<compile_context>
chip_gen: v7x
topology: tpu7x:2x2x1
jax: 0.10.0
libtpu: 0.0.40
codegen_flags: <defaults>
</compile_context>

<pallas_src>
import jax
import jax.numpy as jnp
from jax.experimental import pallas as pl
from jax.experimental.pallas import tpu as pltpu

HIDDEN = 64        # true hidden width of the Critic MLP
H_PAD = 128        # lane-padded hidden width used inside the kernel
LANES = 128        # lane width of the lane-dense output blocks
MAX_TILE_B = 8192  # VMEM-safe on v5e/v6e/v7x (double-buffered x + f32 temps)
MIN_TILE_B = 1024  # lane-dense output repacking needs tile_b % 1024 == 0


def _round_up(n, m):
    return (n + m - 1) // m * m


def _slab_offsets(state_dim):
    """Row offsets of each parameter inside the packed (rows, 128) bf16 slab.

    All section starts are 16-row aligned (bf16 packs 16 sublanes per vreg).
    """
    off_w1 = 0
    off_w2 = _round_up(state_dim, 16)     # w1 section
    off_w3 = off_w2 + H_PAD               # w2 section (128 rows)
    off_b1 = off_w3 + 16
    off_b2 = off_b1 + 16
    off_b3 = off_b2 + 16
    n_rows = off_b3 + 16
    return off_w1, off_w2, off_w3, off_b1, off_b2, off_b3, n_rows


def pack_params(params):
    """Pack (w1,b1,w2,b2,w3,b3) into one zero-padded (rows, 128) bf16 slab."""
    w1, b1, w2, b2, w3, b3 = params
    S, H = w1.shape
    assert H == HIDDEN and w2.shape == (HIDDEN, HIDDEN) and w3.shape == (HIDDEN, 1)
    _, off_w2, off_w3, off_b1, off_b2, off_b3, n_rows = _slab_offsets(S)
    slab = jnp.zeros((n_rows, H_PAD), jnp.float32)
    slab = slab.at[0:S, 0:HIDDEN].set(w1.astype(jnp.float32))
    slab = slab.at[off_w2:off_w2 + HIDDEN, 0:HIDDEN].set(w2.astype(jnp.float32))
    slab = slab.at[off_w3, 0:HIDDEN].set(w3[:, 0].astype(jnp.float32))
    slab = slab.at[off_b1, 0:HIDDEN].set(b1.astype(jnp.float32))
    slab = slab.at[off_b2, 0:HIDDEN].set(b2.astype(jnp.float32))
    # b3 broadcast across all 128 lanes so the kernel adds a full row (no
    # narrow (1,1) slice needed).
    slab = slab.at[off_b3, :].set(b3[0].astype(jnp.float32))
    return slab.astype(jnp.bfloat16)


def critic_kernel(x_ref, p_ref, o_ref):
    tile_b, S = x_ref.shape
    G = o_ref.shape[0]                                     # == tile_b // 128
    _, off_w2, off_w3, off_b1, off_b2, off_b3, _ = _slab_offsets(S)

    x = x_ref[...].astype(jnp.bfloat16)                    # (tile_b, S)
    w1 = p_ref[0:S, :]                                     # (S, 128)  bf16, zero-padded cols
    w2 = p_ref[off_w2:off_w2 + H_PAD, :]                   # (128, 128) bf16, zero-padded
    w3 = p_ref[off_w3:off_w3 + 1, :].astype(jnp.float32)   # (1, 128)
    b1 = p_ref[off_b1:off_b1 + 1, :].astype(jnp.float32)   # (1, 128)
    b2 = p_ref[off_b2:off_b2 + 1, :].astype(jnp.float32)   # (1, 128)
    b3 = p_ref[off_b3:off_b3 + 1, :].astype(jnp.float32)   # (1, 128), every lane == b3

    # bf16 MXU operands, f32 accumulation; tanh kept in f32 (v5e-safe; zero-
    # padded lanes stay zero since tanh(0) = 0 and padded weight lanes are 0).
    h1 = jnp.tanh(jnp.dot(x, w1, preferred_element_type=jnp.float32) + b1)
    h2 = jnp.tanh(
        jnp.dot(h1.astype(jnp.bfloat16), w2, preferred_element_type=jnp.float32) + b2)

    # Final 128 -> 1 projection on the VPU/XLU (an N=1 MXU matmul would waste
    # the whole MXU output width).  Rows are regrouped so the result is a
    # lane-dense (tile_b//128, 128) block: out[g, c] = batch row g*128 + c.
    h2g = h2.reshape(G, LANES, H_PAD)                      # free leading-dim split
    out = jnp.sum(h2g * w3, axis=-1) + b3                  # (G, 128) f32
    o_ref[...] = out.astype(o_ref.dtype)


def critic_forward(x, param_slab, *, tile_b=None, vmem_limit_bytes=48 * 1024 * 1024):
    """x: (B, S) f32 or bf16 (bf16 halves the dominant HBM stream)."""
    B, S = x.shape

    if tile_b is None:
        # Big tiles amortize per-step overhead; cap at 8192 rows (VMEM-safe on
        # all generations incl. v7x's 64 MiB) and aim for >=2 tiles so the
        # "parallel" batch axis can use both v7x TensorCores.
        tile_b = min(MAX_TILE_B, max(MIN_TILE_B, _round_up(pl.cdiv(B, 2), MIN_TILE_B)))
    assert tile_b % MIN_TILE_B == 0, "tile_b must be a multiple of 1024"

    num_tiles = pl.cdiv(B, tile_b)        # ragged last tile; no jnp.pad HBM copy
    rows_out = num_tiles * (tile_b // LANES)

    cost = pl.CostEstimate(
        flops=2 * B * (S * HIDDEN + HIDDEN * HIDDEN + HIDDEN),
        transcendentals=2 * B * HIDDEN,
        bytes_accessed=B * S * x.dtype.itemsize
        + int(param_slab.size) * param_slab.dtype.itemsize
        + B * 4,
    )

    out = pl.pallas_call(
        critic_kernel,
        out_shape=jax.ShapeDtypeStruct((rows_out, LANES), jnp.float32),
        grid=(num_tiles,),
        in_specs=[
            pl.BlockSpec((tile_b, S), lambda i: (i, 0)),         # pipelined x tiles
            pl.BlockSpec(param_slab.shape, lambda i: (0, 0)),    # VMEM-resident weights
        ],
        out_specs=pl.BlockSpec((tile_b // LANES, LANES), lambda i: (i, 0)),
        compiler_params=pltpu.CompilerParams(
            dimension_semantics=("parallel",),
            vmem_limit_bytes=vmem_limit_bytes,
        ),
        cost_estimate=cost,
    )(x, param_slab)

    # Lane-dense (rows_out, 128) -> (B, 1); garbage rows from the ragged last
    # tile are dropped here (rows are independent, so they never mix).
    return out.reshape(-1)[:B].reshape(B, 1)


def init_params(key, state_dim):
    # PyTorch-style uniform init; weights stored as (in, out) so the kernel
    # computes x @ W directly.
    ks = jax.random.split(key, 6)

    def lin(kw, kb, fan_in, fan_out):
        bound = 1.0 / jnp.sqrt(fan_in)
        w = jax.random.uniform(kw, (fan_in, fan_out), jnp.float32, -bound, bound)
        b = jax.random.uniform(kb, (fan_out,), jnp.float32, -bound, bound)
        return w, b

    w1, b1 = lin(ks[0], ks[1], state_dim, HIDDEN)
    w2, b2 = lin(ks[2], ks[3], HIDDEN, HIDDEN)
    w3, b3 = lin(ks[4], ks[5], HIDDEN, 1)
    return (w1, b1, w2, b2, w3, b3)


def critic_reference(x, params):
    w1, b1, w2, b2, w3, b3 = params
    h1 = jnp.tanh(x @ w1 + b1)
    h2 = jnp.tanh(h1 @ w2 + b2)
    return h2 @ w3 + b3


if __name__ == "__main__":
    key = jax.random.PRNGKey(0)
    k_x, k_p = jax.random.split(key)

    # Small shapes; batch=2500 with the auto-chosen tile (2048) exercises a
    # 2-step grid, the ragged-last-tile path (no padding copy) and the
    # lane-dense output repacking.
    batch, state_dim = 2500, 32
    x = jax.random.normal(k_x, (batch, state_dim), jnp.float32)
    params = init_params(k_p, state_dim)
    slab = pack_params(params)

    # bf16 HBM storage for the dominant x stream.
    x_bf16 = x.astype(jnp.bfloat16)

    out = critic_forward(x_bf16, slab)
    out = jax.block_until_ready(out)

    ref = critic_reference(x_bf16.astype(jnp.float32), params)
    assert out.shape == (batch, 1)
    # bf16 matmul operands / bf16-quantized weights vs. the f32 reference.
    assert jnp.allclose(out, ref, atol=5e-2, rtol=5e-2)

    print("KERNEL_OK")
</pallas_src>

<mosaic_0001>
module attributes {stable_mosaic.version = 11 : i64} {
  func.func @critic_kernel(%arg0: i32, %arg1: memref<2048x32xbf16, #tpu.memory_space<vmem>>, %arg2: memref<224x128xbf16, #tpu.memory_space<vmem>>, %arg3: memref<16x128xf32, #tpu.memory_space<vmem>>) attributes {dimension_semantics = [#tpu.dimension_semantics<parallel>], iteration_bounds = array<i64: 2>, scalar_prefetch = 0 : i64, scratch_operands = 0 : i64, tpu.core_type = #tpu.core_type<tc>, window_params = [{transform_indices = @transform_0, window_bounds = array<i64: 2048, 32>}, {pipeline_mode = #tpu.pipeline_mode<synchronous>, transform_indices = @transform_1, window_bounds = array<i64: 224, 128>}, {transform_indices = @transform_2, window_bounds = array<i64: 16, 128>}]} {
    %c0 = arith.constant 0 : index
    %c0_0 = arith.constant 0 : index
    %0 = vector.load %arg1[%c0, %c0_0] : memref<2048x32xbf16, #tpu.memory_space<vmem>>, vector<2048x32xbf16>
    %c0_1 = arith.constant 0 : index
    %c0_2 = arith.constant 0 : index
    %1 = vector.load %arg2[%c0_1, %c0_2] : memref<224x128xbf16, #tpu.memory_space<vmem>>, vector<32x128xbf16>
    %c32 = arith.constant 32 : index
    %c0_3 = arith.constant 0 : index
    %2 = vector.load %arg2[%c32, %c0_3] : memref<224x128xbf16, #tpu.memory_space<vmem>>, vector<128x128xbf16>
    %c160 = arith.constant 160 : index
    %c0_4 = arith.constant 0 : index
    %3 = vector.load %arg2[%c160, %c0_4] : memref<224x128xbf16, #tpu.memory_space<vmem>>, vector<1x128xbf16>
    %4 = arith.extf %3 : vector<1x128xbf16> to vector<1x128xf32>
    %c176 = arith.constant 176 : index
    %c0_5 = arith.constant 0 : index
    %5 = vector.load %arg2[%c176, %c0_5] : memref<224x128xbf16, #tpu.memory_space<vmem>>, vector<1x128xbf16>
    %6 = arith.extf %5 : vector<1x128xbf16> to vector<1x128xf32>
    %c192 = arith.constant 192 : index
    %c0_6 = arith.constant 0 : index
    %7 = vector.load %arg2[%c192, %c0_6] : memref<224x128xbf16, #tpu.memory_space<vmem>>, vector<1x128xbf16>
    %8 = arith.extf %7 : vector<1x128xbf16> to vector<1x128xf32>
    %c208 = arith.constant 208 : index
    %c0_7 = arith.constant 0 : index
    %9 = vector.load %arg2[%c208, %c0_7] : memref<224x128xbf16, #tpu.memory_space<vmem>>, vector<1x128xbf16>
    %10 = arith.extf %9 : vector<1x128xbf16> to vector<1x128xf32>
    %cst = arith.constant dense<0.000000e+00> : vector<2048x128xf32>
    %11 = tpu.matmul %0, %1, %cst {dimension_numbers = #tpu.dot_dimension_numbers<[1], [0], [0], [1], [0, 0, 1, 1], [], []>} : vector<2048x32xbf16>, vector<32x128xbf16>, vector<2048x128xf32> -> vector<2048x128xf32>
    %12 = vector.broadcast %6 : vector<1x128xf32> to vector<2048x128xf32>
    %13 = arith.addf %11, %12 : vector<2048x128xf32>
    %14 = math.tanh %13 : vector<2048x128xf32>
    %15 = arith.truncf %14 : vector<2048x128xf32> to vector<2048x128xbf16>
    %cst_8 = arith.constant dense<0.000000e+00> : vector<2048x128xf32>
    %16 = tpu.matmul %15, %2, %cst_8 {dimension_numbers = #tpu.dot_dimension_numbers<[1], [0], [0], [1], [0, 0, 1, 1], [], []>} : vector<2048x128xbf16>, vector<128x128xbf16>, vector<2048x128xf32> -> vector<2048x128xf32>
    %17 = vector.broadcast %8 : vector<1x128xf32> to vector<2048x128xf32>
    %18 = arith.addf %16, %17 : vector<2048x128xf32>
    %19 = math.tanh %18 : vector<2048x128xf32>
    %20 = vector.shape_cast %19 : vector<2048x128xf32> to vector<16x128x128xf32>
    %21 = vector.shape_cast %4 : vector<1x128xf32> to vector<1x1x128xf32>
    %22 = vector.broadcast %21 : vector<1x1x128xf32> to vector<16x128x128xf32>
    %23 = arith.mulf %20, %22 : vector<16x128x128xf32>
    %cst_9 = arith.constant dense<0.000000e+00> : vector<16x128xf32>
    %24 = vector.multi_reduction <add>, %23, %cst_9 [2] : vector<16x128x128xf32> to vector<16x128xf32>
    %25 = vector.broadcast %10 : vector<1x128xf32> to vector<16x128xf32>
    %26 = arith.addf %24, %25 : vector<16x128xf32>
    %c0_10 = arith.constant 0 : index
    %c0_11 = arith.constant 0 : index
    %27 = vector.load %arg3[%c0_10, %c0_11] : memref<16x128xf32, #tpu.memory_space<vmem>>, vector<16x128xf32>
    tpu.vector_store %arg3[%c0_10, %c0_11], %26 {strides = array<i32>} : memref<16x128xf32, #tpu.memory_space<vmem>>, vector<16x128xf32>,
    return
  }
  func.func @transform_0(%arg0: i32) -> (i32, i32) {
    %c0_i32 = arith.constant 0 : i32
    %c0_i32_0 = arith.constant 0 : i32
    return %arg0, %c0_i32 : i32, i32
  }
  func.func @transform_1(%arg0: i32) -> (i32, i32) {
    %c0_i32 = arith.constant 0 : i32
    %c0_i32_0 = arith.constant 0 : i32
    %c0_i32_1 = arith.constant 0 : i32
    return %c0_i32, %c0_i32_0 : i32, i32
  }
  func.func @transform_2(%arg0: i32) -> (i32, i32) {
    %c0_i32 = arith.constant 0 : i32
    %c0_i32_0 = arith.constant 0 : i32
    return %arg0, %c0_i32 : i32, i32
  }
}

</mosaic_0001>

<bundles_post_ra>
// kernel: tpu_custom_call.1
= control target key start
LH: loop header
LB: loop body
LE: loop exit
PB: predicated region body
PF: predicated region fallthrough
CT: control target
= control target key end

     0   :  { %7 = vsyncpa [#allocation3], 0  ;;  %s14594_s0 = inlined_call_operand.vmem [shape: bf16[2500,32], index: 0, kind: input, shape index: {}]   ;;  %s14595_s1 = inlined_call_operand.vmem [shape: bf16[224,128], index: 1, kind: input, shape index: {}]   ;;  %s14596_s2 = inlined_call_operand.hbm [shape: f32[32,128], index: 2, kind: output, shape index: {}]  }
   0x1   :  { %9 = vsyncpa [#allocation3 + $0x1], 0  ;;  %s10212_s9 = smov 0   ;;  %s10214_s10 = smov 0  }
   0x2   :  { %s10216_s11 = smov 0   ;;  %s10218_s12 = smov 0  }
   0x3 LB: > { %s7829_s13 = sadd.s32 4294967295, %s10191_s12   ;;  %s7830_s14 = sadd.s32 4294967294, %s10191_s12   ;;  %s10191_s12 = sphi %s10218_s12, %s15655_s12   ;;  %s10187_s11 = sphi %s10216_s11, %s15654_s11   ;;  %s10183_s10 = sphi %s10214_s10, %s15653_s10   ;;  %s10179_s9 = sphi %s10212_s9, %s15652_s9  }
   0x4   : > { %s10235_s15 = sadd.s32 1, %s10191_s12   ;;  %s69_s16 = sadd.s32 1, %s10187_s11 }
   0x5   : > { %s66_s17 = ssub.s32 %s10191_s12, %s10235_s15  ;;  %p79_p0 = scmp.ne.s32.totalorder %s10187_s11, %s10183_s10 }
   0x6   : > { %p67_p1 = scmp.eq.s32.totalorder %s66_s17, 0  ;;  %p80_p2 = scmp.eq.s32.totalorder %s7829_s13, 1 }
   0x7   : > { %p85_p3 = scmp.ne.s32.totalorder %s10183_s10, %s10179_s9  ;;  %p86_p4 = scmp.eq.s32.totalorder %s7830_s14, 1 }
   0x8   : > { %s10245_s18 = scalar_select %p67_p1, %s10187_s11, %s69_s16  }
   0x9   : > { %p10247_p5 = por %p80_p2, %p79_p0  ;;  %p10251_p6 = por %p86_p4, %p85_p3 }
   0xa   : > { %p7833_p7 = scmp.ge.s32.totalorder %s10191_s12, 1  ;;  %p124_p8 = scmp.lt.s32.totalorder %s10191_s12, 3 }
   0xc   : > { %p125_p9 = pnand %p7833_p7, %p124_p8 }
   0xe   : > { %128 = sbr.rel (%p125_p9) target bundleno = 3751 (0xea7), region = 28 }
  0x15   : > { %v8967_v0 = vld [vmem:[%s14595_s1] sm:$0xff]   ;;  %s10260_s23 = sshll.u32 %s7829_s13, 8  ;;  %v8968_v1 = vld [vmem:[%s14595_s1 + $0x8] sm:$0xff]   ;;  %vm1106_vm0 = vcmask 261120   ;;  %v9022_v23 = vld [vmem:[%s14595_s1 + $0x10] sm:$0xff]   ;;  %v14597_v62 = vlaneseq  ;;  %vm6444_vm1 = vcmask 130112  }
  0x16   : > { %p155_p10 = scmp.lt.s32.totalorder %s10260_s23, 312  ;;  %8375 = vmatprep.subr.bf16.mxu0 %v8967_v0  ;;  %8907 = vmatprep.subr.bf16.mxu1 %v9022_v23  ;;  %v9024_v26 = vld [vmem:[%s14595_s1 + $0x18] sm:$0xff]   ;;  %v9026_v29 = vld [vmem:[%s14595_s1 + $0x20] sm:$0xff]   ;;  %v9028_v30 = vld [vmem:[%s14595_s1 + $0x28] sm:$0xff]   ;;  %vm6451_vm2 = vcmask 195712   ;;  %vm6458_vm3 = vcmask 261312   ;;  %s14542_s22 = scalar_lea.hbm %s14596_s2, %s10260_s23 }
  0x17   : > { %8376 = vmatpush3.bf16.msra.mxu0 %v8967_v0  ;;  %8915 = vmatpush3.bf16.msra.mxu1 %v9022_v23  ;;  %v9030_v33 = vld [vmem:[%s14595_s1 + $0x30] sm:$0xff]   ;;  %v9032_v34 = vld [vmem:[%s14595_s1 + $0x38] sm:$0xff]   ;;  %v9034_v37 = vld [vmem:[%s14595_s1 + $0x40] sm:$0xff]   ;;  %v10402_v0 = vshrl.u32 %v14597_v62, 7  ;;  %vm6465_vm4 = vcmask 326912   ;;  %vm6472_vm5 = vcmask 392512  }
  0x18   : > { %s156_s26 = scalar_select %p155_p10, %s10260_s23, 312  ;;  %8377 = vmatprep.subr.bf16.mxu0 %v8968_v1  ;;  %8908 = vmatprep.subr.bf16.mxu1 %v9024_v26  ;;  %v9036_v38 = vld [vmem:[%s14595_s1 + $0x48] sm:$0xff]   ;;  %vm6479_vm6 = vcmask 458112   ;;  %vm6486_vm7 = vcmask 523712   ;;  %vm6493_vm8 = vcmask 589312   ;;  %vm6500_vm9 = vcmask 654912  }
  0x19   : > { %14664 = vst [vmem:[#allocation5_spill] sm:$0xff] %v10402_v0  ;;  %vm14650_vm10 = vcmask 720512   ;;  %vm14649_vm11 = vcmask 786112   ;;  %vm14648_vm12 = vcmask 851712   ;;  %vm14651_vm13 = vcmask 917312   ;;  %s10194_s23 = smov [#allocation2]  }
  0x1a   : > { %s7836_s27 = sshll.u32 %s156_s26, 2  ;;  %vm6535_vm14 = vcmask 982912   ;;  %vm6542_vm15 = vcmask 1048512   ;;  %s10133_s26 = sshll.u32 %s10194_s23, 4  ;;  %s10134_s26 = int_to_ptr.vmem [resolvable:$false] %s10133_s26 }
  0x1b   : > { %s10270_s30 = scalar_lea.vmem %s14594_s0, %s7836_s27  ;;  %8378 = vmatpush3.bf16.msra.mxu0 %v8968_v1  ;;  %8916 = vmatpush3.bf16.msra.mxu1 %v9024_v26  ;;  %v444_v1 = vld [vmem:[%s14595_s1 + $0x58] sm:$0x1]  ;;  %s10135_s27 = scalar_lea.vmem %s10134_s26, 512 }
  0x1c   : > { %v8969_v2 = vld [vmem:[%s10270_s30] sm:$0xff]   ;;  %v8970_v3 = vld [vmem:[%s10270_s30 + $0x8] sm:$0xff]   ;;  %v8971_v4 = vld [vmem:[%s10270_s30 + $0x10] sm:$0xff]   ;;  %8635 = vmatprep.subr.bf16.mxu0 %v9022_v23  ;;  %8909 = vmatprep.subr.bf16.mxu1 %v9026_v29 }
  0x1d   : > { %8379 = vmatprep.mubr.msk.bf16.mxu0 %vm1106_vm0, %v8969_v2  ;;  %v8972_v5 = vld [vmem:[%s10270_s30 + $0x18] sm:$0xff]   ;;  %v8973_v6 = vld [vmem:[%s10270_s30 + $0x20] sm:$0xff]   ;;  %v8974_v7 = vld [vmem:[%s10270_s30 + $0x28] sm:$0xff]  }
  0x1e   : > { %8380 = vmatmul.mubr.msk.bf16.vlgmr.msra.gmra.mrb[0].mxu0 %vm1106_vm0, %v8970_v3  ;;  %v8975_v8 = vld [vmem:[%s10270_s30 + $0x30] sm:$0xff]   ;;  %v8976_v9 = vld [vmem:[%s10270_s30 + $0x38] sm:$0xff]   ;;  %v8977_v10 = vld [vmem:[%s10270_s30 + $0x40] sm:$0xff]   ;;  %v445_v3 = vunpack.c.l.bf16 %v444_v1 }
  0x1f   : > { %8383 = vmatprep.mubr.msk.bf16.mxu0 %vm1106_vm0, %v8971_v4  ;;  %v8978_v11 = vld [vmem:[%s10270_s30 + $0x48] sm:$0xff]   ;;  %v8979_v12 = vld [vmem:[%s10270_s30 + $0x50] sm:$0xff]   ;;  %v8980_v13 = vld [vmem:[%s10270_s30 + $0x58] sm:$0xff]   ;;  %8636 = vmatpush3.bf16.msra.mxu0 %v9022_v23  ;;  %v10410_v4 = vsub.s32 0, %v10402_v0 }
  0x20   : > { %v8981_v14 = vld [vmem:[%s10270_s30 + $0x60] sm:$0xff]   ;;  %v8982_v15 = vld [vmem:[%s10270_s30 + $0x68] sm:$0xff]   ;;  %v8983_v16 = vld [vmem:[%s10270_s30 + $0x70] sm:$0xff]   ;;  %8637 = vmatprep.subr.bf16.mxu0 %v9024_v26  ;;  %8917 = vmatpush3.bf16.msra.mxu1 %v9026_v29 }
  0x21   : > { %v8984_v17 = vld [vmem:[%s10270_s30 + $0x78] sm:$0xff]   ;;  %v8985_v18 = vld [vmem:[%s10270_s30 + $0x80] sm:$0xff]   ;;  %v8986_v19 = vld [vmem:[%s10270_s30 + $0x88] sm:$0xff]   ;;  %8910 = vmatprep.subr.bf16.mxu1 %v9028_v30 }
  0x22   : > { %v8987_v20 = vld [vmem:[%s10270_s30 + $0x90] sm:$0xff]   ;;  %v8988_v21 = vld [vmem:[%s10270_s30 + $0x98] sm:$0xff]   ;;  %v8989_v22 = vld [vmem:[%s10270_s30 + $0xa0] sm:$0xff]  }
  0x23   : > { %v8990_v24 = vld [vmem:[%s10270_s30 + $0xa8] sm:$0xff]   ;;  %v8991_v25 = vld [vmem:[%s10270_s30 + $0xb0] sm:$0xff]   ;;  %v8992_v27 = vld [vmem:[%s10270_s30 + $0xb8] sm:$0xff]   ;;  %8638 = vmatpush3.bf16.msra.mxu0 %v9024_v26 }
  0x24   : > { %v8993_v28 = vld [vmem:[%s10270_s30 + $0xc0] sm:$0xff]   ;;  %8639 = vmatprep.subr.bf16.mxu0 %v9026_v29  ;;  %v8994_v31 = vld [vmem:[%s10270_s30 + $0xc8] sm:$0xff]   ;;  %8918 = vmatpush3.bf16.msra.mxu1 %v9028_v30  ;;  %v8995_v32 = vld [vmem:[%s10270_s30 + $0xd0] sm:$0xff]  }
  0x25   : > { %8911 = vmatprep.subr.bf16.mxu1 %v9030_v33  ;;  %v8996_v35 = vld [vmem:[%s10270_s30 + $0xd8] sm:$0xff]   ;;  %v8997_v36 = vld [vmem:[%s10270_s30 + $0xe0] sm:$0xff]   ;;  %v8998_v39 = vld [vmem:[%s10270_s30 + $0xe8] sm:$0xff]  }
  0x26   : > { %8384 = vmatmul.mubr.msk.bf16.gmra.mrb[4].mxu0 %vm1106_vm0, %v8972_v5  ;;  %v8999_v40 = vld [vmem:[%s10270_s30 + $0xf0] sm:$0xff]   ;;  %v9000_v41 = vld [vmem:[%s10270_s30 + $0xf8] sm:$0xff]   ;;  %v9001_v42 = vld [vmem:[%s10270_s30 + $0x100] sm:$0xff]  }
  0x27   : > { %8387 = vmatprep.mubr.msk.bf16.mxu0 %vm1106_vm0, %v8973_v6  ;;  %8640 = vmatpush3.bf16.msra.mxu0 %v9026_v29  ;;  %v9002_v43 = vld [vmem:[%s10270_s30 + $0x108] sm:$0xff]   ;;  %v9003_v44 = vld [vmem:[%s10270_s30 + $0x110] sm:$0xff]   ;;  %v9004_v45 = vld [vmem:[%s10270_s30 + $0x118] sm:$0xff]   ;;  %v10415_v6 = vrot.slane %v445_v3, %v10410_v4 }
  0x28   : > { %8641 = vmatprep.subr.bf16.mxu0 %v9028_v30  ;;  %8919 = vmatpush3.bf16.msra.mxu1 %v9030_v33  ;;  %v9005_v46 = vld [vmem:[%s10270_s30 + $0x120] sm:$0xff]   ;;  %v9006_v47 = vld [vmem:[%s10270_s30 + $0x128] sm:$0xff]   ;;  %v9007_v48 = vld [vmem:[%s10270_s30 + $0x130] sm:$0xff]  }
  0x29   : > { %8912 = vmatprep.subr.bf16.mxu1 %v9032_v34  ;;  %v9008_v49 = vld [vmem:[%s10270_s30 + $0x138] sm:$0xff]   ;;  %v9009_v50 = vld [vmem:[%s10270_s30 + $0x140] sm:$0xff]   ;;  %v9010_v51 = vld [vmem:[%s10270_s30 + $0x148] sm:$0xff]  }
  0x2a   : > { %v9011_v52 = vld [vmem:[%s10270_s30 + $0x150] sm:$0xff]   ;;  %v9012_v53 = vld [vmem:[%s10270_s30 + $0x158] sm:$0xff]   ;;  %v9013_v54 = vld [vmem:[%s10270_s30 + $0x160] sm:$0xff]  }
  0x2b   : > { %8642 = vmatpush3.bf16.msra.mxu0 %v9028_v30  ;;  %v9014_v55 = vld [vmem:[%s10270_s30 + $0x168] sm:$0xff]   ;;  %v9015_v56 = vld [vmem:[%s10270_s30 + $0x170] sm:$0xff]   ;;  %v9016_v57 = vld [vmem:[%s10270_s30 + $0x178] sm:$0xff]  }
  0x2c   : > { %8643 = vmatprep.subr.bf16.mxu0 %v9030_v33  ;;  %8920 = vmatpush3.bf16.msra.mxu1 %v9032_v34  ;;  %v9017_v58 = vld [vmem:[%s10270_s30 + $0x180] sm:$0xff]   ;;  %v9018_v59 = vld [vmem:[%s10270_s30 + $0x188] sm:$0xff]   ;;  %v9019_v60 = vld [vmem:[%s10270_s30 + $0x190] sm:$0xff]  }
  0x2d   : > { %8913 = vmatprep.subr.bf16.mxu1 %v9034_v37  ;;  %v9020_v61 = vld [vmem:[%s10270_s30 + $0x198] sm:$0xff]   ;;  %v9021_v63 = vld [vmem:[%s10270_s30 + $0x1a0] sm:$0xff]   ;;  %v9023_v2 = vld [vmem:[%s10270_s30 + $0x1a8] sm:$0xff]  }
  0x2e   : > { %8388 = vmatmul.mubr.msk.bf16.gmra.mrb[8].mxu0 %vm1106_vm0, %v8974_v7  ;;  %v9025_v5 = vld [vmem:[%s10270_s30 + $0x1b0] sm:$0xff]  }
  0x2f   : > { %8391 = vmatprep.mubr.msk.bf16.mxu0 %vm1106_vm0, %v8975_v8  ;;  %8644 = vmatpush3.bf16.msra.mxu0 %v9030_v33  ;;  %v9033_v23 = vld [vmem:[%s10270_s30 + $0x1d0] sm:$0xff]  }
  0x30   : > { %8645 = vmatprep.subr.bf16.mxu0 %v9032_v34  ;;  %8921 = vmatpush3.bf16.msra.mxu1 %v9034_v37 }
  0x31   : > { %8914 = vmatprep.subr.bf16.mxu1 %v9036_v38 }
  0x33   : > { %8646 = vmatpush3.bf16.msra.mxu0 %v9032_v34 }
  0x34   : > { %8647 = vmatprep.subr.bf16.mxu0 %v9034_v37  ;;  %8922 = vmatpush3.bf16.msra.mxu1 %v9036_v38 }
  0x36   : > { %8392 = vmatmul.mubr.msk.bf16.gmra.mrb[12].mxu0 %vm1106_vm0, %v8976_v9 }
  0x37   : > { %8395 = vmatprep.mubr.msk.bf16.mxu0 %vm1106_vm0, %v8977_v10  ;;  %8648 = vmatpush3.bf16.msra.mxu0 %v9034_v37  ;;  %v9027_v10 = vld [vmem:[%s10270_s30 + $0x1b8] sm:$0xff]  }
  0x38   : > { %8649 = vmatprep.subr.bf16.mxu0 %v9036_v38 }
  0x3b   : > { %8650 = vmatpush3.bf16.msra.mxu0 %v9036_v38 }
  0x3e   : > { %8396 = vmatmul.mubr.msk.bf16.gmra.mrb[16].mxu0 %vm1106_vm0, %v8978_v11 }
  0x3f   : > { %8399 = vmatprep.mubr.msk.bf16.mxu0 %vm1106_vm0, %v8979_v12 }
  0x46   : > { %8400 = vmatmul.mubr.msk.bf16.gmra.mrb[20].mxu0 %vm1106_vm0, %v8980_v13  ;;  %v9029_v13 = vld [vmem:[%s10270_s30 + $0x1c0] sm:$0xff]  }
  0x47   : > { %8403 = vmatprep.mubr.msk.bf16.mxu0 %vm1106_vm0, %v8981_v14 }
  0x4e   : > { %8404 = vmatmul.mubr.msk.bf16.gmra.mrb[24].mxu0 %vm1106_vm0, %v8982_v15 }
  0x4f   : > { %8407 = vmatprep.mubr.msk.bf16.mxu0 %vm1106_vm0, %v8983_v16 }
  0x56   : > { %8408 = vmatmul.mubr.msk.bf16.gmra.mrb[28].mxu0 %vm1106_vm0, %v8984_v17 }
  0x57   : > { %8411 = vmatprep.mubr.msk.bf16.mxu0 %vm1106_vm0, %v8985_v18 }
  0x5e   : > { %8412 = vmatmul.mubr.msk.bf16.gmra.mrb[32].mxu0 %vm1106_vm0, %v8986_v19 }
  0x5f   : > { %8415 = vmatprep.mubr.msk.bf16.mxu0 %vm1106_vm0, %v8987_v20  ;;  %v9031_v20 = vld [vmem:[%s10270_s30 + $0x1c8] sm:$0xff]  }
  0x66   : > { %8416 = vmatmul.mubr.msk.bf16.gmra.mrb[36].mxu0 %vm1106_vm0, %v8988_v21 }
  0x67   : > { %8419 = vmatprep.mubr.msk.bf16.mxu0 %vm1106_vm0, %v8989_v22 }
  0x6e   : > { %8420 = vmatmul.mubr.msk.bf16.gmra.mrb[40].mxu0 %vm1106_vm0, %v8990_v24 }
  0x6f   : > { %8423 = vmatprep.mubr.msk.bf16.mxu0 %vm1106_vm0, %v8991_v25 }
  0x76   : > { %8424 = vmatmul.mubr.msk.bf16.gmra.mrb[44].mxu0 %vm1106_vm0, %v8992_v27 }
  0x77   : > { %8427 = vmatprep.mubr.msk.bf16.mxu0 %vm1106_vm0, %v8993_v28 }
  0x7e   : > { %8428 = vmatmul.mubr.msk.bf16.gmra.mrb[48].mxu0 %vm1106_vm0, %v8994_v31 }
  0x7f   : > { %8431 = vmatprep.mubr.msk.bf16.mxu0 %vm1106_vm0, %v8995_v32 }
  0x86   : > { %8432 = vmatmul.mubr.msk.bf16.gmra.mrb[52].mxu0 %vm1106_vm0, %v8996_v35  ;;  %v9035_v35 = vld [vmem:[%s10270_s30 + $0x1d8] sm:$0xff]  }
  0x87   : > { %8435 = vmatprep.mubr.msk.bf16.mxu0 %vm1106_vm0, %v8997_v36 }
  0x8e   : > { %8436 = vmatmul.mubr.msk.bf16.gmra.mrb[56].mxu0 %vm1106_vm0, %v8998_v39  ;;  %v9037_v39 = vld [vmem:[%s10270_s30 + $0x1e0] sm:$0xff]  }
  0x8f   : > { %8439 = vmatprep.mubr.msk.bf16.mxu0 %vm1106_vm0, %v8999_v40 }
  0x96   : > { %8440 = vmatmul.mubr.msk.bf16.gmra.mrb[60].mxu0 %vm1106_vm0, %v9000_v41 }
  0x97   : > { %8443 = vmatprep.mubr.msk.bf16.mxu0 %vm1106_vm0, %v9001_v42 }
  0x9e   : > { %8444 = vmatmul.mubr.msk.bf16.gmra.mrb[64].mxu0 %vm1106_vm0, %v9002_v43 }
  0x9f   : > { %8447 = vmatprep.mubr.msk.bf16.mxu0 %vm1106_vm0, %v9003_v44 }
  0xa6   : > { %8448 = vmatmul.mubr.msk.bf16.gmra.mrb[68].mxu0 %vm1106_vm0, %v9004_v45 }
  0xa7   : > { %8451 = vmatprep.mubr.msk.bf16.mxu0 %vm1106_vm0, %v9005_v46 }
  0xae   : > { %8452 = vmatmul.mubr.msk.bf16.gmra.mrb[72].mxu0 %vm1106_vm0, %v9006_v47 }
  0xaf   : > { %8455 = vmatprep.mubr.msk.bf16.mxu0 %vm1106_vm0, %v9007_v48 }
  0xb6   : > { %8456 = vmatmul.mubr.msk.bf16.gmra.mrb[76].mxu0 %vm1106_vm0, %v9008_v49 }
  0xb7   : > { %8459 = vmatprep.mubr.msk.bf16.mxu0 %vm1106_vm0, %v9009_v50 }
  0xbe   : > { %8460 = vmatmul.mubr.msk.bf16.gmra.mrb[80].mxu0 %vm1106_vm0, %v9010_v51 }
  0xbf   : > { %8463 = vmatprep.mubr.msk.bf16.mxu0 %vm1106_vm0, %v9011_v52  ;;  %v9038_v52 = vld [vmem:[%s10270_s30 + $0x1e8] sm:$0xff]  }
  0xc6   : > { %8464 = vmatmul.mubr.msk.bf16.gmra.mrb[84].mxu0 %vm1106_vm0, %v9012_v53 }
  0xc7   : > { %8467 = vmatprep.mubr.msk.bf16.mxu0 %vm1106_vm0, %v9013_v54 }
  0xce   : > { %8468 = vmatmul.mubr.msk.bf16.gmra.mrb[88].mxu0 %vm1106_vm0, %v9014_v55  ;;  %v9039_v55 = vld [vmem:[%s10270_s30 + $0x1f0] sm:$0xff]  }
  0xcf   : > { %8471 = vmatprep.mubr.msk.bf16.mxu0 %vm1106_vm0, %v9015_v56 }
  0xd6   : > { %8472 = vmatmul.mubr.msk.bf16.gmra.mrb[92].mxu0 %vm1106_vm0, %v9016_v57 }
  0xd7   : > { %8475 = vmatprep.mubr.msk.bf16.mxu0 %vm1106_vm0, %v9017_v58 }
  0xde   : > { %8476 = vmatmul.mubr.msk.bf16.gmra.mrb[96].mxu0 %vm1106_vm0, %v9018_v59 }
  0xdf   : > { %8479 = vmatprep.mubr.msk.bf16.mxu0 %vm1106_vm0, %v9019_v60 }
  0xe6   : > { %8480 = vmatmul.mubr.msk.bf16.gmra.mrb[100].mxu0 %vm1106_vm0, %v9020_v61 }
  0xe7   : > { %8483 = vmatprep.mubr.msk.bf16.mxu0 %vm1106_vm0, %v9021_v63 }
  0xee   : > { %8484 = vmatmul.mubr.msk.bf16.gmra.mrb[104].mxu0 %vm1106_vm0, %v9023_v2 }
  0xef   : > { %8487 = vmatprep.mubr.msk.bf16.mxu0 %vm1106_vm0, %v9025_v5 }
  0xf1   : > { %v8381_v7 = vpop.f32.mrb[0].mxu0 }
  0xf2   : > { %v1534_v8 = vadd.f32 %v8381_v7, %v10415_v6  ;;  %v1525_v9 = vpop.f32.mrb[1].mxu0 }
  0xf3   : > { %v1526_v11 = vadd.f32 %v1525_v9, %v10415_v6  ;;  %v8382_v12 = vpop.f32.mrb[2].mxu0 }
  0xf4   : > { %9105 = vtanh.f32 %v1534_v8  ;;  %v1537_v14 = vadd.f32 %v8382_v12, %v10415_v6  ;;  %v1528_v15 = vpop.f32.mrb[3].mxu0  ;;  %v9040_v8 = vld [vmem:[%s10270_s30 + $0x1f8] sm:$0xff]  }
  0xf5   : > { %9107 = vtanh.f32 %v1526_v11  ;;  %v1529_v16 = vadd.f32 %v1528_v15, %v10415_v6  ;;  %v9041_v11 = vld [vmem:[%s10270_s30 + $0x200] sm:$0xff]  }
  0xf6   : > { %9109 = vtanh.f32 %v1537_v14  ;;  %8488 = vmatmul.mubr.msk.bf16.gmra.mrb[108].mxu0 %vm1106_vm0, %v9027_v10 }
  0xf7   : > { %9111 = vtanh.f32 %v1529_v16  ;;  %8491 = vmatprep.mubr.msk.bf16.mxu0 %vm1106_vm0, %v9029_v13 }
  0xf9   : > { %v8385_v17 = vpop.f32.mrb[4].mxu0 }
  0xfa   : > { %v1550_v18 = vadd.f32 %v8385_v17, %v10415_v6  ;;  %v1541_v19 = vpop.f32.mrb[5].mxu0 }
  0xfb   : > { %v1542_v21 = vadd.f32 %v1541_v19, %v10415_v6  ;;  %v8386_v22 = vpop.f32.mrb[6].mxu0 }
  0xfc   : > { %9113 = vtanh.f32 %v1550_v18  ;;  %v1553_v24 = vadd.f32 %v8386_v22, %v10415_v6  ;;  %v1544_v25 = vpop.f32.mrb[7].mxu0 }
  0xfd   : > { %9115 = vtanh.f32 %v1542_v21  ;;  %v1545_v26 = vadd.f32 %v1544_v25, %v10415_v6 }
  0xfe   : > { %v10432_v27 = vpop.eup %9105  ;;  %9117 = vtanh.f32 %v1553_v24  ;;  %8492 = vmatmul.mubr.msk.bf16.gmra.mrb[112].mxu0 %vm1106_vm0, %v9031_v20  ;;  %v9042_v24 = vld [vmem:[%s10270_s30 + $0x208] sm:$0xff]  }
  0xff   : > { %v10435_v28 = vpop.eup %9107  ;;  %9119 = vtanh.f32 %v1545_v26  ;;  %8495 = vmatprep.mubr.msk.bf16.mxu0 %vm1106_vm0, %v9033_v23 }
 0x100   : > { %v10438_v29 = vpop.eup %9109 }
 0x101   : > { %v10440_v30 = vpop.eup %9111  ;;  %v8389_v32 = vpop.f32.mrb[8].mxu0 }
 0x102   : > { %v1566_v33 = vadd.f32 %v8389_v32, %v10415_v6  ;;  %v1557_v34 = vpop.f32.mrb[9].mxu0  ;;  %v9043_v32 = vld [vmem:[%s10270_s30 + $0x210] sm:$0xff]  }
 0x103   : > { %v1558_v37 = vadd.f32 %v1557_v34, %v10415_v6  ;;  %v8390_v38 = vpop.f32.mrb[10].mxu0 }
 0x104   : > { %9121 = vtanh.f32 %v1566_v33  ;;  %v1569_v40 = vadd.f32 %v8390_v38, %v10415_v6  ;;  %v1560_v41 = vpop.f32.mrb[11].mxu0 }
 0x105   : > { %9123 = vtanh.f32 %v1558_v37  ;;  %v1561_v42 = vadd.f32 %v1560_v41, %v10415_v6 }
 0x106   : > { %v9114_v43 = vpop.eup %9113  ;;  %9125 = vtanh.f32 %v1569_v40  ;;  %8496 = vmatmul.mubr.msk.bf16.gmra.mrb[116].mxu0 %vm1106_vm0, %v9035_v35 }
 0x107   : > { %v9116_v44 = vpop.eup %9115  ;;  %9127 = vtanh.f32 %v1561_v42  ;;  %8499 = vmatprep.mubr.msk.bf16.mxu0 %vm1106_vm0, %v9037_v39 }
 0x108   : > { %v9118_v45 = vpop.eup %9117 }
 0x109   : > { %v9120_v46 = vpop.eup %9119  ;;  %v8393_v47 = vpop.f32.mrb[12].mxu0  ;;  %v2807_v48 = vpack.c.bf16 %v9118_v45, %v9114_v43 }
 0x10a   : > { %v1582_v49 = vadd.f32 %v8393_v47, %v10415_v6  ;;  %v1573_v50 = vpop.f32.mrb[13].mxu0  ;;  %v2806_v51 = vpack.c.bf16 %v9120_v46, %v9116_v44  ;;  %v9044_v46 = vld [vmem:[%s10270_s30 + $0x218] sm:$0xff]  }
 0x10b   : > { %v1574_v53 = vadd.f32 %v1573_v50, %v10415_v6  ;;  %v8394_v54 = vpop.f32.mrb[14].mxu0 }
 0x10c   : > { %9129 = vtanh.f32 %v1582_v49  ;;  %v1585_v56 = vadd.f32 %v8394_v54, %v10415_v6  ;;  %v1576_v57 = vpop.f32.mrb[15].mxu0  ;;  %8655 = vmatprep.mubr.bf16.mxu1 %v2806_v51  ;;  %v9045_v49 = vld [vmem:[%s10270_s30 + $0x220] sm:$0xff]  }
 0x10d   : > { %9131 = vtanh.f32 %v1574_v53  ;;  %v1577_v58 = vadd.f32 %v1576_v57, %v10415_v6  ;;  %8656 = vmatmul.mubr.bf16.vlgmr.msra.gmra.mrb[0].mxu1 %v2807_v48 }
 0x10e   : > { %v9122_v59 = vpop.eup %9121  ;;  %9133 = vtanh.f32 %v1585_v56  ;;  %8500 = vmatmul.mubr.msk.bf16.gmra.mrb[120].mxu0 %vm1106_vm0, %v9038_v52 }
 0x10f   : > { %v9124_v60 = vpop.eup %9123  ;;  %9135 = vtanh.f32 %v1577_v58  ;;  %8503 = vmatprep.mubr.msk.bf16.mxu0 %vm1106_vm0, %v9039_v55  ;;  %v448_v55 = vld [vmem:[%s14595_s1 + $0x68] sm:$0x1] }
 0x110   : > { %v9126_v61 = vpop.eup %9125  ;;  %v449_v57 = vunpack.c.l.bf16 %v448_v55 }
 0x111   : > { %v9128_v63 = vpop.eup %9127  ;;  %v8397_v1 = vpop.f32.mrb[16].mxu0  ;;  %v2809_v2 = vpack.c.bf16 %v9126_v61, %v9122_v59 }
 0x112   : > { %v1598_v3 = vadd.f32 %v8397_v1, %v10415_v6  ;;  %v1589_v5 = vpop.f32.mrb[17].mxu0  ;;  %v2808_v7 = vpack.c.bf16 %v9128_v63, %v9124_v60 }
 0x113   : > { %v1590_v9 = vadd.f32 %v1589_v5, %v10415_v6  ;;  %v8398_v10 = vpop.f32.mrb[18].mxu0 }
 0x114   : > { %9137 = vtanh.f32 %v1598_v3  ;;  %v1601_v12 = vadd.f32 %v8398_v10, %v10415_v6  ;;  %v1592_v13 = vpop.f32.mrb[19].mxu0  ;;  %8659 = vmatprep.mubr.bf16.mxu1 %v2808_v7  ;;  %v10492_v3 = vrot.slane %v449_v57, %v10410_v4 }
 0x115   : > { %9139 = vtanh.f32 %v1590_v9  ;;  %v1593_v14 = vadd.f32 %v1592_v13, %v10415_v6  ;;  %8660 = vmatmul.mubr.bf16.gmra.mrb[4].mxu1 %v2809_v2  ;;  %v9046_v2 = vld [vmem:[%s10270_s30 + $0x228] sm:$0xff]  }
 0x116   : > { %v9130_v15 = vpop.eup %9129  ;;  %9141 = vtanh.f32 %v1601_v12  ;;  %8504 = vmatmul.mubr.msk.bf16.gmra.mrb[124].mxu0 %vm1106_vm0, %v9040_v8  ;;  %v9047_v8 = vld [vmem:[%s10270_s30 + $0x230] sm:$0xff]   ;;  %5079 = vbcast.lane.b32.xlu1 %v10492_v3, 264 }
 0x117   : > { %v9132_v16 = vpop.eup %9131  ;;  %9143 = vtanh.f32 %v1593_v14  ;;  %8507 = vmatprep.mubr.msk.bf16.mxu0 %vm1106_vm0, %v9041_v11  ;;  %5075 = vbcast.lane.b32.xlu0 %v10492_v3, 256 }
 0x118   : > { %v9134_v17 = vpop.eup %9133 }
 0x119   : > { %v9136_v18 = vpop.eup %9135  ;;  %v8401_v19 = vpop.f32.mrb[20].mxu0  ;;  %v2811_v20 = vpack.c.bf16 %v9134_v17, %v9130_v15 }
 0x11a   : > { %v1614_v21 = vadd.f32 %v8401_v19, %v10415_v6  ;;  %v1605_v22 = vpop.f32.mrb[21].mxu0  ;;  %v2810_v23 = vpack.c.bf16 %v9136_v18, %v9132_v16  ;;  %5083 = vbcast.lane.b32.xlu1 %v10492_v3, 272 }
 0x11b   : > { %v1606_v25 = vadd.f32 %v1605_v22, %v10415_v6  ;;  %v8402_v26 = vpop.f32.mrb[22].mxu0  ;;  %5091 = vbcast.lane.b32.xlu0 %v10492_v3, 288 }
 0x11c   : > { %9145 = vtanh.f32 %v1614_v21  ;;  %v1617_v33 = vadd.f32 %v8402_v26, %v10415_v6  ;;  %v1608_v34 = vpop.f32.mrb[23].mxu0  ;;  %8663 = vmatprep.mubr.bf16.mxu1 %v2810_v23  ;;  %v9048_v21 = vld [vmem:[%s10270_s30 + $0x238] sm:$0xff]  }
 0x11d   : > { %9147 = vtanh.f32 %v1606_v25  ;;  %v1609_v35 = vadd.f32 %v1608_v34, %v10415_v6  ;;  %8664 = vmatmul.mubr.bf16.gmra.mrb[8].mxu1 %v2811_v20 }
 0x11e   : > { %v9138_v37 = vpop.eup %9137  ;;  %9149 = vtanh.f32 %v1617_v33  ;;  %8508 = vmatmul.mubr.msk.bf16.gmra.mrb[128].mxu0 %vm1106_vm0, %v9042_v24  ;;  %v9049_v24 = vld [vmem:[%s10270_s30 + $0x240] sm:$0xff]   ;;  %5087 = vbcast.lane.b32.xlu1 %v10492_v3, 280 }
 0x11f   : > { %v9140_v38 = vpop.eup %9139  ;;  %9151 = vtanh.f32 %v1609_v35  ;;  %8511 = vmatprep.mubr.msk.bf16.mxu0 %vm1106_vm0, %v9043_v32  ;;  %5099 = vbcast.lane.b32.xlu0 %v10492_v3, 304 }
 0x120   : > { %v9142_v39 = vpop.eup %9141 }
 0x121   : > { %v9144_v40 = vpop.eup %9143  ;;  %v8405_v41 = vpop.f32.mrb[24].mxu0  ;;  %v2813_v42 = vpack.c.bf16 %v9142_v39, %v9138_v37 }
 0x122   : > { %v1630_v43 = vadd.f32 %v8405_v41, %v10415_v6  ;;  %v1621_v44 = vpop.f32.mrb[25].mxu0  ;;  %v2812_v45 = vpack.c.bf16 %v9144_v40, %v9140_v38  ;;  %5095 = vbcast.lane.b32.xlu1 %v10492_v3, 296 }
 0x123   : > { %v1622_v47 = vadd.f32 %v1621_v44, %v10415_v6  ;;  %v8406_v48 = vpop.f32.mrb[26].mxu0  ;;  %5107 = vbcast.lane.b32.xlu0 %v10492_v3, 320 }
 0x124   : > { %9153 = vtanh.f32 %v1630_v43  ;;  %v1633_v50 = vadd.f32 %v8406_v48, %v10415_v6  ;;  %v1624_v51 = vpop.f32.mrb[27].mxu0  ;;  %8667 = vmatprep.mubr.bf16.mxu1 %v2812_v45  ;;  %v9050_v43 = vld [vmem:[%s10270_s30 + $0x248] sm:$0xff]  }
 0x125   : > { %9155 = vtanh.f32 %v1622_v47  ;;  %v1625_v52 = vadd.f32 %v1624_v51, %v10415_v6  ;;  %8668 = vmatmul.mubr.bf16.gmra.mrb[12].mxu1 %v2813_v42 }
 0x126   : > { %v9146_v53 = vpop.eup %9145  ;;  %9157 = vtanh.f32 %v1633_v50  ;;  %8512 = vmatmul.mubr.msk.bf16.gmra.mrb[132].mxu0 %vm1106_vm0, %v9044_v46  ;;  %v9051_v46 = vld [vmem:[%s10270_s30 + $0x250] sm:$0xff]   ;;  %5103 = vbcast.lane.b32.xlu1 %v10492_v3, 312 }
 0x127   : > { %v9148_v54 = vpop.eup %9147  ;;  %9159 = vtanh.f32 %v1625_v52  ;;  %8515 = vmatprep.mubr.msk.bf16.mxu0 %vm1106_vm0, %v9045_v49  ;;  %5115 = vbcast.lane.b32.xlu0 %v10492_v3, 336 }
 0x128   : > { %v9150_v56 = vpop.eup %9149 }
 0x129   : > { %v9152_v58 = vpop.eup %9151  ;;  %v8409_v59 = vpop.f32.mrb[28].mxu0  ;;  %v2815_v60 = vpack.c.bf16 %v9150_v56, %v9146_v53 }
 0x12a   : > { %v1646_v61 = vadd.f32 %v8409_v59, %v10415_v6  ;;  %v1637_v63 = vpop.f32.mrb[29].mxu0  ;;  %v2814_v1 = vpack.c.bf16 %v9152_v58, %v9148_v54  ;;  %5111 = vbcast.lane.b32.xlu1 %v10492_v3, 328  ;;  %v9052_v59 = vld [vmem:[%s10270_s30 + $0x258] sm:$0xff]  }
 0x12b   : > { %v1638_v5 = vadd.f32 %v1637_v63, %v10415_v6  ;;  %v8410_v7 = vpop.f32.mrb[30].mxu0  ;;  %5123 = vbcast.lane.b32.xlu0 %v10492_v3, 352  ;;  %v9053_v63 = vld [vmem:[%s10270_s30 + $0x260] sm:$0xff]  }
 0x12c   : > { %9161 = vtanh.f32 %v1646_v61  ;;  %v1649_v9 = vadd.f32 %v8410_v7, %v10415_v6  ;;  %v1640_v10 = vpop.f32.mrb[31].mxu0  ;;  %8671 = vmatprep.mubr.bf16.mxu1 %v2814_v1 }
 0x12d   : > { %9163 = vtanh.f32 %v1638_v5  ;;  %v1641_v11 = vadd.f32 %v1640_v10, %v10415_v6  ;;  %8672 = vmatmul.mubr.bf16.gmra.mrb[16].mxu1 %v2815_v60 }
 0x12e   : > { %v9154_v12 = vpop.eup %9153  ;;  %9165 = vtanh.f32 %v1649_v9  ;;  %8516 = vmatmul.mubr.msk.bf16.gmra.mrb[136].mxu0 %vm1106_vm0, %v9046_v2  ;;  %5119 = vbcast.lane.b32.xlu1 %v10492_v3, 344 }
 0x12f   : > { %v9156_v13 = vpop.eup %9155  ;;  %9167 = vtanh.f32 %v1641_v11  ;;  %8519 = vmatprep.mubr.msk.bf16.mxu0 %vm1106_vm0, %v9047_v8  ;;  %5131 = vbcast.lane.b32.xlu0 %v10492_v3, 368 }
 0x130   : > { %v9158_v14 = vpop.eup %9157 }
 0x131   : > { %v9160_v15 = vpop.eup %9159  ;;  %v8413_v16 = vpop.f32.mrb[32].mxu0  ;;  %v2817_v17 = vpack.c.bf16 %v9158_v14, %v9154_v12 }
 0x132   : > { %v1662_v18 = vadd.f32 %v8413_v16, %v10415_v6  ;;  %v1653_v19 = vpop.f32.mrb[33].mxu0  ;;  %v2816_v20 = vpack.c.bf16 %v9160_v15, %v9156_v13  ;;  %5127 = vbcast.lane.b32.xlu1 %v10492_v3, 360  ;;  %v9054_v16 = vld [vmem:[%s10270_s30 + $0x268] sm:$0xff]  }
 0x133   : > { %v1654_v22 = vadd.f32 %v1653_v19, %v10415_v6  ;;  %v8414_v23 = vpop.f32.mrb[34].mxu0  ;;  %v9055_v19 = vld [vmem:[%s10270_s30 + $0x270] sm:$0xff]  }
 0x134   : > { %9169 = vtanh.f32 %v1662_v18  ;;  %v1665_v25 = vadd.f32 %v8414_v23, %v10415_v6  ;;  %v1656_v26 = vpop.f32.mrb[35].mxu0  ;;  %8675 = vmatprep.mubr.bf16.mxu1 %v2816_v20 }
 0x135   : > { %9171 = vtanh.f32 %v1654_v22  ;;  %v1657_v32 = vadd.f32 %v1656_v26, %v10415_v6  ;;  %8676 = vmatmul.mubr.bf16.gmra.mrb[20].mxu1 %v2817_v17 }
 0x136   : > { %v9162_v33 = vpop.eup %9161  ;;  %9173 = vtanh.f32 %v1665_v25  ;;  %8520 = vmatmul.mubr.msk.bf16.gmra.mrb[140].mxu0 %vm1106_vm0, %v9048_v21  ;;  %5135 = vbcast.lane.b32.xlu1 %v10492_v3, 376 }
 0x137   : > { %v9164_v34 = vpop.eup %9163  ;;  %9175 = vtanh.f32 %v1657_v32  ;;  %8523 = vmatprep.mubr.msk.bf16.mxu0 %vm1106_vm0, %v9049_v24 }
 0x138   : > { %v9166_v35 = vpop.eup %9165 }
 0x139   : > { %v9168_v37 = vpop.eup %9167  ;;  %v8417_v38 = vpop.f32.mrb[36].mxu0  ;;  %v2819_v39 = vpack.c.bf16 %v9166_v35, %v9162_v33 }
 0x13a   : > { %v1678_v40 = vadd.f32 %v8417_v38, %v10415_v6  ;;  %v1669_v41 = vpop.f32.mrb[37].mxu0  ;;  %v2818_v42 = vpack.c.bf16 %v9168_v37, %v9164_v34  ;;  %v9056_v37 = vld [vmem:[%s10270_s30 + $0x278] sm:$0xff]  }
 0x13b   : > { %v1670_v44 = vadd.f32 %v1669_v41, %v10415_v6  ;;  %v8418_v45 = vpop.f32.mrb[38].mxu0 }
 0x13c   : > { %9177 = vtanh.f32 %v1678_v40  ;;  %v1681_v47 = vadd.f32 %v8418_v45, %v10415_v6  ;;  %v1672_v48 = vpop.f32.mrb[39].mxu0  ;;  %8679 = vmatprep.mubr.bf16.mxu1 %v2818_v42  ;;  %v9057_v40 = vld [vmem:[%s10270_s30 + $0x280] sm:$0xff]  }
 0x13d   : > { %9179 = vtanh.f32 %v1670_v44  ;;  %v1673_v49 = vadd.f32 %v1672_v48, %v10415_v6  ;;  %8680 = vmatmul.mubr.bf16.gmra.mrb[24].mxu1 %v2819_v39 }
 0x13e   : > { %v9170_v50 = vpop.eup %9169  ;;  %9181 = vtanh.f32 %v1681_v47  ;;  %8524 = vmatmul.mubr.msk.bf16.gmra.mrb[144].mxu0 %vm1106_vm0, %v9050_v43 }
 0x13f   : > { %v9172_v51 = vpop.eup %9171  ;;  %9183 = vtanh.f32 %v1673_v49  ;;  %8527 = vmatprep.mubr.msk.bf16.mxu0 %vm1106_vm0, %v9051_v46 }
 0x140   : > { %v9174_v52 = vpop.eup %9173 }
 0x141   : > { %v9176_v53 = vpop.eup %9175  ;;  %v8421_v54 = vpop.f32.mrb[40].mxu0  ;;  %v2821_v55 = vpack.c.bf16 %v9174_v52, %v9170_v50 }
 0x142   : > { %v1694_v56 = vadd.f32 %v8421_v54, %v10415_v6  ;;  %v1685_v57 = vpop.f32.mrb[41].mxu0  ;;  %v2820_v58 = vpack.c.bf16 %v9176_v53, %v9172_v51  ;;  %v9058_v53 = vld [vmem:[%s10270_s30 + $0x288] sm:$0xff]  }
 0x143   : > { %v1686_v60 = vadd.f32 %v1685_v57, %v10415_v6  ;;  %v8422_v61 = vpop.f32.mrb[42].mxu0 }
 0x144   : > { %9185 = vtanh.f32 %v1694_v56  ;;  %v1697_v1 = vadd.f32 %v8422_v61, %v10415_v6  ;;  %v1688_v2 = vpop.f32.mrb[43].mxu0  ;;  %8683 = vmatprep.mubr.bf16.mxu1 %v2820_v58  ;;  %v9059_v56 = vld [vmem:[%s10270_s30 + $0x290] sm:$0xff]  }
 0x145   : > { %9187 = vtanh.f32 %v1686_v60  ;;  %v1689_v5 = vadd.f32 %v1688_v2, %v10415_v6  ;;  %8684 = vmatmul.mubr.bf16.gmra.mrb[28].mxu1 %v2821_v55 }
 0x146   : > { %v9178_v7 = vpop.eup %9177  ;;  %9189 = vtanh.f32 %v1697_v1  ;;  %8528 = vmatmul.mubr.msk.bf16.gmra.mrb[148].mxu0 %vm1106_vm0, %v9052_v59 }
 0x147   : > { %v9180_v8 = vpop.eup %9179  ;;  %9191 = vtanh.f32 %v1689_v5  ;;  %8531 = vmatprep.mubr.msk.bf16.mxu0 %vm1106_vm0, %v9053_v63 }
 0x148   : > { %v9182_v9 = vpop.eup %9181 }
 0x149   : > { %v9184_v10 = vpop.eup %9183  ;;  %v8425_v11 = vpop.f32.mrb[44].mxu0  ;;  %v2823_v12 = vpack.c.bf16 %v9182_v9, %v9178_v7 }
 0x14a   : > { %v1710_v13 = vadd.f32 %v8425_v11, %v10415_v6  ;;  %v1701_v14 = vpop.f32.mrb[45].mxu0  ;;  %v2822_v15 = vpack.c.bf16 %v9184_v10, %v9180_v8  ;;  %v9060_v10 = vld [vmem:[%s10270_s30 + $0x298] sm:$0xff]  }
 0x14b   : > { %v1702_v17 = vadd.f32 %v1701_v14, %v10415_v6  ;;  %v8426_v18 = vpop.f32.mrb[46].mxu0 }
 0x14c   : > { %9193 = vtanh.f32 %v1710_v13  ;;  %v1713_v20 = vadd.f32 %v8426_v18, %v10415_v6  ;;  %v1704_v21 = vpop.f32.mrb[47].mxu0  ;;  %8687 = vmatprep.mubr.bf16.mxu1 %v2822_v15  ;;  %v9061_v13 = vld [vmem:[%s10270_s30 + $0x2a0] sm:$0xff]  }
 0x14d   : > { %9195 = vtanh.f32 %v1702_v17  ;;  %v1705_v22 = vadd.f32 %v1704_v21, %v10415_v6  ;;  %8688 = vmatmul.mubr.bf16.gmra.mrb[32].mxu1 %v2823_v12 }
 0x14e   : > { %v9186_v23 = vpop.eup %9185  ;;  %9197 = vtanh.f32 %v1713_v20  ;;  %8532 = vmatmul.mubr.msk.bf16.gmra.mrb[152].mxu0 %vm1106_vm0, %v9054_v16 }
 0x14f   : > { %v9188_v24 = vpop.eup %9187  ;;  %9199 = vtanh.f32 %v1705_v22  ;;  %8535 = vmatprep.mubr.msk.bf16.mxu0 %vm1106_vm0, %v9055_v19 }
 0x150   : > { %v9190_v25 = vpop.eup %9189 }
 0x151   : > { %v9192_v26 = vpop.eup %9191  ;;  %v8429_v32 = vpop.f32.mrb[48].mxu0  ;;  %v2825_v33 = vpack.c.bf16 %v9190_v25, %v9186_v23 }
 0x152   : > { %v1726_v3 = vadd.f32 %v8429_v32, %v10415_v6  ;;  %v1717_v34 = vpop.f32.mrb[49].mxu0  ;;  %v2824_v35 = vpack.c.bf16 %v9192_v26, %v9188_v24  ;;  %v9062_v26 = vld [vmem:[%s10270_s30 + $0x2a8] sm:$0xff]  }
 0x153   : > { %v1718_v38 = vadd.f32 %v1717_v34, %v10415_v6  ;;  %v8430_v39 = vpop.f32.mrb[50].mxu0 }
 0x154   : > { %9201 = vtanh.f32 %v1726_v3  ;;  %v1729_v41 = vadd.f32 %v8430_v39, %v10415_v6  ;;  %v1720_v42 = vpop.f32.mrb[51].mxu0  ;;  %8691 = vmatprep.mubr.bf16.mxu1 %v2824_v35  ;;  %v9063_v3 = vld [vmem:[%s10270_s30 + $0x2b0] sm:$0xff]  }
 0x155   : > { %9203 = vtanh.f32 %v1718_v38  ;;  %v1721_v43 = vadd.f32 %v1720_v42, %v10415_v6  ;;  %8692 = vmatmul.mubr.bf16.gmra.mrb[36].mxu1 %v2825_v33 }
 0x156   : > { %v9194_v44 = vpop.eup %9193  ;;  %9205 = vtanh.f32 %v1729_v41  ;;  %8536 = vmatmul.mubr.msk.bf16.gmra.mrb[156].mxu0 %vm1106_vm0, %v9056_v37 }
 0x157   : > { %v9196_v45 = vpop.eup %9195  ;;  %9207 = vtanh.f32 %v1721_v43  ;;  %8539 = vmatprep.mubr.msk.bf16.mxu0 %vm1106_vm0, %v9057_v40 }
 0x158   : > { %v9198_v46 = vpop.eup %9197 }
 0x159   : > { %v9200_v47 = vpop.eup %9199  ;;  %v8433_v48 = vpop.f32.mrb[52].mxu0  ;;  %v2827_v49 = vpack.c.bf16 %v9198_v46, %v9194_v44 }
 0x15a   : > { %v1742_v50 = vadd.f32 %v8433_v48, %v10415_v6  ;;  %v1733_v51 = vpop.f32.mrb[53].mxu0  ;;  %v2826_v52 = vpack.c.bf16 %v9200_v47, %v9196_v45  ;;  %v9064_v47 = vld [vmem:[%s10270_s30 + $0x2b8] sm:$0xff]  }
 0x15b   : > { %v1734_v54 = vadd.f32 %v1733_v51, %v10415_v6  ;;  %v8434_v55 = vpop.f32.mrb[54].mxu0 }
 0x15c   : > { %9209 = vtanh.f32 %v1742_v50  ;;  %v1745_v57 = vadd.f32 %v8434_v55, %v10415_v6  ;;  %v1736_v58 = vpop.f32.mrb[55].mxu0  ;;  %8695 = vmatprep.mubr.bf16.mxu1 %v2826_v52  ;;  %v9065_v50 = vld [vmem:[%s10270_s30 + $0x2c0] sm:$0xff]  }
 0x15d   : > { %9211 = vtanh.f32 %v1734_v54  ;;  %v1737_v59 = vadd.f32 %v1736_v58, %v10415_v6  ;;  %8696 = vmatmul.mubr.bf16.gmra.mrb[40].mxu1 %v2827_v49 }
 0x15e   : > { %v9202_v60 = vpop.eup %9201  ;;  %9213 = vtanh.f32 %v1745_v57  ;;  %8540 = vmatmul.mubr.msk.bf16.gmra.mrb[160].mxu0 %vm1106_vm0, %v9058_v53 }
 0x15f   : > { %v9204_v61 = vpop.eup %9203  ;;  %9215 = vtanh.f32 %v1737_v59  ;;  %8543 = vmatprep.mubr.msk.bf16.mxu0 %vm1106_vm0, %v9059_v56 }
 0x160   : > { %v9206_v63 = vpop.eup %9205 }
 0x161   : > { %v9208_v1 = vpop.eup %9207  ;;  %v8437_v2 = vpop.f32.mrb[56].mxu0  ;;  %v2829_v5 = vpack.c.bf16 %v9206_v63, %v9202_v60 }
 0x162   : > { %v1758_v7 = vadd.f32 %v8437_v2, %v10415_v6  ;;  %v1749_v8 = vpop.f32.mrb[57].mxu0  ;;  %v2828_v9 = vpack.c.bf16 %v9208_v1, %v9204_v61  ;;  %v9066_v1 = vld [vmem:[%s10270_s30 + $0x2c8] sm:$0xff]  }
 0x163   : > { %v1750_v11 = vadd.f32 %v1749_v8, %v10415_v6  ;;  %v8438_v12 = vpop.f32.mrb[58].mxu0 }
 0x164   : > { %9217 = vtanh.f32 %v1758_v7  ;;  %v1761_v14 = vadd.f32 %v8438_v12, %v10415_v6  ;;  %v1752_v15 = vpop.f32.mrb[59].mxu0  ;;  %8699 = vmatprep.mubr.bf16.mxu1 %v2828_v9  ;;  %v9067_v7 = vld [vmem:[%s10270_s30 + $0x2d0] sm:$0xff]  }
 0x165   : > { %9219 = vtanh.f32 %v1750_v11  ;;  %v1753_v16 = vadd.f32 %v1752_v15, %v10415_v6  ;;  %8700 = vmatmul.mubr.bf16.gmra.mrb[44].mxu1 %v2829_v5 }
 0x166   : > { %v9210_v17 = vpop.eup %9209  ;;  %9221 = vtanh.f32 %v1761_v14  ;;  %8544 = vmatmul.mubr.msk.bf16.gmra.mrb[164].mxu0 %vm1106_vm0, %v9060_v10 }
 0x167   : > { %v9212_v18 = vpop.eup %9211  ;;  %9223 = vtanh.f32 %v1753_v16  ;;  %8547 = vmatprep.mubr.msk.bf16.mxu0 %vm1106_vm0, %v9061_v13 }
 0x168   : > { %v9214_v19 = vpop.eup %9213 }
 0x169   : > { %v9216_v20 = vpop.eup %9215  ;;  %v8441_v21 = vpop.f32.mrb[60].mxu0  ;;  %v2831_v22 = vpack.c.bf16 %v9214_v19, %v9210_v17 }
 0x16a   : > { %v1774_v23 = vadd.f32 %v8441_v21, %v10415_v6  ;;  %v1765_v24 = vpop.f32.mrb[61].mxu0  ;;  %v2830_v25 = vpack.c.bf16 %v9216_v20, %v9212_v18  ;;  %v9068_v20 = vld [vmem:[%s10270_s30 + $0x2d8] sm:$0xff]  }
 0x16b   : > { %v1766_v32 = vadd.f32 %v1765_v24, %v10415_v6  ;;  %v8442_v33 = vpop.f32.mrb[62].mxu0 }
 0x16c   : > { %9225 = vtanh.f32 %v1774_v23  ;;  %v1777_v34 = vadd.f32 %v8442_v33, %v10415_v6  ;;  %v1768_v35 = vpop.f32.mrb[63].mxu0  ;;  %8703 = vmatprep.mubr.bf16.mxu1 %v2830_v25  ;;  %v9069_v23 = vld [vmem:[%s10270_s30 + $0x2e0] sm:$0xff]  }
 0x16d   : > { %9227 = vtanh.f32 %v1766_v32  ;;  %v1769_v37 = vadd.f32 %v1768_v35, %v10415_v6  ;;  %8704 = vmatmul.mubr.bf16.gmra.mrb[48].mxu1 %v2831_v22 }
 0x16e   : > { %v9218_v38 = vpop.eup %9217  ;;  %9229 = vtanh.f32 %v1777_v34  ;;  %8548 = vmatmul.mubr.msk.bf16.gmra.mrb[168].mxu0 %vm1106_vm0, %v9062_v26 }
 0x16f   : > { %v9220_v39 = vpop.eup %9219  ;;  %9231 = vtanh.f32 %v1769_v37  ;;  %8551 = vmatprep.mubr.msk.bf16.mxu0 %vm1106_vm0, %v9063_v3 }
 0x170   : > { %v9222_v40 = vpop.eup %9221 }
 0x171   : > { %v9224_v41 = vpop.eup %9223  ;;  %v8445_v42 = vpop.f32.mrb[64].mxu0  ;;  %v2833_v43 = vpack.c.bf16 %v9222_v40, %v9218_v38 }
 0x172   : > { %v1790_v44 = vadd.f32 %v8445_v42, %v10415_v6  ;;  %v1781_v45 = vpop.f32.mrb[65].mxu0  ;;  %v2832_v46 = vpack.c.bf16 %v9224_v41, %v9220_v39  ;;  %v9070_v41 = vld [vmem:[%s10270_s30 + $0x2e8] sm:$0xff]  }
 0x173   : > { %v1782_v48 = vadd.f32 %v1781_v45, %v10415_v6  ;;  %v8446_v49 = vpop.f32.mrb[66].mxu0 }
 0x174   : > { %9233 = vtanh.f32 %v1790_v44  ;;  %v1793_v51 = vadd.f32 %v8446_v49, %v10415_v6  ;;  %v1784_v52 = vpop.f32.mrb[67].mxu0  ;;  %8707 = vmatprep.mubr.bf16.mxu1 %v2832_v46  ;;  %v9071_v44 = vld [vmem:[%s10270_s30 + $0x2f0] sm:$0xff]  }
 0x175   : > { %9235 = vtanh.f32 %v1782_v48  ;;  %v1785_v53 = vadd.f32 %v1784_v52, %v10415_v6  ;;  %8708 = vmatmul.mubr.bf16.gmra.mrb[52].mxu1 %v2833_v43 }
 0x176   : > { %v9226_v54 = vpop.eup %9225  ;;  %9237 = vtanh.f32 %v1793_v51  ;;  %8552 = vmatmul.mubr.msk.bf16.gmra.mrb[172].mxu0 %vm1106_vm0, %v9064_v47 }
 0x177   : > { %v9228_v55 = vpop.eup %9227  ;;  %9239 = vtanh.f32 %v1785_v53  ;;  %8555 = vmatprep.mubr.msk.bf16.mxu0 %vm1106_vm0, %v9065_v50 }
 0x178   : > { %v9230_v56 = vpop.eup %9229 }
 0x179   : > { %v9232_v57 = vpop.eup %9231  ;;  %v8449_v58 = vpop.f32.mrb[68].mxu0  ;;  %v2835_v59 = vpack.c.bf16 %v9230_v56, %v9226_v54 }
 0x17a   : > { %v1806_v60 = vadd.f32 %v8449_v58, %v10415_v6  ;;  %v1797_v61 = vpop.f32.mrb[69].mxu0  ;;  %v2834_v63 = vpack.c.bf16 %v9232_v57, %v9228_v55  ;;  %v9072_v55 = vld [vmem:[%s10270_s30 + $0x2f8] sm:$0xff]   ;;  %v9073_v58 = vld [vmem:[%s10270_s30 + $0x300] sm:$0xff]  }
 0x17b   : > { %v1798_v2 = vadd.f32 %v1797_v61, %v10415_v6  ;;  %v8450_v5 = vpop.f32.mrb[70].mxu0 }
 0x17c   : > { %9241 = vtanh.f32 %v1806_v60  ;;  %v1809_v8 = vadd.f32 %v8450_v5, %v10415_v6  ;;  %v1800_v9 = vpop.f32.mrb[71].mxu0  ;;  %8711 = vmatprep.mubr.bf16.mxu1 %v2834_v63 }
 0x17d   : > { %9243 = vtanh.f32 %v1798_v2  ;;  %v1801_v10 = vadd.f32 %v1800_v9, %v10415_v6  ;;  %8712 = vmatmul.mubr.bf16.gmra.mrb[56].mxu1 %v2835_v59 }
 0x17e   : > { %v9234_v11 = vpop.eup %9233  ;;  %9245 = vtanh.f32 %v1809_v8  ;;  %8556 = vmatmul.mubr.msk.bf16.gmra.mrb[176].mxu0 %vm1106_vm0, %v9066_v1 }
 0x17f   : > { %v9236_v12 = vpop.eup %9235  ;;  %9247 = vtanh.f32 %v1801_v10  ;;  %8559 = vmatprep.mubr.msk.bf16.mxu0 %vm1106_vm0, %v9067_v7 }
 0x180   : > { %v9238_v13 = vpop.eup %9237 }
 0x181   : > { %v9240_v14 = vpop.eup %9239  ;;  %v8453_v15 = vpop.f32.mrb[72].mxu0  ;;  %v2837_v16 = vpack.c.bf16 %v9238_v13, %v9234_v11 }
 0x182   : > { %v1822_v17 = vadd.f32 %v8453_v15, %v10415_v6  ;;  %v1813_v18 = vpop.f32.mrb[73].mxu0  ;;  %v2836_v19 = vpack.c.bf16 %v9240_v14, %v9236_v12  ;;  %v9074_v12 = vld [vmem:[%s10270_s30 + $0x308] sm:$0xff]   ;;  %v9075_v15 = vld [vmem:[%s10270_s30 + $0x310] sm:$0xff]  }
 0x183   : > { %v1814_v21 = vadd.f32 %v1813_v18, %v10415_v6  ;;  %v8454_v22 = vpop.f32.mrb[74].mxu0 }
 0x184   : > { %9249 = vtanh.f32 %v1822_v17  ;;  %v1825_v24 = vadd.f32 %v8454_v22, %v10415_v6  ;;  %v1816_v25 = vpop.f32.mrb[75].mxu0  ;;  %8715 = vmatprep.mubr.bf16.mxu1 %v2836_v19 }
 0x185   : > { %9251 = vtanh.f32 %v1814_v21  ;;  %v1817_v26 = vadd.f32 %v1816_v25, %v10415_v6  ;;  %8716 = vmatmul.mubr.bf16.gmra.mrb[60].mxu1 %v2837_v16 }
 0x186   : > { %v9242_v32 = vpop.eup %9241  ;;  %9253 = vtanh.f32 %v1825_v24  ;;  %8560 = vmatmul.mubr.msk.bf16.gmra.mrb[180].mxu0 %vm1106_vm0, %v9068_v20 }
 0x187   : > { %v9244_v33 = vpop.eup %9243  ;;  %9255 = vtanh.f32 %v1817_v26  ;;  %8563 = vmatprep.mubr.msk.bf16.mxu0 %vm1106_vm0, %v9069_v23  ;;  %v9076_v26 = vld [vmem:[%s10270_s30 + $0x318] sm:$0xff]  }
 0x188   : > { %v9246_v3 = vpop.eup %9245 }
 0x189   : > { %v9248_v34 = vpop.eup %9247  ;;  %v8457_v35 = vpop.f32.mrb[76].mxu0  ;;  %v2839_v37 = vpack.c.bf16 %v9246_v3, %v9242_v32 }
 0x18a   : > { %v1838_v38 = vadd.f32 %v8457_v35, %v10415_v6  ;;  %v1829_v39 = vpop.f32.mrb[77].mxu0  ;;  %v2838_v40 = vpack.c.bf16 %v9248_v34, %v9244_v33  ;;  %v9077_v33 = vld [vmem:[%s10270_s30 + $0x320] sm:$0xff]  }
 0x18b   : > { %v1830_v42 = vadd.f32 %v1829_v39, %v10415_v6  ;;  %v8458_v43 = vpop.f32.mrb[78].mxu0  ;;  %v9078_v39 = vld [vmem:[%s10270_s30 + $0x328] sm:$0xff]  }
 0x18c   : > { %9257 = vtanh.f32 %v1838_v38  ;;  %v1841_v45 = vadd.f32 %v8458_v43, %v10415_v6  ;;  %v1832_v46 = vpop.f32.mrb[79].mxu0  ;;  %8719 = vmatprep.mubr.bf16.mxu1 %v2838_v40  ;;  %v9081_v43 = vld [vmem:[%s10270_s30 + $0x340] sm:$0xff]  }
 0x18d   : > { %9259 = vtanh.f32 %v1830_v42  ;;  %v1833_v47 = vadd.f32 %v1832_v46, %v10415_v6  ;;  %8720 = vmatmul.mubr.bf16.gmra.mrb[64].mxu1 %v2839_v37  ;;  %v9080_v42 = vld [vmem:[%s10270_s30 + $0x338] sm:$0xff]  }
 0x18e   : > { %v9250_v48 = vpop.eup %9249  ;;  %9261 = vtanh.f32 %v1841_v45  ;;  %8564 = vmatmul.mubr.msk.bf16.gmra.mrb[184].mxu0 %vm1106_vm0, %v9070_v41  ;;  %v9079_v41 = vld [vmem:[%s10270_s30 + $0x330] sm:$0xff]  }
 0x18f   : > { %v9252_v49 = vpop.eup %9251  ;;  %9263 = vtanh.f32 %v1833_v47  ;;  %8567 = vmatprep.mubr.msk.bf16.mxu0 %vm1106_vm0, %v9071_v44  ;;  %v9082_v44 = vld [vmem:[%s10270_s30 + $0x348] sm:$0xff]   ;;  %v9083_v45 = vld [vmem:[%s10270_s30 + $0x350] sm:$0xff]  }
 0x190   : > { %v9254_v50 = vpop.eup %9253 }
 0x191   : > { %v9256_v51 = vpop.eup %9255  ;;  %v2841_v52 = vpack.c.bf16 %v9254_v50, %v9250_v48  ;;  %v8461_v53 = vpop.f32.mrb[80].mxu0 }
 0x192   : > { %v2840_v54 = vpack.c.bf16 %v9256_v51, %v9252_v49  ;;  %v1854_v56 = vadd.f32 %v8461_v53, %v10415_v6  ;;  %v1845_v57 = vpop.f32.mrb[81].mxu0  ;;  %v9084_v49 = vld [vmem:[%s10270_s30 + $0x358] sm:$0xff]   ;;  %v9085_v51 = vld [vmem:[%s10270_s30 + $0x360] sm:$0xff]  }
 0x193   : > { %v1846_v59 = vadd.f32 %v1845_v57, %v10415_v6  ;;  %v8462_v60 = vpop.f32.mrb[82].mxu0  ;;  %v9087_v57 = vld [vmem:[%s10270_s30 + $0x370] sm:$0xff]  }
 0x194   : > { %8723 = vmatprep.mubr.bf16.mxu1 %v2840_v54  ;;  %9265 = vtanh.f32 %v1854_v56  ;;  %v1857_v61 = vadd.f32 %v8462_v60, %v10415_v6  ;;  %v1848_v63 = vpop.f32.mrb[83].mxu0  ;;  %v9086_v56 = vld [vmem:[%s10270_s30 + $0x368] sm:$0xff]  }
 0x195   : > { %8724 = vmatmul.mubr.bf16.gmra.mrb[68].mxu1 %v2841_v52  ;;  %9267 = vtanh.f32 %v1846_v59  ;;  %v1849_v1 = vadd.f32 %v1848_v63, %v10415_v6 }
 0x196   : > { %v9258_v2 = vpop.eup %9257  ;;  %8568 = vmatmul.mubr.msk.bf16.gmra.mrb[188].mxu0 %vm1106_vm0, %v9072_v55  ;;  %9269 = vtanh.f32 %v1857_v61 }
 0x197   : > { %v9260_v5 = vpop.eup %9259  ;;  %8571 = vmatprep.mubr.msk.bf16.mxu0 %vm1106_vm0, %v9073_v58  ;;  %9271 = vtanh.f32 %v1849_v1 }
 0x198   : > { %v9262_v7 = vpop.eup %9261 }
 0x199   : > { %v9264_v8 = vpop.eup %9263  ;;  %v2843_v9 = vpack.c.bf16 %v9262_v7, %v9258_v2  ;;  %v8465_v10 = vpop.f32.mrb[84].mxu0 }
 0x19a   : > { %v2842_v11 = vpack.c.bf16 %v9264_v8, %v9260_v5  ;;  %v1870_v13 = vadd.f32 %v8465_v10, %v10415_v6  ;;  %v1861_v14 = vpop.f32.mrb[85].mxu0  ;;  %v9088_v8 = vld [vmem:[%s10270_s30 + $0x378] sm:$0xff]  }
 0x19b   : > { %v1862_v16 = vadd.f32 %v1861_v14, %v10415_v6  ;;  %v8466_v17 = vpop.f32.mrb[86].mxu0 }
 0x19c   : > { %8727 = vmatprep.mubr.bf16.mxu1 %v2842_v11  ;;  %9273 = vtanh.f32 %v1870_v13  ;;  %v1873_v18 = vadd.f32 %v8466_v17, %v10415_v6  ;;  %v1864_v19 = vpop.f32.mrb[87].mxu0 }
 0x19d   : > { %8728 = vmatmul.mubr.bf16.gmra.mrb[72].mxu1 %v2843_v9  ;;  %9275 = vtanh.f32 %v1862_v16  ;;  %v1865_v20 = vadd.f32 %v1864_v19, %v10415_v6  ;;  %v446_v16 = vld [vmem:[%s14595_s1 + $0x60] sm:$0x1] }
 0x19e   : > { %v9266_v21 = vpop.eup %9265  ;;  %8572 = vmatmul.mubr.msk.bf16.gmra.mrb[192].mxu0 %vm1106_vm0, %v9074_v12  ;;  %9277 = vtanh.f32 %v1873_v18  ;;  %v9089_v12 = vld [vmem:[%s10270_s30 + $0x380] sm:$0xff]  }
 0x19f   : > { %v9268_v22 = vpop.eup %9267  ;;  %8575 = vmatprep.mubr.msk.bf16.mxu0 %vm1106_vm0, %v9075_v15  ;;  %9279 = vtanh.f32 %v1865_v20  ;;  %v447_v20 = vunpack.c.l.bf16 %v446_v16 }
 0x1a0   : > { %v9270_v23 = vpop.eup %9269 }
 0x1a1   : > { %v9272_v24 = vpop.eup %9271  ;;  %v2845_v25 = vpack.c.bf16 %v9270_v23, %v9266_v21  ;;  %v8469_v46 = vpop.f32.mrb[88].mxu0 }
 0x1a2   : > { %v2844_v32 = vpack.c.bf16 %v9272_v24, %v9268_v22  ;;  %v1886_v47 = vadd.f32 %v8469_v46, %v10415_v6  ;;  %v1877_v48 = vpop.f32.mrb[89].mxu0  ;;  %v9090_v22 = vld [vmem:[%s10270_s30 + $0x388] sm:$0xff]   ;;  %v9091_v24 = vld [vmem:[%s10270_s30 + $0x390] sm:$0xff]  }
 0x1a3   : > { %v8470_v50 = vpop.f32.mrb[90].mxu0  ;;  %v1878_v52 = vadd.f32 %v1877_v48, %v10415_v6  ;;  %v442_v48 = vld [vmem:[%s14595_s1 + $0x50] sm:$0x1] }
 0x1a4   : > { %8731 = vmatprep.mubr.bf16.mxu1 %v2844_v32  ;;  %v1880_v53 = vpop.f32.mrb[91].mxu0  ;;  %9281 = vtanh.f32 %v1886_v47  ;;  %v1889_v54 = vadd.f32 %v8470_v50, %v10415_v6  ;;  %v10698_v32 = vrot.slane %v447_v20, %v10410_v4  ;;  %v9093_v47 = vld [vmem:[%s10270_s30 + $0x3a0] sm:$0xff]  }
 0x1a5   : > { %8732 = vmatmul.mubr.bf16.gmra.mrb[76].mxu1 %v2845_v25  ;;  %v1881_v55 = vadd.f32 %v1880_v53, %v10415_v6  ;;  %9283 = vtanh.f32 %v1878_v52  ;;  %v443_v53 = vunpack.c.l.bf16 %v442_v48 }
 0x1a6   : > { %v9274_v3 = vpop.eup %9273  ;;  %8576 = vmatmul.mubr.msk.bf16.gmra.mrb[196].mxu0 %vm1106_vm0, %v9076_v26  ;;  %9285 = vtanh.f32 %v1889_v54 }
 0x1a7   : > { %v9276_v34 = vpop.eup %9275  ;;  %8579 = vmatprep.mubr.msk.bf16.mxu0 %vm1106_vm0, %v9077_v33  ;;  %9287 = vtanh.f32 %v1881_v55 }
 0x1a8   : > { %v9278_v35 = vpop.eup %9277 }
 0x1a9   : > { %v9280_v37 = vpop.eup %9279  ;;  %v2847_v38 = vpack.c.bf16 %v9278_v35, %v9274_v3  ;;  %v10654_v58 = vpop.f32.mrb[92].mxu0 }
 0x1aa   : > { %v2846_v40 = vpack.c.bf16 %v9280_v37, %v9276_v34  ;;  %v10657_v60 = vpop.f32.mrb[93].mxu0 }
 0x1ab   : > { %v10660_v63 = vpop.f32.mrb[94].mxu0 }
 0x1ac   : > { %8735 = vmatprep.mubr.bf16.mxu1 %v2846_v40  ;;  %v10662_v2 = vpop.f32.mrb[95].mxu0 }
 0x1ad   : > { %8736 = vmatmul.mubr.bf16.gmra.mrb[80].mxu1 %v2847_v38 }
 0x1ae   : > { %8580 = vmatmul.mubr.msk.bf16.gmra.mrb[200].mxu0 %vm1106_vm0, %v9078_v39  ;;  %v9282_v59 = vpop.eup %9281 }
 0x1af   : > { %8583 = vmatprep.mubr.msk.bf16.mxu0 %vm1106_vm0, %v9079_v41  ;;  %v9284_v61 = vpop.eup %9283 }
 0x1b0   : > { %v9286_v1 = vpop.eup %9285 }
 0x1b1   : > { %v9288_v5 = vpop.eup %9287  ;;  %v10664_v7 = vpop.f32.mrb[96].mxu0  ;;  %v2849_v11 = vpack.c.bf16 %v9286_v1, %v9282_v59 }
 0x1b2   : > { %v10667_v9 = vpop.f32.mrb[97].mxu0  ;;  %v2848_v10 = vpack.c.bf16 %v9288_v5, %v9284_v61 }
 0x1b3   : > { %v10670_v13 = vpop.f32.mrb[98].mxu0 }
 0x1b4   : > { %8739 = vmatprep.mubr.bf16.mxu1 %v2848_v10  ;;  %v10672_v14 = vpop.f32.mrb[99].mxu0  ;;  %v9094_v10 = vld [vmem:[%s10270_s30 + $0x3a8] sm:$0xff]  }
 0x1b5   : > { %8740 = vmatmul.mubr.bf16.gmra.mrb[84].mxu1 %v2849_v11  ;;  %v10743_v11 = vrot.slane %v443_v53, %v10410_v4 }
 0x1b6   : > { %8584 = vmatmul.mubr.msk.bf16.gmra.mrb[204].mxu0 %vm1106_vm0, %v9080_v42 }
 0x1b7   : > { %8587 = vmatprep.mubr.msk.bf16.mxu0 %vm1106_vm0, %v9081_v43  ;;  %v9092_v43 = vld [vmem:[%s10270_s30 + $0x398] sm:$0xff]  }
 0x1b9   : > { %v10674_v15 = vpop.f32.mrb[100].mxu0 }
 0x1ba   : > { %v10680_v17 = vpop.f32.mrb[101].mxu0 }
 0x1bb   : > { %v10683_v18 = vpop.f32.mrb[102].mxu0 }
 0x1bc   : > { %v10685_v19 = vpop.f32.mrb[103].mxu0 }
 0x1be   : > { %8588 = vmatmul.mubr.msk.bf16.gmra.mrb[208].mxu0 %vm1106_vm0, %v9082_v44 }
 0x1bf   : > { %8591 = vmatprep.mubr.msk.bf16.mxu0 %vm1106_vm0, %v9083_v45 }
 0x1c1   : > { %v10687_v21 = vpop.f32.mrb[104].mxu0 }
 0x1c2   : > { %v10690_v23 = vpop.f32.mrb[105].mxu0 }
 0x1c3   : > { %v10693_v25 = vpop.f32.mrb[106].mxu0 }
 0x1c4   : > { %v10695_v26 = vpop.f32.mrb[107].mxu0 }
 0x1c6   : > { %8592 = vmatmul.mubr.msk.bf16.gmra.mrb[212].mxu0 %vm1106_vm0, %v9084_v49 }
 0x1c7   : > { %8595 = vmatprep.mubr.msk.bf16.mxu0 %vm1106_vm0, %v9085_v51 }
 0x1c9   : > { %v10700_v33 = vpop.f32.mrb[108].mxu0 }
 0x1ca   : > { %v10703_v3 = vpop.f32.mrb[109].mxu0 }
 0x1cb   : > { %v10706_v34 = vpop.f32.mrb[110].mxu0 }
 0x1cc   : > { %v10708_v37 = vpop.f32.mrb[111].mxu0 }
 0x1ce   : > { %8596 = vmatmul.mubr.msk.bf16.gmra.mrb[216].mxu0 %vm1106_vm0, %v9086_v56 }
 0x1cf   : > { %8599 = vmatprep.mubr.msk.bf16.mxu0 %vm1106_vm0, %v9087_v57 }
 0x1d1   : > { %v10711_v40 = vpop.f32.mrb[112].mxu0 }
 0x1d2   : > { %v10715_v44 = vpop.f32.mrb[113].mxu0 }
 0x1d3   : > { %v10722_v49 = vpop.f32.mrb[114].mxu0 }
 0x1d4   : > { %v10725_v51 = vpop.f32.mrb[115].mxu0 }
 0x1d6   : > { %8600 = vmatmul.mubr.msk.bf16.gmra.mrb[220].mxu0 %vm1106_vm0, %v9088_v8 }
 0x1d7   : > { %8603 = vmatprep.mubr.msk.bf16.mxu0 %vm1106_vm0, %v9089_v12 }
 0x1d9   : > { %v10727_v52 = vpop.f32.mrb[116].mxu0 }
 0x1da   : > { %v10730_v54 = vpop.f32.mrb[117].mxu0 }
 0x1db   : > { %v10733_v55 = vpop.f32.mrb[118].mxu0 }
 0x1dc   : > { %v10735_v57 = vpop.f32.mrb[119].mxu0 }
 0x1de   : > { %8604 = vmatmul.mubr.msk.bf16.gmra.mrb[224].mxu0 %vm1106_vm0, %v9090_v22  ;;  %v9095_v22 = vld [vmem:[%s10270_s30 + $0x3b0] sm:$0xff]  }
 0x1df   : > { %8607 = vmatprep.mubr.msk.bf16.mxu0 %vm1106_vm0, %v9091_v24 }
 0x1e0   : > { %v8657_v35 = vpop.f32.mrb[0].mxu1 }
 0x1e1   : > { %v3043_v38 = vadd.f32 %v8657_v35, %v10698_v32  ;;  %v3034_v39 = vpop.f32.mrb[1].mxu1  ;;  %v10738_v1 = vpop.f32.mrb[120].mxu0 }
 0x1e2   : > { %v3035_v41 = vadd.f32 %v3034_v39, %v10698_v32  ;;  %v8658_v42 = vpop.f32.mrb[2].mxu1  ;;  %v10745_v12 = vpop.f32.mrb[121].mxu0 }
 0x1e3   : > { %9289 = vtanh.f32 %v3043_v38  ;;  %v3046_v45 = vadd.f32 %v8658_v42, %v10698_v32  ;;  %v3037_v46 = vpop.f32.mrb[3].mxu1  ;;  %v10749_v24 = vpop.f32.mrb[122].mxu0 }
 0x1e4   : > { %9291 = vtanh.f32 %v3035_v41  ;;  %v3038_v50 = vadd.f32 %v3037_v46, %v10698_v32  ;;  %v10752_v38 = vpop.f32.mrb[123].mxu0 }
 0x1e5   : > { %9293 = vtanh.f32 %v3046_v45 }
 0x1e6   : > { %8608 = vmatmul.mubr.msk.bf16.gmra.mrb[228].mxu0 %vm1106_vm0, %v9092_v43  ;;  %9295 = vtanh.f32 %v3038_v50 }
 0x1e7   : > { %8611 = vmatprep.mubr.msk.bf16.mxu0 %vm1106_vm0, %v9093_v47 }
 0x1e8   : > { %v8661_v56 = vpop.f32.mrb[4].mxu1 }
 0x1e9   : > { %v3059_v59 = vadd.f32 %v8661_v56, %v10698_v32  ;;  %v3050_v61 = vpop.f32.mrb[5].mxu1  ;;  %v10754_v41 = vpop.f32.mrb[124].mxu0 }
 0x1ea   : > { %v3051_v5 = vadd.f32 %v3050_v61, %v10698_v32  ;;  %v8662_v8 = vpop.f32.mrb[6].mxu1  ;;  %v10758_v43 = vpop.f32.mrb[125].mxu0 }
 0x1eb   : > { %9297 = vtanh.f32 %v3059_v59  ;;  %v3062_v16 = vadd.f32 %v8662_v8, %v10698_v32  ;;  %v3053_v20 = vpop.f32.mrb[7].mxu1  ;;  %v10761_v46 = vpop.f32.mrb[126].mxu0 }
 0x1ec   : > { %9299 = vtanh.f32 %v3051_v5  ;;  %v3054_v35 = vadd.f32 %v3053_v20, %v10698_v32  ;;  %v10764_v50 = vpop.f32.mrb[127].mxu0 }
 0x1ed   : > { %v9290_v39 = vpop.eup %9289  ;;  %9301 = vtanh.f32 %v3062_v16  ;;  %v9096_v16 = vld [vmem:[%s10270_s30 + $0x3b8] sm:$0xff]  }
 0x1ee   : > { %v9292_v4 = vpop.eup %9291  ;;  %8612 = vmatmul.mubr.msk.bf16.gmra.mrb[232].mxu0 %vm1106_vm0, %v9094_v10  ;;  %v4307_v42 = vmul.f32 %v9290_v39, %v10743_v11  ;;  %9303 = vtanh.f32 %v3054_v35  ;;  %v9097_v39 = vld [vmem:[%s10270_s30 + $0x3c0] sm:$0xff]  }
 0x1ef   : > { %v9294_v45 = vpop.eup %9293  ;;  %8615 = vmatprep.mubr.msk.bf16.mxu0 %vm1106_vm0, %v9095_v22  ;;  %v4305_v10 = vmul.f32 %v9292_v4, %v10743_v11 }
 0x1f0   : > { %4569 = vadd.xlane.f32.xlu0 %v4307_v42  ;;  %v8665_v47 = vpop.f32.mrb[8].mxu1  ;;  %v4308_v48 = vmul.f32 %v9294_v45, %v10743_v11  ;;  %v9296_v53 = vpop.eup %9295 }
 0x1f1   : > { %v3075_v56 = vadd.f32 %v8665_v47, %v10698_v32  ;;  %v3066_v59 = vpop.f32.mrb[9].mxu1  ;;  %v10767_v61 = vpop.f32.mrb[128].mxu0  ;;  %v4306_v47 = vmul.f32 %v9296_v53, %v10743_v11 }
 0x1f2   : > { %14665 = vst [vmem:[#allocation6_spill] sm:$0xff] %v10767_v61  ;;  %v3067_v5 = vadd.f32 %v3066_v59, %v10698_v32  ;;  %4571 = vadd.xlane.f32.xlu1 %v4308_v48  ;;  %v8666_v8 = vpop.f32.mrb[10].mxu1  ;;  %v10772_v20 = vpop.f32.mrb[129].mxu0 }
 0x1f3   : > { %14666 = vst [vmem:[#allocation7_spill] sm:$0xff] %v10772_v20  ;;  %9305 = vtanh.f32 %v3075_v56  ;;  %v3078_v22 = vadd.f32 %v8666_v8, %v10698_v32  ;;  %v3069_v35 = vpop.f32.mrb[11].mxu1  ;;  %v10776_v42 = vpop.f32.mrb[130].mxu0 }
 0x1f4   : > { %14667 = vst [vmem:[#allocation8_spill] sm:$0xff] %v10776_v42  ;;  %9307 = vtanh.f32 %v3067_v5  ;;  %v3070_v45 = vadd.f32 %v3069_v35, %v10698_v32  ;;  %4565 = vadd.xlane.f32.xlu0 %v4305_v10  ;;  %v10780_v48 = vpop.f32.mrb[131].mxu0 }
 0x1f5   : > { %14668 = vst [vmem:[#allocation9_spill] sm:$0xff] %v10780_v48  ;;  %v9298_v59 = vpop.eup %9297  ;;  %9309 = vtanh.f32 %v3078_v22 }
 0x1f6   : > { %v9300_v4 = vpop.eup %9299  ;;  %8616 = vmatmul.mubr.msk.bf16.gmra.mrb[236].mxu0 %vm1106_vm0, %v9096_v16  ;;  %4567 = vadd.xlane.f32.xlu1 %v4306_v47  ;;  %v4311_v56 = vmul.f32 %v9298_v59, %v10743_v11  ;;  %9311 = vtanh.f32 %v3070_v45  ;;  %v9098_v45 = vld [vmem:[%s10270_s30 + $0x3c8] sm:$0xff]  }
 0x1f7   : > { %v9302_v8 = vpop.eup %9301  ;;  %8619 = vmatprep.mubr.msk.bf16.mxu0 %vm1106_vm0, %v9097_v39  ;;  %v4309_v59 = vmul.f32 %v9300_v4, %v10743_v11  ;;  %v1902_v39 = vadd.f32 %v10654_v58, %v10415_v6  ;;  %v1894_v4 = vadd.f32 %v10657_v60, %v10415_v6 }
 0x1f8   : > { %v8669_v5 = vpop.f32.mrb[12].mxu1  ;;  %4577 = vadd.xlane.f32.xlu0 %v4311_v56  ;;  %v4312_v53 = vmul.f32 %v9302_v8, %v10743_v11  ;;  %v9304_v10 = vpop.eup %9303 }
 0x1f9   : > { %v3091_v35 = vadd.f32 %v8669_v5, %v10698_v32  ;;  %v3082_v22 = vpop.f32.mrb[13].mxu1  ;;  %v10787_v62 = vpop.f32.mrb[132].mxu0  ;;  %v9099_v5 = vld [vmem:[%s10270_s30 + $0x3d0] sm:$0xff]  }
 0x1fa   : > { %14669 = vst [vmem:[#allocation10_spill] sm:$0xff] %v10787_v62  ;;  %v3083_v16 = vadd.f32 %v3082_v22, %v10698_v32  ;;  %v8670_v47 = vpop.f32.mrb[14].mxu1  ;;  %4579 = vadd.xlane.f32.xlu1 %v4312_v53  ;;  %v10794_v56 = vpop.f32.mrb[133].mxu0  ;;  %v4310_v53 = vmul.f32 %v9304_v10, %v10743_v11 }
 0x1fb   : > { %14670 = vst [vmem:[#allocation11_spill] sm:$0xff] %v10794_v56  ;;  %9313 = vtanh.f32 %v3091_v35  ;;  %v3094_v8 = vadd.f32 %v8670_v47, %v10698_v32  ;;  %v3085_v31 = vpop.f32.mrb[15].mxu1  ;;  %v10798_v36 = vpop.f32.mrb[134].mxu0  ;;  %v1897_v35 = vadd.f32 %v10662_v2, %v10415_v6 }
 0x1fc   : > { %14671 = vst [vmem:[#allocation12_spill] sm:$0xff] %v10798_v36  ;;  %9315 = vtanh.f32 %v3083_v16  ;;  %v3086_v22 = vadd.f32 %v3085_v31, %v10698_v32  ;;  %4573 = vadd.xlane.f32.xlu0 %v4309_v59  ;;  %v10804_v0 = vpop.f32.mrb[135].mxu0  ;;  %v1905_v31 = vadd.f32 %v10660_v63, %v10415_v6  ;;  %v9103_v36 = vld [vmem:[%s10270_s30 + $0x3f0] sm:$0xff]  }
 0x1fd   : > { %14672 = vst [vmem:[#allocation13_spill] sm:$0xff] %v10804_v0  ;;  %v9306_v58 = vpop.eup %9305  ;;  %9317 = vtanh.f32 %v3094_v8 }
 0x1fe   : > { %v9308_v47 = vpop.eup %9307  ;;  %8620 = vmatmul.mubr.msk.bf16.gmra.mrb[240].mxu0 %vm1106_vm0, %v9098_v45  ;;  %4575 = vadd.xlane.f32.xlu1 %v4310_v53  ;;  %v4315_v16 = vmul.f32 %v9306_v58, %v10743_v11  ;;  %9319 = vtanh.f32 %v1902_v39 }
 0x1ff   : > { %v9310_v10 = vpop.eup %9309  ;;  %9321 = vtanh.f32 %v3086_v22  ;;  %8623 = vmatprep.mubr.msk.bf16.mxu0 %vm1106_vm0, %v9099_v5  ;;  %v4313_v22 = vmul.f32 %v9308_v47, %v10743_v11  ;;  %v9100_v5 = vld [vmem:[%s10270_s30 + $0x3d8] sm:$0xff]  }
 0x200   : > { %v8673_v60 = vpop.f32.mrb[16].mxu1  ;;  %4585 = vadd.xlane.f32.xlu0 %v4315_v16  ;;  %v4316_v59 = vmul.f32 %v9310_v10, %v10743_v11  ;;  %9323 = vtanh.f32 %v1894_v4  ;;  %v9312_v2 = vpop.eup %9311  ;;  %v9101_v10 = vld [vmem:[%s10270_s30 + $0x3e0] sm:$0xff]  }
 0x201   : > { %v3107_v45 = vadd.f32 %v8673_v60, %v10698_v32  ;;  %v3098_v8 = vpop.f32.mrb[17].mxu1  ;;  %9325 = vtanh.f32 %v1897_v35  ;;  %v10815_v39 = vpop.f32.mrb[136].mxu0 }
 0x202   : > { %14673 = vst [vmem:[#allocation14_spill] sm:$0xff] %v10815_v39  ;;  %v3099_v63 = vadd.f32 %v3098_v8, %v10698_v32  ;;  %v8674_v53 = vpop.f32.mrb[18].mxu1  ;;  %4587 = vadd.xlane.f32.xlu1 %v4316_v59  ;;  %9327 = vtanh.f32 %v1905_v31  ;;  %v10820_v58 = vpop.f32.mrb[137].mxu0  ;;  %v4314_v8 = vmul.f32 %v9312_v2, %v10743_v11 }
 0x203   : > { %14674 = vst [vmem:[#allocation15_spill] sm:$0xff] %v10820_v58  ;;  %9329 = vtanh.f32 %v3107_v45  ;;  %v3110_v4 = vadd.f32 %v8674_v53, %v10698_v32  ;;  %v3101_v16 = vpop.f32.mrb[19].mxu1  ;;  %v10824_v60 = vpop.f32.mrb[138].mxu0 }
 0x204   : > { %14675 = vst [vmem:[#allocation16_spill] sm:$0xff] %v10824_v60  ;;  %9331 = vtanh.f32 %v3099_v63  ;;  %v3102_v35 = vadd.f32 %v3101_v16, %v10698_v32  ;;  %4581 = vadd.xlane.f32.xlu0 %v4313_v22  ;;  %v10828_v59 = vpop.f32.mrb[139].mxu0 }
 0x205   : > { %14676 = vst [vmem:[#allocation17_spill] sm:$0xff] %v10828_v59  ;;  %v9314_v47 = vpop.eup %9313  ;;  %9333 = vtanh.f32 %v3110_v4 }
 0x206   : > { %v9316_v31 = vpop.eup %9315  ;;  %8624 = vmatmul.mubr.msk.bf16.gmra.mrb[244].mxu0 %vm1106_vm0, %v9100_v5  ;;  %4583 = vadd.xlane.f32.xlu1 %v4314_v8  ;;  %v4319_v45 = vmul.f32 %v9314_v47, %v10743_v11  ;;  %9335 = vtanh.f32 %v3102_v35 }
 0x207   : > { %v9318_v53 = vpop.eup %9317  ;;  %8627 = vmatprep.mubr.msk.bf16.mxu0 %vm1106_vm0, %v9101_v10  ;;  %v4317_v35 = vmul.f32 %v9316_v31, %v10743_v11  ;;  %v9102_v10 = vld [vmem:[%s10270_s30 + $0x3e8] sm:$0xff]  }
 0x208   : > { %v9320_v63 = vpop.eup %9319  ;;  %v8677_v16 = vpop.f32.mrb[20].mxu1  ;;  %4593 = vadd.xlane.f32.xlu0 %v4319_v45  ;;  %v4320_v2 = vmul.f32 %v9318_v53, %v10743_v11 }
 0x209   : > { %v9322_v22 = vpop.eup %9321  ;;  %v3123_v4 = vadd.f32 %v8677_v16, %v10698_v32  ;;  %v3114_v60 = vpop.f32.mrb[21].mxu1 }
 0x20a   : > { %v10835_v59 = vpop.f32.mrb[140].mxu0  ;;  %v9324_v5 = vpop.eup %9323  ;;  %v3115_v8 = vadd.f32 %v3114_v60, %v10698_v32  ;;  %4595 = vadd.xlane.f32.xlu1 %v4320_v2  ;;  %v4318_v60 = vmul.f32 %v9322_v22, %v10743_v11 }
 0x20b   : > { %14677 = vst [vmem:[#allocation18_spill] sm:$0xff] %v10835_v59  ;;  %v8678_v47 = vpop.f32.mrb[22].mxu1  ;;  %v10840_v58 = vpop.f32.mrb[141].mxu0  ;;  %9337 = vtanh.f32 %v3123_v4 }
 0x20c   : > { %14678 = vst [vmem:[#allocation19_spill] sm:$0xff] %v10840_v58  ;;  %v9326_v45 = vpop.eup %9325  ;;  %v3126_v53 = vadd.f32 %v8678_v47, %v10698_v32  ;;  %v3117_v39 = vpop.f32.mrb[23].mxu1  ;;  %9339 = vtanh.f32 %v3115_v8  ;;  %4589 = vadd.xlane.f32.xlu0 %v4317_v35  ;;  %v10193_v8 = vmov 0  }
 0x20d   : > { %v10844_v16 = vpop.f32.mrb[142].mxu0  ;;  %v9328_v0 = vpop.eup %9327  ;;  %v3118_v59 = vadd.f32 %v3117_v39, %v10698_v32  ;;  %v2850_v47 = vpack.c.bf16 %v9326_v45, %v9324_v5  ;;  %8965 = vset.pattern.permute.xlu1 %v10193_v8  ;;  %8966 = vset.pattern.permute.xlu0 %v10193_v8 }
 0x20e   : > { %14679 = vst [vmem:[#allocation20_spill] sm:$0xff] %v10844_v16  ;;  %v10848_v2 = vpop.f32.mrb[143].mxu0  ;;  %v9330_v31 = vpop.eup %9329  ;;  %9341 = vtanh.f32 %v3126_v53  ;;  %8628 = vmatmul.mubr.msk.bf16.gmra.mrb[248].mxu0 %vm1106_vm0, %v9102_v10  ;;  %4591 = vadd.xlane.f32.xlu1 %v4318_v60  ;;  %v2851_v39 = vpack.c.bf16 %v9328_v0, %v9320_v63  ;;  %v9104_v0 = vld [vmem:[%s10270_s30 + $0x3f8] sm:$0xff]   ;;  %s147_s30 = sand.u32 1, %s10183_s10  }
 0x20f   : > { %14680 = vst [vmem:[#allocation21_spill] sm:$0xff] %v10848_v2  ;;  %v9332_v58 = vpop.eup %9331  ;;  %v4323_v4 = vmul.f32 %v9330_v31, %v10743_v11  ;;  %9343 = vtanh.f32 %v3118_v59  ;;  %8631 = vmatprep.mubr.msk.bf16.mxu0 %vm1106_vm0, %v9103_v36  ;;  %8743 = vmatprep.mubr.bf16.mxu1 %v2850_v47  ;;  %s7834_s13 = sshll.u32 %s147_s30, 4  ;;  %s14553_s24 = scalar_lea.sflag [#allocation3], %s147_s30 }
 0x210   : > { %v9334_v56 = vpop.eup %9333  ;;  %v8681_v22 = vpop.f32.mrb[24].mxu1  ;;  %8744 = vmatmul.mubr.bf16.gmra.mrb[88].mxu1 %v2851_v39  ;;  %v4321_v5 = vmul.f32 %v9332_v58, %v10743_v11  ;;  %s13778_s14 = scalar_lea.vmem [#allocation2], %s7834_s13 }
 0x211   : > { %4601 = vadd.xlane.f32.xlu0 %v4323_v4  ;;  %v4324_v35 = vmul.f32 %v9334_v56, %v10743_v11  ;;  %v9336_v53 = vpop.eup %9335  ;;  %v3139_v10 = vadd.f32 %v8681_v22, %v10698_v32  ;;  %v3130_v60 = vpop.f32.mrb[25].mxu1  ;;  %s7768_s16 = sshll.u32 %s13778_s14, 4  ;;  %s14544_s16 = int_to_ptr.vmem [resolvable:$true] %s7768_s16 }
 0x212   : > { %v10855_v16 = vpop.f32.mrb[144].mxu0  ;;  %v3131_v59 = vadd.f32 %v3130_v60, %v10698_v32  ;;  %v8682_v36 = vpop.f32.mrb[26].mxu1  ;;  %v4322_v47 = vmul.f32 %v9336_v53, %v10743_v11  ;;  %s10129_s25 = scalar_lea.vmem %s14544_s16, 256  ;;  %p10136_p0 = scmp.lt.s32.totalorder %s14544_s16, %s10134_s26 }
 0x213   : > { %14681 = vst [vmem:[#allocation22_spill] sm:$0xff] %v10855_v16  ;;  %4603 = vadd.xlane.f32.xlu1 %v4324_v35  ;;  %v10860_v63 = vpop.f32.mrb[145].mxu0  ;;  %9345 = vtanh.f32 %v3139_v10  ;;  %v3142_v56 = vadd.f32 %v8682_v36, %v10698_v32  ;;  %v3133_v45 = vpop.f32.mrb[27].mxu1  ;;  %v14685_v10 = vpack.c.bf16 %v10440_v30, %v10435_v28  ;;  %p10130_p11 = scmp.ne.s32.totalorder %s14544_s16, %s10129_s25  ;;  %p10137_p1 = scmp.lt.s32.totalorder %s10135_s27, %s10129_s25 }
 0x214   : > { %14682 = vst [vmem:[#allocation23_spill] sm:$0xff] %v10860_v63  ;;  %v10863_v31 = vpop.f32.mrb[146].mxu0  ;;  %9347 = vtanh.f32 %v3131_v59  ;;  %v3134_v4 = vadd.f32 %v3133_v45, %v10698_v32 }
 0x215   : > { %14683 = vst [vmem:[#allocation24_spill] sm:$0xff] %v10863_v31  ;;  %4597 = vadd.xlane.f32.xlu0 %v4321_v5  ;;  %v10867_v8 = vpop.f32.mrb[147].mxu0  ;;  %v9338_v39 = vpop.eup %9337  ;;  %9349 = vtanh.f32 %v3142_v56  ;;  %p10131_p12 = pnand %p10130_p11, %p10247_p5  ;;  %p10138_p2 = por %p10137_p1, %p10136_p0 }
 0x216   : > { %14684 = vst [vmem:[#allocation25_spill] sm:$0xff] %v10867_v8  ;;  %v9340_v58 = vpop.eup %9339  ;;  %8632 = vmatmul.mubr.msk.bf16.gmra.mrb[252].mxu0 %vm1106_vm0, %v9104_v0  ;;  %v4327_v22 = vmul.f32 %v9338_v39, %v10743_v11  ;;  %9351 = vtanh.f32 %v3134_v4  ;;  %vm14652_vm0 = vcmask 1041409  }
 0x217   : > { %4599 = vadd.xlane.f32.xlu1 %v4322_v47  ;;  %8651 = vmatprep.mubr.bf16.mxu0 %v14685_v10  ;;  %v4325_v4 = vmul.f32 %v9340_v58, %v10743_v11  ;;  %v14690_v58 = vpack.c.bf16 %v10438_v29, %v10432_v27  ;;  %p10132_p13 = pneg %p10131_p12 }
 0x218   : > { %v9342_v35 = vpop.eup %9341  ;;  %v8685_v60 = vpop.f32.mrb[28].mxu1 }
 0x219   : > { %4609 = vadd.xlane.f32.xlu0 %v4327_v22  ;;  %v4328_v53 = vmul.f32 %v9342_v35, %v10743_v11  ;;  %v9344_v59 = vpop.eup %9343  ;;  %v3155_v36 = vadd.f32 %v8685_v60, %v10698_v32  ;;  %v3146_v5 = vpop.f32.mrb[29].mxu1  ;;  %p10139_p3 = pnand %p10138_p2, %p10132_p13 }
 0x21a   : > { %v10876_v56 = vpop.f32.mrb[148].mxu0  ;;  %v3147_v0 = vadd.f32 %v3146_v5, %v10698_v32  ;;  %v8686_v45 = vpop.f32.mrb[30].mxu1  ;;  %v4326_v35 = vmul.f32 %v9344_v59, %v10743_v11 }
 0x21b   : > { %14686 = vst [vmem:[#allocation26_spill] sm:$0xff] %v10876_v56  ;;  %4611 = vadd.xlane.f32.xlu1 %v4328_v53  ;;  %v10880_v47 = vpop.f32.mrb[149].mxu0  ;;  %9353 = vtanh.f32 %v3155_v36  ;;  %v3158_v28 = vadd.f32 %v8686_v45, %v10698_v32  ;;  %v3149_v30 = vpop.f32.mrb[31].mxu1 }
 0x21c   : > { %14687 = vst [vmem:[#allocation27_spill] sm:$0xff] %v10880_v47  ;;  %v10883_v39 = vpop.f32.mrb[150].mxu0  ;;  %9355 = vtanh.f32 %v3147_v0  ;;  %v3150_v22 = vadd.f32 %v3149_v30, %v10698_v32 }
 0x21d   : > { %14688 = vst [vmem:[#allocation28_spill] sm:$0xff] %v10883_v39  ;;  %4605 = vadd.xlane.f32.xlu0 %v4325_v4  ;;  %v10887_v10 = vpop.f32.mrb[151].mxu0  ;;  %v9346_v60 = vpop.eup %9345  ;;  %9357 = vtanh.f32 %v3158_v28 }
 0x21e   : > { %14689 = vst [vmem:[#allocation29_spill] sm:$0xff] %v10887_v10  ;;  %v9348_v53 = vpop.eup %9347  ;;  %8652 = vmatmul.mubr.bf16.vlgmr.msra.gmra.mrb[0].mxu0 %v14690_v58  ;;  %v4331_v36 = vmul.f32 %v9346_v60, %v10743_v11  ;;  %9359 = vtanh.f32 %v3150_v22 }
 0x21f   : > { %4607 = vadd.xlane.f32.xlu1 %v4326_v35  ;;  %v9350_v5 = vpop.eup %9349  ;;  %v4329_v27 = vmul.f32 %v9348_v53, %v10743_v11 }
 0x220   : > { %v8689_v0 = vpop.f32.mrb[32].mxu1  ;;  %v4332_v45 = vmul.f32 %v9350_v5, %v10743_v11  ;;  %v9352_v4 = vpop.eup %9351 }
 0x221   : > { %4617 = vadd.xlane.f32.xlu0 %v4331_v36  ;;  %v3171_v59 = vadd.f32 %v8689_v0, %v10698_v32  ;;  %v3162_v30 = vpop.f32.mrb[33].mxu1  ;;  %v10895_v39 = vpop.f32.mrb[152].mxu0  ;;  %v4330_v5 = vmul.f32 %v9352_v4, %v10743_v11 }
 0x222   : > { %14691 = vst [vmem:[#allocation30_spill] sm:$0xff] %v10895_v39  ;;  %v3163_v28 = vadd.f32 %v3162_v30, %v10698_v32  ;;  %v8690_v35 = vpop.f32.mrb[34].mxu1  ;;  %v10899_v29 = vpop.f32.mrb[153].mxu0 }
 0x223   : > { %4619 = vadd.xlane.f32.xlu1 %v4332_v45  ;;  %14692 = vst [vmem:[#allocation31_spill] sm:$0xff] %v10899_v29  ;;  %9361 = vtanh.f32 %v3171_v59  ;;  %v3174_v22 = vadd.f32 %v8690_v35, %v10698_v32  ;;  %v3165_v60 = vpop.f32.mrb[35].mxu1  ;;  %v10902_v58 = vpop.f32.mrb[154].mxu0 }
 0x224   : > { %14693 = vst [vmem:[#allocation32_spill] sm:$0xff] %v10902_v58  ;;  %9363 = vtanh.f32 %v3163_v28  ;;  %v3166_v36 = vadd.f32 %v3165_v60, %v10698_v32  ;;  %v10906_v0 = vpop.f32.mrb[155].mxu0 }
 0x225   : > { %4613 = vadd.xlane.f32.xlu0 %v4329_v27  ;;  %14694 = vst [vmem:[#allocation33_spill] sm:$0xff] %v10906_v0  ;;  %v9354_v30 = vpop.eup %9353  ;;  %9365 = vtanh.f32 %v3174_v22 }
 0x226   : > { %v9356_v45 = vpop.eup %9355  ;;  %v4335_v53 = vmul.f32 %v9354_v30, %v10743_v11  ;;  %9367 = vtanh.f32 %v3166_v36 }
 0x227   : > { %4615 = vadd.xlane.f32.xlu1 %v4330_v5  ;;  %v9358_v59 = vpop.eup %9357  ;;  %v4333_v22 = vmul.f32 %v9356_v45, %v10743_v11 }
 0x228   : > { %v8693_v35 = vpop.f32.mrb[36].mxu1  ;;  %v4336_v58 = vmul.f32 %v9358_v59, %v10743_v11  ;;  %v9360_v28 = vpop.eup %9359 }
 0x229   : > { %4625 = vadd.xlane.f32.xlu0 %v4335_v53  ;;  %v3187_v60 = vadd.f32 %v8693_v35, %v10698_v32  ;;  %v3178_v27 = vpop.f32.mrb[37].mxu1  ;;  %v10911_v29 = vpop.f32.mrb[156].mxu0  ;;  %v4334_v35 = vmul.f32 %v9360_v28, %v10743_v11 }
 0x22a   : > { %14695 = vst [vmem:[#allocation34_spill] sm:$0xff] %v10911_v29  ;;  %v3179_v4 = vadd.f32 %v3178_v27, %v10698_v32  ;;  %v8694_v0 = vpop.f32.mrb[38].mxu1  ;;  %v10915_v5 = vpop.f32.mrb[157].mxu0 }
 0x22b   : > { %4627 = vadd.xlane.f32.xlu1 %v4336_v58  ;;  %14696 = vst [vmem:[#allocation35_spill] sm:$0xff] %v10915_v5  ;;  %9369 = vtanh.f32 %v3187_v60  ;;  %v3190_v36 = vadd.f32 %v8694_v0, %v10698_v32  ;;  %v3181_v30 = vpop.f32.mrb[39].mxu1  ;;  %v10918_v53 = vpop.f32.mrb[158].mxu0 }
 0x22c   : > { %14697 = vst [vmem:[#allocation36_spill] sm:$0xff] %v10918_v53  ;;  %9371 = vtanh.f32 %v3179_v4  ;;  %v3182_v59 = vadd.f32 %v3181_v30, %v10698_v32  ;;  %v10922_v29 = vpop.f32.mrb[159].mxu0 }
 0x22d   : > { %4621 = vadd.xlane.f32.xlu0 %v4333_v22  ;;  %14698 = vst [vmem:[#allocation37_spill] sm:$0xff] %v10922_v29  ;;  %v9362_v27 = vpop.eup %9361  ;;  %9373 = vtanh.f32 %v3190_v36 }
 0x22e   : > { %v9364_v58 = vpop.eup %9363  ;;  %v4339_v45 = vmul.f32 %v9362_v27, %v10743_v11  ;;  %9375 = vtanh.f32 %v3182_v59 }
 0x22f   : > { %4623 = vadd.xlane.f32.xlu1 %v4334_v35  ;;  %v9366_v60 = vpop.eup %9365  ;;  %v4337_v36 = vmul.f32 %v9364_v58, %v10743_v11 }
 0x230   : > { %v8697_v0 = vpop.f32.mrb[40].mxu1  ;;  %v4340_v53 = vmul.f32 %v9366_v60, %v10743_v11  ;;  %v9368_v4 = vpop.eup %9367 }
 0x231   : > { %4633 = vadd.xlane.f32.xlu0 %v4339_v45  ;;  %v3203_v30 = vadd.f32 %v8697_v0, %v10698_v32  ;;  %v3194_v22 = vpop.f32.mrb[41].mxu1  ;;  %v10927_v5 = vpop.f32.mrb[160].mxu0  ;;  %v4338_v0 = vmul.f32 %v9368_v4, %v10743_v11 }
 0x232   : > { %14699 = vst [vmem:[#allocation38_spill] sm:$0xff] %v10927_v5  ;;  %v3195_v28 = vadd.f32 %v3194_v22, %v10698_v32  ;;  %v8698_v29 = vpop.f32.mrb[42].mxu1  ;;  %v10931_v35 = vpop.f32.mrb[161].mxu0  ;;  %v1918_v22 = vadd.f32 %v10664_v7, %v10415_v6 }
 0x233   : > { %4635 = vadd.xlane.f32.xlu1 %v4340_v53  ;;  %14700 = vst [vmem:[#allocation39_spill] sm:$0xff] %v10931_v35  ;;  %9377 = vtanh.f32 %v3203_v30  ;;  %v3206_v59 = vadd.f32 %v8698_v29, %v10698_v32  ;;  %v3197_v27 = vpop.f32.mrb[43].mxu1  ;;  %v10934_v45 = vpop.f32.mrb[162].mxu0  ;;  %v1910_v30 = vadd.f32 %v10667_v9, %v10415_v6 }
 0x234   : > { %14701 = vst [vmem:[#allocation40_spill] sm:$0xff] %v10934_v45  ;;  %9379 = vtanh.f32 %v3195_v28  ;;  %v3198_v60 = vadd.f32 %v3197_v27, %v10698_v32  ;;  %v10940_v53 = vpop.f32.mrb[163].mxu0  ;;  %v1921_v28 = vadd.f32 %v10670_v13, %v10415_v6 }
 0x235   : > { %4629 = vadd.xlane.f32.xlu0 %v4337_v36  ;;  %14702 = vst [vmem:[#allocation41_spill] sm:$0xff] %v10940_v53  ;;  %v9370_v58 = vpop.eup %9369  ;;  %9381 = vtanh.f32 %v3206_v59 }
 0x236   : > { %v9372_v29 = vpop.eup %9371  ;;  %v4343_v45 = vmul.f32 %v9370_v58, %v10743_v11  ;;  %9383 = vtanh.f32 %v3198_v60 }
 0x237   : > { %4631 = vadd.xlane.f32.xlu1 %v4338_v0  ;;  %v9374_v36 = vpop.eup %9373  ;;  %9385 = vtanh.f32 %v1918_v22  ;;  %v4341_v13 = vmul.f32 %v9372_v29, %v10743_v11 }
 0x238   : > { %v8701_v4 = vpop.f32.mrb[44].mxu1  ;;  %v4344_v7 = vmul.f32 %v9374_v36, %v10743_v11  ;;  %v9376_v27 = vpop.eup %9375  ;;  %9387 = vtanh.f32 %v1910_v30 }
 0x239   : > { %4641 = vadd.xlane.f32.xlu0 %v4343_v45  ;;  %v3219_v59 = vadd.f32 %v8701_v4, %v10698_v32  ;;  %v3210_v53 = vpop.f32.mrb[45].mxu1  ;;  %v10949_v9 = vpop.f32.mrb[164].mxu0  ;;  %9389 = vtanh.f32 %v1921_v28  ;;  %v1913_v45 = vadd.f32 %v10672_v14, %v10415_v6 }
 0x23a   : > { %14703 = vst [vmem:[#allocation42_spill] sm:$0xff] %v10949_v9  ;;  %v3211_v0 = vadd.f32 %v3210_v53, %v10698_v32  ;;  %v8702_v58 = vpop.f32.mrb[46].mxu1  ;;  %v10955_v60 = vpop.f32.mrb[165].mxu0  ;;  %v4342_v53 = vmul.f32 %v9376_v27, %v10743_v11 }
 0x23b   : > { %4643 = vadd.xlane.f32.xlu1 %v4344_v7  ;;  %14704 = vst [vmem:[#allocation43_spill] sm:$0xff] %v10955_v60  ;;  %9391 = vtanh.f32 %v3219_v59  ;;  %v3222_v22 = vadd.f32 %v8702_v58, %v10698_v32  ;;  %v3213_v36 = vpop.f32.mrb[47].mxu1  ;;  %v10958_v4 = vpop.f32.mrb[166].mxu0 }
 0x23c   : > { %14705 = vst [vmem:[#allocation44_spill] sm:$0xff] %v10958_v4  ;;  %9393 = vtanh.f32 %v3211_v0  ;;  %v3214_v30 = vadd.f32 %v3213_v36, %v10698_v32  ;;  %v10962_v7 = vpop.f32.mrb[167].mxu0 }
 0x23d   : > { %4637 = vadd.xlane.f32.xlu0 %v4341_v13  ;;  %14706 = vst [vmem:[#allocation45_spill] sm:$0xff] %v10962_v7  ;;  %v9378_v29 = vpop.eup %9377  ;;  %9395 = vtanh.f32 %v3222_v22 }
 0x23e   : > { %v9380_v28 = vpop.eup %9379  ;;  %v4347_v14 = vmul.f32 %v9378_v29, %v10743_v11  ;;  %9397 = vtanh.f32 %v1913_v45 }
 0x23f   : > { %4639 = vadd.xlane.f32.xlu1 %v4342_v53  ;;  %v9382_v59 = vpop.eup %9381  ;;  %9399 = vtanh.f32 %v3214_v30  ;;  %v4345_v53 = vmul.f32 %v9380_v28, %v10743_v11 }
 0x240   : > { %v8705_v58 = vpop.f32.mrb[48].mxu1  ;;  %v4348_v0 = vmul.f32 %v9382_v59, %v10743_v11  ;;  %v9384_v4 = vpop.eup %9383 }
 0x241   : > { %4649 = vadd.xlane.f32.xlu0 %v4347_v14  ;;  %v3235_v13 = vadd.f32 %v8705_v58, %v10698_v32  ;;  %v3226_v36 = vpop.f32.mrb[49].mxu1  ;;  %v10967_v27 = vpop.f32.mrb[168].mxu0 }
 0x242   : > { %14707 = vst [vmem:[#allocation46_spill] sm:$0xff] %v10967_v27  ;;  %v9386_v7 = vpop.eup %9385  ;;  %v3227_v22 = vadd.f32 %v3226_v36, %v10698_v32  ;;  %v8706_v60 = vpop.f32.mrb[50].mxu1  ;;  %v4346_v36 = vmul.f32 %v9384_v4, %v10743_v11 }
 0x243   : > { %4651 = vadd.xlane.f32.xlu1 %v4348_v0  ;;  %v10971_v45 = vpop.f32.mrb[169].mxu0  ;;  %v9388_v30 = vpop.eup %9387  ;;  %9401 = vtanh.f32 %v3235_v13  ;;  %v3238_v29 = vadd.f32 %v8706_v60, %v10698_v32 }
 0x244   : > { %14708 = vst [vmem:[#allocation47_spill] sm:$0xff] %v10971_v45  ;;  %v3229_v14 = vpop.f32.mrb[51].mxu1  ;;  %v10974_v59 = vpop.f32.mrb[170].mxu0  ;;  %9403 = vtanh.f32 %v3227_v22 }
 0x245   : > { %14709 = vst [vmem:[#allocation48_spill] sm:$0xff] %v10974_v59  ;;  %v9390_v58 = vpop.eup %9389  ;;  %v3230_v27 = vadd.f32 %v3229_v14, %v10698_v32  ;;  %4645 = vadd.xlane.f32.xlu0 %v4345_v53  ;;  %v10978_v9 = vpop.f32.mrb[171].mxu0  ;;  %9405 = vtanh.f32 %v3238_v29 }
 0x246   : > { %14710 = vst [vmem:[#allocation49_spill] sm:$0xff] %v10978_v9  ;;  %v9392_v0 = vpop.eup %9391 }
 0x247   : > { %v9394_v28 = vpop.eup %9393  ;;  %4647 = vadd.xlane.f32.xlu1 %v4346_v36  ;;  %v4351_v13 = vmul.f32 %v9392_v0, %v10743_v11  ;;  %9407 = vtanh.f32 %v3230_v27 }
 0x248   : > { %v9396_v45 = vpop.eup %9395  ;;  %v8709_v35 = vpop.f32.mrb[52].mxu1  ;;  %v4349_v36 = vmul.f32 %v9394_v28, %v10743_v11 }
 0x249   : > { %v9398_v60 = vpop.eup %9397  ;;  %4657 = vadd.xlane.f32.xlu0 %v4351_v13  ;;  %v4352_v22 = vmul.f32 %v9396_v45, %v10743_v11  ;;  %v3251_v53 = vadd.f32 %v8709_v35, %v10698_v32  ;;  %v3242_v14 = vpop.f32.mrb[53].mxu1 }
 0x24a   : > { %v9400_v59 = vpop.eup %9399  ;;  %v10983_v4 = vpop.f32.mrb[172].mxu0  ;;  %v3243_v9 = vadd.f32 %v3242_v14, %v10698_v32  ;;  %v2852_v45 = vpack.c.bf16 %v9398_v60, %v9388_v30 }
 0x24b   : > { %14711 = vst [vmem:[#allocation50_spill] sm:$0xff] %v10983_v4  ;;  %v8710_v29 = vpop.f32.mrb[54].mxu1  ;;  %4659 = vadd.xlane.f32.xlu1 %v4352_v22  ;;  %v10987_v0 = vpop.f32.mrb[173].mxu0  ;;  %9409 = vtanh.f32 %v3251_v53  ;;  %v4350_v4 = vmul.f32 %v9400_v59, %v10743_v11  ;;  %v2853_v22 = vpack.c.bf16 %v9390_v58, %v9386_v7 }
 0x24c   : > { %14712 = vst [vmem:[#allocation51_spill] sm:$0xff] %v10987_v0  ;;  %v3254_v27 = vadd.f32 %v8710_v29, %v10698_v32  ;;  %v3245_v13 = vpop.f32.mrb[55].mxu1  ;;  %v10990_v5 = vpop.f32.mrb[174].mxu0  ;;  %9411 = vtanh.f32 %v3243_v9  ;;  %8747 = vmatprep.mubr.bf16.mxu1 %v2852_v45 }
 0x24d   : > { %14713 = vst [vmem:[#allocation52_spill] sm:$0xff] %v10990_v5  ;;  %v3246_v35 = vadd.f32 %v3245_v13, %v10698_v32  ;;  %4653 = vadd.xlane.f32.xlu0 %v4349_v36  ;;  %v10994_v14 = vpop.f32.mrb[175].mxu0  ;;  %v9402_v39 = vpop.eup %9401  ;;  %8748 = vmatmul.mubr.bf16.gmra.mrb[92].mxu1 %v2853_v22 }
 0x24e   : > { %14714 = vst [vmem:[#allocation53_spill] sm:$0xff] %v10994_v14  ;;  %9413 = vtanh.f32 %v3254_v27  ;;  %v9404_v28 = vpop.eup %9403  ;;  %v4355_v53 = vmul.f32 %v9402_v39, %v10743_v11 }
 0x24f   : > { %4655 = vadd.xlane.f32.xlu1 %v4350_v4  ;;  %v9406_v29 = vpop.eup %9405  ;;  %9415 = vtanh.f32 %v3246_v35  ;;  %v4353_v4 = vmul.f32 %v9404_v28, %v10743_v11 }
 0x250   : > { %v8713_v30 = vpop.f32.mrb[56].mxu1  ;;  %v4356_v9 = vmul.f32 %v9406_v29, %v10743_v11 }
 0x251   : > { %4665 = vadd.xlane.f32.xlu0 %v4355_v53  ;;  %v9408_v60 = vpop.eup %9407  ;;  %v3267_v59 = vadd.f32 %v8713_v30, %v10698_v32  ;;  %v3258_v36 = vpop.f32.mrb[57].mxu1 }
 0x252   : > { %v10999_v13 = vpop.f32.mrb[176].mxu0  ;;  %v3259_v7 = vadd.f32 %v3258_v36, %v10698_v32  ;;  %v8714_v58 = vpop.f32.mrb[58].mxu1  ;;  %v4354_v53 = vmul.f32 %v9408_v60, %v10743_v11 }
 0x253   : > { %14715 = vst [vmem:[#allocation54_spill] sm:$0xff] %v10999_v13  ;;  %4667 = vadd.xlane.f32.xlu1 %v4356_v9  ;;  %v11003_v39 = vpop.f32.mrb[177].mxu0  ;;  %9417 = vtanh.f32 %v3267_v59  ;;  %v3270_v27 = vadd.f32 %v8714_v58, %v10698_v32  ;;  %v3261_v45 = vpop.f32.mrb[59].mxu1 }
 0x254   : > { %14716 = vst [vmem:[#allocation55_spill] sm:$0xff] %v11003_v39  ;;  %v11006_v35 = vpop.f32.mrb[178].mxu0  ;;  %9419 = vtanh.f32 %v3259_v7  ;;  %v3262_v22 = vadd.f32 %v3261_v45, %v10698_v32  ;;  %v11013_v36 = vpop.permute.xlu1 %5079 }
 0x255   : > { %14717 = vst [vmem:[#allocation56_spill] sm:$0xff] %v11006_v35  ;;  %4661 = vadd.xlane.f32.xlu0 %v4353_v4  ;;  %v11010_v29 = vpop.f32.mrb[179].mxu0  ;;  %v9410_v30 = vpop.eup %9409  ;;  %9421 = vtanh.f32 %v3270_v27  ;;  %14719 = vst [vmem:[#allocation58_spill] sm:$0xff] %v11013_v36 }
 0x256   : > { %14718 = vst [vmem:[#allocation57_spill] sm:$0xff] %v11010_v29  ;;  %v9412_v9 = vpop.eup %9411  ;;  %v4359_v28 = vmul.f32 %v9410_v30, %v10743_v11  ;;  %9423 = vtanh.f32 %v3262_v22  ;;  %v11015_v58 = vpop.permute.xlu0 %5075 }
 0x257   : > { %4663 = vadd.xlane.f32.xlu1 %v4354_v53  ;;  %14720 = vst [vmem:[#allocation59_spill] sm:$0xff] %v11015_v58  ;;  %v4357_v30 = vmul.f32 %v9412_v9, %v10743_v11 }
 0x258   : > { %v9414_v59 = vpop.eup %9413  ;;  %v8717_v7 = vpop.f32.mrb[60].mxu1 }
 0x259   : > { %4673 = vadd.xlane.f32.xlu0 %v4359_v28  ;;  %v4360_v4 = vmul.f32 %v9414_v59, %v10743_v11  ;;  %v9416_v45 = vpop.eup %9415  ;;  %v3283_v60 = vadd.f32 %v8717_v7, %v10698_v32  ;;  %v3274_v29 = vpop.f32.mrb[61].mxu1 }
 0x25a   : > { %v11019_v35 = vpop.f32.mrb[180].mxu0  ;;  %v3275_v27 = vadd.f32 %v3274_v29, %v10698_v32  ;;  %v8718_v53 = vpop.f32.mrb[62].mxu1  ;;  %v4358_v7 = vmul.f32 %v9416_v45, %v10743_v11 }
 0x25b   : > { %14721 = vst [vmem:[#allocation60_spill] sm:$0xff] %v11019_v35  ;;  %4675 = vadd.xlane.f32.xlu1 %v4360_v4  ;;  %v11023_v39 = vpop.f32.mrb[181].mxu0  ;;  %9425 = vtanh.f32 %v3283_v60  ;;  %v3286_v22 = vadd.f32 %v8718_v53, %v10698_v32  ;;  %v3277_v28 = vpop.f32.mrb[63].mxu1 }
 0x25c   : > { %14722 = vst [vmem:[#allocation61_spill] sm:$0xff] %v11023_v39  ;;  %v11026_v13 = vpop.f32.mrb[182].mxu0  ;;  %9427 = vtanh.f32 %v3275_v27  ;;  %v3278_v59 = vadd.f32 %v3277_v28, %v10698_v32  ;;  %v11033_v39 = vpop.permute.xlu1 %5083 }
 0x25d   : > { %14723 = vst [vmem:[#allocation62_spill] sm:$0xff] %v11026_v13  ;;  %4669 = vadd.xlane.f32.xlu0 %v4357_v30  ;;  %v11030_v35 = vpop.f32.mrb[183].mxu0  ;;  %v9418_v29 = vpop.eup %9417  ;;  %9429 = vtanh.f32 %v3286_v22  ;;  %14725 = vst [vmem:[#allocation64_spill] sm:$0xff] %v11033_v39 }
 0x25e   : > { %14724 = vst [vmem:[#allocation63_spill] sm:$0xff] %v11030_v35  ;;  %v9420_v4 = vpop.eup %9419  ;;  %v4363_v9 = vmul.f32 %v9418_v29, %v10743_v11  ;;  %9431 = vtanh.f32 %v3278_v59  ;;  %v11035_v53 = vpop.permute.xlu0 %5091 }
 0x25f   : > { %4671 = vadd.xlane.f32.xlu1 %v4358_v7  ;;  %v9422_v60 = vpop.eup %9421  ;;  %14726 = vst [vmem:[#allocation65_spill] sm:$0xff] %v11035_v53  ;;  %v4361_v29 = vmul.f32 %v9420_v4, %v10743_v11 }
 0x260   : > { %v8721_v27 = vpop.f32.mrb[64].mxu1  ;;  %v4364_v30 = vmul.f32 %v9422_v60, %v10743_v11  ;;  %v9424_v28 = vpop.eup %9423 }
 0x261   : > { %4681 = vadd.xlane.f32.xlu0 %v4363_v9  ;;  %v3299_v45 = vadd.f32 %v8721_v27, %v10698_v32  ;;  %v3290_v13 = vpop.f32.mrb[65].mxu1  ;;  %v11039_v35 = vpop.f32.mrb[184].mxu0  ;;  %v4362_v27 = vmul.f32 %v9424_v28, %v10743_v11 }
 0x262   : > { %14727 = vst [vmem:[#allocation66_spill] sm:$0xff] %v11039_v35  ;;  %v3291_v22 = vadd.f32 %v3290_v13, %v10698_v32  ;;  %v8722_v7 = vpop.f32.mrb[66].mxu1  ;;  %v11043_v14 = vpop.f32.mrb[185].mxu0 }
 0x263   : > { %4683 = vadd.xlane.f32.xlu1 %v4364_v30  ;;  %14728 = vst [vmem:[#allocation67_spill] sm:$0xff] %v11043_v14  ;;  %9433 = vtanh.f32 %v3299_v45  ;;  %v3302_v59 = vadd.f32 %v8722_v7, %v10698_v32  ;;  %v3293_v9 = vpop.f32.mrb[67].mxu1  ;;  %v11046_v5 = vpop.f32.mrb[186].mxu0 }
 0x264   : > { %14729 = vst [vmem:[#allocation68_spill] sm:$0xff] %v11046_v5  ;;  %9435 = vtanh.f32 %v3291_v22  ;;  %v3294_v60 = vadd.f32 %v3293_v9, %v10698_v32  ;;  %v11050_v35 = vpop.f32.mrb[187].mxu0  ;;  %v11053_v14 = vpop.permute.xlu1 %5087 }
 0x265   : > { %4677 = vadd.xlane.f32.xlu0 %v4361_v29  ;;  %14730 = vst [vmem:[#allocation69_spill] sm:$0xff] %v11050_v35  ;;  %v9426_v13 = vpop.eup %9425  ;;  %9437 = vtanh.f32 %v3302_v59  ;;  %14731 = vst [vmem:[#allocation70_spill] sm:$0xff] %v11053_v14  ;;  %v11055_v7 = vpop.permute.xlu0 %5099 }
 0x266   : > { %v9428_v30 = vpop.eup %9427  ;;  %v4367_v4 = vmul.f32 %v9426_v13, %v10743_v11  ;;  %9439 = vtanh.f32 %v3294_v60  ;;  %14732 = vst [vmem:[#allocation71_spill] sm:$0xff] %v11055_v7 }
 0x267   : > { %4679 = vadd.xlane.f32.xlu1 %v4362_v27  ;;  %v9430_v45 = vpop.eup %9429  ;;  %v4365_v13 = vmul.f32 %v9428_v30, %v10743_v11 }
 0x268   : > { %v8725_v22 = vpop.f32.mrb[68].mxu1  ;;  %v4368_v29 = vmul.f32 %v9430_v45, %v10743_v11  ;;  %v9432_v9 = vpop.eup %9431 }
 0x269   : > { %4689 = vadd.xlane.f32.xlu0 %v4367_v4  ;;  %v3315_v28 = vadd.f32 %v8725_v22, %v10698_v32  ;;  %v3306_v5 = vpop.f32.mrb[69].mxu1  ;;  %v11059_v35 = vpop.f32.mrb[188].mxu0  ;;  %v4366_v22 = vmul.f32 %v9432_v9, %v10743_v11 }
 0x26a   : > { %14733 = vst [vmem:[#allocation72_spill] sm:$0xff] %v11059_v35  ;;  %v3307_v59 = vadd.f32 %v3306_v5, %v10698_v32  ;;  %v8726_v27 = vpop.f32.mrb[70].mxu1  ;;  %v11063_v0 = vpop.f32.mrb[189].mxu0 }
 0x26b   : > { %4691 = vadd.xlane.f32.xlu1 %v4368_v29  ;;  %14734 = vst [vmem:[#allocation73_spill] sm:$0xff] %v11063_v0  ;;  %9441 = vtanh.f32 %v3315_v28  ;;  %v3318_v60 = vadd.f32 %v8726_v27, %v10698_v32  ;;  %v3309_v4 = vpop.f32.mrb[71].mxu1  ;;  %v11066_v10 = vpop.f32.mrb[190].mxu0 }
 0x26c   : > { %14735 = vst [vmem:[#allocation74_spill] sm:$0xff] %v11066_v10  ;;  %9443 = vtanh.f32 %v3307_v59  ;;  %v3310_v45 = vadd.f32 %v3309_v4, %v10698_v32  ;;  %v11070_v35 = vpop.f32.mrb[191].mxu0  ;;  %v11073_v0 = vpop.permute.xlu1 %5095 }
 0x26d   : > { %4685 = vadd.xlane.f32.xlu0 %v4365_v13  ;;  %14736 = vst [vmem:[#allocation75_spill] sm:$0xff] %v11070_v35  ;;  %v9434_v5 = vpop.eup %9433  ;;  %9445 = vtanh.f32 %v3318_v60  ;;  %14737 = vst [vmem:[#allocation76_spill] sm:$0xff] %v11073_v0  ;;  %v11075_v27 = vpop.permute.xlu0 %5107 }
 0x26e   : > { %v9436_v29 = vpop.eup %9435  ;;  %v4371_v30 = vmul.f32 %v9434_v5, %v10743_v11  ;;  %9447 = vtanh.f32 %v3310_v45  ;;  %14738 = vst [vmem:[#allocation77_spill] sm:$0xff] %v11075_v27 }
 0x26f   : > { %4687 = vadd.xlane.f32.xlu1 %v4366_v22  ;;  %v9438_v28 = vpop.eup %9437  ;;  %v4369_v22 = vmul.f32 %v9436_v29, %v10743_v11 }
 0x270   : > { %v8729_v59 = vpop.f32.mrb[72].mxu1  ;;  %v4372_v13 = vmul.f32 %v9438_v28, %v10743_v11  ;;  %v9440_v4 = vpop.eup %9439 }
 0x271   : > { %4697 = vadd.xlane.f32.xlu0 %v4371_v30  ;;  %v3331_v9 = vadd.f32 %v8729_v59, %v10698_v32  ;;  %v3322_v35 = vpop.f32.mrb[73].mxu1  ;;  %v11079_v10 = vpop.f32.mrb[192].mxu0  ;;  %v4370_v28 = vmul.f32 %v9440_v4, %v10743_v11 }
 0x272   : > { %14739 = vst [vmem:[#allocation78_spill] sm:$0xff] %v11079_v10  ;;  %v3323_v60 = vadd.f32 %v3322_v35, %v10698_v32  ;;  %v11083_v5 = vpop.f32.mrb[74].mxu1  ;;  %v11085_v45 = vpop.f32.mrb[193].mxu0  ;;  %v1934_v35 = vadd.f32 %v10674_v15, %v10415_v6  ;;  %v1926_v10 = vadd.f32 %v10680_v17, %v10415_v6 }
 0x273   : > { %4699 = vadd.xlane.f32.xlu1 %v4372_v13  ;;  %14740 = vst [vmem:[#allocation79_spill] sm:$0xff] %v11085_v45  ;;  %9449 = vtanh.f32 %v3331_v9  ;;  %v11087_v47 = vpop.f32.mrb[75].mxu1  ;;  %v11089_v30 = vpop.f32.mrb[194].mxu0 }
 0x274   : > { %14741 = vst [vmem:[#allocation80_spill] sm:$0xff] %v11089_v30  ;;  %9451 = vtanh.f32 %v3323_v60  ;;  %v11092_v59 = vpop.f32.mrb[195].mxu0  ;;  %v11099_v56 = vpop.permute.xlu1 %5103  ;;  %v1929_v60 = vadd.f32 %v10685_v19, %v10415_v6 }
 0x275   : > { %4693 = vadd.xlane.f32.xlu0 %v4369_v22  ;;  %14742 = vst [vmem:[#allocation81_spill] sm:$0xff] %v11092_v59  ;;  %v9442_v13 = vpop.eup %9441  ;;  %14743 = vst [vmem:[#allocation82_spill] sm:$0xff] %v11099_v56  ;;  %v11103_v4 = vpop.permute.xlu0 %5115  ;;  %v1937_v22 = vadd.f32 %v10683_v18, %v10415_v6  ;;  %9453 = vtanh.f32 %v1934_v35 }
 0x276   : > { %v9444_v29 = vpop.eup %9443  ;;  %v4375_v9 = vmul.f32 %v9442_v13, %v10743_v11  ;;  %9455 = vtanh.f32 %v1926_v10 }
 0x277   : > { %4695 = vadd.xlane.f32.xlu1 %v4370_v28  ;;  %v9446_v45 = vpop.eup %9445  ;;  %v4373_v19 = vmul.f32 %v9444_v29, %v10743_v11  ;;  %9457 = vtanh.f32 %v1929_v60 }
 0x278   : > { %v4376_v15 = vmul.f32 %v9446_v45, %v10743_v11  ;;  %v11108_v59 = vpop.f32.mrb[76].mxu1  ;;  %v9448_v17 = vpop.eup %9447  ;;  %9459 = vtanh.f32 %v1937_v22 }
 0x279   : > { %4705 = vadd.xlane.f32.xlu0 %v4375_v9  ;;  %v11110_v28 = vpop.f32.mrb[77].mxu1  ;;  %v11112_v13 = vpop.f32.mrb[196].mxu0  ;;  %v4374_v35 = vmul.f32 %v9448_v17, %v10743_v11 }
 0x27a   : > { %14744 = vst [vmem:[#allocation83_spill] sm:$0xff] %v11112_v13  ;;  %v11115_v30 = vpop.f32.mrb[197].mxu0  ;;  %v11117_v8 = vpop.f32.mrb[78].mxu1 }
 0x27b   : > { %4707 = vadd.xlane.f32.xlu1 %v4376_v15  ;;  %14745 = vst [vmem:[#allocation84_spill] sm:$0xff] %v11115_v30  ;;  %v11119_v18 = vpop.f32.mrb[198].mxu0  ;;  %v11121_v45 = vpop.f32.mrb[79].mxu1 }
 0x27c   : > { %14746 = vst [vmem:[#allocation85_spill] sm:$0xff] %v11119_v18  ;;  %v11124_v9 = vpop.f32.mrb[199].mxu0  ;;  %v11126_v10 = vpop.permute.xlu1 %5111 }
 0x27d   : > { %4701 = vadd.xlane.f32.xlu0 %v4373_v19  ;;  %14747 = vst [vmem:[#allocation86_spill] sm:$0xff] %v11124_v9  ;;  %v9450_v13 = vpop.eup %9449  ;;  %14748 = vst [vmem:[#allocation87_spill] sm:$0xff] %v11126_v10  ;;  %v11128_v29 = vpop.permute.xlu0 %5123 }
 0x27e   : > { %v9452_v15 = vpop.eup %9451  ;;  %14749 = vst [vmem:[#allocation88_spill] sm:$0xff] %v11128_v29  ;;  %v4379_v30 = vmul.f32 %v9450_v13, %v10743_v11 }
 0x27f   : > { %4703 = vadd.xlane.f32.xlu1 %v4374_v35  ;;  %v4377_v60 = vmul.f32 %v9452_v15, %v10743_v11  ;;  %v9454_v9 = vpop.eup %9453 }
 0x280   : > { %v11132_v18 = vpop.f32.mrb[80].mxu1  ;;  %v11140_v31 = vpop.permute.xlu1 %5119 }
 0x281   : > { %4713 = vadd.xlane.f32.xlu0 %v4379_v30  ;;  %v11134_v22 = vpop.f32.mrb[200].mxu0  ;;  %v11138_v17 = vpop.f32.mrb[81].mxu1  ;;  %14752 = vst [vmem:[#allocation91_spill] sm:$0xff] %v11140_v31 }
 0x282   : > { %14750 = vst [vmem:[#allocation89_spill] sm:$0xff] %v11134_v22  ;;  %v11136_v19 = vpop.f32.mrb[201].mxu0  ;;  %v9456_v16 = vpop.eup %9455 }
 0x283   : > { %14751 = vst [vmem:[#allocation90_spill] sm:$0xff] %v11136_v19  ;;  %v11142_v63 = vpop.f32.mrb[202].mxu0  ;;  %v11144_v35 = vpop.permute.xlu0 %5131 }
 0x284   : > { %14753 = vst [vmem:[#allocation92_spill] sm:$0xff] %v11142_v63  ;;  %14754 = vst [vmem:[#allocation93_spill] sm:$0xff] %v11144_v35  ;;  %v11146_v30 = vpop.f32.mrb[203].mxu0  ;;  %v9458_v13 = vpop.eup %9457 }
 0x285   : > { %4709 = vadd.xlane.f32.xlu0 %v4377_v60  ;;  %14755 = vst [vmem:[#allocation94_spill] sm:$0xff] %v11146_v30  ;;  %v9460_v15 = vpop.eup %9459  ;;  %v2854_v62 = vpack.c.bf16 %v9458_v13, %v9456_v16  ;;  %v11148_v22 = vpop.permute.xlu1 %5127 }
 0x286   : > { %14756 = vst [vmem:[#allocation95_spill] sm:$0xff] %v11148_v22  ;;  %v2855_v42 = vpack.c.bf16 %v9460_v15, %v9454_v9 }
 0x287   : > { %v4570_v2 = vpop.xlane.xlu0 %4569  ;;  %8751 = vmatprep.mubr.bf16.mxu1 %v2854_v62 }
 0x288   : > { %8752 = vmatmul.mubr.bf16.gmra.mrb[96].mxu1 %v2855_v42  ;;  %v5159_v60 = vadd.f32 %v11055_v7, %v4570_v2 }
 0x289   : > { %v11150_v19 = vpop.f32.mrb[204].mxu0  ;;  %v11159_v61 = vpop.permute.xlu1 %5135 }
 0x28a   : > { %14757 = vst [vmem:[#allocation96_spill] sm:$0xff] %v11150_v19  ;;  %v11152_v48 = vpop.f32.mrb[205].mxu0  ;;  %14760 = vst [vmem:[#allocation99_spill] sm:$0xff] %v11159_v61 }
 0x28b   : > { %v11154_v20 = vpop.f32.mrb[206].mxu0  ;;  %v4566_v30 = vpop.xlane.xlu0 %4565 }
 0x28c   : > { %14758 = vst [vmem:[#allocation97_spill] sm:$0xff] %v11154_v20  ;;  %v11156_v63 = vpop.f32.mrb[207].mxu0  ;;  %v5157_v16 = vadd.f32 %v11035_v53, %v4566_v30 }
 0x28d   : > { %14759 = vst [vmem:[#allocation98_spill] sm:$0xff] %v11156_v63  ;;  %v4572_v9 = vpop.xlane.xlu1 %4571 }
 0x28e   : > { %v5160_v42 = vadd.f32 %v11099_v56, %v4572_v9 }
 0x290   : > { %5684 = vperm.xlu1 %8965, %v5159_v60   ;;  %v11175_v60 = vpop.f32.mrb[82].mxu1 }
 0x291   : > { %v11162_v13 = vpop.f32.mrb[208].mxu0  ;;  %v4568_v63 = vpop.xlane.xlu1 %4567 }
 0x292   : > { %14761 = vst [vmem:[#allocation100_spill] sm:$0xff] %v11162_v13  ;;  %v11164_v19 = vpop.f32.mrb[209].mxu0 }
 0x293   : > { %14762 = vst [vmem:[#allocation101_spill] sm:$0xff] %v11164_v19  ;;  %v11166_v62 = vpop.f32.mrb[210].mxu0  ;;  %v5158_v19 = vadd.f32 %v11073_v0, %v4568_v63  ;;  %v3347_v63 = vadd.f32 %v11108_v59, %v10698_v32 }
 0x294   : > { %5678 = vperm.xlu1 %8965, %v5157_v16   ;;  %14763 = vst [vmem:[#allocation102_spill] sm:$0xff] %v11166_v62  ;;  %v11168_v15 = vpop.f32.mrb[211].mxu0  ;;  %v11182_v16 = vpop.f32.mrb[83].mxu1 }
 0x295   : > { %14764 = vst [vmem:[#allocation103_spill] sm:$0xff] %v11168_v15 }
 0x299   : > { %v11171_v2 = vpop.f32.mrb[212].mxu0 }
 0x29a   : > { %v11173_v20 = vpop.f32.mrb[213].mxu0 }
 0x29b   : > { %5687 = vperm.xlu0 %8966, %v5160_v42   ;;  %14765 = vst [vmem:[#allocation104_spill] sm:$0xff] %v11173_v20  ;;  %v11177_v30 = vpop.f32.mrb[214].mxu0  ;;  %v3334_v42 = vadd.f32 %v11083_v5, %v10698_v32  ;;  %v3339_v5 = vadd.f32 %v11110_v28, %v10698_v32 }
 0x29c   : > { %14766 = vst [vmem:[#allocation105_spill] sm:$0xff] %v11177_v30  ;;  %v11180_v13 = vpop.f32.mrb[215].mxu0  ;;  %v3326_v30 = vadd.f32 %v11087_v47, %v10698_v32 }
 0x29d   : > { %14767 = vst [vmem:[#allocation106_spill] sm:$0xff] %v11180_v13  ;;  %9461 = vtanh.f32 %v3334_v42  ;;  %v11198_v13 = vpop.f32.mrb[84].mxu1 }
 0x29e   : > { %9463 = vtanh.f32 %v3326_v30  ;;  %v1942_v30 = vadd.f32 %v10690_v23, %v10415_v6 }
 0x29f   : > { %5681 = vperm.xlu0 %8966, %v5158_v19   ;;  %9465 = vtanh.f32 %v3347_v63  ;;  %v1945_v63 = vadd.f32 %v10695_v26, %v10415_v6 }
 0x2a0   : > { %9467 = vtanh.f32 %v3339_v5  ;;  %v1953_v5 = vadd.f32 %v10693_v25, %v10415_v6 }
 0x2a1   : > { %v11184_v15 = vpop.f32.mrb[216].mxu0 }
 0x2a2   : > { %14768 = vst [vmem:[#allocation107_spill] sm:$0xff] %v11184_v15  ;;  %v11186_v9 = vpop.f32.mrb[217].mxu0 }
 0x2a3   : > { %14769 = vst [vmem:[#allocation108_spill] sm:$0xff] %v11186_v9  ;;  %v11188_v62 = vpop.f32.mrb[218].mxu0  ;;  %v11204_v9 = vpop.f32.mrb[85].mxu1 }
 0x2a4   : > { %14770 = vst [vmem:[#allocation109_spill] sm:$0xff] %v11188_v62  ;;  %v11192_v20 = vpop.f32.mrb[219].mxu0 }
 0x2a5   : > { %14771 = vst [vmem:[#allocation110_spill] sm:$0xff] %v11192_v20 }
 0x2a7   : > { %v9462_v59 = vpop.eup %9461 }
 0x2a9   : > { %v11200_v19 = vpop.f32.mrb[220].mxu0 }
 0x2aa   : > { %14772 = vst [vmem:[#allocation111_spill] sm:$0xff] %v11200_v19  ;;  %v11202_v15 = vpop.f32.mrb[221].mxu0  ;;  %v1950_v19 = vadd.f32 %v10687_v21, %v10415_v6 }
 0x2ab   : > { %14773 = vst [vmem:[#allocation112_spill] sm:$0xff] %v11202_v15  ;;  %v11206_v62 = vpop.f32.mrb[222].mxu0 }
 0x2ac   : > { %14774 = vst [vmem:[#allocation113_spill] sm:$0xff] %v11206_v62  ;;  %v11210_v47 = vpop.f32.mrb[223].mxu0  ;;  %9469 = vtanh.f32 %v1950_v19 }
 0x2ad   : > { %14775 = vst [vmem:[#allocation114_spill] sm:$0xff] %v11210_v47  ;;  %v9464_v47 = vpop.eup %9463  ;;  %9471 = vtanh.f32 %v1942_v30 }
 0x2ae   : > { %v9466_v62 = vpop.eup %9465  ;;  %9473 = vtanh.f32 %v1945_v63  ;;  %v4378_v21 = vmul.f32 %v9464_v47, %v10743_v11 }
 0x2af   : > { %9475 = vtanh.f32 %v1953_v5  ;;  %v4383_v23 = vmul.f32 %v9466_v62, %v10743_v11  ;;  %v9468_v26 = vpop.eup %9467 }
 0x2b0   : > { %v4381_v19 = vmul.f32 %v9468_v26, %v10743_v11 }
 0x2b1   : > { %v11212_v42 = vpop.f32.mrb[224].mxu0 }
 0x2b2   : > { %14776 = vst [vmem:[#allocation115_spill] sm:$0xff] %v11212_v42  ;;  %v11216_v20 = vpop.f32.mrb[225].mxu0  ;;  %v4380_v42 = vmul.f32 %v9462_v59, %v10743_v11 }
 0x2b3   : > { %14777 = vst [vmem:[#allocation116_spill] sm:$0xff] %v11216_v20  ;;  %v11220_v15 = vpop.f32.mrb[226].mxu0 }
 0x2b4   : > { %14778 = vst [vmem:[#allocation117_spill] sm:$0xff] %v11220_v15  ;;  %v11224_v28 = vpop.f32.mrb[227].mxu0 }
 0x2b5   : > { %14779 = vst [vmem:[#allocation118_spill] sm:$0xff] %v11224_v28 }
 0x2b8   : > { %4715 = vadd.xlane.f32.xlu1 %v4380_v42  ;;  %v9470_v42 = vpop.eup %9469 }
 0x2b9   : > { %v11231_v15 = vpop.f32.mrb[228].mxu0  ;;  %v9472_v59 = vpop.eup %9471 }
 0x2ba   : > { %14780 = vst [vmem:[#allocation119_spill] sm:$0xff] %v11231_v15  ;;  %v11233_v28 = vpop.f32.mrb[229].mxu0  ;;  %v9474_v47 = vpop.eup %9473 }
 0x2bb   : > { %14781 = vst [vmem:[#allocation120_spill] sm:$0xff] %v11233_v28  ;;  %v11235_v20 = vpop.f32.mrb[230].mxu0  ;;  %v9476_v63 = vpop.eup %9475 }
 0x2bc   : > { %4711 = vadd.xlane.f32.xlu1 %v4378_v21  ;;  %14782 = vst [vmem:[#allocation121_spill] sm:$0xff] %v11235_v20  ;;  %v11237_v25 = vpop.f32.mrb[231].mxu0  ;;  %v4578_v21 = vpop.xlane.xlu0 %4577  ;;  %v2856_v20 = vpack.c.bf16 %v9474_v47, %v9472_v59  ;;  %v2857_v15 = vpack.c.bf16 %v9476_v63, %v9470_v42 }
 0x2bd   : > { %14783 = vst [vmem:[#allocation122_spill] sm:$0xff] %v11237_v25  ;;  %v5163_v26 = vadd.f32 %v11103_v4, %v4578_v21  ;;  %v11267_v21 = vpop.f32.mrb[86].mxu1 }
 0x2be   : > { %4721 = vadd.xlane.f32.xlu0 %v4383_v23  ;;  %8755 = vmatprep.mubr.bf16.mxu1 %v2856_v20 }
 0x2bf   : > { %8756 = vmatmul.mubr.bf16.gmra.mrb[100].mxu1 %v2857_v15 }
 0x2c1   : > { %v11240_v30 = vpop.f32.mrb[232].mxu0 }
 0x2c2   : > { %4717 = vadd.xlane.f32.xlu0 %v4381_v19  ;;  %14784 = vst [vmem:[#allocation123_spill] sm:$0xff] %v11240_v30  ;;  %v11242_v62 = vpop.f32.mrb[233].mxu0  ;;  %v4574_v30 = vpop.xlane.xlu0 %4573 }
 0x2c3   : > { %14785 = vst [vmem:[#allocation124_spill] sm:$0xff] %v11242_v62  ;;  %v11244_v5 = vpop.f32.mrb[234].mxu0 }
 0x2c4   : > { %14786 = vst [vmem:[#allocation125_spill] sm:$0xff] %v11244_v5  ;;  %v11246_v28 = vpop.f32.mrb[235].mxu0  ;;  %v5161_v5 = vadd.f32 %v11075_v27, %v4574_v30 }
 0x2c5   : > { %14787 = vst [vmem:[#allocation126_spill] sm:$0xff] %v11246_v28  ;;  %v4580_v28 = vpop.xlane.xlu1 %4579 }
 0x2c6   : > { %v5164_v47 = vadd.f32 %v11140_v31, %v4580_v28  ;;  %v3350_v28 = vadd.f32 %v11117_v8, %v10698_v32 }
 0x2c8   : > { %9477 = vtanh.f32 %v3350_v28 }
 0x2c9   : > { %v11248_v23 = vpop.f32.mrb[236].mxu0  ;;  %v4576_v63 = vpop.xlane.xlu1 %4575 }
 0x2ca   : > { %v11251_v19 = vpop.f32.mrb[237].mxu0  ;;  %v5162_v30 = vadd.f32 %v11126_v10, %v4576_v63  ;;  %v3342_v63 = vadd.f32 %v11121_v45, %v10698_v32 }
 0x2cb   : > { %v11253_v25 = vpop.f32.mrb[238].mxu0 }
 0x2cc   : > { %v11255_v62 = vpop.f32.mrb[239].mxu0  ;;  %9479 = vtanh.f32 %v3342_v63  ;;  %v1958_v63 = vadd.f32 %v10703_v3, %v10415_v6 }
 0x2cd   : > { %5696 = vperm.xlu1 %8965, %v5163_v26   ;;  %14788 = vst [vmem:[#allocation127_spill] sm:$0xff] %v11255_v62  ;;  %v11269_v26 = vpop.f32.mrb[87].mxu1 }
 0x2d1   : > { %5690 = vperm.xlu1 %8965, %v5161_v5   ;;  %v11258_v59 = vpop.f32.mrb[240].mxu0 }
 0x2d2   : > { %14789 = vst [vmem:[#allocation128_spill] sm:$0xff] %v11258_v59  ;;  %v11260_v20 = vpop.f32.mrb[241].mxu0  ;;  %v9478_v28 = vpop.eup %9477 }
 0x2d3   : > { %14790 = vst [vmem:[#allocation129_spill] sm:$0xff] %v11260_v20  ;;  %v11262_v15 = vpop.f32.mrb[242].mxu0 }
 0x2d4   : > { %14791 = vst [vmem:[#allocation130_spill] sm:$0xff] %v11262_v15  ;;  %v11264_v42 = vpop.f32.mrb[243].mxu0 }
 0x2d5   : > { %14792 = vst [vmem:[#allocation131_spill] sm:$0xff] %v11264_v42 }
 0x2d8   : > { %5699 = vperm.xlu0 %8966, %v5164_v47  }
 0x2d9   : > { %v11272_v62 = vpop.f32.mrb[244].mxu0 }
 0x2da   : > { %14793 = vst [vmem:[#allocation132_spill] sm:$0xff] %v11272_v62  ;;  %v11274_v5 = vpop.f32.mrb[245].mxu0 }
 0x2db   : > { %14794 = vst [vmem:[#allocation133_spill] sm:$0xff] %v11274_v5  ;;  %v11276_v20 = vpop.f32.mrb[246].mxu0 }
 0x2dc   : > { %5693 = vperm.xlu0 %8966, %v5162_v30   ;;  %14795 = vst [vmem:[#allocation134_spill] sm:$0xff] %v11276_v20  ;;  %v11278_v15 = vpop.f32.mrb[247].mxu0  ;;  %v3363_v30 = vadd.f32 %v11132_v18, %v10698_v32  ;;  %v1966_v18 = vadd.f32 %v10700_v33, %v10415_v6 }
 0x2dd   : > { %14796 = vst [vmem:[#allocation135_spill] sm:$0xff] %v11278_v15 }
 0x2de   : > { %9481 = vtanh.f32 %v3363_v30  ;;  %v1961_v30 = vadd.f32 %v10708_v37, %v10415_v6 }
 0x2e1   : > { %v11282_v42 = vpop.f32.mrb[248].mxu0 }
 0x2e2   : > { %14797 = vst [vmem:[#allocation136_spill] sm:$0xff] %v11282_v42  ;;  %v11284_v47 = vpop.f32.mrb[249].mxu0 }
 0x2e3   : > { %14798 = vst [vmem:[#allocation137_spill] sm:$0xff] %v11284_v47  ;;  %v11286_v59 = vpop.f32.mrb[250].mxu0  ;;  %v11292_v5 = vpop.f32.mrb[88].mxu1 }
 0x2e4   : > { %14799 = vst [vmem:[#allocation138_spill] sm:$0xff] %v11286_v59  ;;  %v11290_v62 = vpop.f32.mrb[251].mxu0  ;;  %v11296_v20 = vpop.f32.mrb[89].mxu1  ;;  %v3355_v59 = vadd.f32 %v11138_v17, %v10698_v32 }
 0x2e5   : > { %14800 = vst [vmem:[#allocation139_spill] sm:$0xff] %v11290_v62  ;;  %v9480_v17 = vpop.eup %9479 }
 0x2e6   : > { %9483 = vtanh.f32 %v3355_v59  ;;  %v4384_v59 = vmul.f32 %v9478_v28, %v10743_v11  ;;  %v4382_v3 = vmul.f32 %v9480_v17, %v10743_v11  ;;  %v4588_v17 = vpop.xlane.xlu1 %4587 }
 0x2e7   : > { %9485 = vtanh.f32 %v1966_v18 }
 0x2e8   : > { %9487 = vtanh.f32 %v1958_v63  ;;  %v4586_v63 = vpop.xlane.xlu0 %4585 }
 0x2e9   : > { %v11298_v8 = vpop.f32.mrb[252].mxu0  ;;  %9489 = vtanh.f32 %v1961_v30 }
 0x2ea   : > { %14801 = vst [vmem:[#allocation140_spill] sm:$0xff] %v11298_v8  ;;  %v11302_v47 = vpop.f32.mrb[253].mxu0 }
 0x2eb   : > { %14802 = vst [vmem:[#allocation141_spill] sm:$0xff] %v11302_v47  ;;  %v11304_v45 = vpop.f32.mrb[254].mxu0  ;;  %v1969_v47 = vadd.f32 %v10706_v34, %v10415_v6 }
 0x2ec   : > { %14803 = vst [vmem:[#allocation142_spill] sm:$0xff] %v11304_v45  ;;  %v11306_v62 = vpop.f32.mrb[255].mxu0  ;;  %v4582_v30 = vpop.xlane.xlu0 %4581 }
 0x2ed   : > { %14804 = vst [vmem:[#allocation143_spill] sm:$0xff] %v11306_v62  ;;  %v9482_v62 = vpop.eup %9481  ;;  %9491 = vtanh.f32 %v1969_v47  ;;  %v5167_v47 = vadd.f32 %v11144_v35, %v4586_v63 }
 0x2ee   : > { %v4387_v37 = vmul.f32 %v9482_v62, %v10743_v11  ;;  %v5165_v62 = vadd.f32 %v11128_v29, %v4582_v30  ;;  %v1977_v30 = vadd.f32 %v10725_v51, %v10415_v6 }
 0x2f1   : > { %v11314_v8 = vpop.f32.mrb[0].mxu0 }
 0x2f2   : > { %14805 = vst [vmem:[#allocation144_spill] sm:$0xff] %v11314_v8  ;;  %v11318_v45 = vpop.f32.mrb[1].mxu0  ;;  %v9484_v8 = vpop.eup %9483 }
 0x2f3   : > { %14806 = vst [vmem:[#allocation145_spill] sm:$0xff] %v11318_v45  ;;  %v11321_v42 = vpop.f32.mrb[2].mxu0  ;;  %v4385_v34 = vmul.f32 %v9484_v8, %v10743_v11  ;;  %v9486_v28 = vpop.eup %9485  ;;  %v5168_v8 = vadd.f32 %v11159_v61, %v4588_v17 }
 0x2f4   : > { %14807 = vst [vmem:[#allocation146_spill] sm:$0xff] %v11321_v42  ;;  %v11323_v33 = vpop.f32.mrb[3].mxu0  ;;  %v9488_v45 = vpop.eup %9487 }
 0x2f5   : > { %4723 = vadd.xlane.f32.xlu1 %v4384_v59  ;;  %14808 = vst [vmem:[#allocation147_spill] sm:$0xff] %v11323_v33  ;;  %v9490_v18 = vpop.eup %9489 }
 0x2f6   : > { %v2858_v59 = vpack.c.bf16 %v9490_v18, %v9488_v45  ;;  %v3358_v45 = vadd.f32 %v11182_v16, %v10698_v32  ;;  %v3379_v18 = vadd.f32 %v11198_v13, %v10698_v32  ;;  %v1974_v16 = vadd.f32 %v10715_v44, %v10415_v6 }
 0x2f7   : > { %v9492_v42 = vpop.eup %9491  ;;  %v1985_v13 = vadd.f32 %v10722_v49, %v10415_v6 }
 0x2f8   : > { %v2859_v15 = vpack.c.bf16 %v9492_v42, %v9486_v28  ;;  %8759 = vmatprep.mubr.bf16.mxu1 %v2858_v59  ;;  %v3371_v59 = vadd.f32 %v11204_v9, %v10698_v32 }
 0x2f9   : > { %4719 = vadd.xlane.f32.xlu1 %v4382_v3  ;;  %v4584_v3 = vpop.xlane.xlu1 %4583 }
 0x2fa   : > { %8760 = vmatmul.mubr.bf16.gmra.mrb[104].mxu1 %v2859_v15  ;;  %v5166_v42 = vadd.f32 %v11148_v22, %v4584_v3  ;;  %v3366_v15 = vadd.f32 %v11175_v60, %v10698_v32  ;;  %v1982_v60 = vadd.f32 %v10711_v40, %v10415_v6 }
 0x2fb   : > { %4729 = vadd.xlane.f32.xlu0 %v4387_v37  ;;  %v11331_v37 = vpop.f32.mrb[90].mxu1 }
 0x2fc   : > { %9493 = vtanh.f32 %v3366_v15 }
 0x2fd   : > { %9495 = vtanh.f32 %v3358_v45  ;;  %v4594_v45 = vpop.xlane.xlu0 %4593 }
 0x2fe   : > { %9497 = vtanh.f32 %v3379_v18 }
 0x2ff   : > { %4725 = vadd.xlane.f32.xlu0 %v4385_v34  ;;  %v11333_v34 = vpop.f32.mrb[91].mxu1  ;;  %9499 = vtanh.f32 %v3371_v59 }
 0x300   : > { %9501 = vtanh.f32 %v1982_v60 }
 0x301   : > { %9503 = vtanh.f32 %v1974_v16  ;;  %v4590_v60 = vpop.xlane.xlu0 %4589 }
 0x302   : > { %9505 = vtanh.f32 %v1977_v30  ;;  %v5169_v16 = vadd.f32 %v11015_v58, %v4590_v60  ;;  %v4596_v30 = vpop.xlane.xlu1 %4595 }
 0x303   : > { %9507 = vtanh.f32 %v1985_v13 }
 0x306   : > { %v4592_v13 = vpop.xlane.xlu1 %4591 }
 0x30a   : > { %5708 = vperm.xlu1 %8965, %v5167_v47   ;;  %v9494_v47 = vpop.eup %9493 }
 0x30b   : > { %v4388_v17 = vmul.f32 %v9494_v47, %v10743_v11  ;;  %v5171_v47 = vadd.f32 %v11033_v39, %v4594_v45  ;;  %v1993_v45 = vadd.f32 %v10735_v57, %v10415_v6 }
 0x30e   : > { %5702 = vperm.xlu1 %8965, %v5165_v62   ;;  %v9496_v62 = vpop.eup %9495 }
 0x30f   : > { %v4386_v40 = vmul.f32 %v9496_v62, %v10743_v11  ;;  %v5172_v62 = vadd.f32 %v11053_v14, %v4596_v30 }
 0x315   : > { %5711 = vperm.xlu0 %8966, %v5168_v8   ;;  %v9498_v8 = vpop.eup %9497 }
 0x316   : > { %v4391_v9 = vmul.f32 %v9498_v8, %v10743_v11  ;;  %v9500_v44 = vpop.eup %9499 }
 0x317   : > { %v4389_v51 = vmul.f32 %v9500_v44, %v10743_v11  ;;  %v9502_v3 = vpop.eup %9501  ;;  %v3374_v44 = vadd.f32 %v11269_v26, %v10698_v32  ;;  %v1990_v26 = vadd.f32 %v10730_v54, %v10415_v6 }
 0x319   : > { %5705 = vperm.xlu0 %8966, %v5166_v42   ;;  %v9504_v42 = vpop.eup %9503 }
 0x31a   : > { %v9506_v49 = vpop.eup %9505 }
 0x31b   : > { %v9508_v15 = vpop.eup %9507  ;;  %v2860_v18 = vpack.c.bf16 %v9506_v49, %v9504_v42  ;;  %v3387_v49 = vadd.f32 %v11296_v20, %v10698_v32 }
 0x31c   : > { %v2861_v59 = vpack.c.bf16 %v9508_v15, %v9502_v3  ;;  %v3395_v3 = vadd.f32 %v11292_v5, %v10698_v32  ;;  %v2001_v5 = vadd.f32 %v10733_v55, %v10415_v6 }
 0x31d   : > { %8763 = vmatprep.mubr.bf16.mxu1 %v2860_v18 }
 0x31e   : > { %8764 = vmatmul.mubr.bf16.gmra.mrb[108].mxu1 %v2861_v59 }
 0x320   : > { %v11340_v28 = vpop.f32.mrb[92].mxu1 }
 0x321   : > { %v11344_v63 = vpop.f32.mrb[93].mxu1 }
 0x332   : > { %4731 = vadd.xlane.f32.xlu1 %v4388_v17  ;;  %v11363_v17 = vpop.f32.mrb[94].mxu1 }
 0x333   : > { %v11365_v8 = vpop.f32.mrb[95].mxu1 }
 0x336   : > { %4727 = vadd.xlane.f32.xlu1 %v4386_v40  ;;  %v5170_v40 = vadd.f32 %v11013_v36, %v4592_v13 }
 0x338   : > { %4737 = vadd.xlane.f32.xlu0 %v4391_v9  ;;  %v3382_v9 = vadd.f32 %v11267_v21, %v10698_v32  ;;  %v1998_v21 = vadd.f32 %v10727_v52, %v10415_v6 }
 0x33a   : > { %9509 = vtanh.f32 %v3382_v9 }
 0x33b   : > { %9511 = vtanh.f32 %v3374_v44 }
 0x33c   : > { %4733 = vadd.xlane.f32.xlu0 %v4389_v51  ;;  %9513 = vtanh.f32 %v3395_v3 }
 0x33d   : > { %9515 = vtanh.f32 %v3387_v49  ;;  %v4604_v49 = vpop.xlane.xlu1 %4603 }
 0x33e   : > { %9517 = vtanh.f32 %v1998_v21 }
 0x33f   : > { %9519 = vtanh.f32 %v1990_v26 }
 0x340   : > { %9521 = vtanh.f32 %v1993_v45 }
 0x341   : > { %9523 = vtanh.f32 %v2001_v5  ;;  %v4600_v21 = vpop.xlane.xlu1 %4599  ;;  %v3398_v5 = vadd.f32 %v11331_v37, %v10698_v32  ;;  %v2014_v37 = vadd.f32 %v10738_v1, %v10415_v6 }
 0x343   : > { %9525 = vtanh.f32 %v3398_v5 }
 0x344   : > { %v9510_v15 = vpop.eup %9509 }
 0x345   : > { %v9512_v18 = vpop.eup %9511  ;;  %v4392_v59 = vmul.f32 %v9510_v15, %v10743_v11  ;;  %v5176_v15 = vadd.f32 %v11099_v56, %v4604_v49 }
 0x346   : > { %v4390_v52 = vmul.f32 %v9512_v18, %v10743_v11  ;;  %v5174_v18 = vadd.f32 %v11073_v0, %v4600_v21 }
 0x347   : > { %5720 = vperm.xlu1 %8965, %v5171_v47   ;;  %v9514_v47 = vpop.eup %9513 }
 0x348   : > { %v4395_v20 = vmul.f32 %v9514_v47, %v10743_v11  ;;  %v9516_v54 = vpop.eup %9515 }
 0x349   : > { %v4393_v57 = vmul.f32 %v9516_v54, %v10743_v11  ;;  %v9518_v60 = vpop.eup %9517  ;;  %v3403_v54 = vadd.f32 %v11344_v63, %v10698_v32 }
 0x34b   : > { %5714 = vperm.xlu1 %8965, %v5169_v16   ;;  %v9520_v16 = vpop.eup %9519 }
 0x34c   : > { %v9522_v55 = vpop.eup %9521 }
 0x34d   : > { %v9524_v30 = vpop.eup %9523  ;;  %v2862_v13 = vpack.c.bf16 %v9522_v55, %v9520_v16 }
 0x34f   : > { %8767 = vmatprep.mubr.bf16.mxu1 %v2862_v13 }
 0x352   : > { %5723 = vperm.xlu0 %8966, %v5172_v62   ;;  %v4602_v62 = vpop.xlane.xlu0 %4601 }
 0x353   : > { %v5175_v9 = vadd.f32 %v11055_v7, %v4602_v62 }
 0x356   : > { %5717 = vperm.xlu0 %8966, %v5170_v40   ;;  %v2863_v40 = vpack.c.bf16 %v9524_v30, %v9518_v60  ;;  %v4598_v44 = vpop.xlane.xlu0 %4597  ;;  %v2009_v60 = vadd.f32 %v10752_v38, %v10415_v6 }
 0x357   : > { %v5173_v3 = vadd.f32 %v11035_v53, %v4598_v44 }
 0x358   : > { %8768 = vmatmul.mubr.bf16.gmra.mrb[112].mxu1 %v2863_v40 }
 0x35b   : > { %v11372_v51 = vpop.f32.mrb[96].mxu1 }
 0x35c   : > { %v11376_v42 = vpop.f32.mrb[97].mxu1 }
 0x35d   : > { %v11395_v26 = vpop.f32.mrb[98].mxu1 }
 0x35e   : > { %v11397_v45 = vpop.f32.mrb[99].mxu1 }
 0x36f   : > { %4739 = vadd.xlane.f32.xlu1 %v4392_v59  ;;  %v3390_v59 = vadd.f32 %v11333_v34, %v10698_v32  ;;  %v2006_v34 = vadd.f32 %v10745_v12, %v10415_v6 }
 0x371   : > { %9527 = vtanh.f32 %v3390_v59 }
 0x373   : > { %4735 = vadd.xlane.f32.xlu1 %v4390_v52  ;;  %v3411_v52 = vadd.f32 %v11340_v28, %v10698_v32  ;;  %v2017_v28 = vadd.f32 %v10749_v24, %v10415_v6 }
 0x375   : > { %4745 = vadd.xlane.f32.xlu0 %v4395_v20  ;;  %9529 = vtanh.f32 %v3411_v52 }
 0x376   : > { %9531 = vtanh.f32 %v3403_v54 }
 0x377   : > { %9533 = vtanh.f32 %v2014_v37  ;;  %v3414_v37 = vadd.f32 %v11363_v17, %v10698_v32  ;;  %v2030_v17 = vadd.f32 %v10754_v41, %v10415_v6 }
 0x378   : > { %9535 = vtanh.f32 %v2006_v34  ;;  %v3406_v34 = vadd.f32 %v11365_v8, %v10698_v32  ;;  %v2022_v8 = vadd.f32 %v10758_v43, %v10415_v6 }
 0x379   : > { %4741 = vadd.xlane.f32.xlu0 %v4393_v57  ;;  %v9526_v57 = vpop.eup %9525  ;;  %9537 = vtanh.f32 %v2009_v60 }
 0x37a   : > { %v4396_v55 = vmul.f32 %v9526_v57, %v10743_v11  ;;  %9539 = vtanh.f32 %v2017_v28 }
 0x37b   : > { %v9528_v16 = vpop.eup %9527  ;;  %9541 = vtanh.f32 %v3414_v37 }
 0x37c   : > { %v4394_v1 = vmul.f32 %v9528_v16, %v10743_v11  ;;  %v3427_v16 = vadd.f32 %v11372_v51, %v10698_v32  ;;  %9543 = vtanh.f32 %v3406_v34  ;;  %v2033_v51 = vadd.f32 %v10761_v46, %v10415_v6 }
 0x37e   : > { %9545 = vtanh.f32 %v3427_v16  ;;  %v3430_v16 = vadd.f32 %v11395_v26, %v10698_v32  ;;  %v14809_v26 = vld [vmem:[#allocation6_spill] sm:$0xff] }
 0x37f   : > { %v9530_v30 = vpop.eup %9529 }
 0x380   : > { %v4399_v63 = vmul.f32 %v9530_v30, %v10743_v11  ;;  %v9532_v12 = vpop.eup %9531 }
 0x381   : > { %v4397_v38 = vmul.f32 %v9532_v12, %v10743_v11  ;;  %v9534_v62 = vpop.eup %9533 }
 0x382   : > { %v9536_v13 = vpop.eup %9535 }
 0x383   : > { %v9538_v24 = vpop.eup %9537 }
 0x384   : > { %5732 = vperm.xlu1 %8965, %v5175_v9   ;;  %v9540_v40 = vpop.eup %9539  ;;  %v4610_v9 = vpop.xlane.xlu0 %4609  ;;  %v2864_v44 = vpack.c.bf16 %v9538_v24, %v9536_v13 }
 0x385   : > { %v5179_v49 = vadd.f32 %v11103_v4, %v4610_v9  ;;  %v9542_v30 = vpop.eup %9541 }
 0x386   : > { %8771 = vmatprep.mubr.bf16.mxu1 %v2864_v44  ;;  %v4400_v12 = vmul.f32 %v9542_v30, %v10743_v11 }
 0x388   : > { %5726 = vperm.xlu1 %8965, %v5173_v3   ;;  %v2865_v3 = vpack.c.bf16 %v9540_v40, %v9534_v62 }
 0x38a   : > { %8772 = vmatmul.mubr.bf16.gmra.mrb[116].mxu1 %v2865_v3 }
 0x38f   : > { %5735 = vperm.xlu0 %8966, %v5176_v15   ;;  %v4606_v15 = vpop.xlane.xlu0 %4605 }
 0x390   : > { %v5177_v21 = vadd.f32 %v11075_v27, %v4606_v15 }
 0x392   : > { %v11404_v47 = vpop.f32.mrb[100].mxu1 }
 0x393   : > { %5729 = vperm.xlu0 %8966, %v5174_v18   ;;  %v11408_v20 = vpop.f32.mrb[101].mxu1  ;;  %v4612_v18 = vpop.xlane.xlu1 %4611 }
 0x394   : > { %v5180_v5 = vadd.f32 %v11140_v31, %v4612_v18  ;;  %v11427_v52 = vpop.f32.mrb[102].mxu1  ;;  %v4618_v46 = vpop.xlane.xlu0 %4617 }
 0x395   : > { %v11429_v54 = vpop.f32.mrb[103].mxu1  ;;  %v5183_v3 = vadd.f32 %v11144_v35, %v4618_v46 }
 0x397   : > { %v4608_v59 = vpop.xlane.xlu1 %4607 }
 0x398   : > { %v5178_v57 = vadd.f32 %v11126_v10, %v4608_v59 }
 0x3ac   : > { %4747 = vadd.xlane.f32.xlu1 %v4396_v55  ;;  %v3419_v55 = vadd.f32 %v11376_v42, %v10698_v32 }
 0x3ae   : > { %9547 = vtanh.f32 %v3419_v55  ;;  %v3422_v55 = vadd.f32 %v11397_v45, %v10698_v32  ;;  %v14810_v45 = vld [vmem:[#allocation7_spill] sm:$0xff] }
 0x3af   : > { %9549 = vtanh.f32 %v2030_v17  ;;  %v3443_v17 = vadd.f32 %v11404_v47, %v10698_v32  ;;  %v14812_v47 = vld [vmem:[#allocation8_spill] sm:$0xff] }
 0x3b0   : > { %4743 = vadd.xlane.f32.xlu1 %v4394_v1  ;;  %v2025_v1 = vadd.f32 %v10764_v50, %v10415_v6  ;;  %9551 = vtanh.f32 %v2022_v8 }
 0x3b2   : > { %4753 = vadd.xlane.f32.xlu0 %v4399_v63  ;;  %v9544_v63 = vpop.eup %9543  ;;  %9553 = vtanh.f32 %v2025_v1  ;;  %v3435_v1 = vadd.f32 %v11408_v20, %v10698_v32 }
 0x3b3   : > { %9555 = vtanh.f32 %v2033_v51  ;;  %v4398_v41 = vmul.f32 %v9544_v63, %v10743_v11  ;;  %v2046_v51 = vadd.f32 %v14809_v26, %v10415_v6 }
 0x3b4   : > { %9557 = vtanh.f32 %v3430_v16 }
 0x3b5   : > { %9559 = vtanh.f32 %v3422_v55 }
 0x3b6   : > { %4749 = vadd.xlane.f32.xlu0 %v4397_v38  ;;  %v9546_v38 = vpop.eup %9545  ;;  %9561 = vtanh.f32 %v3443_v17 }
 0x3b7   : > { %v4403_v42 = vmul.f32 %v9546_v38, %v10743_v11  ;;  %9563 = vtanh.f32 %v3435_v1  ;;  %v14811_v38 = vld [vmem:[#allocation9_spill] sm:$0xff] }
 0x3b8   : > { %v9548_v43 = vpop.eup %9547  ;;  %9565 = vtanh.f32 %v2046_v51 }
 0x3b9   : > { %v4401_v50 = vmul.f32 %v9548_v43, %v10743_v11  ;;  %v9550_v62 = vpop.eup %9549  ;;  %v2049_v43 = vadd.f32 %v14812_v47, %v10415_v6 }
 0x3ba   : > { %v9552_v13 = vpop.eup %9551 }
 0x3bc   : > { %v9554_v24 = vpop.eup %9553 }
 0x3bd   : > { %v9556_v40 = vpop.eup %9555  ;;  %v2866_v9 = vpack.c.bf16 %v9554_v24, %v9552_v13 }
 0x3be   : > { %v2867_v44 = vpack.c.bf16 %v9556_v40, %v9550_v62  ;;  %v9558_v63 = vpop.eup %9557 }
 0x3bf   : > { %8775 = vmatprep.mubr.bf16.mxu1 %v2866_v9 }
 0x3c0   : > { %8776 = vmatmul.mubr.bf16.gmra.mrb[120].mxu1 %v2867_v44 }
 0x3c1   : > { %5744 = vperm.xlu1 %8965, %v5179_v49   ;;  %v4614_v49 = vpop.xlane.xlu0 %4613 }
 0x3c2   : > { %v5181_v15 = vadd.f32 %v11128_v29, %v4614_v49 }
 0x3c5   : > { %5738 = vperm.xlu1 %8965, %v5177_v21   ;;  %v4620_v21 = vpop.xlane.xlu1 %4619  ;;  %v4626_v34 = vpop.xlane.xlu0 %4625 }
 0x3c6   : > { %v5184_v18 = vadd.f32 %v11159_v61, %v4620_v21 }
 0x3c9   : > { %v4622_v40 = vpop.xlane.xlu0 %4621 }
 0x3ca   : > { %v5185_v55 = vadd.f32 %v11015_v58, %v4622_v40 }
 0x3cc   : > { %5747 = vperm.xlu0 %8966, %v5180_v5   ;;  %v4616_v5 = vpop.xlane.xlu1 %4615 }
 0x3cd   : > { %v11436_v60 = vpop.f32.mrb[104].mxu1  ;;  %v5182_v37 = vadd.f32 %v11148_v22, %v4616_v5  ;;  %v11488_v49 = vpop.xlane.xlu0 %4633 }
 0x3ce   : > { %v11440_v28 = vpop.f32.mrb[105].mxu1 }
 0x3cf   : > { %v11459_v59 = vpop.f32.mrb[106].mxu1 }
 0x3d0   : > { %5741 = vperm.xlu0 %8966, %v5178_v57   ;;  %v11461_v57 = vpop.f32.mrb[107].mxu1  ;;  %v4628_v24 = vpop.xlane.xlu1 %4627 }
 0x3d1   : > { %v5188_v1 = vadd.f32 %v11053_v14, %v4628_v24 }
 0x3d4   : > { %v4624_v16 = vpop.xlane.xlu1 %4623 }
 0x3d8   : > { %v4636_v17 = vpop.xlane.xlu1 %4635 }
 0x3e9   : > { %4755 = vadd.xlane.f32.xlu1 %v4400_v12  ;;  %v2038_v12 = vadd.f32 %v14810_v45, %v10415_v6  ;;  %v5186_v45 = vadd.f32 %v11013_v36, %v4624_v16 }
 0x3eb   : > { %9567 = vtanh.f32 %v2038_v12 }
 0x3ed   : > { %4751 = vadd.xlane.f32.xlu1 %v4398_v41  ;;  %v2041_v41 = vadd.f32 %v14811_v38, %v10415_v6  ;;  %v3438_v38 = vadd.f32 %v11429_v54, %v10698_v32  ;;  %v14814_v54 = vld [vmem:[#allocation11_spill] sm:$0xff] }
 0x3ef   : > { %4761 = vadd.xlane.f32.xlu0 %v4403_v42  ;;  %v9560_v42 = vpop.eup %9559  ;;  %9569 = vtanh.f32 %v2041_v41 }
 0x3f0   : > { %v9562_v62 = vpop.eup %9561  ;;  %9571 = vtanh.f32 %v2049_v43  ;;  %v4402_v20 = vmul.f32 %v9560_v42, %v10743_v11  ;;  %v3459_v42 = vadd.f32 %v11436_v60, %v10698_v32  ;;  %v3451_v43 = vadd.f32 %v11440_v28, %v10698_v32  ;;  %v14816_v60 = vld [vmem:[#allocation12_spill] sm:$0xff] }
 0x3f1   : > { %v11468_v30 = vpop.f32.mrb[108].mxu1  ;;  %v4407_v13 = vmul.f32 %v9562_v62, %v10743_v11  ;;  %v9564_v46 = vpop.eup %9563  ;;  %v2065_v40 = vadd.f32 %v14816_v60, %v10415_v6  ;;  %v3454_v60 = vadd.f32 %v11461_v57, %v10698_v32  ;;  %v14818_v57 = vld [vmem:[#allocation15_spill] sm:$0xff] }
 0x3f2   : > { %v11472_v8 = vpop.f32.mrb[109].mxu1  ;;  %v4405_v9 = vmul.f32 %v9564_v46, %v10743_v11  ;;  %v9566_v44 = vpop.eup %9565 }
 0x3f3   : > { %4757 = vadd.xlane.f32.xlu0 %v4401_v50  ;;  %v4404_v50 = vmul.f32 %v9558_v63, %v10743_v11  ;;  %v4630_v63 = vpop.xlane.xlu0 %4629  ;;  %v11493_v26 = vpop.f32.mrb[110].mxu1 }
 0x3f4   : > { %v11495_v51 = vpop.f32.mrb[111].mxu1 }
 0x3f7   : > { %v11498_v12 = vpop.xlane.xlu0 %4641 }
 0x3fe   : > { %5756 = vperm.xlu1 %8965, %v5183_v3   ;;  %v9568_v3 = vpop.eup %9567 }
 0x402   : > { %5750 = vperm.xlu1 %8965, %v5181_v15   ;;  %v9570_v15 = vpop.eup %9569 }
 0x403   : > { %v9572_v21 = vpop.eup %9571 }
 0x404   : > { %v2869_v5 = vpack.c.bf16 %v9572_v21, %v9566_v44 }
 0x409   : > { %5759 = vperm.xlu0 %8966, %v5184_v18   ;;  %v2868_v18 = vpack.c.bf16 %v9570_v15, %v9568_v3 }
 0x40b   : > { %8779 = vmatprep.mubr.bf16.mxu1 %v2868_v18 }
 0x40c   : > { %8780 = vmatmul.mubr.bf16.gmra.mrb[124].mxu1 %v2869_v5  ;;  %v11525_v5 = vpop.xlane.xlu0 %4637 }
 0x40d   : > { %5753 = vperm.xlu0 %8966, %v5182_v37   ;;  %v5187_v37 = vadd.f32 %v11033_v39, %v4626_v34  ;;  %v3446_v34 = vadd.f32 %v11427_v52, %v10698_v32  ;;  %v14813_v52 = vld [vmem:[#allocation10_spill] sm:$0xff] }
 0x40e   : > { %v2062_v62 = vadd.f32 %v14813_v52, %v10415_v6  ;;  %v5189_v52 = vadd.f32 %v11035_v53, %v4630_v63  ;;  %v3462_v63 = vadd.f32 %v11459_v59, %v10698_v32  ;;  %v14817_v59 = vld [vmem:[#allocation14_spill] sm:$0xff] }
 0x40f   : > { %9573 = vtanh.f32 %v3446_v34 }
 0x410   : > { %9575 = vtanh.f32 %v3438_v38 }
 0x411   : > { %9577 = vtanh.f32 %v3459_v42 }
 0x412   : > { %9579 = vtanh.f32 %v3451_v43  ;;  %v5191_v43 = vadd.f32 %v11055_v7, %v11488_v49 }
 0x413   : > { %9581 = vtanh.f32 %v2062_v62 }
 0x426   : > { %4763 = vadd.xlane.f32.xlu1 %v4404_v50  ;;  %v9574_v50 = vpop.eup %9573 }
 0x427   : > { %v9576_v24 = vpop.eup %9575  ;;  %v4408_v44 = vmul.f32 %v9574_v50, %v10743_v11 }
 0x428   : > { %v9578_v3 = vpop.eup %9577  ;;  %v4406_v28 = vmul.f32 %v9576_v24, %v10743_v11 }
 0x429   : > { %v4411_v15 = vmul.f32 %v9578_v3, %v10743_v11  ;;  %v9580_v21 = vpop.eup %9579 }
 0x42a   : > { %4759 = vadd.xlane.f32.xlu1 %v4402_v20  ;;  %v2054_v20 = vadd.f32 %v14814_v54, %v10415_v6  ;;  %v9582_v16 = vpop.eup %9581  ;;  %v5192_v54 = vadd.f32 %v11099_v56, %v4636_v17  ;;  %v3475_v17 = vadd.f32 %v11468_v30, %v10698_v32  ;;  %v14820_v30 = vld [vmem:[#allocation16_spill] sm:$0xff] }
 0x42b   : > { %v11504_v41 = vpop.f32.mrb[112].mxu1 }
 0x42c   : > { %4769 = vadd.xlane.f32.xlu0 %v4407_v13  ;;  %v11508_v47 = vpop.f32.mrb[113].mxu1  ;;  %v14815_v13 = vld [vmem:[#allocation13_spill] sm:$0xff]  ;;  %9583 = vtanh.f32 %v2054_v20 }
 0x42d   : > { %v2057_v46 = vadd.f32 %v14815_v13, %v10415_v6  ;;  %v11540_v13 = vpop.f32.mrb[114].mxu1 }
 0x42f   : > { %9585 = vtanh.f32 %v2057_v46  ;;  %v11542_v46 = vpop.f32.mrb[115].mxu1 }
 0x430   : > { %4765 = vadd.xlane.f32.xlu0 %v4405_v9  ;;  %v4632_v9 = vpop.xlane.xlu1 %4631  ;;  %9587 = vtanh.f32 %v2065_v40 }
 0x431   : > { %v5190_v24 = vadd.f32 %v11073_v0, %v4632_v9  ;;  %9589 = vtanh.f32 %v3462_v63  ;;  %v3467_v9 = vadd.f32 %v11472_v8, %v10698_v32 }
 0x432   : > { %9591 = vtanh.f32 %v3454_v60 }
 0x433   : > { %9593 = vtanh.f32 %v3475_v17 }
 0x434   : > { %v11523_v18 = vpop.xlane.xlu1 %4643  ;;  %9595 = vtanh.f32 %v3467_v9 }
 0x438   : > { %v11532_v50 = vpop.xlane.xlu1 %4639 }
 0x43b   : > { %5768 = vperm.xlu1 %8965, %v5187_v37   ;;  %v4409_v37 = vmul.f32 %v9580_v21, %v10743_v11  ;;  %v14819_v21 = vld [vmem:[#allocation17_spill] sm:$0xff] }
 0x43c   : > { %v11535_v62 = vpop.xlane.xlu1 %4651 }
 0x43f   : > { %5762 = vperm.xlu1 %8965, %v5185_v55   ;;  %v9584_v55 = vpop.eup %9583 }
 0x446   : > { %5771 = vperm.xlu0 %8966, %v5188_v1   ;;  %v11528_v1 = vpop.xlane.xlu0 %4649 }
 0x44a   : > { %5765 = vperm.xlu0 %8966, %v5186_v45   ;;  %v9586_v45 = vpop.eup %9585  ;;  %v11538_v20 = vpop.xlane.xlu0 %4645 }
 0x44b   : > { %v9588_v34 = vpop.eup %9587  ;;  %v2870_v38 = vpack.c.bf16 %v9586_v45, %v9584_v55  ;;  %v2081_v55 = vadd.f32 %v14820_v30, %v10415_v6  ;;  %v11567_v45 = vpop.xlane.xlu1 %4647 }
 0x44c   : > { %v2871_v42 = vpack.c.bf16 %v9588_v34, %v9582_v16  ;;  %v9590_v3 = vpop.eup %9589 }
 0x44d   : > { %8783 = vmatprep.mubr.bf16.mxu1 %v2870_v38  ;;  %v9592_v16 = vpop.eup %9591  ;;  %v4412_v34 = vmul.f32 %v9590_v3, %v10743_v11 }
 0x44e   : > { %8784 = vmatmul.mubr.bf16.gmra.mrb[128].mxu1 %v2871_v42  ;;  %v11545_v49 = vpop.xlane.xlu0 %4657  ;;  %v9594_v8 = vpop.eup %9593  ;;  %v4410_v38 = vmul.f32 %v9592_v16, %v10743_v11  ;;  %v5196_v16 = vadd.f32 %v11140_v31, %v11523_v18 }
 0x44f   : > { %v4415_v42 = vmul.f32 %v9594_v8, %v10743_v11 }
 0x45d   : > { %v11551_v40 = vpop.f32.mrb[116].mxu1 }
 0x463   : > { %4771 = vadd.xlane.f32.xlu1 %v4408_v44  ;;  %v11555_v44 = vpop.f32.mrb[117].mxu1 }
 0x467   : > { %4767 = vadd.xlane.f32.xlu1 %v4406_v28  ;;  %v2078_v28 = vadd.f32 %v14817_v59, %v10415_v6 }
 0x469   : > { %4777 = vadd.xlane.f32.xlu0 %v4411_v15  ;;  %v2070_v15 = vadd.f32 %v14818_v57, %v10415_v6  ;;  %9597 = vtanh.f32 %v2078_v28  ;;  %v5195_v57 = vadd.f32 %v11103_v4, %v11498_v12  ;;  %v5194_v12 = vadd.f32 %v11126_v10, %v11532_v50 }
 0x46a   : > { %v3483_v50 = vadd.f32 %v11508_v47, %v10698_v32 }
 0x46b   : > { %9599 = vtanh.f32 %v2070_v15 }
 0x46d   : > { %4773 = vadd.xlane.f32.xlu0 %v4409_v37  ;;  %v2073_v37 = vadd.f32 %v14819_v21, %v10415_v6  ;;  %v5193_v21 = vadd.f32 %v11075_v27, %v11525_v5  ;;  %v3478_v5 = vadd.f32 %v11493_v26, %v10698_v32  ;;  %v14821_v26 = vld [vmem:[#allocation18_spill] sm:$0xff] }
 0x46f   : > { %9601 = vtanh.f32 %v2073_v37 }
 0x470   : > { %9603 = vtanh.f32 %v2081_v55  ;;  %v11591_v55 = vpop.f32.mrb[118].mxu1 }
 0x471   : > { %9605 = vtanh.f32 %v3478_v5 }
 0x478   : > { %5780 = vperm.xlu1 %8965, %v5191_v43   ;;  %v9596_v43 = vpop.eup %9595 }
 0x479   : > { %v9598_v63 = vpop.eup %9597 }
 0x47a   : > { %v9600_v60 = vpop.eup %9599 }
 0x47b   : > { %v9602_v9 = vpop.eup %9601 }
 0x47c   : > { %5774 = vperm.xlu1 %8965, %v5189_v52   ;;  %v11572_v52 = vpop.xlane.xlu1 %4659  ;;  %v9604_v3 = vpop.eup %9603  ;;  %v2872_v59 = vpack.c.bf16 %v9602_v9, %v9600_v60  ;;  %v14823_v9 = vld [vmem:[#allocation21_spill] sm:$0xff] }
 0x47d   : > { %v2873_v28 = vpack.c.bf16 %v9604_v3, %v9598_v63  ;;  %v2094_v63 = vadd.f32 %v14821_v26, %v10415_v6  ;;  %v2089_v3 = vadd.f32 %v14823_v9, %v10415_v6 }
 0x47e   : > { %8787 = vmatprep.mubr.bf16.mxu1 %v2872_v59 }
 0x47f   : > { %8788 = vmatmul.mubr.bf16.gmra.mrb[132].mxu1 %v2873_v28 }
 0x480   : > { %v11581_v15 = vpop.xlane.xlu1 %4655 }
 0x483   : > { %5783 = vperm.xlu0 %8966, %v5192_v54   ;;  %v11574_v54 = vpop.xlane.xlu0 %4653 }
 0x484   : > { %v11585_v37 = vpop.xlane.xlu1 %4667 }
 0x487   : > { %5777 = vperm.xlu0 %8966, %v5190_v24   ;;  %v4413_v24 = vmul.f32 %v9596_v43, %v10743_v11  ;;  %v11577_v17 = vpop.xlane.xlu0 %4665 }
 0x48b   : > { %v11589_v30 = vpop.xlane.xlu0 %4661 }
 0x48f   : > { %v11597_v8 = vpop.xlane.xlu0 %4673 }
 0x4a0   : > { %4779 = vadd.xlane.f32.xlu1 %v4412_v34  ;;  %v11593_v34 = vpop.f32.mrb[119].mxu1 }
 0x4a1   : > { %v11603_v18 = vpop.f32.mrb[120].mxu1 }
 0x4a2   : > { %v11607_v43 = vpop.f32.mrb[121].mxu1 }
 0x4a4   : > { %4775 = vadd.xlane.f32.xlu1 %v4410_v38  ;;  %v3470_v38 = vadd.f32 %v11495_v51, %v10698_v32  ;;  %v14822_v51 = vld [vmem:[#allocation19_spill] sm:$0xff] }
 0x4a5   : > { %v2086_v60 = vadd.f32 %v14822_v51, %v10415_v6 }
 0x4a6   : > { %4785 = vadd.xlane.f32.xlu0 %v4415_v42  ;;  %v3491_v42 = vadd.f32 %v11504_v41, %v10698_v32  ;;  %9607 = vtanh.f32 %v3470_v38  ;;  %v14824_v41 = vld [vmem:[#allocation20_spill] sm:$0xff] }
 0x4a7   : > { %v2097_v28 = vadd.f32 %v14824_v41, %v10415_v6 }
 0x4a8   : > { %9609 = vtanh.f32 %v3491_v42  ;;  %v11626_v42 = vpop.xlane.xlu0 %4669 }
 0x4a9   : > { %9611 = vtanh.f32 %v3483_v50 }
 0x4aa   : > { %4781 = vadd.xlane.f32.xlu0 %v4413_v24  ;;  %v9606_v24 = vpop.eup %9605  ;;  %9613 = vtanh.f32 %v2094_v63 }
 0x4ab   : > { %9615 = vtanh.f32 %v2086_v60 }
 0x4ac   : > { %9617 = vtanh.f32 %v2089_v3  ;;  %v11629_v63 = vpop.xlane.xlu0 %4681 }
 0x4ad   : > { %9619 = vtanh.f32 %v2097_v28  ;;  %v5197_v28 = vadd.f32 %v11128_v29, %v11538_v20  ;;  %v3494_v20 = vadd.f32 %v11540_v13, %v10698_v32  ;;  %v14829_v13 = vld [vmem:[#allocation24_spill] sm:$0xff] }
 0x4af   : > { %9621 = vtanh.f32 %v3494_v20  ;;  %v14832_v20 = vld [vmem:[#allocation27_spill] sm:$0xff] }
 0x4b0   : > { %v9608_v59 = vpop.eup %9607 }
 0x4b2   : > { %v9610_v47 = vpop.eup %9609 }
 0x4b3   : > { %v9612_v5 = vpop.eup %9611 }
 0x4b4   : > { %v4417_v50 = vmul.f32 %v9612_v5, %v10743_v11 }
 0x4b5   : > { %5792 = vperm.xlu1 %8965, %v5195_v57   ;;  %v11619_v57 = vpop.xlane.xlu1 %4663 }
 0x4b9   : > { %5786 = vperm.xlu1 %8965, %v5193_v21   ;;  %v4416_v21 = vmul.f32 %v9606_v24, %v10743_v11  ;;  %v11624_v38 = vpop.xlane.xlu1 %4675  ;;  %v9614_v24 = vpop.eup %9613 }
 0x4ba   : > { %v9616_v26 = vpop.eup %9615 }
 0x4bb   : > { %v9618_v51 = vpop.eup %9617 }
 0x4bc   : > { %v9620_v60 = vpop.eup %9619  ;;  %v2874_v9 = vpack.c.bf16 %v9618_v51, %v9616_v26 }
 0x4bd   : > { %v2875_v3 = vpack.c.bf16 %v9620_v60, %v9614_v24  ;;  %v11633_v41 = vpop.xlane.xlu1 %4671  ;;  %v14827_v24 = vld [vmem:[#allocation22_spill] sm:$0xff]  ;;  %v3486_v60 = vadd.f32 %v11542_v46, %v10698_v32  ;;  %v3499_v46 = vadd.f32 %v11555_v44, %v10698_v32 }
 0x4be   : > { %8791 = vmatprep.mubr.bf16.mxu1 %v2874_v9  ;;  %v2110_v26 = vadd.f32 %v14827_v24, %v10415_v6  ;;  %v2118_v24 = vadd.f32 %v14832_v20, %v10415_v6 }
 0x4bf   : > { %8792 = vmatmul.mubr.bf16.gmra.mrb[136].mxu1 %v2875_v3 }
 0x4c0   : > { %5795 = vperm.xlu0 %8966, %v5196_v16   ;;  %v4414_v16 = vmul.f32 %v9608_v59, %v10743_v11  ;;  %v5199_v59 = vadd.f32 %v11144_v35, %v11528_v1  ;;  %v5198_v1 = vadd.f32 %v11148_v22, %v11567_v45  ;;  %v3507_v45 = vadd.f32 %v11551_v40, %v10698_v32 }
 0x4c1   : > { %9623 = vtanh.f32 %v2110_v26  ;;  %v9622_v26 = vpop.eup %9621 }
 0x4c4   : > { %5789 = vperm.xlu0 %8966, %v5194_v12   ;;  %v4419_v12 = vmul.f32 %v9610_v47, %v10743_v11  ;;  %v5200_v47 = vadd.f32 %v11159_v61, %v11535_v62  ;;  %v14828_v62 = vld [vmem:[#allocation23_spill] sm:$0xff] }
 0x4c5   : > { %v2102_v51 = vadd.f32 %v14828_v62, %v10415_v6  ;;  %v14833_v62 = vld [vmem:[#allocation29_spill] sm:$0xff] }
 0x4c7   : > { %9625 = vtanh.f32 %v2102_v51  ;;  %v2121_v51 = vadd.f32 %v14833_v62, %v10415_v6  ;;  %v14836_v62 = vld [vmem:[#allocation30_spill] sm:$0xff] }
 0x4c8   : > { %9627 = vtanh.f32 %v3486_v60  ;;  %v14834_v60 = vld [vmem:[#allocation28_spill] sm:$0xff]  ;;  %v2142_v33 = vadd.f32 %v14836_v62, %v10415_v6 }
 0x4c9   : > { %9629 = vtanh.f32 %v3507_v45  ;;  %v2129_v45 = vadd.f32 %v14834_v60, %v10415_v6 }
 0x4dd   : > { %4787 = vadd.xlane.f32.xlu1 %v4416_v21  ;;  %v11637_v21 = vpop.xlane.xlu1 %4683 }
 0x4de   : > { %14825 = vst [vmem:[#allocation6_spill] sm:$0xff] %v11637_v21 }
 0x4e1   : > { %4783 = vadd.xlane.f32.xlu1 %v4414_v16  ;;  %v11641_v16 = vpop.xlane.xlu0 %4677 }
 0x4e3   : > { %4793 = vadd.xlane.f32.xlu0 %v4419_v12  ;;  %v11643_v12 = vpop.f32.mrb[122].mxu1 }
 0x4e4   : > { %v11645_v5 = vpop.f32.mrb[123].mxu1 }
 0x4e5   : > { %v11659_v9 = vpop.f32.mrb[124].mxu1 }
 0x4e6   : > { %v11663_v3 = vpop.f32.mrb[125].mxu1 }
 0x4e7   : > { %4789 = vadd.xlane.f32.xlu0 %v4417_v50  ;;  %v11649_v50 = vpop.xlane.xlu0 %4689 }
 0x4e8   : > { %14826 = vst [vmem:[#allocation7_spill] sm:$0xff] %v11649_v50  ;;  %v14837_v50 = vld [vmem:[#allocation31_spill] sm:$0xff] }
 0x4e9   : > { %v2134_v60 = vadd.f32 %v14837_v50, %v10415_v6 }
 0x4f2   : > { %5804 = vperm.xlu1 %8965, %v5199_v59   ;;  %v2113_v59 = vadd.f32 %v14829_v13, %v10415_v6  ;;  %v9624_v13 = vpop.eup %9623 }
 0x4f4   : > { %9631 = vtanh.f32 %v2113_v59  ;;  %v11679_v59 = vpop.xlane.xlu1 %4679 }
 0x4f5   : > { %14835 = vst [vmem:[#allocation9_spill] sm:$0xff] %v11679_v59  ;;  %v14838_v59 = vld [vmem:[#allocation33_spill] sm:$0xff] }
 0x4f6   : > { %5798 = vperm.xlu1 %8965, %v5197_v28   ;;  %v14830_v28 = vld [vmem:[#allocation25_spill] sm:$0xff] }
 0x4fd   : > { %5807 = vperm.xlu0 %8966, %v5200_v47   ;;  %v2105_v47 = vadd.f32 %v14830_v28, %v10415_v6  ;;  %v9626_v28 = vpop.eup %9625 }
 0x4fe   : > { %v9628_v44 = vpop.eup %9627 }
 0x4ff   : > { %9633 = vtanh.f32 %v2105_v47  ;;  %v4420_v47 = vmul.f32 %v9622_v26, %v10743_v11  ;;  %v2137_v26 = vadd.f32 %v14838_v59, %v10415_v6  ;;  %v14842_v59 = vld [vmem:[#allocation34_spill] sm:$0xff] }
 0x500   : > { %9635 = vtanh.f32 %v3499_v46  ;;  %v9630_v46 = vpop.eup %9629 }
 0x501   : > { %5801 = vperm.xlu0 %8966, %v5198_v1   ;;  %v14831_v1 = vld [vmem:[#allocation26_spill] sm:$0xff] }
 0x502   : > { %v2126_v40 = vadd.f32 %v14831_v1, %v10415_v6  ;;  %v9632_v1 = vpop.eup %9631 }
 0x503   : > { %v2877_v21 = vpack.c.bf16 %v9632_v1, %v9624_v13  ;;  %v14844_v13 = vld [vmem:[#allocation37_spill] sm:$0xff]  ;;  %v14845_v1 = vld [vmem:[#allocation36_spill] sm:$0xff] }
 0x504   : > { %9637 = vtanh.f32 %v2126_v40  ;;  %v4418_v40 = vmul.f32 %v9628_v44, %v10743_v11 }
 0x505   : > { %9639 = vtanh.f32 %v2118_v24  ;;  %v4423_v24 = vmul.f32 %v9630_v46, %v10743_v11  ;;  %v2158_v46 = vadd.f32 %v14842_v59, %v10415_v6 }
 0x506   : > { %9641 = vtanh.f32 %v2121_v51  ;;  %v14839_v51 = vld [vmem:[#allocation32_spill] sm:$0xff] }
 0x507   : > { %9643 = vtanh.f32 %v2129_v45  ;;  %v2145_v61 = vadd.f32 %v14839_v51, %v10415_v6  ;;  %v11692_v45 = vpop.xlane.xlu1 %4691 }
 0x508   : > { %14840 = vst [vmem:[#allocation8_spill] sm:$0xff] %v11692_v45  ;;  %9645 = vtanh.f32 %v2142_v33  ;;  %v14843_v45 = vld [vmem:[#allocation35_spill] sm:$0xff]  ;;  %v2153_v33 = vadd.f32 %v14844_v13, %v10415_v6  ;;  %v14850_v13 = vld [vmem:[#allocation41_spill] sm:$0xff] }
 0x509   : > { %v9634_v20 = vpop.eup %9633  ;;  %9647 = vtanh.f32 %v2134_v60  ;;  %v14847_v60 = vld [vmem:[#allocation38_spill] sm:$0xff] }
 0x50a   : > { %v9636_v22 = vpop.eup %9635  ;;  %v2876_v62 = vpack.c.bf16 %v9634_v20, %v9626_v28  ;;  %9649 = vtanh.f32 %v2137_v26 }
 0x50b   : > { %v4421_v50 = vmul.f32 %v9636_v22, %v10743_v11  ;;  %9651 = vtanh.f32 %v2145_v61  ;;  %v2161_v22 = vadd.f32 %v14845_v1, %v10415_v6  ;;  %v14848_v61 = vld [vmem:[#allocation39_spill] sm:$0xff]  ;;  %v2169_v1 = vadd.f32 %v14850_v13, %v10415_v6 }
 0x50c   : > { %8795 = vmatprep.mubr.bf16.mxu1 %v2876_v62  ;;  %9653 = vtanh.f32 %v2158_v46  ;;  %v14851_v46 = vld [vmem:[#allocation42_spill] sm:$0xff] }
 0x50d   : > { %8796 = vmatmul.mubr.bf16.gmra.mrb[140].mxu1 %v2877_v21  ;;  %v2174_v21 = vadd.f32 %v14847_v60, %v10415_v6  ;;  %v2190_v60 = vadd.f32 %v14851_v46, %v10415_v6 }
 0x50e   : > { %v9638_v44 = vpop.eup %9637 }
 0x50f   : > { %v9640_v51 = vpop.eup %9639 }
 0x51a   : > { %4795 = vadd.xlane.f32.xlu1 %v4420_v47  ;;  %v11694_v47 = vpop.xlane.xlu0 %4685 }
 0x51b   : > { %14841 = vst [vmem:[#allocation10_spill] sm:$0xff] %v11694_v47  ;;  %v2150_v47 = vadd.f32 %v14843_v45, %v10415_v6  ;;  %v14849_v45 = vld [vmem:[#allocation40_spill] sm:$0xff] }
 0x51c   : > { %v2177_v62 = vadd.f32 %v14849_v45, %v10415_v6 }
 0x51d   : > { %9655 = vtanh.f32 %v2150_v47 }
 0x51e   : > { %4791 = vadd.xlane.f32.xlu1 %v4418_v40  ;;  %v9642_v40 = vpop.eup %9641  ;;  %v11705_v20 = vpop.xlane.xlu0 %4697  ;;  %9657 = vtanh.f32 %v2153_v33 }
 0x51f   : > { %v9644_v28 = vpop.eup %9643  ;;  %14846 = vst [vmem:[#allocation11_spill] sm:$0xff] %v11705_v20  ;;  %v2878_v26 = vpack.c.bf16 %v9642_v40, %v9640_v51  ;;  %9659 = vtanh.f32 %v2161_v22  ;;  %v14852_v51 = vld [vmem:[#allocation43_spill] sm:$0xff] }
 0x520   : > { %4801 = vadd.xlane.f32.xlu0 %v4423_v24  ;;  %v2166_v24 = vadd.f32 %v14848_v61, %v10415_v6  ;;  %v2879_v59 = vpack.c.bf16 %v9644_v28, %v9638_v44  ;;  %9661 = vtanh.f32 %v2174_v21  ;;  %v2182_v40 = vadd.f32 %v14852_v51, %v10415_v6  ;;  %v14853_v44 = vld [vmem:[#allocation44_spill] sm:$0xff]  ;;  %v14854_v61 = vld [vmem:[#allocation45_spill] sm:$0xff]  ;;  %v14855_v21 = vld [vmem:[#allocation46_spill] sm:$0xff] }
 0x521   : > { %8799 = vmatprep.mubr.bf16.mxu1 %v2878_v26  ;;  %v2193_v28 = vadd.f32 %v14853_v44, %v10415_v6  ;;  %v2185_v26 = vadd.f32 %v14854_v61, %v10415_v6  ;;  %v2206_v45 = vadd.f32 %v14855_v21, %v10415_v6  ;;  %v14859_v21 = vld [vmem:[#allocation49_spill] sm:$0xff] }
 0x522   : > { %8800 = vmatmul.mubr.bf16.gmra.mrb[144].mxu1 %v2879_v59  ;;  %9663 = vtanh.f32 %v2166_v24  ;;  %v5203_v24 = vadd.f32 %v11033_v39, %v11545_v49  ;;  %v11727_v59 = vpop.xlane.xlu1 %4687  ;;  %v2201_v20 = vadd.f32 %v14859_v21, %v10415_v6 }
 0x523   : > { %9665 = vtanh.f32 %v2177_v62  ;;  %14856 = vst [vmem:[#allocation13_spill] sm:$0xff] %v11727_v59  ;;  %v14857_v62 = vld [vmem:[#allocation47_spill] sm:$0xff] }
 0x524   : > { %4797 = vadd.xlane.f32.xlu0 %v4421_v50  ;;  %v9646_v50 = vpop.eup %9645  ;;  %9667 = vtanh.f32 %v2169_v1  ;;  %v2198_v13 = vadd.f32 %v14857_v62, %v10415_v6  ;;  %v14858_v1 = vld [vmem:[#allocation48_spill] sm:$0xff] }
 0x525   : > { %v9648_v47 = vpop.eup %9647  ;;  %9669 = vtanh.f32 %v2190_v60  ;;  %v2209_v44 = vadd.f32 %v14858_v1, %v10415_v6  ;;  %v11741_v1 = vpop.xlane.xlu0 %4693 }
 0x526   : > { %v9650_v33 = vpop.eup %9649  ;;  %9671 = vtanh.f32 %v2182_v40  ;;  %v5201_v40 = vadd.f32 %v11015_v58, %v11574_v54  ;;  %v5204_v54 = vadd.f32 %v11053_v14, %v11572_v52  ;;  %14861 = vst [vmem:[#allocation14_spill] sm:$0xff] %v11741_v1 }
 0x527   : > { %v9652_v22 = vpop.eup %9651  ;;  %v2880_v46 = vpack.c.bf16 %v9650_v33, %v9648_v47  ;;  %9673 = vtanh.f32 %v2193_v28  ;;  %v11737_v28 = vpop.xlane.xlu1 %4699 }
 0x528   : > { %v9654_v51 = vpop.eup %9653  ;;  %v2881_v60 = vpack.c.bf16 %v9652_v22, %v9646_v50  ;;  %9675 = vtanh.f32 %v2185_v26  ;;  %14860 = vst [vmem:[#allocation12_spill] sm:$0xff] %v11737_v28 }
 0x529   : > { %v9656_v61 = vpop.eup %9655  ;;  %8803 = vmatprep.mubr.bf16.mxu1 %v2880_v46  ;;  %9677 = vtanh.f32 %v2206_v45 }
 0x52a   : > { %v9658_v49 = vpop.eup %9657  ;;  %8804 = vmatmul.mubr.bf16.gmra.mrb[148].mxu1 %v2881_v60  ;;  %9679 = vtanh.f32 %v2198_v13  ;;  %v11743_v60 = vpop.f32.mrb[126].mxu1 }
 0x52b   : > { %v9660_v47 = vpop.eup %9659  ;;  %9681 = vtanh.f32 %v2209_v44  ;;  %v2882_v22 = vpack.c.bf16 %v9658_v49, %v9656_v61  ;;  %v5202_v49 = vadd.f32 %v11013_v36, %v11581_v15  ;;  %v14865_v15 = vld [vmem:[#allocation52_spill] sm:$0xff] }
 0x52c   : > { %v9662_v33 = vpop.eup %9661  ;;  %9683 = vtanh.f32 %v2201_v20  ;;  %v2883_v46 = vpack.c.bf16 %v9660_v47, %v9654_v51  ;;  %v11745_v20 = vpop.f32.mrb[127].mxu1  ;;  %v2225_v36 = vadd.f32 %v14865_v15, %v10415_v6 }
 0x52d   : > { %v9664_v50 = vpop.eup %9663  ;;  %8807 = vmatprep.mubr.bf16.mxu1 %v2882_v22  ;;  %v11749_v47 = vpop.xlane.xlu0 %4705 }
 0x52e   : > { %v9666_v26 = vpop.eup %9665  ;;  %14862 = vst [vmem:[#allocation15_spill] sm:$0xff] %v11749_v47  ;;  %v14866_v47 = vld [vmem:[#allocation53_spill] sm:$0xff] }
 0x52f   : > { %5816 = vperm.xlu1 %8965, %v5203_v24   ;;  %v9668_v24 = vpop.eup %9667  ;;  %v2885_v22 = vpack.c.bf16 %v9666_v26, %v9662_v33  ;;  %v3510_v33 = vadd.f32 %v11591_v55, %v10698_v32  ;;  %v14869_v55 = vld [vmem:[#allocation56_spill] sm:$0xff] }
 0x530   : > { %v9670_v62 = vpop.eup %9669  ;;  %v2884_v52 = vpack.c.bf16 %v9668_v24, %v9664_v50  ;;  %v14867_v50 = vld [vmem:[#allocation54_spill] sm:$0xff]  ;;  %v14868_v24 = vld [vmem:[#allocation55_spill] sm:$0xff] }
 0x531   : > { %v9672_v45 = vpop.eup %9671  ;;  %v2238_v26 = vadd.f32 %v14867_v50, %v10415_v6 }
 0x532   : > { %v9674_v13 = vpop.eup %9673  ;;  %8808 = vmatmul.mubr.bf16.gmra.mrb[152].mxu1 %v2883_v46  ;;  %v14863_v46 = vld [vmem:[#allocation50_spill] sm:$0xff] }
 0x533   : > { %5810 = vperm.xlu1 %8965, %v5201_v40   ;;  %v9676_v44 = vpop.eup %9675  ;;  %v2222_v1 = vadd.f32 %v14863_v46, %v10415_v6  ;;  %8811 = vmatprep.mubr.bf16.mxu1 %v2884_v52  ;;  %v2887_v14 = vpack.c.bf16 %v9674_v13, %v9670_v62  ;;  %v2230_v62 = vadd.f32 %v14868_v24, %v10415_v6  ;;  %v11767_v13 = vpop.f32.mrb[128].mxu1 }
 0x534   : > { %v9678_v21 = vpop.eup %9677  ;;  %v2886_v59 = vpack.c.bf16 %v9676_v44, %v9672_v45  ;;  %v3502_v45 = vadd.f32 %v11593_v34, %v10698_v32  ;;  %v3515_v34 = vadd.f32 %v11607_v43, %v10698_v32  ;;  %v14873_v43 = vld [vmem:[#allocation63_spill] sm:$0xff] }
 0x535   : > { %v9680_v61 = vpop.eup %9679  ;;  %9685 = vtanh.f32 %v2222_v1  ;;  %v11771_v1 = vpop.f32.mrb[129].mxu1  ;;  %v2249_v15 = vadd.f32 %v14873_v43, %v10415_v6 }
 0x536   : > { %v9682_v51 = vpop.eup %9681 }
 0x537   : > { %v9684_v40 = vpop.eup %9683  ;;  %v2889_v39 = vpack.c.bf16 %v9682_v51, %v9678_v21 }
 0x538   : > { %v2888_v58 = vpack.c.bf16 %v9684_v40, %v9680_v61 }
 0x53a   : > { %5819 = vperm.xlu0 %8966, %v5204_v54   ;;  %v14864_v54 = vld [vmem:[#allocation51_spill] sm:$0xff]  ;;  %8812 = vmatmul.mubr.bf16.gmra.mrb[156].mxu1 %v2885_v22 }
 0x53b   : > { %v2214_v28 = vadd.f32 %v14864_v54, %v10415_v6  ;;  %8815 = vmatprep.mubr.bf16.mxu1 %v2886_v59  ;;  %v3523_v59 = vadd.f32 %v11603_v18, %v10698_v32 }
 0x53d   : > { %9687 = vtanh.f32 %v2214_v28  ;;  %v2241_v28 = vadd.f32 %v14869_v55, %v10415_v6 }
 0x53e   : > { %5813 = vperm.xlu0 %8966, %v5202_v49   ;;  %v2217_v49 = vadd.f32 %v14866_v47, %v10415_v6  ;;  %9689 = vtanh.f32 %v2225_v36  ;;  %v14870_v36 = vld [vmem:[#allocation57_spill] sm:$0xff]  ;;  %v14871_v47 = vld [vmem:[#allocation60_spill] sm:$0xff] }
 0x53f   : > { %v2233_v44 = vadd.f32 %v14870_v36, %v10415_v6  ;;  %v9686_v21 = vpop.eup %9685  ;;  %v2254_v52 = vadd.f32 %v14871_v47, %v10415_v6 }
 0x540   : > { %9691 = vtanh.f32 %v2217_v49  ;;  %v11785_v49 = vpop.xlane.xlu1 %4695 }
 0x541   : > { %9693 = vtanh.f32 %v3510_v33 }
 0x542   : > { %9695 = vtanh.f32 %v2238_v26  ;;  %8816 = vmatmul.mubr.bf16.gmra.mrb[160].mxu1 %v2887_v14 }
 0x543   : > { %9697 = vtanh.f32 %v2230_v62  ;;  %8819 = vmatprep.mubr.bf16.mxu1 %v2888_v58  ;;  %v14872_v58 = vld [vmem:[#allocation61_spill] sm:$0xff] }
 0x544   : > { %9699 = vtanh.f32 %v3502_v45  ;;  %v2246_v46 = vadd.f32 %v14872_v58, %v10415_v6 }
 0x545   : > { %9701 = vtanh.f32 %v3523_v59 }
 0x546   : > { %9703 = vtanh.f32 %v2241_v28 }
 0x547   : > { %9705 = vtanh.f32 %v2233_v44  ;;  %v9688_v18 = vpop.eup %9687  ;;  %v14875_v44 = vld [vmem:[#allocation66_spill] sm:$0xff] }
 0x548   : > { %v9690_v61 = vpop.eup %9689  ;;  %9707 = vtanh.f32 %v3515_v34  ;;  %v2270_v34 = vadd.f32 %v14875_v44, %v10415_v6 }
 0x549   : > { %9709 = vtanh.f32 %v2254_v52  ;;  %v2891_v45 = vpack.c.bf16 %v9690_v61, %v9686_v21  ;;  %v14877_v52 = vld [vmem:[#allocation69_spill] sm:$0xff] }
 0x54a   : > { %v9692_v51 = vpop.eup %9691  ;;  %8820 = vmatmul.mubr.bf16.gmra.mrb[164].mxu1 %v2889_v39  ;;  %v14874_v39 = vld [vmem:[#allocation62_spill] sm:$0xff]  ;;  %9711 = vtanh.f32 %v2246_v46  ;;  %v2265_v58 = vadd.f32 %v14877_v52, %v10415_v6 }
 0x54b   : > { %v9694_v40 = vpop.eup %9693  ;;  %v2257_v26 = vadd.f32 %v14874_v39, %v10415_v6  ;;  %v2890_v24 = vpack.c.bf16 %v9692_v51, %v9688_v18  ;;  %9713 = vtanh.f32 %v2249_v15  ;;  %v11796_v18 = vpop.xlane.xlu0 %4701  ;;  %v14876_v51 = vld [vmem:[#allocation67_spill] sm:$0xff] }
 0x54c   : > { %v9696_v14 = vpop.eup %9695  ;;  %v4424_v33 = vmul.f32 %v9694_v40, %v10743_v11  ;;  %v11794_v40 = vpop.xlane.xlu1 %4707  ;;  %v2262_v47 = vadd.f32 %v14876_v51, %v10415_v6 }
 0x54d   : > { %v9698_v22 = vpop.eup %9697  ;;  %8823 = vmatprep.mubr.bf16.mxu1 %v2890_v24  ;;  %9715 = vtanh.f32 %v2257_v26  ;;  %v14880_v26 = vld [vmem:[#allocation73_spill] sm:$0xff] }
 0x54e   : > { %v9700_v54 = vpop.eup %9699  ;;  %9717 = vtanh.f32 %v2270_v34  ;;  %v2278_v24 = vadd.f32 %v14880_v26, %v10415_v6  ;;  %v14888_v26 = vld [vmem:[#allocation84_spill] sm:$0xff] }
 0x54f   : > { %v9702_v50 = vpop.eup %9701  ;;  %v4422_v55 = vmul.f32 %v9700_v54, %v10743_v11  ;;  %v14878_v54 = vld [vmem:[#allocation68_spill] sm:$0xff]  ;;  %9719 = vtanh.f32 %v2262_v47 }
 0x550   : > { %v9704_v62 = vpop.eup %9703  ;;  %v4427_v28 = vmul.f32 %v9702_v50, %v10743_v11  ;;  %v2273_v43 = vadd.f32 %v14878_v54, %v10415_v6  ;;  %9721 = vtanh.f32 %v2265_v58  ;;  %v14885_v47 = vld [vmem:[#allocation80_spill] sm:$0xff] }
 0x551   : > { %v9706_v59 = vpop.eup %9705  ;;  %v2893_v61 = vpack.c.bf16 %v9704_v62, %v9696_v14  ;;  %v2305_v52 = vadd.f32 %v14885_v47, %v10415_v6 }
 0x552   : > { %8824 = vmatmul.mubr.bf16.gmra.mrb[168].mxu1 %v2891_v45  ;;  %v9708_v36 = vpop.eup %9707  ;;  %v2892_v21 = vpack.c.bf16 %v9706_v59, %v9698_v22  ;;  %9723 = vtanh.f32 %v2273_v43  ;;  %v14879_v22 = vld [vmem:[#allocation72_spill] sm:$0xff]  ;;  %v14881_v45 = vld [vmem:[#allocation74_spill] sm:$0xff] }
 0x553   : > { %v4425_v46 = vmul.f32 %v9708_v36, %v10743_v11  ;;  %v9710_v15 = vpop.eup %9709  ;;  %v2286_v50 = vadd.f32 %v14879_v22, %v10415_v6  ;;  %v2289_v59 = vadd.f32 %v14881_v45, %v10415_v6  ;;  %v14883_v36 = vld [vmem:[#allocation78_spill] sm:$0xff]  ;;  %v14889_v45 = vld [vmem:[#allocation85_spill] sm:$0xff] }
 0x554   : > { %8827 = vmatprep.mubr.bf16.mxu1 %v2892_v21  ;;  %v9712_v14 = vpop.eup %9711  ;;  %v2302_v44 = vadd.f32 %v14883_v36, %v10415_v6  ;;  %v14884_v21 = vld [vmem:[#allocation79_spill] sm:$0xff] }
 0x555   : > { %v9714_v39 = vpop.eup %9713  ;;  %9725 = vtanh.f32 %v2286_v50  ;;  %v5207_v50 = vadd.f32 %v11055_v7, %v11577_v17  ;;  %v5205_v17 = vadd.f32 %v11035_v53, %v11589_v30 }
 0x556   : > { %v2894_v34 = vpack.c.bf16 %v9714_v39, %v9712_v14  ;;  %9727 = vtanh.f32 %v2278_v24  ;;  %v14887_v14 = vld [vmem:[#allocation83_spill] sm:$0xff]  ;;  %v2310_v24 = vadd.f32 %v14888_v26, %v10415_v6  ;;  %v14892_v26 = vld [vmem:[#allocation89_spill] sm:$0xff] }
 0x557   : > { %4803 = vadd.xlane.f32.xlu1 %v4424_v33  ;;  %v11805_v33 = vpop.xlane.xlu0 %4713  ;;  %v9716_v62 = vpop.eup %9715  ;;  %9729 = vtanh.f32 %v2289_v59  ;;  %v2318_v22 = vadd.f32 %v14887_v14, %v10415_v6  ;;  %v2321_v59 = vadd.f32 %v14889_v45, %v10415_v6 }
 0x558   : > { %v2895_v51 = vpack.c.bf16 %v9716_v62, %v9710_v15  ;;  %v9718_v58 = vpop.eup %9717  ;;  %v11827_v15 = vpop.xlane.xlu1 %4703 }
 0x559   : > { %v9720_v43 = vpop.eup %9719 }
 0x55a   : > { %8828 = vmatmul.mubr.bf16.gmra.mrb[172].mxu1 %v2893_v61  ;;  %v2294_v61 = vadd.f32 %v14884_v21, %v10415_v6  ;;  %v9722_v39 = vpop.eup %9721 }
 0x55b   : > { %4799 = vadd.xlane.f32.xlu1 %v4422_v55  ;;  %v14882_v55 = vld [vmem:[#allocation75_spill] sm:$0xff]  ;;  %8831 = vmatprep.mubr.bf16.mxu1 %v2894_v34  ;;  %v2896_v36 = vpack.c.bf16 %v9722_v39, %v9720_v43 }
 0x55c   : > { %v9724_v62 = vpop.eup %9723  ;;  %v11837_v21 = vpop.permute.xlu1 %5684 }
 0x55d   : > { %4809 = vadd.xlane.f32.xlu0 %v4427_v28  ;;  %v2281_v28 = vadd.f32 %v14882_v55, %v10415_v6  ;;  %v14890_v55 = vld [vmem:[#allocation86_spill] sm:$0xff]  ;;  %14891 = vst [vmem:[#allocation17_spill] sm:$0xff] %v11837_v21 }
 0x55f   : > { %9731 = vtanh.f32 %v2281_v28  ;;  %v2313_v28 = vadd.f32 %v14890_v55, %v10415_v6  ;;  %v9726_v34 = vpop.eup %9725  ;;  %v5206_v55 = vadd.f32 %v11073_v0, %v11619_v57  ;;  %v2342_v57 = vadd.f32 %v11152_v48, %v10415_v6  ;;  %v14900_v48 = vld [vmem:[#allocation100_spill] sm:$0xff] }
 0x560   : > { %9733 = vtanh.f32 %v2302_v44  ;;  %v2897_v44 = vpack.c.bf16 %v9724_v62, %v9718_v58  ;;  %v11841_v58 = vpop.xlane.xlu0 %4709 }
 0x561   : > { %4805 = vadd.xlane.f32.xlu0 %v4425_v46  ;;  %v14886_v46 = vld [vmem:[#allocation81_spill] sm:$0xff]  ;;  %9735 = vtanh.f32 %v2294_v61  ;;  %v9728_v61 = vpop.eup %9727 }
 0x562   : > { %v2297_v54 = vadd.f32 %v14886_v46, %v10415_v6  ;;  %8832 = vmatmul.mubr.bf16.gmra.mrb[176].mxu1 %v2895_v51  ;;  %9737 = vtanh.f32 %v2305_v52  ;;  %v9730_v51 = vpop.eup %9729 }
 0x563   : > { %8835 = vmatprep.mubr.bf16.mxu1 %v2896_v36  ;;  %v14894_v36 = vld [vmem:[#allocation92_spill] sm:$0xff] }
 0x564   : > { %9739 = vtanh.f32 %v2297_v54  ;;  %v5208_v54 = vadd.f32 %v11099_v56, %v11585_v37 }
 0x565   : > { %9741 = vtanh.f32 %v2318_v22  ;;  %v11843_v22 = vpop.f32.mrb[130].mxu1 }
 0x566   : > { %9743 = vtanh.f32 %v2310_v24  ;;  %v2334_v24 = vadd.f32 %v14892_v26, %v10415_v6  ;;  %v11847_v62 = vpop.f32.mrb[131].mxu1 }
 0x567   : > { %9745 = vtanh.f32 %v2321_v59  ;;  %v14893_v59 = vld [vmem:[#allocation90_spill] sm:$0xff] }
 0x568   : > { %9747 = vtanh.f32 %v2313_v28  ;;  %v2326_v37 = vadd.f32 %v14893_v59, %v10415_v6 }
 0x569   : > { %v9732_v47 = vpop.eup %9731  ;;  %9749 = vtanh.f32 %v2334_v24  ;;  %v14899_v24 = vld [vmem:[#allocation98_spill] sm:$0xff] }
 0x56a   : > { %8836 = vmatmul.mubr.bf16.gmra.mrb[180].mxu1 %v2897_v44  ;;  %v9734_v52 = vpop.eup %9733  ;;  %v2898_v43 = vpack.c.bf16 %v9732_v47, %v9728_v61  ;;  %v2337_v44 = vadd.f32 %v14894_v36, %v10415_v6  ;;  %v14896_v61 = vld [vmem:[#allocation94_spill] sm:$0xff]  ;;  %9751 = vtanh.f32 %v2326_v37  ;;  %v14897_v47 = vld [vmem:[#allocation96_spill] sm:$0xff]  ;;  %v14898_v36 = vld [vmem:[#allocation97_spill] sm:$0xff]  ;;  %v3526_v37 = vadd.f32 %v11643_v12, %v10698_v32 }
 0x56b   : > { %v9736_v46 = vpop.eup %9735  ;;  %v3539_v12 = vadd.f32 %v11659_v9, %v10698_v32 }
 0x56c   : > { %5828 = vperm.xlu1 %8965, %v5207_v50   ;;  %v9738_v30 = vpop.eup %9737  ;;  %v2899_v50 = vpack.c.bf16 %v9730_v51, %v9726_v34  ;;  %8839 = vmatprep.mubr.bf16.mxu1 %v2898_v43  ;;  %v11855_v34 = vpop.permute.xlu0 %5687  ;;  %v2329_v51 = vadd.f32 %v14896_v61, %v10415_v6  ;;  %9753 = vtanh.f32 %v2337_v44  ;;  %v14903_v61 = vld [vmem:[#allocation103_spill] sm:$0xff] }
 0x56d   : > { %14895 = vst [vmem:[#allocation16_spill] sm:$0xff] %v11855_v34  ;;  %v2353_v34 = vadd.f32 %v14898_v36, %v10415_v6 }
 0x56e   : > { %v9740_v14 = vpop.eup %9739  ;;  %9755 = vtanh.f32 %v2329_v51  ;;  %v2361_v51 = vadd.f32 %v14903_v61, %v10415_v6  ;;  %v14907_v61 = vld [vmem:[#allocation105_spill] sm:$0xff] }
 0x56f   : > { %v9742_v39 = vpop.eup %9741  ;;  %v2900_v43 = vpack.c.bf16 %v9740_v14, %v9736_v46  ;;  %v14901_v46 = vld [vmem:[#allocation101_spill] sm:$0xff]  ;;  %v3518_v14 = vadd.f32 %v11645_v5, %v10698_v32 }
 0x570   : > { %5822 = vperm.xlu1 %8965, %v5205_v17   ;;  %v9744_v45 = vpop.eup %9743 }
 0x571   : > { %v9746_v28 = vpop.eup %9745 }
 0x572   : > { %8840 = vmatmul.mubr.bf16.gmra.mrb[184].mxu1 %v2899_v50  ;;  %v9748_v17 = vpop.eup %9747  ;;  %v2901_v50 = vpack.c.bf16 %v9738_v30, %v9734_v52  ;;  %v2903_v59 = vpack.c.bf16 %v9746_v28, %v9742_v39  ;;  %v2366_v52 = vadd.f32 %v14900_v48, %v10415_v6  ;;  %v2358_v30 = vadd.f32 %v14901_v46, %v10415_v6  ;;  %v11875_v39 = vpop.f32.mrb[132].mxu1 }
 0x573   : > { %v2902_v26 = vpack.c.bf16 %v9748_v17, %v9744_v45  ;;  %8843 = vmatprep.mubr.bf16.mxu1 %v2900_v43  ;;  %v11879_v45 = vpop.f32.mrb[133].mxu1  ;;  %v9750_v28 = vpop.eup %9749  ;;  %v14902_v17 = vld [vmem:[#allocation102_spill] sm:$0xff] }
 0x574   : > { %v2369_v44 = vadd.f32 %v14902_v17, %v10415_v6 }
 0x577   : > { %5831 = vperm.xlu0 %8966, %v5208_v54   ;;  %v2350_v54 = vadd.f32 %v14897_v47, %v10415_v6  ;;  %v3531_v47 = vadd.f32 %v11663_v3, %v10698_v32 }
 0x579   : > { %9757 = vtanh.f32 %v2350_v54 }
 0x57a   : > { %8844 = vmatmul.mubr.bf16.gmra.mrb[188].mxu1 %v2901_v50  ;;  %9759 = vtanh.f32 %v2342_v57 }
 0x57b   : > { %5825 = vperm.xlu0 %8966, %v5206_v55   ;;  %v2345_v55 = vadd.f32 %v14899_v24, %v10415_v6  ;;  %8847 = vmatprep.mubr.bf16.mxu1 %v2902_v26  ;;  %9761 = vtanh.f32 %v2353_v34  ;;  %v9752_v34 = vpop.eup %9751 }
 0x57c   : > { %v9754_v5 = vpop.eup %9753 }
 0x57d   : > { %9763 = vtanh.f32 %v2345_v55  ;;  %v9756_v9 = vpop.eup %9755  ;;  %v2905_v36 = vpack.c.bf16 %v9754_v5, %v9750_v28 }
 0x57e   : > { %9765 = vtanh.f32 %v3526_v37  ;;  %v2904_v26 = vpack.c.bf16 %v9756_v9, %v9752_v34 }
 0x57f   : > { %9767 = vtanh.f32 %v2366_v52 }
 0x580   : > { %9769 = vtanh.f32 %v2358_v30  ;;  %v14904_v30 = vld [vmem:[#allocation104_spill] sm:$0xff] }
 0x581   : > { %9771 = vtanh.f32 %v3518_v14  ;;  %v2374_v14 = vadd.f32 %v14904_v30, %v10415_v6  ;;  %v14913_v30 = vld [vmem:[#allocation111_spill] sm:$0xff] }
 0x582   : > { %9773 = vtanh.f32 %v3539_v12  ;;  %8848 = vmatmul.mubr.bf16.gmra.mrb[192].mxu1 %v2903_v59  ;;  %v2382_v59 = vadd.f32 %v11171_v2, %v10415_v6  ;;  %v11892_v12 = vpop.permute.xlu1 %5678 }
 0x583   : > { %9775 = vtanh.f32 %v2369_v44  ;;  %v9758_v54 = vpop.eup %9757  ;;  %8851 = vmatprep.mubr.bf16.mxu1 %v2904_v26  ;;  %14905 = vst [vmem:[#allocation18_spill] sm:$0xff] %v11892_v12  ;;  %v14906_v44 = vld [vmem:[#allocation106_spill] sm:$0xff] }
 0x584   : > { %9777 = vtanh.f32 %v2361_v51  ;;  %v9760_v57 = vpop.eup %9759  ;;  %v2377_v34 = vadd.f32 %v14906_v44, %v10415_v6  ;;  %v2385_v51 = vadd.f32 %v14907_v61, %v10415_v6 }
 0x585   : > { %v9762_v43 = vpop.eup %9761  ;;  %9779 = vtanh.f32 %v3531_v47 }
 0x586   : > { %9781 = vtanh.f32 %v2382_v59  ;;  %v2907_v9 = vpack.c.bf16 %v9762_v43, %v9758_v54  ;;  %v11900_v26 = vpop.xlane.xlu1 %4715  ;;  %v14910_v54 = vld [vmem:[#allocation108_spill] sm:$0xff] }
 0x587   : > { %v9764_v50 = vpop.eup %9763  ;;  %9783 = vtanh.f32 %v2374_v14  ;;  %v2390_v43 = vadd.f32 %v14910_v54, %v10415_v6  ;;  %v2414_v14 = vadd.f32 %v14913_v30, %v10415_v6  ;;  %v14919_v54 = vld [vmem:[#allocation117_spill] sm:$0xff]  ;;  %v5211_v30 = vadd.f32 %v11103_v4, %v11597_v8 }
 0x588   : > { %v9766_v24 = vpop.eup %9765  ;;  %v2906_v28 = vpack.c.bf16 %v9764_v50, %v9760_v57  ;;  %9785 = vtanh.f32 %v2377_v34  ;;  %v14915_v34 = vld [vmem:[#allocation113_spill] sm:$0xff] }
 0x589   : > { %v9768_v55 = vpop.eup %9767  ;;  %v4428_v52 = vmul.f32 %v9766_v24, %v10743_v11  ;;  %9787 = vtanh.f32 %v2385_v51  ;;  %v2417_v61 = vadd.f32 %v14915_v34, %v10415_v6 }
 0x58a   : > { %v9770_v37 = vpop.eup %9769  ;;  %8852 = vmatmul.mubr.bf16.gmra.mrb[196].mxu1 %v2905_v36  ;;  %v11902_v36 = vpop.permute.xlu0 %5681 }
 0x58b   : > { %v9772_v48 = vpop.eup %9771  ;;  %8855 = vmatprep.mubr.bf16.mxu1 %v2906_v28  ;;  %14908 = vst [vmem:[#allocation19_spill] sm:$0xff] %v11902_v36  ;;  %v14914_v28 = vld [vmem:[#allocation112_spill] sm:$0xff] }
 0x58c   : > { %v9774_v3 = vpop.eup %9773  ;;  %v4426_v5 = vmul.f32 %v9772_v48, %v10743_v11  ;;  %v14909_v48 = vld [vmem:[#allocation107_spill] sm:$0xff] }
 0x58d   : > { %v9776_v46 = vpop.eup %9775  ;;  %v4431_v47 = vmul.f32 %v9774_v3, %v10743_v11  ;;  %v14911_v3 = vld [vmem:[#allocation110_spill] sm:$0xff] }
 0x58e   : > { %v9778_v17 = vpop.eup %9777  ;;  %v2909_v50 = vpack.c.bf16 %v9776_v46, %v9768_v55  ;;  %v2393_v59 = vadd.f32 %v14911_v3, %v10415_v6  ;;  %v14912_v55 = vld [vmem:[#allocation109_spill] sm:$0xff]  ;;  %v11913_v46 = vpop.xlane.xlu0 %4721 }
 0x58f   : > { %v9780_v2 = vpop.eup %9779  ;;  %v2908_v57 = vpack.c.bf16 %v9778_v17, %v9770_v37  ;;  %v2401_v37 = vadd.f32 %v14912_v55, %v10415_v6  ;;  %v2406_v17 = vadd.f32 %v14914_v28, %v10415_v6  ;;  %v14921_v55 = vld [vmem:[#allocation119_spill] sm:$0xff] }
 0x590   : > { %v4429_v24 = vmul.f32 %v9780_v2, %v10743_v11  ;;  %v9782_v44 = vpop.eup %9781 }
 0x591   : > { %v9784_v51 = vpop.eup %9783 }
 0x592   : > { %8856 = vmatmul.mubr.bf16.gmra.mrb[200].mxu1 %v2907_v9  ;;  %v9786_v2 = vpop.eup %9785  ;;  %v14917_v9 = vld [vmem:[#allocation115_spill] sm:$0xff] }
 0x593   : > { %8859 = vmatprep.mubr.bf16.mxu1 %v2908_v57  ;;  %v2430_v57 = vadd.f32 %v14917_v9, %v10415_v6 }
 0x594   : > { %4811 = vadd.xlane.f32.xlu1 %v4428_v52  ;;  %v2398_v52 = vadd.f32 %v14909_v48, %v10415_v6  ;;  %v14918_v48 = vld [vmem:[#allocation116_spill] sm:$0xff] }
 0x596   : > { %9789 = vtanh.f32 %v2398_v52  ;;  %v2422_v52 = vadd.f32 %v14918_v48, %v10415_v6 }
 0x597   : > { %9791 = vtanh.f32 %v2390_v43  ;;  %v2433_v43 = vadd.f32 %v14919_v54, %v10415_v6 }
 0x598   : > { %4807 = vadd.xlane.f32.xlu1 %v4426_v5  ;;  %9793 = vtanh.f32 %v2393_v59  ;;  %v14916_v5 = vld [vmem:[#allocation114_spill] sm:$0xff]  ;;  %v2910_v59 = vpack.c.bf16 %v9786_v2, %v9784_v51 }
 0x599   : > { %9795 = vtanh.f32 %v2401_v37  ;;  %v2446_v37 = vadd.f32 %v14921_v55, %v10415_v6  ;;  %v14924_v2 = vld [vmem:[#allocation122_spill] sm:$0xff] }
 0x59a   : > { %4817 = vadd.xlane.f32.xlu0 %v4431_v47  ;;  %8860 = vmatmul.mubr.bf16.gmra.mrb[204].mxu1 %v2909_v50  ;;  %v2409_v47 = vadd.f32 %v14916_v5, %v10415_v6  ;;  %9797 = vtanh.f32 %v2414_v14  ;;  %v14920_v50 = vld [vmem:[#allocation118_spill] sm:$0xff]  ;;  %v11935_v14 = vpop.xlane.xlu1 %4711  ;;  %v14923_v5 = vld [vmem:[#allocation121_spill] sm:$0xff]  ;;  %v2441_v8 = vadd.f32 %v14924_v2, %v10415_v6 }
 0x59b   : > { %9799 = vtanh.f32 %v2406_v17  ;;  %v2425_v3 = vadd.f32 %v14920_v50, %v10415_v6  ;;  %v14922_v17 = vld [vmem:[#allocation120_spill] sm:$0xff]  ;;  %8863 = vmatprep.mubr.bf16.mxu1 %v2910_v59  ;;  %v2449_v51 = vadd.f32 %v14923_v5, %v10415_v6 }
 0x59c   : > { %9801 = vtanh.f32 %v2417_v61  ;;  %v2438_v34 = vadd.f32 %v14922_v17, %v10415_v6  ;;  %v11951_v17 = vpop.f32.mrb[134].mxu1 }
 0x59d   : > { %9803 = vtanh.f32 %v2409_v47  ;;  %v11953_v5 = vpop.f32.mrb[135].mxu1 }
 0x59e   : > { %4813 = vadd.xlane.f32.xlu0 %v4429_v24  ;;  %v9788_v24 = vpop.eup %9787  ;;  %9805 = vtanh.f32 %v2430_v57  ;;  %v11945_v48 = vpop.permute.xlu1 %5696 }
 0x59f   : > { %v2911_v28 = vpack.c.bf16 %v9788_v24, %v9782_v44  ;;  %9807 = vtanh.f32 %v2422_v52  ;;  %v5209_v44 = vadd.f32 %v11075_v27, %v11626_v42  ;;  %14925 = vst [vmem:[#allocation21_spill] sm:$0xff] %v11945_v48  ;;  %v5212_v42 = vadd.f32 %v11140_v31, %v11624_v38  ;;  %v14927_v38 = vld [vmem:[#allocation123_spill] sm:$0xff] }
 0x5a0   : > { %v9790_v61 = vpop.eup %9789  ;;  %9809 = vtanh.f32 %v2433_v43 }
 0x5a1   : > { %v9792_v47 = vpop.eup %9791  ;;  %9811 = vtanh.f32 %v2425_v3 }
 0x5a2   : > { %8864 = vmatmul.mubr.bf16.gmra.mrb[208].mxu1 %v2911_v28  ;;  %v9794_v9 = vpop.eup %9793  ;;  %9813 = vtanh.f32 %v2446_v37  ;;  %v11949_v28 = vpop.xlane.xlu0 %4717 }
 0x5a3   : > { %v9796_v57 = vpop.eup %9795  ;;  %9815 = vtanh.f32 %v2438_v34  ;;  %v2912_v54 = vpack.c.bf16 %v9794_v9, %v9792_v47 }
 0x5a4   : > { %v9798_v24 = vpop.eup %9797  ;;  %9817 = vtanh.f32 %v2449_v51  ;;  %v2913_v50 = vpack.c.bf16 %v9796_v57, %v9790_v61  ;;  %v5210_v61 = vadd.f32 %v11126_v10, %v11633_v41  ;;  %v2462_v57 = vadd.f32 %v14927_v38, %v10415_v6  ;;  %v14929_v41 = vld [vmem:[#allocation125_spill] sm:$0xff] }
 0x5a5   : > { %v9800_v52 = vpop.eup %9799  ;;  %9819 = vtanh.f32 %v2441_v8  ;;  %8867 = vmatprep.mubr.bf16.mxu1 %v2912_v54  ;;  %v14928_v54 = vld [vmem:[#allocation124_spill] sm:$0xff] }
 0x5a6   : > { %v9802_v43 = vpop.eup %9801  ;;  %9821 = vtanh.f32 %v2462_v57  ;;  %v14934_v57 = vld [vmem:[#allocation131_spill] sm:$0xff] }
 0x5a7   : > { %v9804_v3 = vpop.eup %9803  ;;  %v2915_v8 = vpack.c.bf16 %v9802_v43, %v9798_v24  ;;  %v14930_v24 = vld [vmem:[#allocation126_spill] sm:$0xff] }
 0x5a8   : > { %v9806_v59 = vpop.eup %9805  ;;  %v2914_v47 = vpack.c.bf16 %v9804_v3, %v9800_v52  ;;  %v2465_v52 = vadd.f32 %v14929_v41, %v10415_v6  ;;  %v2457_v43 = vadd.f32 %v14930_v24, %v10415_v6  ;;  %v3542_v3 = vadd.f32 %v11743_v60, %v10698_v32 }
 0x5a9   : > { %5840 = vperm.xlu1 %8965, %v5211_v30   ;;  %v9808_v55 = vpop.eup %9807 }
 0x5aa   : > { %8868 = vmatmul.mubr.bf16.gmra.mrb[212].mxu1 %v2913_v50  ;;  %v9810_v37 = vpop.eup %9809  ;;  %v2454_v50 = vadd.f32 %v14928_v54, %v10415_v6  ;;  %v2489_v54 = vadd.f32 %v14934_v57, %v10415_v6 }
 0x5ab   : > { %v9812_v30 = vpop.eup %9811  ;;  %8871 = vmatprep.mubr.bf16.mxu1 %v2914_v47  ;;  %v2917_v48 = vpack.c.bf16 %v9810_v37, %v9806_v59  ;;  %v2470_v59 = vadd.f32 %v11251_v19, %v10415_v6  ;;  %v11975_v37 = vpop.f32.mrb[136].mxu1  ;;  %v14931_v19 = vld [vmem:[#allocation127_spill] sm:$0xff]  ;;  %v14932_v47 = vld [vmem:[#allocation128_spill] sm:$0xff] }
 0x5ac   : > { %v9814_v34 = vpop.eup %9813  ;;  %9823 = vtanh.f32 %v2454_v50  ;;  %v11979_v60 = vpop.f32.mrb[137].mxu1  ;;  %v14935_v50 = vld [vmem:[#allocation130_spill] sm:$0xff] }
 0x5ad   : > { %5834 = vperm.xlu1 %8965, %v5209_v44   ;;  %v9816_v51 = vpop.eup %9815  ;;  %v11957_v44 = vpop.permute.xlu0 %5699  ;;  %9825 = vtanh.f32 %v2465_v52 }
 0x5ae   : > { %v9818_v2 = vpop.eup %9817  ;;  %14926 = vst [vmem:[#allocation20_spill] sm:$0xff] %v11957_v44  ;;  %9827 = vtanh.f32 %v2457_v43 }
 0x5af   : > { %v9820_v9 = vpop.eup %9819  ;;  %v2919_v12 = vpack.c.bf16 %v9818_v2, %v9814_v34  ;;  %9829 = vtanh.f32 %v3542_v3  ;;  %v2473_v34 = vadd.f32 %v14931_v19, %v10415_v6 }
 0x5b0   : > { %v2918_v36 = vpack.c.bf16 %v9820_v9, %v9816_v51 }
 0x5b2   : > { %8872 = vmatmul.mubr.bf16.gmra.mrb[216].mxu1 %v2915_v8  ;;  %v14933_v8 = vld [vmem:[#allocation129_spill] sm:$0xff] }
 0x5b3   : > { %v2486_v9 = vadd.f32 %v14933_v8, %v10415_v6 }
 0x5b4   : > { %5843 = vperm.xlu0 %8966, %v5212_v42   ;;  %v2916_v42 = vpack.c.bf16 %v9812_v30, %v9808_v55  ;;  %v3534_v55 = vadd.f32 %v11745_v20, %v10698_v32  ;;  %v3555_v30 = vadd.f32 %v11767_v13, %v10698_v32  ;;  %v3547_v20 = vadd.f32 %v11771_v1, %v10698_v32 }
 0x5b6   : > { %8875 = vmatprep.mubr.bf16.mxu1 %v2916_v42  ;;  %v2497_v42 = vadd.f32 %v14935_v50, %v10415_v6 }
 0x5b8   : > { %5837 = vperm.xlu0 %8966, %v5210_v61   ;;  %v2478_v61 = vadd.f32 %v11248_v23, %v10415_v6  ;;  %v2481_v23 = vadd.f32 %v11253_v25, %v10415_v6  ;;  %v2494_v25 = vadd.f32 %v14932_v47, %v10415_v6 }
 0x5ba   : > { %8876 = vmatmul.mubr.bf16.gmra.mrb[220].mxu1 %v2917_v48  ;;  %9831 = vtanh.f32 %v2478_v61  ;;  %v9822_v48 = vpop.eup %9821  ;;  %v11996_v61 = vpop.permute.xlu1 %5690 }
 0x5bb   : > { %8879 = vmatprep.mubr.bf16.mxu1 %v2918_v36  ;;  %9833 = vtanh.f32 %v2470_v59  ;;  %v9824_v13 = vpop.eup %9823  ;;  %14936 = vst [vmem:[#allocation22_spill] sm:$0xff] %v11996_v61 }
 0x5bc   : > { %9835 = vtanh.f32 %v3534_v55  ;;  %v9826_v51 = vpop.eup %9825  ;;  %v14937_v55 = vld [vmem:[#allocation132_spill] sm:$0xff] }
 0x5bd   : > { %9837 = vtanh.f32 %v3555_v30  ;;  %v9828_v36 = vpop.eup %9827  ;;  %v2921_v24 = vpack.c.bf16 %v9826_v51, %v9822_v48  ;;  %v2510_v30 = vadd.f32 %v14937_v55, %v10415_v6 }
 0x5be   : > { %9839 = vtanh.f32 %v2481_v23  ;;  %v9830_v2 = vpop.eup %9829  ;;  %v2920_v41 = vpack.c.bf16 %v9828_v36, %v9824_v13  ;;  %v14939_v13 = vld [vmem:[#allocation135_spill] sm:$0xff]  ;;  %v12006_v36 = vpop.xlane.xlu1 %4723 }
 0x5bf   : > { %9841 = vtanh.f32 %v2473_v34  ;;  %v4432_v52 = vmul.f32 %v9830_v2, %v10743_v11  ;;  %v2505_v51 = vadd.f32 %v14939_v13, %v10415_v6  ;;  %v14940_v2 = vld [vmem:[#allocation134_spill] sm:$0xff] }
 0x5c0   : > { %9843 = vtanh.f32 %v3547_v20  ;;  %v14938_v20 = vld [vmem:[#allocation133_spill] sm:$0xff]  ;;  %v2513_v8 = vadd.f32 %v14940_v2, %v10415_v6 }
 0x5c1   : > { %9845 = vtanh.f32 %v2494_v25  ;;  %v2502_v48 = vadd.f32 %v14938_v20, %v10415_v6 }
 0x5c2   : > { %8880 = vmatmul.mubr.bf16.gmra.mrb[224].mxu1 %v2919_v12  ;;  %9847 = vtanh.f32 %v2486_v9  ;;  %v12010_v9 = vpop.permute.xlu0 %5693 }
 0x5c3   : > { %8883 = vmatprep.mubr.bf16.mxu1 %v2920_v41  ;;  %9849 = vtanh.f32 %v2489_v54  ;;  %14941 = vst [vmem:[#allocation23_spill] sm:$0xff] %v12010_v9 }
 0x5c4   : > { %v9832_v38 = vpop.eup %9831  ;;  %9851 = vtanh.f32 %v2497_v42 }
 0x5c5   : > { %v9834_v1 = vpop.eup %9833  ;;  %9853 = vtanh.f32 %v2510_v30 }
 0x5c6   : > { %v9836_v12 = vpop.eup %9835  ;;  %9855 = vtanh.f32 %v2502_v48  ;;  %v12015_v41 = vpop.xlane.xlu0 %4729  ;;  %v14947_v48 = vld [vmem:[#allocation140_spill] sm:$0xff] }
 0x5c7   : > { %v9838_v43 = vpop.eup %9837  ;;  %v4430_v23 = vmul.f32 %v9836_v12, %v10743_v11  ;;  %9857 = vtanh.f32 %v2505_v51  ;;  %14943 = vst [vmem:[#allocation24_spill] sm:$0xff] %v12015_v41  ;;  %v2542_v13 = vadd.f32 %v14947_v48, %v10415_v6 }
 0x5c8   : > { %v9840_v3 = vpop.eup %9839  ;;  %v4435_v19 = vmul.f32 %v9838_v43, %v10743_v11  ;;  %9859 = vtanh.f32 %v2513_v8  ;;  %v14945_v43 = vld [vmem:[#allocation139_spill] sm:$0xff]  ;;  %v12029_v8 = vpop.xlane.xlu1 %4719 }
 0x5c9   : > { %v9842_v59 = vpop.eup %9841  ;;  %v2923_v25 = vpack.c.bf16 %v9840_v3, %v9832_v38  ;;  %v2521_v3 = vadd.f32 %v14945_v43, %v10415_v6 }
 0x5ca   : > { %8884 = vmatmul.mubr.bf16.gmra.mrb[228].mxu1 %v2921_v24  ;;  %v9844_v34 = vpop.eup %9843  ;;  %v2922_v47 = vpack.c.bf16 %v9842_v59, %v9834_v1  ;;  %v14942_v1 = vld [vmem:[#allocation136_spill] sm:$0xff]  ;;  %v14946_v59 = vld [vmem:[#allocation138_spill] sm:$0xff] }
 0x5cb   : > { %v4433_v57 = vmul.f32 %v9844_v34, %v10743_v11  ;;  %v9846_v54 = vpop.eup %9845  ;;  %v2526_v38 = vadd.f32 %v14942_v1, %v10415_v6  ;;  %v2529_v55 = vadd.f32 %v14946_v59, %v10415_v6 }
 0x5cc   : > { %8887 = vmatprep.mubr.bf16.mxu1 %v2922_v47  ;;  %v9848_v50 = vpop.eup %9847  ;;  %v5215_v47 = vadd.f32 %v11144_v35, %v11629_v63 }
 0x5cd   : > { %v9850_v42 = vpop.eup %9849  ;;  %9861 = vtanh.f32 %v2526_v38 }
 0x5ce   : > { %v9852_v12 = vpop.eup %9851  ;;  %v2924_v30 = vpack.c.bf16 %v9850_v42, %v9848_v50  ;;  %v14950_v50 = vld [vmem:[#allocation142_spill] sm:$0xff] }
 0x5cf   : > { %v2545_v42 = vadd.f32 %v14950_v50, %v10415_v6 }
 0x5d1   : > { %4819 = vadd.xlane.f32.xlu1 %v4432_v52  ;;  %v14944_v52 = vld [vmem:[#allocation137_spill] sm:$0xff] }
 0x5d2   : > { %8888 = vmatmul.mubr.bf16.gmra.mrb[232].mxu1 %v2923_v25  ;;  %v2518_v24 = vadd.f32 %v14944_v52, %v10415_v6  ;;  %v14948_v25 = vld [vmem:[#allocation141_spill] sm:$0xff] }
 0x5d3   : > { %8891 = vmatprep.mubr.bf16.mxu1 %v2924_v30  ;;  %v2534_v2 = vadd.f32 %v14948_v25, %v10415_v6  ;;  %v14952_v30 = vld [vmem:[#allocation6_spill] sm:$0xff] }
 0x5d4   : > { %9863 = vtanh.f32 %v2518_v24  ;;  %v12037_v24 = vpop.permute.xlu1 %5708 }
 0x5d5   : > { %4815 = vadd.xlane.f32.xlu1 %v4430_v23  ;;  %v2925_v23 = vpack.c.bf16 %v9852_v12, %v9846_v54  ;;  %9865 = vtanh.f32 %v2521_v3  ;;  %v5213_v12 = vadd.f32 %v11128_v29, %v11641_v16  ;;  %14951 = vst [vmem:[#allocation25_spill] sm:$0xff] %v12037_v24 }
 0x5d6   : > { %9867 = vtanh.f32 %v2529_v55 }
 0x5d7   : > { %4825 = vadd.xlane.f32.xlu0 %v4435_v19  ;;  %v9854_v19 = vpop.eup %9853  ;;  %9869 = vtanh.f32 %v2542_v13 }
 0x5d8   : > { %v9856_v34 = vpop.eup %9855  ;;  %9871 = vtanh.f32 %v2534_v2 }
 0x5d9   : > { %v9858_v20 = vpop.eup %9857 }
 0x5da   : > { %8892 = vmatmul.mubr.bf16.gmra.mrb[236].mxu1 %v2925_v23  ;;  %v9860_v51 = vpop.eup %9859  ;;  %v2926_v1 = vpack.c.bf16 %v9858_v20, %v9856_v34  ;;  %v14953_v23 = vld [vmem:[#allocation99_spill] sm:$0xff]  ;;  %v12045_v20 = vpop.xlane.xlu0 %4725 }
 0x5db   : > { %4821 = vadd.xlane.f32.xlu0 %v4433_v57  ;;  %v14949_v57 = vld [vmem:[#allocation143_spill] sm:$0xff]  ;;  %v2927_v38 = vpack.c.bf16 %v9860_v51, %v9854_v19  ;;  %v9862_v63 = vpop.eup %9861  ;;  %v5216_v19 = vadd.f32 %v14953_v23, %v14952_v30  ;;  %14954 = vst [vmem:[#allocation26_spill] sm:$0xff] %v12045_v20  ;;  %v14955_v51 = vld [vmem:[#allocation9_spill] sm:$0xff]  ;;  %v3571_v30 = vadd.f32 %v11875_v39, %v10698_v32  ;;  %v14980_v20 = vld [vmem:[#allocation70_spill] sm:$0xff] }
 0x5dc   : > { %v2537_v54 = vadd.f32 %v14949_v57, %v10415_v6  ;;  %8895 = vmatprep.mubr.bf16.mxu1 %v2926_v1  ;;  %v12039_v6 = vpop.f32.mrb[138].mxu1 }
 0x5dd   : > { %v12041_v59 = vpop.f32.mrb[139].mxu1 }
 0x5de   : > { %9873 = vtanh.f32 %v2537_v54  ;;  %v9864_v52 = vpop.eup %9863  ;;  %v12051_v54 = vpop.permute.xlu0 %5711 }
 0x5df   : > { %9875 = vtanh.f32 %v2545_v42  ;;  %v9866_v43 = vpop.eup %9865  ;;  %14957 = vst [vmem:[#allocation27_spill] sm:$0xff] %v12051_v54 }
 0x5e0   : > { %v9868_v3 = vpop.eup %9867  ;;  %v2928_v55 = vpack.c.bf16 %v9866_v43, %v9864_v52  ;;  %v12049_v57 = vpop.f32.mrb[140].mxu1 }
 0x5e1   : > { %v2929_v16 = vpack.c.bf16 %v9868_v3, %v9862_v63  ;;  %v9870_v34 = vpop.eup %9869  ;;  %v12053_v50 = vpop.f32.mrb[141].mxu1  ;;  %v3558_v63 = vadd.f32 %v11843_v22, %v10698_v32  ;;  %v3550_v3 = vadd.f32 %v11847_v62, %v10698_v32  ;;  %v3563_v22 = vadd.f32 %v11879_v45, %v10698_v32 }
 0x5e2   : > { %8896 = vmatmul.mubr.bf16.gmra.mrb[240].mxu1 %v2927_v38  ;;  %v9872_v48 = vpop.eup %9871  ;;  %v12055_v42 = vpop.f32.mrb[142].mxu1 }
 0x5e3   : > { %8899 = vmatprep.mubr.bf16.mxu1 %v2928_v55  ;;  %v12057_v38 = vpop.f32.mrb[143].mxu1  ;;  %9877 = vtanh.f32 %v3558_v63 }
 0x5e4   : > { %9879 = vtanh.f32 %v3550_v3 }
 0x5e5   : > { %9881 = vtanh.f32 %v3571_v30 }
 0x5e6   : > { %5852 = vperm.xlu1 %8965, %v5215_v47   ;;  %v14956_v47 = vld [vmem:[#allocation95_spill] sm:$0xff]  ;;  %9883 = vtanh.f32 %v3563_v22 }
 0x5e7   : > { %v5214_v25 = vadd.f32 %v14956_v47, %v14955_v51 }
 0x5e8   : > { %v9874_v13 = vpop.eup %9873 }
 0x5e9   : > { %v9876_v2 = vpop.eup %9875  ;;  %v2930_v1 = vpack.c.bf16 %v9874_v13, %v9872_v48 }
 0x5ea   : > { %5846 = vperm.xlu1 %8965, %v5213_v12   ;;  %8900 = vmatmul.mubr.bf16.gmra.mrb[244].mxu1 %v2929_v16  ;;  %v2931_v12 = vpack.c.bf16 %v9876_v2, %v9870_v34 }
 0x5eb   : > { %8903 = vmatprep.mubr.bf16.mxu1 %v2930_v1 }
 0x5ed   : > { %v9878_v13 = vpop.eup %9877 }
 0x5ee   : > { %v9880_v51 = vpop.eup %9879  ;;  %v4436_v39 = vmul.f32 %v9878_v13, %v10743_v11  ;;  %v12098_v13 = vpop.permute.xlu0 %5705 }
 0x5ef   : > { %v9882_v2 = vpop.eup %9881  ;;  %v4434_v3 = vmul.f32 %v9880_v51, %v10743_v11  ;;  %14961 = vst [vmem:[#allocation31_spill] sm:$0xff] %v12098_v13  ;;  %v14971_v13 = vld [vmem:[#allocation64_spill] sm:$0xff] }
 0x5f0   : > { %v4439_v30 = vmul.f32 %v9882_v2, %v10743_v11  ;;  %v9884_v22 = vpop.eup %9883 }
 0x5f1   : > { %5855 = vperm.xlu0 %8966, %v5216_v19   ;;  %v4437_v24 = vmul.f32 %v9884_v22, %v10743_v11  ;;  %v14970_v22 = vld [vmem:[#allocation7_spill] sm:$0xff] }
 0x5f2   : > { %8904 = vmatmul.mubr.bf16.gmra.mrb[248].mxu1 %v2931_v12  ;;  %v12088_v12 = vpop.permute.xlu1 %5702  ;;  %v12109_v51 = vpop.xlane.xlu0 %4737  ;;  %v5219_v21 = vadd.f32 %v14971_v13, %v14970_v22 }
 0x5f3   : > { %14958 = vst [vmem:[#allocation29_spill] sm:$0xff] %v12088_v12  ;;  %14965 = vst [vmem:[#allocation35_spill] sm:$0xff] %v12109_v51 }
 0x5f5   : > { %5849 = vperm.xlu0 %8966, %v5214_v25   ;;  %v12061_v52 = vpop.f32.mrb[144].mxu1 }
 0x5f6   : > { %v12063_v43 = vpop.f32.mrb[145].mxu1  ;;  %v12096_v54 = vpop.xlane.xlu1 %4731 }
 0x5f7   : > { %v12067_v55 = vpop.f32.mrb[146].mxu1 }
 0x5f8   : > { %v12071_v19 = vpop.f32.mrb[147].mxu1 }
 0x5fd   : > { %v12075_v16 = vpop.f32.mrb[148].mxu1 }
 0x5fe   : > { %v12077_v34 = vpop.f32.mrb[149].mxu1 }
 0x5ff   : > { %v12079_v48 = vpop.f32.mrb[150].mxu1 }
 0x600   : > { %v12081_v62 = vpop.f32.mrb[151].mxu1 }
 0x605   : > { %v12084_v25 = vpop.f32.mrb[152].mxu1 }
 0x606   : > { %v12086_v1 = vpop.f32.mrb[153].mxu1 }
 0x607   : > { %v12090_v45 = vpop.f32.mrb[154].mxu1 }
 0x608   : > { %14959 = vst [vmem:[#allocation28_spill] sm:$0xff] %v12090_v45  ;;  %v12092_v63 = vpop.f32.mrb[155].mxu1  ;;  %v14974_v45 = vld [vmem:[#allocation59_spill] sm:$0xff] }
 0x609   : > { %14960 = vst [vmem:[#allocation30_spill] sm:$0xff] %v12092_v63  ;;  %v12121_v63 = vpop.xlane.xlu1 %4727 }
 0x60d   : > { %v12101_v9 = vpop.f32.mrb[156].mxu1 }
 0x60e   : > { %4827 = vadd.xlane.f32.xlu1 %v4436_v39  ;;  %v12103_v39 = vpop.f32.mrb[157].mxu1 }
 0x60f   : > { %14962 = vst [vmem:[#allocation33_spill] sm:$0xff] %v12103_v39  ;;  %v12105_v12 = vpop.f32.mrb[158].mxu1  ;;  %v14986_v39 = vld [vmem:[#allocation58_spill] sm:$0xff] }
 0x610   : > { %14963 = vst [vmem:[#allocation32_spill] sm:$0xff] %v12105_v12  ;;  %v12107_v44 = vpop.f32.mrb[159].mxu1 }
 0x611   : > { %14964 = vst [vmem:[#allocation34_spill] sm:$0xff] %v12107_v44  ;;  %v14973_v44 = vld [vmem:[#allocation10_spill] sm:$0xff] }
 0x612   : > { %4823 = vadd.xlane.f32.xlu1 %v4434_v3  ;;  %v5217_v51 = vadd.f32 %v14974_v45, %v14973_v44 }
 0x614   : > { %4833 = vadd.xlane.f32.xlu0 %v4439_v30 }
 0x615   : > { %v12111_v2 = vpop.f32.mrb[160].mxu1 }
 0x616   : > { %14966 = vst [vmem:[#allocation37_spill] sm:$0xff] %v12111_v2  ;;  %v12113_v61 = vpop.f32.mrb[161].mxu1 }
 0x617   : > { %14967 = vst [vmem:[#allocation36_spill] sm:$0xff] %v12113_v61  ;;  %v12115_v3 = vpop.f32.mrb[162].mxu1  ;;  %v12131_v61 = vpop.permute.xlu1 %5720 }
 0x618   : > { %4829 = vadd.xlane.f32.xlu0 %v4437_v24  ;;  %14968 = vst [vmem:[#allocation38_spill] sm:$0xff] %v12115_v3  ;;  %v12117_v30 = vpop.f32.mrb[163].mxu1  ;;  %14977 = vst [vmem:[#allocation43_spill] sm:$0xff] %v12131_v61 }
 0x619   : > { %14969 = vst [vmem:[#allocation39_spill] sm:$0xff] %v12117_v30  ;;  %v14979_v30 = vld [vmem:[#allocation8_spill] sm:$0xff] }
 0x61a   : > { %v5220_v22 = vadd.f32 %v14980_v20, %v14979_v30 }
 0x61d   : > { %v12123_v12 = vpop.f32.mrb[164].mxu1 }
 0x61e   : > { %14972 = vst [vmem:[#allocation40_spill] sm:$0xff] %v12123_v12  ;;  %v12127_v24 = vpop.f32.mrb[165].mxu1  ;;  %v12141_v12 = vpop.xlane.xlu0 %4733 }
 0x61f   : > { %14975 = vst [vmem:[#allocation41_spill] sm:$0xff] %v12127_v24  ;;  %v12129_v2 = vpop.f32.mrb[166].mxu1 }
 0x620   : > { %14976 = vst [vmem:[#allocation42_spill] sm:$0xff] %v12129_v2  ;;  %v12133_v3 = vpop.f32.mrb[167].mxu1  ;;  %v14985_v2 = vld [vmem:[#allocation13_spill] sm:$0xff] }
 0x621   : > { %14978 = vst [vmem:[#allocation44_spill] sm:$0xff] %v12133_v3  ;;  %v5218_v61 = vadd.f32 %v14986_v39, %v14985_v2  ;;  %v3587_v2 = vadd.f32 %v11975_v37, %v10698_v32  ;;  %v14998_v37 = vld [vmem:[#allocation145_spill] sm:$0xff] }
 0x623   : > { %5864 = vperm.xlu1 %8965, %v5219_v21  }
 0x625   : > { %v12137_v41 = vpop.f32.mrb[168].mxu1 }
 0x626   : > { %14981 = vst [vmem:[#allocation45_spill] sm:$0xff] %v12137_v41  ;;  %v12139_v21 = vpop.f32.mrb[169].mxu1 }
 0x627   : > { %5858 = vperm.xlu1 %8965, %v5217_v51   ;;  %14982 = vst [vmem:[#allocation46_spill] sm:$0xff] %v12139_v21  ;;  %v12143_v44 = vpop.f32.mrb[170].mxu1  ;;  %v12149_v51 = vpop.permute.xlu0 %5723 }
 0x628   : > { %14983 = vst [vmem:[#allocation47_spill] sm:$0xff] %v12143_v44  ;;  %v12145_v24 = vpop.f32.mrb[171].mxu1  ;;  %14987 = vst [vmem:[#allocation49_spill] sm:$0xff] %v12149_v51 }
 0x629   : > { %14984 = vst [vmem:[#allocation48_spill] sm:$0xff] %v12145_v24  ;;  %v3566_v24 = vadd.f32 %v11953_v5, %v10698_v32 }
 0x62d   : > { %v12151_v3 = vpop.f32.mrb[172].mxu1 }
 0x62e   : > { %5867 = vperm.xlu0 %8966, %v5220_v22   ;;  %14988 = vst [vmem:[#allocation50_spill] sm:$0xff] %v12151_v3  ;;  %v12153_v30 = vpop.f32.mrb[173].mxu1  ;;  %v3574_v22 = vadd.f32 %v11951_v17, %v10698_v32  ;;  %v3579_v17 = vadd.f32 %v11979_v60, %v10698_v32 }
 0x62f   : > { %14989 = vst [vmem:[#allocation51_spill] sm:$0xff] %v12153_v30  ;;  %v12155_v41 = vpop.f32.mrb[174].mxu1 }
 0x630   : > { %14990 = vst [vmem:[#allocation52_spill] sm:$0xff] %v12155_v41  ;;  %v12157_v21 = vpop.f32.mrb[175].mxu1  ;;  %9885 = vtanh.f32 %v3574_v22 }
 0x631   : > { %14991 = vst [vmem:[#allocation53_spill] sm:$0xff] %v12157_v21  ;;  %9887 = vtanh.f32 %v3566_v24 }
 0x632   : > { %5861 = vperm.xlu0 %8966, %v5218_v61   ;;  %9889 = vtanh.f32 %v3587_v2 }
 0x633   : > { %9891 = vtanh.f32 %v3579_v17 }
 0x635   : > { %v12165_v51 = vpop.f32.mrb[176].mxu1 }
 0x636   : > { %14992 = vst [vmem:[#allocation54_spill] sm:$0xff] %v12165_v51  ;;  %v12167_v61 = vpop.f32.mrb[177].mxu1  ;;  %v3019_v51 = vadd.f32 %v14998_v37, %v10698_v32 }
 0x637   : > { %14993 = vst [vmem:[#allocation55_spill] sm:$0xff] %v12167_v61  ;;  %v12169_v44 = vpop.f32.mrb[178].mxu1 }
 0x638   : > { %14994 = vst [vmem:[#allocation56_spill] sm:$0xff] %v12169_v44  ;;  %v12171_v41 = vpop.f32.mrb[179].mxu1  ;;  %9893 = vtanh.f32 %v3019_v51  ;;  %v12186_v44 = vpop.permute.xlu1 %5714 }
 0x639   : > { %14995 = vst [vmem:[#allocation57_spill] sm:$0xff] %v12171_v41  ;;  %15001 = vst [vmem:[#allocation66_spill] sm:$0xff] %v12186_v44 }
 0x63a   : > { %v9886_v22 = vpop.eup %9885 }
 0x63b   : > { %v9888_v24 = vpop.eup %9887  ;;  %v4440_v41 = vmul.f32 %v9886_v22, %v10743_v11 }
 0x63c   : > { %v9890_v2 = vpop.eup %9889  ;;  %v4438_v17 = vmul.f32 %v9888_v24, %v10743_v11  ;;  %v12198_v3 = vpop.xlane.xlu1 %4739 }
 0x63d   : > { %v12175_v21 = vpop.f32.mrb[180].mxu1  ;;  %v9892_v37 = vpop.eup %9891 }
 0x63e   : > { %14996 = vst [vmem:[#allocation60_spill] sm:$0xff] %v12175_v21  ;;  %v12177_v5 = vpop.f32.mrb[181].mxu1 }
 0x63f   : > { %14997 = vst [vmem:[#allocation61_spill] sm:$0xff] %v12177_v5  ;;  %v12181_v30 = vpop.f32.mrb[182].mxu1  ;;  %v4443_v5 = vmul.f32 %v9890_v2, %v10743_v11 }
 0x640   : > { %14999 = vst [vmem:[#allocation63_spill] sm:$0xff] %v12181_v30  ;;  %v12183_v61 = vpop.f32.mrb[183].mxu1  ;;  %v12194_v30 = vpop.permute.xlu0 %5717 }
 0x641   : > { %15000 = vst [vmem:[#allocation62_spill] sm:$0xff] %v12183_v61  ;;  %15004 = vst [vmem:[#allocation68_spill] sm:$0xff] %v12194_v30 }
 0x642   : > { %v9894_v24 = vpop.eup %9893 }
 0x643   : > { %v4301_v30 = vmul.f32 %v9894_v24, %v10743_v11 }
 0x644   : > { %v12203_v22 = vpop.xlane.xlu0 %4745 }
 0x645   : > { %v12188_v60 = vpop.f32.mrb[184].mxu1 }
 0x646   : > { %15002 = vst [vmem:[#allocation67_spill] sm:$0xff] %v12188_v60  ;;  %v12192_v21 = vpop.f32.mrb[185].mxu1 }
 0x647   : > { %15003 = vst [vmem:[#allocation69_spill] sm:$0xff] %v12192_v21  ;;  %v12196_v61 = vpop.f32.mrb[186].mxu1 }
 0x648   : > { %15005 = vst [vmem:[#allocation72_spill] sm:$0xff] %v12196_v61  ;;  %v12200_v51 = vpop.f32.mrb[187].mxu1 }
 0x649   : > { %15006 = vst [vmem:[#allocation73_spill] sm:$0xff] %v12200_v51  ;;  %v15014_v51 = vld [vmem:[#allocation11_spill] sm:$0xff] }
 0x64a   : > { %v5223_v60 = vadd.f32 %v11055_v7, %v15014_v51 }
 0x64b   : > { %4835 = vadd.xlane.f32.xlu1 %v4440_v41  ;;  %v4441_v41 = vmul.f32 %v9892_v37, %v10743_v11 }
 0x64d   : > { %v12205_v44 = vpop.f32.mrb[188].mxu1 }
 0x64e   : > { %15007 = vst [vmem:[#allocation74_spill] sm:$0xff] %v12205_v44  ;;  %v12207_v2 = vpop.f32.mrb[189].mxu1 }
 0x64f   : > { %4831 = vadd.xlane.f32.xlu1 %v4438_v17  ;;  %15008 = vst [vmem:[#allocation75_spill] sm:$0xff] %v12207_v2  ;;  %v12209_v21 = vpop.f32.mrb[190].mxu1  ;;  %v12214_v17 = vpop.xlane.xlu0 %4741 }
 0x650   : > { %15009 = vst [vmem:[#allocation78_spill] sm:$0xff] %v12209_v21  ;;  %v12212_v61 = vpop.f32.mrb[191].mxu1  ;;  %15011 = vst [vmem:[#allocation80_spill] sm:$0xff] %v12214_v17  ;;  %v12226_v2 = vpop.xlane.xlu1 %4735 }
 0x651   : > { %4841 = vadd.xlane.f32.xlu0 %v4443_v5  ;;  %15010 = vst [vmem:[#allocation79_spill] sm:$0xff] %v12212_v61 }
 0x653   : > { %v12240_v17 = vpop.permute.xlu0 %5735 }
 0x654   : > { %15023 = vst [vmem:[#allocation96_spill] sm:$0xff] %v12240_v17 }
 0x655   : > { %4837 = vadd.xlane.f32.xlu0 %v4441_v41  ;;  %v12216_v5 = vpop.f32.mrb[192].mxu1 }
 0x656   : > { %15012 = vst [vmem:[#allocation81_spill] sm:$0xff] %v12216_v5  ;;  %v12218_v37 = vpop.f32.mrb[193].mxu1 }
 0x657   : > { %15013 = vst [vmem:[#allocation83_spill] sm:$0xff] %v12218_v37  ;;  %v12222_v44 = vpop.f32.mrb[194].mxu1  ;;  %v15022_v37 = vld [vmem:[#allocation12_spill] sm:$0xff] }
 0x658   : > { %15015 = vst [vmem:[#allocation84_spill] sm:$0xff] %v12222_v44  ;;  %v12224_v41 = vpop.f32.mrb[195].mxu1  ;;  %v5224_v51 = vadd.f32 %v11099_v56, %v15022_v37 }
 0x659   : > { %4557 = vadd.xlane.f32.xlu0 %v4301_v30  ;;  %15016 = vst [vmem:[#allocation85_spill] sm:$0xff] %v12224_v41 }
 0x65d   : > { %v12228_v24 = vpop.f32.mrb[196].mxu1 }
 0x65e   : > { %15017 = vst [vmem:[#allocation86_spill] sm:$0xff] %v12228_v24  ;;  %v12230_v61 = vpop.f32.mrb[197].mxu1 }
 0x65f   : > { %15018 = vst [vmem:[#allocation89_spill] sm:$0xff] %v12230_v61  ;;  %v12232_v21 = vpop.f32.mrb[198].mxu1  ;;  %v15027_v61 = vld [vmem:[#allocation144_spill] sm:$0xff] }
 0x660   : > { %5876 = vperm.xlu1 %8965, %v5223_v60   ;;  %15019 = vst [vmem:[#allocation90_spill] sm:$0xff] %v12232_v21  ;;  %v12234_v30 = vpop.f32.mrb[199].mxu1  ;;  %v3027_v24 = vadd.f32 %v15027_v61, %v10698_v32  ;;  %v12252_v21 = vpop.permute.xlu0 %5729 }
 0x661   : > { %15020 = vst [vmem:[#allocation92_spill] sm:$0xff] %v12234_v30  ;;  %v5222_v30 = vadd.f32 %v11073_v0, %v11785_v49  ;;  %15028 = vst [vmem:[#allocation101_spill] sm:$0xff] %v12252_v21  ;;  %v15035_v49 = vld [vmem:[#allocation147_spill] sm:$0xff] }
 0x662   : > { %9895 = vtanh.f32 %v3027_v24  ;;  %v3022_v21 = vadd.f32 %v15035_v49, %v10698_v32  ;;  %v3595_v49 = vadd.f32 %v12053_v50, %v10698_v32 }
 0x664   : > { %9897 = vtanh.f32 %v3022_v21 }
 0x665   : > { %v12236_v5 = vpop.f32.mrb[200].mxu1 }
 0x666   : > { %15021 = vst [vmem:[#allocation94_spill] sm:$0xff] %v12236_v5  ;;  %v12242_v44 = vpop.f32.mrb[201].mxu1 }
 0x667   : > { %15024 = vst [vmem:[#allocation97_spill] sm:$0xff] %v12242_v44  ;;  %v12244_v41 = vpop.f32.mrb[202].mxu1 }
 0x668   : > { %15025 = vst [vmem:[#allocation98_spill] sm:$0xff] %v12244_v41  ;;  %v12246_v60 = vpop.f32.mrb[203].mxu1 }
 0x669   : > { %15026 = vst [vmem:[#allocation100_spill] sm:$0xff] %v12246_v60 }
 0x66c   : > { %v9896_v44 = vpop.eup %9895 }
 0x66d   : > { %v12254_v5 = vpop.f32.mrb[204].mxu1  ;;  %v4303_v24 = vmul.f32 %v9896_v44, %v10743_v11 }
 0x66e   : > { %v12256_v37 = vpop.f32.mrb[205].mxu1  ;;  %v9898_v44 = vpop.eup %9897 }
 0x66f   : > { %5879 = vperm.xlu0 %8966, %v5224_v51   ;;  %15029 = vst [vmem:[#allocation102_spill] sm:$0xff] %v12256_v37  ;;  %v12258_v17 = vpop.f32.mrb[206].mxu1  ;;  %v12275_v37 = vpop.permute.xlu1 %5732 }
 0x670   : > { %15030 = vst [vmem:[#allocation103_spill] sm:$0xff] %v12258_v17  ;;  %v12260_v41 = vpop.f32.mrb[207].mxu1  ;;  %v3603_v17 = vadd.f32 %v12049_v57, %v10698_v32  ;;  %15037 = vst [vmem:[#allocation110_spill] sm:$0xff] %v12275_v37 }
 0x671   : > { %15031 = vst [vmem:[#allocation104_spill] sm:$0xff] %v12260_v41 }
 0x672   : > { %9899 = vtanh.f32 %v3603_v17 }
 0x673   : > { %5873 = vperm.xlu0 %8966, %v5222_v30   ;;  %9901 = vtanh.f32 %v3595_v49 }
 0x675   : > { %v12262_v51 = vpop.f32.mrb[208].mxu1 }
 0x676   : > { %15032 = vst [vmem:[#allocation106_spill] sm:$0xff] %v12262_v51  ;;  %v12264_v60 = vpop.f32.mrb[209].mxu1  ;;  %v12303_v51 = vpop.permute.xlu1 %5726 }
 0x677   : > { %15033 = vst [vmem:[#allocation105_spill] sm:$0xff] %v12264_v60  ;;  %v12266_v61 = vpop.f32.mrb[210].mxu1  ;;  %15048 = vst [vmem:[#allocation119_spill] sm:$0xff] %v12303_v51 }
 0x678   : > { %15034 = vst [vmem:[#allocation107_spill] sm:$0xff] %v12266_v61  ;;  %v12270_v30 = vpop.f32.mrb[211].mxu1 }
 0x679   : > { %15036 = vst [vmem:[#allocation108_spill] sm:$0xff] %v12270_v30 }
 0x67c   : > { %v9900_v17 = vpop.eup %9899 }
 0x67d   : > { %v12277_v41 = vpop.f32.mrb[212].mxu1  ;;  %v4447_v49 = vmul.f32 %v9900_v17, %v10743_v11 }
 0x67e   : > { %15038 = vst [vmem:[#allocation109_spill] sm:$0xff] %v12277_v41  ;;  %v12279_v60 = vpop.f32.mrb[213].mxu1  ;;  %v12295_v41 = vpop.xlane.xlu0 %4753 }
 0x67f   : > { %15039 = vst [vmem:[#allocation111_spill] sm:$0xff] %v12279_v60  ;;  %v12281_v61 = vpop.f32.mrb[214].mxu1  ;;  %v15046_v60 = vld [vmem:[#allocation14_spill] sm:$0xff] }
 0x680   : > { %15040 = vst [vmem:[#allocation112_spill] sm:$0xff] %v12281_v61  ;;  %v12285_v30 = vpop.f32.mrb[215].mxu1  ;;  %v4302_v61 = vmul.f32 %v9898_v44, %v10743_v11  ;;  %v5221_v50 = vadd.f32 %v11035_v53, %v15046_v60 }
 0x681   : > { %15041 = vst [vmem:[#allocation113_spill] sm:$0xff] %v12285_v30 }
 0x684   : > { %4561 = vadd.xlane.f32.xlu1 %v4303_v24 }
 0x685   : > { %v12287_v21 = vpop.f32.mrb[216].mxu1 }
 0x686   : > { %15042 = vst [vmem:[#allocation114_spill] sm:$0xff] %v12287_v21  ;;  %v12289_v57 = vpop.f32.mrb[217].mxu1  ;;  %v9902_v21 = vpop.eup %9901 }
 0x687   : > { %15043 = vst [vmem:[#allocation115_spill] sm:$0xff] %v12289_v57  ;;  %v12291_v37 = vpop.f32.mrb[218].mxu1 }
 0x688   : > { %15044 = vst [vmem:[#allocation116_spill] sm:$0xff] %v12291_v37  ;;  %v12293_v24 = vpop.f32.mrb[219].mxu1 }
 0x689   : > { %15045 = vst [vmem:[#allocation117_spill] sm:$0xff] %v12293_v24  ;;  %v12307_v24 = vpop.xlane.xlu0 %4749 }
 0x68d   : > { %v12301_v30 = vpop.f32.mrb[220].mxu1  ;;  %v12314_v60 = vpop.permute.xlu0 %5747 }
 0x68e   : > { %15047 = vst [vmem:[#allocation118_spill] sm:$0xff] %v12301_v30  ;;  %v12305_v37 = vpop.f32.mrb[221].mxu1  ;;  %15052 = vst [vmem:[#allocation123_spill] sm:$0xff] %v12314_v60 }
 0x68f   : > { %15049 = vst [vmem:[#allocation120_spill] sm:$0xff] %v12305_v37  ;;  %v12309_v57 = vpop.f32.mrb[222].mxu1 }
 0x690   : > { %15050 = vst [vmem:[#allocation121_spill] sm:$0xff] %v12309_v57  ;;  %v12311_v44 = vpop.f32.mrb[223].mxu1 }
 0x691   : > { %15051 = vst [vmem:[#allocation122_spill] sm:$0xff] %v12311_v44  ;;  %v3590_v44 = vadd.f32 %v12039_v6, %v10698_v32 }
 0x692   : > { %4559 = vadd.xlane.f32.xlu0 %v4302_v61  ;;  %v4445_v61 = vmul.f32 %v9902_v21, %v10743_v11 }
 0x693   : > { %9903 = vtanh.f32 %v3590_v44  ;;  %v5226_v44 = vadd.f32 %v11126_v10, %v11827_v15 }
 0x695   : > { %5870 = vperm.xlu1 %8965, %v5221_v50   ;;  %v12316_v17 = vpop.f32.mrb[224].mxu1 }
 0x696   : > { %4849 = vadd.xlane.f32.xlu0 %v4447_v49  ;;  %15053 = vst [vmem:[#allocation124_spill] sm:$0xff] %v12316_v17  ;;  %v12318_v30 = vpop.f32.mrb[225].mxu1 }
 0x697   : > { %15054 = vst [vmem:[#allocation125_spill] sm:$0xff] %v12318_v30  ;;  %v12320_v51 = vpop.f32.mrb[226].mxu1 }
 0x698   : > { %15055 = vst [vmem:[#allocation126_spill] sm:$0xff] %v12320_v51  ;;  %v12322_v50 = vpop.f32.mrb[227].mxu1 }
 0x699   : > { %15056 = vst [vmem:[#allocation127_spill] sm:$0xff] %v12322_v50  ;;  %v5228_v50 = vadd.f32 %v11140_v31, %v11794_v40  ;;  %v12356_v40 = vpop.xlane.xlu1 %4747 }
 0x69a   : > { %4845 = vadd.xlane.f32.xlu0 %v4445_v61  ;;  %v15061_v61 = vld [vmem:[#allocation146_spill] sm:$0xff] }
 0x69b   : > { %v3030_v17 = vadd.f32 %v15061_v61, %v10698_v32 }
 0x69d   : > { %v12324_v37 = vpop.f32.mrb[228].mxu1  ;;  %9905 = vtanh.f32 %v3030_v17  ;;  %v9904_v61 = vpop.eup %9903 }
 0x69e   : > { %15057 = vst [vmem:[#allocation128_spill] sm:$0xff] %v12324_v37  ;;  %v12326_v49 = vpop.f32.mrb[229].mxu1  ;;  %v12365_v15 = vpop.xlane.xlu1 %4743 }
 0x69f   : > { %15058 = vst [vmem:[#allocation129_spill] sm:$0xff] %v12326_v49  ;;  %v12330_v57 = vpop.f32.mrb[230].mxu1  ;;  %v3582_v49 = vadd.f32 %v12041_v59, %v10698_v32 }
 0x6a0   : > { %15059 = vst [vmem:[#allocation131_spill] sm:$0xff] %v12330_v57  ;;  %v12332_v21 = vpop.f32.mrb[231].mxu1 }
 0x6a1   : > { %15060 = vst [vmem:[#allocation130_spill] sm:$0xff] %v12332_v21  ;;  %v12348_v21 = vpop.permute.xlu0 %5741  ;;  %9907 = vtanh.f32 %v3582_v49 }
 0x6a5   : > { %v12336_v30 = vpop.f32.mrb[232].mxu1 }
 0x6a6   : > { %15062 = vst [vmem:[#allocation132_spill] sm:$0xff] %v12336_v30  ;;  %v12338_v51 = vpop.f32.mrb[233].mxu1 }
 0x6a7   : > { %15063 = vst [vmem:[#allocation133_spill] sm:$0xff] %v12338_v51  ;;  %v12344_v6 = vpop.f32.mrb[234].mxu1  ;;  %v12352_v51 = vpop.xlane.xlu0 %4761 }
 0x6a8   : > { %15064 = vst [vmem:[#allocation135_spill] sm:$0xff] %v12344_v6  ;;  %v12346_v57 = vpop.f32.mrb[235].mxu1 }
 0x6a9   : > { %15065 = vst [vmem:[#allocation134_spill] sm:$0xff] %v12346_v57  ;;  %v4444_v57 = vmul.f32 %v9904_v61, %v10743_v11  ;;  %v3619_v61 = vadd.f32 %v12061_v52, %v10698_v32 }
 0x6ab   : > { %9909 = vtanh.f32 %v3619_v61  ;;  %v15083_v61 = vld [vmem:[#allocation15_spill] sm:$0xff] }
 0x6ad   : > { %v12354_v17 = vpop.f32.mrb[236].mxu1 }
 0x6ae   : > { %15066 = vst [vmem:[#allocation136_spill] sm:$0xff] %v12354_v17  ;;  %v12358_v59 = vpop.f32.mrb[237].mxu1 }
 0x6af   : > { %15067 = vst [vmem:[#allocation137_spill] sm:$0xff] %v12358_v59  ;;  %v12360_v6 = vpop.f32.mrb[238].mxu1 }
 0x6b0   : > { %5891 = vperm.xlu0 %8966, %v5228_v50   ;;  %15068 = vst [vmem:[#allocation139_spill] sm:$0xff] %v12360_v6  ;;  %v12363_v30 = vpop.f32.mrb[239].mxu1  ;;  %v9906_v50 = vpop.eup %9905 }
 0x6b1   : > { %15069 = vst [vmem:[#allocation138_spill] sm:$0xff] %v12363_v30  ;;  %v4304_v49 = vmul.f32 %v9906_v50, %v10743_v11  ;;  %v9908_v37 = vpop.eup %9907  ;;  %v3611_v50 = vadd.f32 %v12063_v43, %v10698_v32  ;;  %v5227_v43 = vadd.f32 %v11103_v4, %v15083_v61  ;;  %v5232_v61 = vadd.f32 %v14953_v23, %v11900_v26 }
 0x6b2   : > { %v4442_v6 = vmul.f32 %v9908_v37, %v10743_v11 }
 0x6b3   : > { %9911 = vtanh.f32 %v3611_v50  ;;  %v5225_v50 = vadd.f32 %v11075_v27, %v11796_v18  ;;  %v5230_v18 = vadd.f32 %v14956_v47, %v11935_v14  ;;  %v3627_v14 = vadd.f32 %v12077_v34, %v10698_v32 }
 0x6b4   : > { %5885 = vperm.xlu0 %8966, %v5226_v44  }
 0x6b5   : > { %v12368_v44 = vpop.f32.mrb[240].mxu1  ;;  %v9910_v52 = vpop.eup %9909 }
 0x6b6   : > { %15070 = vst [vmem:[#allocation140_spill] sm:$0xff] %v12368_v44  ;;  %v12370_v17 = vpop.f32.mrb[241].mxu1 }
 0x6b7   : > { %15071 = vst [vmem:[#allocation141_spill] sm:$0xff] %v12370_v17  ;;  %v12372_v60 = vpop.f32.mrb[242].mxu1 }
 0x6b8   : > { %15072 = vst [vmem:[#allocation143_spill] sm:$0xff] %v12372_v60  ;;  %v12375_v59 = vpop.f32.mrb[243].mxu1 }
 0x6b9   : > { %4843 = vadd.xlane.f32.xlu1 %v4444_v57  ;;  %15073 = vst [vmem:[#allocation142_spill] sm:$0xff] %v12375_v59  ;;  %v12379_v57 = vpop.permute.xlu1 %5744 }
 0x6ba   : > { %15074 = vst [vmem:[#allocation6_spill] sm:$0xff] %v12379_v57 }
 0x6bd   : > { %4563 = vadd.xlane.f32.xlu1 %v4304_v49  ;;  %v12383_v30 = vpop.f32.mrb[244].mxu1  ;;  %v12402_v57 = vpop.permute.xlu1 %5738 }
 0x6be   : > { %15075 = vst [vmem:[#allocation9_spill] sm:$0xff] %v12383_v30  ;;  %v12385_v49 = vpop.f32.mrb[245].mxu1  ;;  %v4451_v30 = vmul.f32 %v9910_v52, %v10743_v11  ;;  %v3606_v52 = vadd.f32 %v12055_v42, %v10698_v32 }
 0x6bf   : > { %15076 = vst [vmem:[#allocation7_spill] sm:$0xff] %v12385_v49  ;;  %v12387_v17 = vpop.f32.mrb[246].mxu1  ;;  %v9912_v49 = vpop.eup %9911 }
 0x6c0   : > { %15077 = vst [vmem:[#allocation10_spill] sm:$0xff] %v12387_v17  ;;  %v12389_v60 = vpop.f32.mrb[247].mxu1  ;;  %v4449_v17 = vmul.f32 %v9912_v49, %v10743_v11  ;;  %9913 = vtanh.f32 %v3606_v52 }
 0x6c1   : > { %4839 = vadd.xlane.f32.xlu1 %v4442_v6  ;;  %15078 = vst [vmem:[#allocation8_spill] sm:$0xff] %v12389_v60  ;;  %v12404_v60 = vpop.xlane.xlu0 %4757 }
 0x6c5   : > { %v12391_v37 = vpop.f32.mrb[248].mxu1 }
 0x6c6   : > { %15079 = vst [vmem:[#allocation13_spill] sm:$0xff] %v12391_v37  ;;  %v12393_v59 = vpop.f32.mrb[249].mxu1 }
 0x6c7   : > { %15080 = vst [vmem:[#allocation145_spill] sm:$0xff] %v12393_v59  ;;  %v12395_v44 = vpop.f32.mrb[250].mxu1 }
 0x6c8   : > { %15081 = vst [vmem:[#allocation11_spill] sm:$0xff] %v12395_v44  ;;  %v12397_v6 = vpop.f32.mrb[251].mxu1  ;;  %v12409_v44 = vpop.xlane.xlu1 %4755 }
 0x6c9   : > { %15082 = vst [vmem:[#allocation12_spill] sm:$0xff] %v12397_v6  ;;  %v12411_v6 = vpop.permute.xlu0 %5759 }
 0x6ca   : > { %15084 = vst [vmem:[#allocation144_spill] sm:$0xff] %v12411_v6 }
 0x6d2   : > { %5888 = vperm.xlu1 %8965, %v5227_v43   ;;  %v12419_v43 = vpop.permute.xlu0 %5753 }
 0x6d3   : > { %4857 = vadd.xlane.f32.xlu0 %v4451_v30  ;;  %v3598_v30 = vadd.f32 %v12057_v38, %v10698_v32  ;;  %15085 = vst [vmem:[#allocation147_spill] sm:$0xff] %v12419_v43  ;;  %v3635_v38 = vadd.f32 %v12075_v16, %v10698_v32  ;;  %v5229_v16 = vadd.f32 %v11128_v29, %v11841_v58 }
 0x6d4   : > { %v5234_v58 = vadd.f32 %v14986_v39, %v12029_v8  ;;  %v3643_v8 = vadd.f32 %v12086_v1, %v10698_v32 }
 0x6d5   : > { %9915 = vtanh.f32 %v3598_v30 }
 0x6d6   : > { %5882 = vperm.xlu1 %8965, %v5225_v50   ;;  %v12423_v49 = vpop.xlane.xlu0 %4769  ;;  %v12425_v50 = vpop.xlane.xlu1 %4751  ;;  %9917 = vtanh.f32 %v3635_v38 }
 0x6d7   : > { %4853 = vadd.xlane.f32.xlu0 %v4449_v17  ;;  %v9914_v17 = vpop.eup %9913  ;;  %9919 = vtanh.f32 %v3627_v14  ;;  %v5236_v14 = vadd.f32 %v14980_v20, %v12006_v36 }
 0x6d8   : > { %v4448_v42 = vmul.f32 %v9914_v17, %v10743_v11 }
 0x6df   : > { %v9916_v26 = vpop.eup %9915 }
 0x6e0   : > { %v4446_v52 = vmul.f32 %v9916_v26, %v10743_v11  ;;  %v9918_v30 = vpop.eup %9917  ;;  %v12440_v26 = vpop.xlane.xlu0 %4765 }
 0x6e1   : > { %v4455_v17 = vmul.f32 %v9918_v30, %v10743_v11  ;;  %v3614_v30 = vadd.f32 %v12071_v19, %v10698_v32  ;;  %v3651_v19 = vadd.f32 %v12084_v25, %v10698_v32  ;;  %v5233_v25 = vadd.f32 %v14974_v45, %v11949_v28 }
 0x6e2   : > { %v5238_v28 = vadd.f32 %v11073_v0, %v12121_v63  ;;  %v15091_v63 = vld [vmem:[#allocation33_spill] sm:$0xff] }
 0x6e4   : > { %v12447_v38 = vpop.permute.xlu0 %5771 }
 0x6ed   : > { %5903 = vperm.xlu0 %8966, %v5232_v61   ;;  %v12431_v61 = vpop.permute.xlu1 %5756 }
 0x6ee   : > { %15086 = vst [vmem:[#allocation14_spill] sm:$0xff] %v12431_v61 }
 0x6f1   : > { %5897 = vperm.xlu0 %8966, %v5230_v18   ;;  %v5231_v18 = vadd.f32 %v11144_v35, %v11805_v33  ;;  %v12438_v59 = vpop.permute.xlu1 %5750  ;;  %v3622_v33 = vadd.f32 %v12067_v55, %v10698_v32 }
 0x6f2   : > { %15087 = vst [vmem:[#allocation146_spill] sm:$0xff] %v12438_v59  ;;  %v5251_v59 = vadd.f32 %v14971_v13, %v12295_v41  ;;  %v15121_v41 = vld [vmem:[#allocation42_spill] sm:$0xff] }
 0x6f3   : > { %9921 = vtanh.f32 %v3622_v33 }
 0x6f4   : > { %9923 = vtanh.f32 %v3614_v30  ;;  %v5235_v30 = vadd.f32 %v14971_v13, %v11913_v46  ;;  %v3638_v46 = vadd.f32 %v12079_v48, %v10698_v32 }
 0x6f5   : > { %v12445_v34 = vpop.xlane.xlu1 %4763  ;;  %9925 = vtanh.f32 %v3651_v19 }
 0x6f6   : > { %9927 = vtanh.f32 %v3643_v8  ;;  %v5240_v8 = vadd.f32 %v11099_v56, %v12096_v54 }
 0x6f7   : > { %9929 = vtanh.f32 %v3638_v46 }
 0x6fa   : > { %4851 = vadd.xlane.f32.xlu1 %v4448_v42  ;;  %v9920_v42 = vpop.eup %9919 }
 0x6fe   : > { %4847 = vadd.xlane.f32.xlu1 %v4446_v52  ;;  %v4453_v52 = vmul.f32 %v9920_v42, %v10743_v11  ;;  %v9922_v42 = vpop.eup %9921 }
 0x6ff   : > { %v4452_v55 = vmul.f32 %v9922_v42, %v10743_v11  ;;  %v9924_v36 = vpop.eup %9923 }
 0x70f   : > { %5900 = vperm.xlu1 %8965, %v5231_v18   ;;  %v12455_v18 = vpop.permute.xlu0 %5765 }
 0x710   : > { %4865 = vadd.xlane.f32.xlu0 %v4455_v17 }
 0x713   : > { %5894 = vperm.xlu1 %8965, %v5229_v16   ;;  %v12459_v17 = vpop.xlane.xlu0 %4777  ;;  %v12461_v16 = vpop.xlane.xlu1 %4759 }
 0x714   : > { %4861 = vadd.xlane.f32.xlu0 %v4453_v52  ;;  %v4450_v52 = vmul.f32 %v9924_v36, %v10743_v11 }
 0x717   : > { %v12467_v33 = vpop.permute.xlu1 %5768  ;;  %v12476_v36 = vpop.xlane.xlu0 %4773 }
 0x71b   : > { %v12483_v19 = vpop.permute.xlu0 %5783 }
 0x71c   : > { %15088 = vst [vmem:[#allocation15_spill] sm:$0xff] %v12483_v19 }
 0x72a   : > { %5915 = vperm.xlu0 %8966, %v5236_v14   ;;  %v9926_v14 = vpop.eup %9925 }
 0x72b   : > { %v9928_v42 = vpop.eup %9927 }
 0x72e   : > { %5909 = vperm.xlu0 %8966, %v5234_v58   ;;  %v4459_v58 = vmul.f32 %v9926_v14, %v10743_v11  ;;  %v3630_v14 = vadd.f32 %v12081_v62, %v10698_v32  ;;  %v3667_v62 = vadd.f32 %v12101_v9, %v10698_v32  ;;  %v15094_v9 = vld [vmem:[#allocation26_spill] sm:$0xff] }
 0x730   : > { %9931 = vtanh.f32 %v3630_v14 }
 0x731   : > { %9933 = vtanh.f32 %v3667_v62 }
 0x737   : > { %4859 = vadd.xlane.f32.xlu1 %v4452_v55  ;;  %v12474_v55 = vpop.permute.xlu1 %5762 }
 0x73b   : > { %4855 = vadd.xlane.f32.xlu1 %v4450_v52  ;;  %v4457_v52 = vmul.f32 %v9928_v42, %v10743_v11  ;;  %v12481_v1 = vpop.xlane.xlu1 %4771  ;;  %v9930_v42 = vpop.eup %9929 }
 0x73c   : > { %v4456_v48 = vmul.f32 %v9930_v42, %v10743_v11  ;;  %v9932_v54 = vpop.eup %9931 }
 0x73d   : > { %v9934_v14 = vpop.eup %9933 }
 0x73e   : > { %v4463_v42 = vmul.f32 %v9934_v14, %v10743_v11  ;;  %v15096_v14 = vld [vmem:[#allocation28_spill] sm:$0xff] }
 0x74c   : > { %5912 = vperm.xlu1 %8965, %v5235_v30   ;;  %v12491_v30 = vpop.permute.xlu0 %5777 }
 0x74d   : > { %4873 = vadd.xlane.f32.xlu0 %v4459_v58  ;;  %15089 = vst [vmem:[#allocation148_spill] sm:$0xff] %v12491_v30 }
 0x750   : > { %5906 = vperm.xlu1 %8965, %v5233_v25   ;;  %v12495_v58 = vpop.xlane.xlu0 %4785  ;;  %v12497_v25 = vpop.xlane.xlu1 %4767 }
 0x751   : > { %4869 = vadd.xlane.f32.xlu0 %v4457_v52  ;;  %v4454_v52 = vmul.f32 %v9932_v54, %v10743_v11 }
 0x754   : > { %v12503_v46 = vpop.permute.xlu1 %5780  ;;  %v12512_v54 = vpop.xlane.xlu0 %4781 }
 0x755   : > { %15090 = vst [vmem:[#allocation149_spill] sm:$0xff] %v12503_v46 }
 0x758   : > { %v12510_v6 = vpop.permute.xlu1 %5774 }
 0x759   : > { %15093 = vst [vmem:[#allocation33_spill] sm:$0xff] %v12510_v6 }
 0x767   : > { %5927 = vperm.xlu0 %8966, %v5240_v8   ;;  %v3659_v8 = vadd.f32 %v15091_v63, %v10698_v32  ;;  %v12517_v63 = vpop.xlane.xlu1 %4779 }
 0x769   : > { %9935 = vtanh.f32 %v3659_v8  ;;  %v12519_v8 = vpop.permute.xlu0 %5795 }
 0x76b   : > { %5921 = vperm.xlu0 %8966, %v5238_v28   ;;  %v15092_v28 = vld [vmem:[#allocation24_spill] sm:$0xff] }
 0x76c   : > { %v5239_v37 = vadd.f32 %v11055_v7, %v15092_v28  ;;  %15095 = vst [vmem:[#allocation24_spill] sm:$0xff] %v12519_v8  ;;  %v3654_v28 = vadd.f32 %v15096_v14, %v10698_v32 }
 0x76d   : > { %v12527_v19 = vpop.permute.xlu0 %5789 }
 0x76e   : > { %9937 = vtanh.f32 %v3654_v28  ;;  %15098 = vst [vmem:[#allocation26_spill] sm:$0xff] %v12527_v19  ;;  %v15102_v19 = vld [vmem:[#allocation35_spill] sm:$0xff] }
 0x76f   : > { %v5243_v43 = vadd.f32 %v11103_v4, %v15102_v19  ;;  %v15105_v19 = vld [vmem:[#allocation32_spill] sm:$0xff] }
 0x774   : > { %4867 = vadd.xlane.f32.xlu1 %v4456_v48  ;;  %v9936_v48 = vpop.eup %9935 }
 0x775   : > { %v4461_v62 = vmul.f32 %v9936_v48, %v10743_v11  ;;  %v5242_v48 = vadd.f32 %v11126_v10, %v12226_v2  ;;  %v15101_v2 = vld [vmem:[#allocation36_spill] sm:$0xff] }
 0x778   : > { %4863 = vadd.xlane.f32.xlu1 %v4454_v52  ;;  %v5237_v52 = vadd.f32 %v11035_v53, %v15094_v9  ;;  %v12531_v9 = vpop.xlane.xlu0 %4793 }
 0x789   : > { %5924 = vperm.xlu1 %8965, %v5239_v37   ;;  %v5244_v37 = vadd.f32 %v11140_v31, %v12198_v3 }
 0x78a   : > { %4881 = vadd.xlane.f32.xlu0 %v4463_v42  ;;  %v15097_v42 = vld [vmem:[#allocation30_spill] sm:$0xff] }
 0x78b   : > { %v3646_v61 = vadd.f32 %v15097_v42, %v10698_v32  ;;  %v15099_v42 = vld [vmem:[#allocation37_spill] sm:$0xff] }
 0x78c   : > { %v3683_v8 = vadd.f32 %v15099_v42, %v10698_v32 }
 0x78d   : > { %5918 = vperm.xlu1 %8965, %v5237_v52   ;;  %9939 = vtanh.f32 %v3646_v61  ;;  %v9938_v52 = vpop.eup %9937  ;;  %v3675_v61 = vadd.f32 %v15101_v2, %v10698_v32 }
 0x78e   : > { %4877 = vadd.xlane.f32.xlu0 %v4461_v62  ;;  %v12533_v62 = vpop.xlane.xlu1 %4775  ;;  %v4460_v14 = vmul.f32 %v9938_v52, %v10743_v11  ;;  %9941 = vtanh.f32 %v3683_v8  ;;  %v5241_v8 = vadd.f32 %v11075_v27, %v12141_v12  ;;  %v5246_v12 = vadd.f32 %v14956_v47, %v12365_v15  ;;  %v15110_v15 = vld [vmem:[#allocation41_spill] sm:$0xff] }
 0x78f   : > { %9943 = vtanh.f32 %v3675_v61  ;;  %v3670_v61 = vadd.f32 %v15105_v19, %v10698_v32 }
 0x791   : > { %9945 = vtanh.f32 %v3670_v61 }
 0x797   : > { %v9940_v3 = vpop.eup %9939 }
 0x798   : > { %v4458_v28 = vmul.f32 %v9940_v3, %v10743_v11  ;;  %v12548_v3 = vpop.xlane.xlu0 %4789 }
 0x79c   : > { %v12555_v2 = vpop.permute.xlu0 %5807 }
 0x79d   : > { %15104 = vst [vmem:[#allocation37_spill] sm:$0xff] %v12555_v2 }
 0x7a4   : > { %5939 = vperm.xlu0 %8966, %v5244_v37   ;;  %v12539_v37 = vpop.permute.xlu1 %5792 }
 0x7a5   : > { %15100 = vst [vmem:[#allocation28_spill] sm:$0xff] %v12539_v37  ;;  %v12563_v37 = vpop.permute.xlu0 %5801 }
 0x7a6   : > { %15107 = vst [vmem:[#allocation36_spill] sm:$0xff] %v12563_v37  ;;  %v5247_v37 = vadd.f32 %v11144_v35, %v12203_v22  ;;  %v15114_v22 = vld [vmem:[#allocation38_spill] sm:$0xff] }
 0x7a8   : > { %5933 = vperm.xlu0 %8966, %v5242_v48   ;;  %v9942_v48 = vpop.eup %9941  ;;  %v12546_v46 = vpop.permute.xlu1 %5786 }
 0x7a9   : > { %v4467_v52 = vmul.f32 %v9942_v48, %v10743_v11  ;;  %15103 = vst [vmem:[#allocation30_spill] sm:$0xff] %v12546_v46  ;;  %v15106_v48 = vld [vmem:[#allocation34_spill] sm:$0xff] }
 0x7ac   : > { %v12553_v42 = vpop.xlane.xlu1 %4787 }
 0x7b1   : > { %4875 = vadd.xlane.f32.xlu1 %v4460_v14  ;;  %v9944_v14 = vpop.eup %9943 }
 0x7b5   : > { %4871 = vadd.xlane.f32.xlu1 %v4458_v28  ;;  %v4465_v28 = vmul.f32 %v9944_v14, %v10743_v11  ;;  %v12567_v14 = vpop.xlane.xlu0 %4801 }
 0x7c6   : > { %5936 = vperm.xlu1 %8965, %v5243_v43   ;;  %v5248_v43 = vadd.f32 %v14953_v23, %v12356_v40 }
 0x7c7   : > { %4889 = vadd.xlane.f32.xlu0 %v4467_v52  ;;  %v3662_v52 = vadd.f32 %v15106_v48, %v10698_v32  ;;  %v15108_v48 = vld [vmem:[#allocation40_spill] sm:$0xff] }
 0x7c8   : > { %v3699_v2 = vadd.f32 %v15108_v48, %v10698_v32  ;;  %v15112_v48 = vld [vmem:[#allocation80_spill] sm:$0xff] }
 0x7c9   : > { %9947 = vtanh.f32 %v3662_v52  ;;  %v3691_v52 = vadd.f32 %v15110_v15, %v10698_v32 }
 0x7ca   : > { %5930 = vperm.xlu1 %8965, %v5241_v8   ;;  %v9946_v8 = vpop.eup %9945  ;;  %9949 = vtanh.f32 %v3699_v2  ;;  %v5245_v2 = vadd.f32 %v11128_v29, %v15112_v48 }
 0x7cb   : > { %4885 = vadd.xlane.f32.xlu0 %v4465_v28  ;;  %v12569_v28 = vpop.xlane.xlu1 %4783  ;;  %v4464_v19 = vmul.f32 %v9946_v8, %v10743_v11  ;;  %9951 = vtanh.f32 %v3691_v52 }
 0x7d3   : > { %v9948_v40 = vpop.eup %9947 }
 0x7d4   : > { %v4462_v61 = vmul.f32 %v9948_v40, %v10743_v11  ;;  %v12584_v40 = vpop.xlane.xlu0 %4797 }
 0x7d8   : > { %v12591_v52 = vpop.permute.xlu0 %5819 }
 0x7d9   : > { %15113 = vst [vmem:[#allocation34_spill] sm:$0xff] %v12591_v52 }
 0x7e1   : > { %5951 = vperm.xlu0 %8966, %v5248_v43   ;;  %v12575_v43 = vpop.permute.xlu1 %5804 }
 0x7e2   : > { %15109 = vst [vmem:[#allocation35_spill] sm:$0xff] %v12575_v43 }
 0x7e5   : > { %5945 = vperm.xlu0 %8966, %v5246_v12   ;;  %v9950_v12 = vpop.eup %9949  ;;  %v12582_v46 = vpop.permute.xlu1 %5798 }
 0x7e6   : > { %v4471_v8 = vmul.f32 %v9950_v12, %v10743_v11  ;;  %15111 = vst [vmem:[#allocation32_spill] sm:$0xff] %v12582_v46  ;;  %v3686_v12 = vadd.f32 %v15114_v22, %v10698_v32  ;;  %v12599_v46 = vpop.permute.xlu0 %5813 }
 0x7e8   : > { %9953 = vtanh.f32 %v3686_v12 }
 0x7e9   : > { %v12589_v15 = vpop.xlane.xlu1 %4795 }
 0x7ea   : > { %v12603_v48 = vpop.xlane.xlu0 %4809 }
 0x7ee   : > { %4883 = vadd.xlane.f32.xlu1 %v4464_v19  ;;  %v9952_v19 = vpop.eup %9951 }
 0x7f2   : > { %4879 = vadd.xlane.f32.xlu1 %v4462_v61  ;;  %v4469_v61 = vmul.f32 %v9952_v19, %v10743_v11  ;;  %v5250_v19 = vadd.f32 %v14986_v39, %v12425_v50  ;;  %v15118_v50 = vld [vmem:[#allocation46_spill] sm:$0xff] }
 0x803   : > { %5948 = vperm.xlu1 %8965, %v5247_v37   ;;  %v5252_v37 = vadd.f32 %v14980_v20, %v12409_v44 }
 0x804   : > { %4897 = vadd.xlane.f32.xlu0 %v4471_v8  ;;  %v15115_v8 = vld [vmem:[#allocation39_spill] sm:$0xff] }
 0x805   : > { %v3678_v43 = vadd.f32 %v15115_v8, %v10698_v32  ;;  %v15116_v8 = vld [vmem:[#allocation45_spill] sm:$0xff] }
 0x806   : > { %v3715_v52 = vadd.f32 %v15116_v8, %v10698_v32 }
 0x807   : > { %5942 = vperm.xlu1 %8965, %v5245_v2   ;;  %9955 = vtanh.f32 %v3678_v43  ;;  %v9954_v2 = vpop.eup %9953  ;;  %v3707_v43 = vadd.f32 %v15118_v50, %v10698_v32 }
 0x808   : > { %4893 = vadd.xlane.f32.xlu0 %v4469_v61  ;;  %v12605_v61 = vpop.xlane.xlu1 %4791  ;;  %v4468_v22 = vmul.f32 %v9954_v2, %v10743_v11  ;;  %9957 = vtanh.f32 %v3715_v52  ;;  %v5249_v52 = vadd.f32 %v14974_v45, %v12307_v24  ;;  %v5254_v24 = vadd.f32 %v11073_v0, %v12461_v16  ;;  %v15126_v16 = vld [vmem:[#allocation51_spill] sm:$0xff] }
 0x809   : > { %9959 = vtanh.f32 %v3707_v43  ;;  %v3702_v43 = vadd.f32 %v15121_v41, %v10698_v32 }
 0x80b   : > { %9961 = vtanh.f32 %v3702_v43 }
 0x811   : > { %v9956_v44 = vpop.eup %9955 }
 0x812   : > { %v4466_v12 = vmul.f32 %v9956_v44, %v10743_v11  ;;  %v12620_v44 = vpop.xlane.xlu0 %4805 }
 0x816   : > { %v12627_v50 = vpop.permute.xlu0 %5831 }
 0x817   : > { %15120 = vst [vmem:[#allocation80_spill] sm:$0xff] %v12627_v50 }
 0x81e   : > { %5963 = vperm.xlu0 %8966, %v5252_v37   ;;  %v12611_v37 = vpop.permute.xlu1 %5816 }
 0x81f   : > { %15117 = vst [vmem:[#allocation40_spill] sm:$0xff] %v12611_v37  ;;  %v12635_v37 = vpop.permute.xlu0 %5825 }
 0x820   : > { %15123 = vst [vmem:[#allocation38_spill] sm:$0xff] %v12635_v37  ;;  %v5255_v37 = vadd.f32 %v11055_v7, %v12352_v51  ;;  %v15129_v51 = vld [vmem:[#allocation47_spill] sm:$0xff] }
 0x822   : > { %5957 = vperm.xlu0 %8966, %v5250_v19   ;;  %v9958_v19 = vpop.eup %9957  ;;  %v12618_v30 = vpop.permute.xlu1 %5810 }
 0x823   : > { %v4475_v2 = vmul.f32 %v9958_v19, %v10743_v11  ;;  %15119 = vst [vmem:[#allocation41_spill] sm:$0xff] %v12618_v30  ;;  %v15122_v19 = vld [vmem:[#allocation44_spill] sm:$0xff] }
 0x826   : > { %v12625_v8 = vpop.xlane.xlu1 %4803 }
 0x82b   : > { %4891 = vadd.xlane.f32.xlu1 %v4468_v22  ;;  %v9960_v22 = vpop.eup %9959 }
 0x82f   : > { %4887 = vadd.xlane.f32.xlu1 %v4466_v12  ;;  %v4473_v12 = vmul.f32 %v9960_v22, %v10743_v11  ;;  %v12639_v22 = vpop.xlane.xlu0 %4817 }
 0x840   : > { %5960 = vperm.xlu1 %8965, %v5251_v59   ;;  %v5256_v59 = vadd.f32 %v11099_v56, %v12445_v34 }
 0x841   : > { %4905 = vadd.xlane.f32.xlu0 %v4475_v2  ;;  %v3694_v2 = vadd.f32 %v15122_v19, %v10698_v32  ;;  %v15124_v19 = vld [vmem:[#allocation50_spill] sm:$0xff] }
 0x842   : > { %v3731_v50 = vadd.f32 %v15124_v19, %v10698_v32 }
 0x843   : > { %9963 = vtanh.f32 %v3694_v2  ;;  %v3723_v2 = vadd.f32 %v15126_v16, %v10698_v32 }
 0x844   : > { %5954 = vperm.xlu1 %8965, %v5249_v52   ;;  %v9962_v52 = vpop.eup %9961  ;;  %9965 = vtanh.f32 %v3731_v50  ;;  %v5253_v50 = vadd.f32 %v11035_v53, %v12404_v60  ;;  %v5258_v60 = vadd.f32 %v11126_v10, %v12497_v25  ;;  %v15134_v25 = vld [vmem:[#allocation55_spill] sm:$0xff] }
 0x845   : > { %4901 = vadd.xlane.f32.xlu0 %v4473_v12  ;;  %v12641_v12 = vpop.xlane.xlu1 %4799  ;;  %v4472_v41 = vmul.f32 %v9962_v52, %v10743_v11  ;;  %9967 = vtanh.f32 %v3723_v2  ;;  %v3718_v2 = vadd.f32 %v15129_v51, %v10698_v32 }
 0x847   : > { %9969 = vtanh.f32 %v3718_v2 }
 0x84d   : > { %v9964_v34 = vpop.eup %9963 }
 0x84e   : > { %v4470_v43 = vmul.f32 %v9964_v34, %v10743_v11  ;;  %v12656_v34 = vpop.xlane.xlu0 %4813 }
 0x852   : > { %v12663_v16 = vpop.permute.xlu0 %5843 }
 0x853   : > { %15128 = vst [vmem:[#allocation46_spill] sm:$0xff] %v12663_v16 }
 0x85b   : > { %5975 = vperm.xlu0 %8966, %v5256_v59   ;;  %v12647_v59 = vpop.permute.xlu1 %5828 }
 0x85c   : > { %15125 = vst [vmem:[#allocation39_spill] sm:$0xff] %v12647_v59  ;;  %v12671_v59 = vpop.permute.xlu0 %5837 }
 0x85d   : > { %15131 = vst [vmem:[#allocation42_spill] sm:$0xff] %v12671_v59  ;;  %v5259_v59 = vadd.f32 %v11103_v4, %v12423_v49  ;;  %v15137_v49 = vld [vmem:[#allocation52_spill] sm:$0xff] }
 0x85f   : > { %5969 = vperm.xlu0 %8966, %v5254_v24   ;;  %v9966_v24 = vpop.eup %9965  ;;  %v12654_v30 = vpop.permute.xlu1 %5822 }
 0x860   : > { %v4479_v52 = vmul.f32 %v9966_v24, %v10743_v11  ;;  %15127 = vst [vmem:[#allocation45_spill] sm:$0xff] %v12654_v30  ;;  %v15130_v24 = vld [vmem:[#allocation48_spill] sm:$0xff] }
 0x863   : > { %v12661_v19 = vpop.xlane.xlu1 %4811 }
 0x868   : > { %4899 = vadd.xlane.f32.xlu1 %v4472_v41  ;;  %v9968_v41 = vpop.eup %9967 }
 0x86c   : > { %4895 = vadd.xlane.f32.xlu1 %v4470_v43  ;;  %v4477_v43 = vmul.f32 %v9968_v41, %v10743_v11  ;;  %v12675_v41 = vpop.xlane.xlu0 %4825 }
 0x87d   : > { %5972 = vperm.xlu1 %8965, %v5255_v37   ;;  %v5260_v37 = vadd.f32 %v11140_v31, %v12481_v1 }
 0x87e   : > { %4913 = vadd.xlane.f32.xlu0 %v4479_v52  ;;  %v3710_v52 = vadd.f32 %v15130_v24, %v10698_v32  ;;  %v15132_v24 = vld [vmem:[#allocation54_spill] sm:$0xff] }
 0x87f   : > { %v3747_v16 = vadd.f32 %v15132_v24, %v10698_v32 }
 0x880   : > { %9971 = vtanh.f32 %v3710_v52  ;;  %v3739_v52 = vadd.f32 %v15134_v25, %v10698_v32 }
 0x881   : > { %5966 = vperm.xlu1 %8965, %v5253_v50   ;;  %v9970_v50 = vpop.eup %9969  ;;  %9973 = vtanh.f32 %v3747_v16  ;;  %v5257_v16 = vadd.f32 %v11075_v27, %v12440_v26  ;;  %v5262_v26 = vadd.f32 %v14956_v47, %v12533_v62  ;;  %v15142_v62 = vld [vmem:[#allocation61_spill] sm:$0xff] }
 0x882   : > { %4909 = vadd.xlane.f32.xlu0 %v4477_v43  ;;  %v12677_v43 = vpop.xlane.xlu1 %4807  ;;  %v4476_v51 = vmul.f32 %v9970_v50, %v10743_v11  ;;  %9975 = vtanh.f32 %v3739_v52  ;;  %v3734_v52 = vadd.f32 %v15137_v49, %v10698_v32 }
 0x884   : > { %9977 = vtanh.f32 %v3734_v52 }
 0x88a   : > { %v9972_v1 = vpop.eup %9971 }
 0x88b   : > { %v4474_v2 = vmul.f32 %v9972_v1, %v10743_v11  ;;  %v12692_v1 = vpop.xlane.xlu0 %4821 }
 0x88f   : > { %v12699_v25 = vpop.permute.xlu0 %5855 }
 0x890   : > { %15136 = vst [vmem:[#allocation51_spill] sm:$0xff] %v12699_v25 }
 0x898   : > { %5987 = vperm.xlu0 %8966, %v5260_v37   ;;  %v12683_v37 = vpop.permute.xlu1 %5840 }
 0x899   : > { %15133 = vst [vmem:[#allocation44_spill] sm:$0xff] %v12683_v37  ;;  %v12707_v37 = vpop.permute.xlu0 %5849 }
 0x89a   : > { %15139 = vst [vmem:[#allocation47_spill] sm:$0xff] %v12707_v37  ;;  %v5263_v37 = vadd.f32 %v11144_v35, %v12459_v17  ;;  %v15145_v17 = vld [vmem:[#allocation56_spill] sm:$0xff] }
 0x89c   : > { %5981 = vperm.xlu0 %8966, %v5258_v60   ;;  %v9974_v60 = vpop.eup %9973  ;;  %v12690_v30 = vpop.permute.xlu1 %5834 }
 0x89d   : > { %v4483_v50 = vmul.f32 %v9974_v60, %v10743_v11  ;;  %15135 = vst [vmem:[#allocation50_spill] sm:$0xff] %v12690_v30  ;;  %v15138_v60 = vld [vmem:[#allocation53_spill] sm:$0xff] }
 0x8a0   : > { %v12697_v24 = vpop.xlane.xlu1 %4819 }
 0x8a5   : > { %4907 = vadd.xlane.f32.xlu1 %v4476_v51  ;;  %v9976_v51 = vpop.eup %9975 }
 0x8a9   : > { %4903 = vadd.xlane.f32.xlu1 %v4474_v2  ;;  %v4481_v2 = vmul.f32 %v9976_v51, %v10743_v11  ;;  %v12711_v51 = vpop.xlane.xlu0 %4833 }
 0x8ba   : > { %5984 = vperm.xlu1 %8965, %v5259_v59   ;;  %v5264_v59 = vadd.f32 %v14953_v23, %v12517_v63 }
 0x8bb   : > { %4921 = vadd.xlane.f32.xlu0 %v4483_v50  ;;  %v3726_v50 = vadd.f32 %v15138_v60, %v10698_v32  ;;  %v15140_v60 = vld [vmem:[#allocation60_spill] sm:$0xff] }
 0x8bc   : > { %v3763_v25 = vadd.f32 %v15140_v60, %v10698_v32 }
 0x8bd   : > { %9979 = vtanh.f32 %v3726_v50  ;;  %v3755_v50 = vadd.f32 %v15142_v62, %v10698_v32 }
 0x8be   : > { %5978 = vperm.xlu1 %8965, %v5257_v16   ;;  %v9978_v16 = vpop.eup %9977  ;;  %9981 = vtanh.f32 %v3763_v25  ;;  %v5261_v25 = vadd.f32 %v11128_v29, %v12476_v36  ;;  %v5266_v36 = vadd.f32 %v14986_v39, %v12569_v28  ;;  %v15150_v28 = vld [vmem:[#allocation69_spill] sm:$0xff] }
 0x8bf   : > { %4917 = vadd.xlane.f32.xlu0 %v4481_v2  ;;  %v12713_v2 = vpop.xlane.xlu1 %4815  ;;  %v4480_v49 = vmul.f32 %v9978_v16, %v10743_v11  ;;  %9983 = vtanh.f32 %v3755_v50  ;;  %v3750_v50 = vadd.f32 %v15145_v17, %v10698_v32 }
 0x8c1   : > { %9985 = vtanh.f32 %v3750_v50 }
 0x8c7   : > { %v9980_v63 = vpop.eup %9979 }
 0x8c8   : > { %v4478_v52 = vmul.f32 %v9980_v63, %v10743_v11  ;;  %v12728_v63 = vpop.xlane.xlu0 %4829 }
 0x8cc   : > { %v12735_v62 = vpop.permute.xlu0 %5867 }
 0x8cd   : > { %15144 = vst [vmem:[#allocation55_spill] sm:$0xff] %v12735_v62  ;;  %v5267_v62 = vadd.f32 %v14971_v13, %v12495_v58  ;;  %v15152_v58 = vld [vmem:[#allocation63_spill] sm:$0xff] }
 0x8d5   : > { %5999 = vperm.xlu0 %8966, %v5264_v59   ;;  %v12719_v59 = vpop.permute.xlu1 %5852 }
 0x8d6   : > { %15141 = vst [vmem:[#allocation48_spill] sm:$0xff] %v12719_v59  ;;  %v12743_v59 = vpop.permute.xlu0 %5861 }
 0x8d7   : > { %15147 = vst [vmem:[#allocation52_spill] sm:$0xff] %v12743_v59 }
 0x8d9   : > { %5993 = vperm.xlu0 %8966, %v5262_v26   ;;  %v9982_v26 = vpop.eup %9981  ;;  %v12726_v30 = vpop.permute.xlu1 %5846 }
 0x8da   : > { %v4487_v16 = vmul.f32 %v9982_v26, %v10743_v11  ;;  %15143 = vst [vmem:[#allocation54_spill] sm:$0xff] %v12726_v30  ;;  %v15146_v26 = vld [vmem:[#allocation57_spill] sm:$0xff] }
 0x8dd   : > { %v12733_v60 = vpop.xlane.xlu1 %4827 }
 0x8e2   : > { %4915 = vadd.xlane.f32.xlu1 %v4480_v49  ;;  %v9984_v49 = vpop.eup %9983 }
 0x8e6   : > { %4911 = vadd.xlane.f32.xlu1 %v4478_v52  ;;  %v4485_v52 = vmul.f32 %v9984_v49, %v10743_v11  ;;  %v12747_v49 = vpop.xlane.xlu0 %4841 }
 0x8f7   : > { %5996 = vperm.xlu1 %8965, %v5263_v37   ;;  %v5268_v37 = vadd.f32 %v14980_v20, %v12553_v42 }
 0x8f8   : > { %4929 = vadd.xlane.f32.xlu0 %v4487_v16  ;;  %v3742_v16 = vadd.f32 %v15146_v26, %v10698_v32  ;;  %v15148_v26 = vld [vmem:[#allocation67_spill] sm:$0xff] }
 0x8f9   : > { %v3779_v30 = vadd.f32 %v15148_v26, %v10698_v32 }
 0x8fa   : > { %9987 = vtanh.f32 %v3742_v16  ;;  %v3771_v16 = vadd.f32 %v15150_v28, %v10698_v32 }
 0x8fb   : > { %5990 = vperm.xlu1 %8965, %v5261_v25   ;;  %v9986_v25 = vpop.eup %9985  ;;  %9989 = vtanh.f32 %v3779_v30  ;;  %v5265_v30 = vadd.f32 %v14974_v45, %v12512_v54  ;;  %v5270_v54 = vadd.f32 %v11073_v0, %v12605_v61  ;;  %v15158_v61 = vld [vmem:[#allocation75_spill] sm:$0xff] }
 0x8fc   : > { %4925 = vadd.xlane.f32.xlu0 %v4485_v52  ;;  %v12749_v52 = vpop.xlane.xlu1 %4823  ;;  %v4484_v17 = vmul.f32 %v9986_v25, %v10743_v11  ;;  %9991 = vtanh.f32 %v3771_v16  ;;  %v12761_v25 = vpop.xlane.xlu0 %4837  ;;  %v3766_v16 = vadd.f32 %v15152_v58, %v10698_v32 }
 0x8fe   : > { %9993 = vtanh.f32 %v3766_v16 }
 0x900   : > { %v12771_v28 = vpop.xlane.xlu0 %4557 }
 0x904   : > { %v9988_v42 = vpop.eup %9987 }
 0x905   : > { %v4482_v50 = vmul.f32 %v9988_v42, %v10743_v11 }
 0x912   : > { %6011 = vperm.xlu0 %8966, %v5268_v37   ;;  %v12755_v37 = vpop.permute.xlu1 %5864 }
 0x913   : > { %15149 = vst [vmem:[#allocation53_spill] sm:$0xff] %v12755_v37  ;;  %v12779_v37 = vpop.permute.xlu0 %5879 }
 0x914   : > { %15154 = vst [vmem:[#allocation61_spill] sm:$0xff] %v12779_v37 }
 0x916   : > { %6005 = vperm.xlu0 %8966, %v5266_v36   ;;  %v9990_v36 = vpop.eup %9989  ;;  %v12764_v59 = vpop.permute.xlu1 %5858 }
 0x917   : > { %v9992_v42 = vpop.eup %9991  ;;  %15151 = vst [vmem:[#allocation60_spill] sm:$0xff] %v12764_v59 }
 0x91a   : > { %v12769_v26 = vpop.xlane.xlu1 %4835 }
 0x91f   : > { %4923 = vadd.xlane.f32.xlu1 %v4484_v17  ;;  %v4491_v17 = vmul.f32 %v9990_v36, %v10743_v11  ;;  %v5272_v36 = vadd.f32 %v11099_v56, %v12589_v15 }
 0x923   : > { %4919 = vadd.xlane.f32.xlu1 %v4482_v50  ;;  %v4489_v50 = vmul.f32 %v9992_v42, %v10743_v11  ;;  %v12783_v42 = vpop.permute.xlu0 %5873 }
 0x924   : > { %15155 = vst [vmem:[#allocation56_spill] sm:$0xff] %v12783_v42  ;;  %v5271_v42 = vadd.f32 %v11055_v7, %v12531_v9  ;;  %v15160_v9 = vld [vmem:[#allocation72_spill] sm:$0xff] }
 0x934   : > { %6008 = vperm.xlu1 %8965, %v5267_v62   ;;  %v15153_v62 = vld [vmem:[#allocation62_spill] sm:$0xff] }
 0x935   : > { %4937 = vadd.xlane.f32.xlu0 %v4491_v17  ;;  %v3758_v17 = vadd.f32 %v15153_v62, %v10698_v32  ;;  %v15156_v62 = vld [vmem:[#allocation74_spill] sm:$0xff] }
 0x936   : > { %v3795_v37 = vadd.f32 %v15156_v62, %v10698_v32 }
 0x937   : > { %9995 = vtanh.f32 %v3758_v17  ;;  %v3787_v17 = vadd.f32 %v15158_v61, %v10698_v32 }
 0x938   : > { %6002 = vperm.xlu1 %8965, %v5265_v30   ;;  %v9994_v30 = vpop.eup %9993  ;;  %9997 = vtanh.f32 %v3795_v37  ;;  %v5269_v37 = vadd.f32 %v11035_v53, %v12548_v3  ;;  %v5274_v3 = vadd.f32 %v11126_v10, %v12641_v12  ;;  %v15164_v12 = vld [vmem:[#allocation83_spill] sm:$0xff] }
 0x939   : > { %4933 = vadd.xlane.f32.xlu0 %v4489_v50  ;;  %v12785_v50 = vpop.xlane.xlu1 %4831  ;;  %v4488_v58 = vmul.f32 %v9994_v30, %v10743_v11  ;;  %9999 = vtanh.f32 %v3787_v17  ;;  %v3782_v17 = vadd.f32 %v15160_v9, %v10698_v32 }
 0x93b   : > { %10001 = vtanh.f32 %v3782_v17 }
 0x941   : > { %v9996_v15 = vpop.eup %9995 }
 0x942   : > { %v4486_v16 = vmul.f32 %v9996_v15, %v10743_v11 }
 0x94f   : > { %6023 = vperm.xlu0 %8966, %v5272_v36   ;;  %v12791_v36 = vpop.permute.xlu1 %5876 }
 0x950   : > { %15157 = vst [vmem:[#allocation57_spill] sm:$0xff] %v12791_v36 }
 0x953   : > { %6017 = vperm.xlu0 %8966, %v5270_v54   ;;  %v9998_v54 = vpop.eup %9997  ;;  %v12797_v30 = vpop.xlane.xlu1 %4561 }
 0x954   : > { %v4495_v15 = vmul.f32 %v9998_v54, %v10743_v11  ;;  %v10000_v59 = vpop.eup %9999  ;;  %v5276_v54 = vadd.f32 %v11140_v31, %v12625_v8 }
 0x957   : > { %v12805_v62 = vpop.permute.xlu1 %5870 }
 0x958   : > { %15159 = vst [vmem:[#allocation67_spill] sm:$0xff] %v12805_v62 }
 0x95c   : > { %4931 = vadd.xlane.f32.xlu1 %v4488_v58  ;;  %v12799_v58 = vpop.xlane.xlu0 %4559 }
 0x960   : > { %4927 = vadd.xlane.f32.xlu1 %v4486_v16  ;;  %v4493_v16 = vmul.f32 %v10000_v59, %v10743_v11  ;;  %v12807_v61 = vpop.xlane.xlu0 %4849 }
 0x964   : > { %v12815_v36 = vpop.xlane.xlu0 %4845 }
 0x968   : > { %v12819_v59 = vpop.permute.xlu0 %5891 }
 0x969   : > { %15162 = vst [vmem:[#allocation69_spill] sm:$0xff] %v12819_v59  ;;  %v5275_v59 = vadd.f32 %v11103_v4, %v12567_v14  ;;  %v15167_v14 = vld [vmem:[#allocation78_spill] sm:$0xff] }
 0x96c   : > { %v12836_v6 = vpop.permute.xlu0 %5885 }
 0x96d   : > { %15165 = vst [vmem:[#allocation63_spill] sm:$0xff] %v12836_v6 }
 0x971   : > { %6020 = vperm.xlu1 %8965, %v5271_v42   ;;  %v15161_v42 = vld [vmem:[#allocation73_spill] sm:$0xff] }
 0x972   : > { %4945 = vadd.xlane.f32.xlu0 %v4495_v15  ;;  %v3774_v15 = vadd.f32 %v15161_v42, %v10698_v32  ;;  %v15163_v42 = vld [vmem:[#allocation81_spill] sm:$0xff] }
 0x973   : > { %v3811_v62 = vadd.f32 %v15163_v42, %v10698_v32 }
 0x974   : > { %10003 = vtanh.f32 %v3774_v15  ;;  %v3803_v15 = vadd.f32 %v15164_v12, %v10698_v32  ;;  %v12843_v12 = vpop.xlane.xlu0 %4857 }
 0x975   : > { %6014 = vperm.xlu1 %8965, %v5269_v37   ;;  %v10002_v37 = vpop.eup %10001  ;;  %10005 = vtanh.f32 %v3811_v62  ;;  %v5273_v62 = vadd.f32 %v11075_v27, %v12584_v40  ;;  %v5278_v40 = vadd.f32 %v14956_v47, %v12677_v43  ;;  %v15172_v43 = vld [vmem:[#allocation89_spill] sm:$0xff] }
 0x976   : > { %4941 = vadd.xlane.f32.xlu0 %v4493_v16  ;;  %v12821_v16 = vpop.xlane.xlu1 %4843  ;;  %v4492_v9 = vmul.f32 %v10002_v37, %v10743_v11  ;;  %10007 = vtanh.f32 %v3803_v15  ;;  %v3798_v15 = vadd.f32 %v15167_v14, %v10698_v32 }
 0x978   : > { %10009 = vtanh.f32 %v3798_v15  ;;  %v12851_v6 = vpop.xlane.xlu0 %4853  ;;  %v15171_v15 = vld [vmem:[#allocation86_spill] sm:$0xff] }
 0x97e   : > { %v10004_v8 = vpop.eup %10003 }
 0x97f   : > { %v4490_v17 = vmul.f32 %v10004_v8, %v10743_v11 }
 0x98c   : > { %6035 = vperm.xlu0 %8966, %v5276_v54   ;;  %v12827_v54 = vpop.xlane.xlu1 %4563 }
 0x990   : > { %6029 = vperm.xlu0 %8966, %v5274_v3   ;;  %v10006_v3 = vpop.eup %10005  ;;  %v12833_v37 = vpop.xlane.xlu1 %4839 }
 0x991   : > { %v10008_v8 = vpop.eup %10007 }
 0x994   : > { %v12841_v42 = vpop.permute.xlu1 %5888 }
 0x995   : > { %15166 = vst [vmem:[#allocation62_spill] sm:$0xff] %v12841_v42 }
 0x998   : > { %v12858_v42 = vpop.permute.xlu1 %5882 }
 0x999   : > { %4939 = vadd.xlane.f32.xlu1 %v4492_v9  ;;  %v4499_v9 = vmul.f32 %v10006_v3, %v10743_v11  ;;  %v15168_v3 = vld [vmem:[#allocation79_spill] sm:$0xff]  ;;  %15170 = vst [vmem:[#allocation75_spill] sm:$0xff] %v12858_v42 }
 0x99d   : > { %4935 = vadd.xlane.f32.xlu1 %v4490_v17  ;;  %v4497_v17 = vmul.f32 %v10008_v8, %v10743_v11  ;;  %v12855_v8 = vpop.permute.xlu0 %5903 }
 0x99e   : > { %15169 = vst [vmem:[#allocation74_spill] sm:$0xff] %v12855_v8 }
 0x9a1   : > { %v12872_v42 = vpop.permute.xlu0 %5897 }
 0x9a2   : > { %15173 = vst [vmem:[#allocation72_spill] sm:$0xff] %v12872_v42 }
 0x9ae   : > { %6032 = vperm.xlu1 %8965, %v5275_v59   ;;  %v5280_v59 = vadd.f32 %v14953_v23, %v12661_v19 }
 0x9af   : > { %4953 = vadd.xlane.f32.xlu0 %v4499_v9  ;;  %v3790_v9 = vadd.f32 %v15168_v3, %v10698_v32  ;;  %v3827_v3 = vadd.f32 %v15171_v15, %v10698_v32 }
 0x9b1   : > { %10011 = vtanh.f32 %v3790_v9  ;;  %v3819_v9 = vadd.f32 %v15172_v43, %v10698_v32  ;;  %v12879_v43 = vpop.xlane.xlu0 %4865 }
 0x9b2   : > { %6026 = vperm.xlu1 %8965, %v5273_v62   ;;  %v10010_v62 = vpop.eup %10009  ;;  %10013 = vtanh.f32 %v3827_v3  ;;  %15175 = vst [vmem:[#allocation81_spill] sm:$0xff] %v12879_v43 }
 0x9b3   : > { %4949 = vadd.xlane.f32.xlu0 %v4497_v17  ;;  %v4496_v17 = vmul.f32 %v10010_v62, %v10743_v11  ;;  %10015 = vtanh.f32 %v3819_v9  ;;  %v5279_v62 = vadd.f32 %v11144_v35, %v12603_v48  ;;  %v15176_v48 = vld [vmem:[#allocation84_spill] sm:$0xff] }
 0x9b4   : > { %v3814_v9 = vadd.f32 %v15176_v48, %v10698_v32 }
 0x9b5   : > { %v12887_v42 = vpop.xlane.xlu0 %4861 }
 0x9b6   : > { %10017 = vtanh.f32 %v3814_v9  ;;  %15178 = vst [vmem:[#allocation83_spill] sm:$0xff] %v12887_v42  ;;  %v15181_v9 = vld [vmem:[#allocation94_spill] sm:$0xff] }
 0x9bb   : > { %v10012_v14 = vpop.eup %10011 }
 0x9bc   : > { %v4494_v19 = vmul.f32 %v10012_v14, %v10743_v11 }
 0x9c9   : > { %6047 = vperm.xlu0 %8966, %v5280_v59   ;;  %v12863_v59 = vpop.xlane.xlu1 %4851 }
 0x9cd   : > { %6041 = vperm.xlu0 %8966, %v5278_v40   ;;  %v10014_v40 = vpop.eup %10013  ;;  %v12869_v8 = vpop.xlane.xlu1 %4847 }
 0x9ce   : > { %v10016_v14 = vpop.eup %10015 }
 0x9cf   : > { %v4501_v15 = vmul.f32 %v10016_v14, %v10743_v11  ;;  %v12891_v14 = vpop.permute.xlu0 %5915 }
 0x9d0   : > { %15179 = vst [vmem:[#allocation78_spill] sm:$0xff] %v12891_v14 }
 0x9d1   : > { %v12877_v3 = vpop.permute.xlu1 %5900 }
 0x9d2   : > { %15174 = vst [vmem:[#allocation73_spill] sm:$0xff] %v12877_v3 }
 0x9d5   : > { %v12894_v3 = vpop.permute.xlu1 %5894 }
 0x9d6   : > { %4947 = vadd.xlane.f32.xlu1 %v4496_v17  ;;  %v4503_v17 = vmul.f32 %v10014_v40, %v10743_v11  ;;  %v5284_v40 = vadd.f32 %v14980_v20, %v12697_v24  ;;  %15180 = vst [vmem:[#allocation79_spill] sm:$0xff] %v12894_v3  ;;  %v12908_v3 = vpop.permute.xlu0 %5909 }
 0x9da   : > { %4943 = vadd.xlane.f32.xlu1 %v4494_v19  ;;  %v5277_v19 = vadd.f32 %v11128_v29, %v12620_v44  ;;  %v5282_v44 = vadd.f32 %v14986_v39, %v12713_v2  ;;  %v15182_v2 = vld [vmem:[#allocation97_spill] sm:$0xff] }
 0x9eb   : > { %6044 = vperm.xlu1 %8965, %v5279_v62   ;;  %v15177_v62 = vld [vmem:[#allocation85_spill] sm:$0xff] }
 0x9ec   : > { %4961 = vadd.xlane.f32.xlu0 %v4503_v17  ;;  %v3806_v17 = vadd.f32 %v15177_v62, %v10698_v32  ;;  %v3843_v62 = vadd.f32 %v15181_v9, %v10698_v32 }
 0x9ee   : > { %10019 = vtanh.f32 %v3806_v17  ;;  %v3835_v17 = vadd.f32 %v15182_v2, %v10698_v32  ;;  %v12915_v2 = vpop.xlane.xlu0 %4873 }
 0x9ef   : > { %6038 = vperm.xlu1 %8965, %v5277_v19   ;;  %v10018_v19 = vpop.eup %10017  ;;  %10021 = vtanh.f32 %v3843_v62  ;;  %15183 = vst [vmem:[#allocation86_spill] sm:$0xff] %v12915_v2 }
 0x9f0   : > { %4957 = vadd.xlane.f32.xlu0 %v4501_v15  ;;  %v4500_v15 = vmul.f32 %v10018_v19, %v10743_v11  ;;  %10023 = vtanh.f32 %v3835_v17  ;;  %v5283_v19 = vadd.f32 %v14971_v13, %v12639_v22  ;;  %v15184_v22 = vld [vmem:[#allocation90_spill] sm:$0xff] }
 0x9f1   : > { %v3830_v17 = vadd.f32 %v15184_v22, %v10698_v32 }
 0x9f2   : > { %v12923_v43 = vpop.xlane.xlu0 %4869 }
 0x9f3   : > { %10025 = vtanh.f32 %v3830_v17  ;;  %15186 = vst [vmem:[#allocation89_spill] sm:$0xff] %v12923_v43  ;;  %v3859_v43 = vadd.f32 %v12254_v5, %v10698_v32 }
 0x9f8   : > { %v10020_v48 = vpop.eup %10019 }
 0x9f9   : > { %v4498_v24 = vmul.f32 %v10020_v48, %v10743_v11 }
 0xa06   : > { %6059 = vperm.xlu0 %8966, %v5284_v40   ;;  %v12899_v40 = vpop.xlane.xlu1 %4859 }
 0xa0a   : > { %6053 = vperm.xlu0 %8966, %v5282_v44   ;;  %v10022_v44 = vpop.eup %10021  ;;  %v12905_v42 = vpop.xlane.xlu1 %4855 }
 0xa0b   : > { %v10024_v48 = vpop.eup %10023 }
 0xa0c   : > { %v4505_v9 = vmul.f32 %v10024_v48, %v10743_v11  ;;  %v5286_v48 = vadd.f32 %v11073_v0, %v12749_v52  ;;  %v10026_v22 = vpop.eup %10025  ;;  %v15189_v52 = vld [vmem:[#allocation102_spill] sm:$0xff] }
 0xa0d   : > { %v4504_v17 = vmul.f32 %v10026_v22, %v10743_v11 }
 0xa0e   : > { %v12913_v62 = vpop.permute.xlu1 %5912 }
 0xa13   : > { %4955 = vadd.xlane.f32.xlu1 %v4500_v15  ;;  %v4507_v15 = vmul.f32 %v10022_v44, %v10743_v11  ;;  %v5288_v44 = vadd.f32 %v11099_v56, %v12733_v60 }
 0xa17   : > { %4951 = vadd.xlane.f32.xlu1 %v4498_v24  ;;  %v5281_v24 = vadd.f32 %v14974_v45, %v12656_v34  ;;  %v12925_v34 = vpop.permute.xlu1 %5906 }
 0xa28   : > { %6056 = vperm.xlu1 %8965, %v5283_v19   ;;  %v15185_v19 = vld [vmem:[#allocation92_spill] sm:$0xff] }
 0xa29   : > { %4969 = vadd.xlane.f32.xlu0 %v4507_v15  ;;  %v3822_v15 = vadd.f32 %v15185_v19, %v10698_v32 }
 0xa2b   : > { %10027 = vtanh.f32 %v3822_v15  ;;  %v3851_v15 = vadd.f32 %v15189_v52, %v10698_v32 }
 0xa2c   : > { %6050 = vperm.xlu1 %8965, %v5281_v24   ;;  %v12929_v24 = vpop.permute.xlu0 %5927  ;;  %10029 = vtanh.f32 %v3859_v43  ;;  %v5285_v43 = vadd.f32 %v11035_v53, %v12692_v1  ;;  %v5292_v1 = vadd.f32 %v11140_v31, %v12769_v26 }
 0xa2d   : > { %4965 = vadd.xlane.f32.xlu0 %v4505_v9  ;;  %15187 = vst [vmem:[#allocation84_spill] sm:$0xff] %v12929_v24  ;;  %v12931_v9 = vpop.xlane.xlu1 %4867  ;;  %10031 = vtanh.f32 %v3851_v15 }
 0xa31   : > { %v12933_v60 = vpop.xlane.xlu1 %4863 }
 0xa35   : > { %v10028_v19 = vpop.eup %10027  ;;  %v12939_v2 = vpop.permute.xlu1 %5924 }
 0xa36   : > { %15188 = vst [vmem:[#allocation85_spill] sm:$0xff] %v12939_v2  ;;  %v10030_v22 = vpop.eup %10029 }
 0xa37   : > { %v4511_v5 = vmul.f32 %v10030_v22, %v10743_v11  ;;  %v10032_v14 = vpop.eup %10031  ;;  %v15195_v22 = vld [vmem:[#allocation98_spill] sm:$0xff] }
 0xa38   : > { %v4509_v52 = vmul.f32 %v10032_v14, %v10743_v11  ;;  %v15197_v14 = vld [vmem:[#allocation100_spill] sm:$0xff] }
 0xa43   : > { %6071 = vperm.xlu0 %8966, %v5288_v44   ;;  %v4502_v44 = vmul.f32 %v10028_v19, %v10743_v11 }
 0xa47   : > { %6065 = vperm.xlu0 %8966, %v5286_v48   ;;  %v12943_v48 = vpop.permute.xlu1 %5918 }
 0xa4b   : > { %v12945_v24 = vpop.xlane.xlu1 %4875 }
 0xa4c   : > { %15190 = vst [vmem:[#allocation94_spill] sm:$0xff] %v12945_v24 }
 0xa4f   : > { %v12949_v19 = vpop.xlane.xlu1 %4871 }
 0xa50   : > { %4963 = vadd.xlane.f32.xlu1 %v4504_v17  ;;  %v5287_v17 = vadd.f32 %v11055_v7, %v12675_v41  ;;  %15191 = vst [vmem:[#allocation97_spill] sm:$0xff] %v12949_v19 }
 0xa53   : > { %v12959_v24 = vpop.permute.xlu1 %5936 }
 0xa54   : > { %4959 = vadd.xlane.f32.xlu1 %v4502_v44  ;;  %v12952_v44 = vpop.permute.xlu0 %5921  ;;  %15193 = vst [vmem:[#allocation92_spill] sm:$0xff] %v12959_v24 }
 0xa57   : > { %v12961_v41 = vpop.permute.xlu1 %5930 }
 0xa58   : > { %v12957_v15 = vpop.xlane.xlu0 %4881 }
 0xa59   : > { %15192 = vst [vmem:[#allocation90_spill] sm:$0xff] %v12957_v15 }
 0xa5b   : > { %v12963_v19 = vpop.xlane.xlu1 %4883 }
 0xa5c   : > { %15194 = vst [vmem:[#allocation102_spill] sm:$0xff] %v12963_v19 }
 0xa5f   : > { %v12967_v2 = vpop.xlane.xlu1 %4879 }
 0xa60   : > { %15196 = vst [vmem:[#allocation98_spill] sm:$0xff] %v12967_v2 }
 0xa63   : > { %v12975_v15 = vpop.permute.xlu1 %5948 }
 0xa64   : > { %15199 = vst [vmem:[#allocation150_spill] sm:$0xff] %v12975_v15 }
 0xa65   : > { %6068 = vperm.xlu1 %8965, %v5287_v17   ;;  %v3846_v17 = vadd.f32 %v15195_v22, %v10698_v32 }
 0xa66   : > { %4977 = vadd.xlane.f32.xlu0 %v4511_v5  ;;  %v3838_v5 = vadd.f32 %v15197_v14, %v10698_v32 }
 0xa67   : > { %10033 = vtanh.f32 %v3846_v17  ;;  %v12981_v22 = vpop.permute.xlu1 %5942 }
 0xa68   : > { %10035 = vtanh.f32 %v3838_v5  ;;  %15201 = vst [vmem:[#allocation152_spill] sm:$0xff] %v12981_v22 }
 0xa69   : > { %6062 = vperm.xlu1 %8965, %v5285_v43   ;;  %v12973_v43 = vpop.xlane.xlu0 %4877 }
 0xa6a   : > { %4973 = vadd.xlane.f32.xlu0 %v4509_v52  ;;  %15198 = vst [vmem:[#allocation100_spill] sm:$0xff] %v12973_v43  ;;  %v5290_v52 = vadd.f32 %v11126_v10, %v12785_v50  ;;  %v15205_v50 = vld [vmem:[#allocation105_spill] sm:$0xff] }
 0xa6b   : > { %v12983_v26 = vpop.xlane.xlu1 %4891  ;;  %v3867_v5 = vadd.f32 %v15205_v50, %v10698_v32 }
 0xa6c   : > { %15202 = vst [vmem:[#allocation153_spill] sm:$0xff] %v12983_v26 }
 0xa6d   : > { %v12979_v19 = vpop.permute.xlu0 %5939 }
 0xa6e   : > { %15200 = vst [vmem:[#allocation151_spill] sm:$0xff] %v12979_v19 }
 0xa6f   : > { %v12989_v24 = vpop.xlane.xlu1 %4887 }
 0xa71   : > { %v10034_v2 = vpop.eup %10033 }
 0xa72   : > { %v4508_v17 = vmul.f32 %v10034_v2, %v10743_v11  ;;  %v10036_v14 = vpop.eup %10035 }
 0xa73   : > { %v4506_v43 = vmul.f32 %v10036_v14, %v10743_v11  ;;  %v12995_v19 = vpop.permute.xlu1 %5960 }
 0xa80   : > { %6083 = vperm.xlu0 %8966, %v5292_v1   ;;  %v15203_v1 = vld [vmem:[#allocation106_spill] sm:$0xff] }
 0xa81   : > { %v3875_v15 = vadd.f32 %v15203_v1, %v10698_v32  ;;  %15204 = vst [vmem:[#allocation106_spill] sm:$0xff] %v12989_v24  ;;  %v5291_v1 = vadd.f32 %v11103_v4, %v12711_v51 }
 0xa83   : > { %10037 = vtanh.f32 %v3875_v15 }
 0xa84   : > { %6077 = vperm.xlu0 %8966, %v5290_v52   ;;  %v12993_v52 = vpop.permute.xlu0 %5933  ;;  %10039 = vtanh.f32 %v3867_v5  ;;  %v5289_v5 = vadd.f32 %v11075_v27, %v12728_v63  ;;  %v15216_v63 = vld [vmem:[#allocation103_spill] sm:$0xff] }
 0xa85   : > { %15206 = vst [vmem:[#allocation105_spill] sm:$0xff] %v12993_v52 }
 0xa88   : > { %v12997_v2 = vpop.xlane.xlu0 %4889 }
 0xa89   : > { %15207 = vst [vmem:[#allocation154_spill] sm:$0xff] %v12997_v2 }
 0xa8c   : > { %v13003_v26 = vpop.xlane.xlu0 %4885 }
 0xa8d   : > { %4971 = vadd.xlane.f32.xlu1 %v4508_v17  ;;  %v12999_v17 = vpop.permute.xlu1 %5954  ;;  %v10038_v14 = vpop.eup %10037  ;;  %15208 = vst [vmem:[#allocation155_spill] sm:$0xff] %v13003_v26 }
 0xa8e   : > { %v4515_v15 = vmul.f32 %v10038_v14, %v10743_v11  ;;  %v10040_v50 = vpop.eup %10039 }
 0xa8f   : > { %v4513_v2 = vmul.f32 %v10040_v50, %v10743_v11 }
 0xa90   : > { %v13010_v24 = vpop.permute.xlu0 %5951 }
 0xa91   : > { %4967 = vadd.xlane.f32.xlu1 %v4506_v43  ;;  %v13005_v43 = vpop.xlane.xlu1 %4899  ;;  %15210 = vst [vmem:[#allocation157_spill] sm:$0xff] %v13010_v24  ;;  %v3862_v24 = vadd.f32 %v15216_v63, %v10698_v32 }
 0xa92   : > { %15209 = vst [vmem:[#allocation156_spill] sm:$0xff] %v13005_v43 }
 0xa93   : > { %10041 = vtanh.f32 %v3862_v24 }
 0xa94   : > { %v13015_v51 = vpop.permute.xlu0 %5945 }
 0xa95   : > { %v13013_v22 = vpop.xlane.xlu1 %4895  ;;  %15212 = vst [vmem:[#allocation159_spill] sm:$0xff] %v13015_v51 }
 0xa96   : > { %15211 = vst [vmem:[#allocation158_spill] sm:$0xff] %v13013_v22 }
 0xa98   : > { %v13019_v43 = vpop.xlane.xlu0 %4897 }
 0xa99   : > { %v13017_v26 = vpop.permute.xlu1 %5972  ;;  %15213 = vst [vmem:[#allocation160_spill] sm:$0xff] %v13019_v43 }
 0xa9d   : > { %v13021_v14 = vpop.permute.xlu1 %5966  ;;  %v10042_v24 = vpop.eup %10041 }
 0xaa2   : > { %6080 = vperm.xlu1 %8965, %v5291_v1   ;;  %v13023_v1 = vpop.xlane.xlu0 %4893 }
 0xaa3   : > { %4985 = vadd.xlane.f32.xlu0 %v4515_v15  ;;  %15214 = vst [vmem:[#allocation161_spill] sm:$0xff] %v13023_v1  ;;  %v13025_v15 = vpop.xlane.xlu1 %4907 }
 0xaa4   : > { %15215 = vst [vmem:[#allocation162_spill] sm:$0xff] %v13025_v15  ;;  %v5296_v15 = vadd.f32 %v14953_v23, %v12821_v16 }
 0xaa6   : > { %6074 = vperm.xlu1 %8965, %v5289_v5   ;;  %v13029_v50 = vpop.permute.xlu0 %5963  ;;  %v15217_v5 = vld [vmem:[#allocation104_spill] sm:$0xff] }
 0xaa7   : > { %4981 = vadd.xlane.f32.xlu0 %v4513_v2  ;;  %v5153_v2 = vadd.f32 %v14974_v45, %v12771_v28  ;;  %v3854_v22 = vadd.f32 %v15217_v5, %v10698_v32  ;;  %v13035_v51 = vpop.xlane.xlu1 %4903  ;;  %v5156_v28 = vadd.f32 %v14980_v20, %v12827_v54  ;;  %v5294_v5 = vadd.f32 %v14956_v47, %v12833_v37  ;;  %v15226_v37 = vld [vmem:[#allocation109_spill] sm:$0xff] }
 0xaa8   : > { %15218 = vst [vmem:[#allocation103_spill] sm:$0xff] %v13035_v51 }
 0xaa9   : > { %10043 = vtanh.f32 %v3854_v22  ;;  %v4512_v22 = vmul.f32 %v10042_v24, %v10743_v11 }
 0xaaa   : > { %v13037_v43 = vpop.permute.xlu0 %5957 }
 0xaab   : > { %v13043_v1 = vpop.permute.xlu1 %5984 }
 0xaac   : > { %15220 = vst [vmem:[#allocation163_spill] sm:$0xff] %v13043_v1 }
 0xaae   : > { %v13041_v63 = vpop.xlane.xlu0 %4905 }
 0xaaf   : > { %15219 = vst [vmem:[#allocation104_spill] sm:$0xff] %v13041_v63  ;;  %v13051_v51 = vpop.permute.xlu1 %5978 }
 0xab0   : > { %15222 = vst [vmem:[#allocation165_spill] sm:$0xff] %v13051_v51 }
 0xab3   : > { %v10044_v16 = vpop.eup %10043  ;;  %v13056_v63 = vpop.xlane.xlu1 %4915 }
 0xab4   : > { %15224 = vst [vmem:[#allocation167_spill] sm:$0xff] %v13056_v63  ;;  %v4510_v54 = vmul.f32 %v10044_v16, %v10743_v11  ;;  %v5295_v16 = vadd.f32 %v11144_v35, %v12747_v49 }
 0xab7   : > { %v13061_v23 = vpop.xlane.xlu1 %4911 }
 0xab8   : > { %15225 = vst [vmem:[#allocation168_spill] sm:$0xff] %v13061_v23 }
 0xabb   : > { %v13067_v24 = vpop.permute.xlu1 %5996 }
 0xabc   : > { %15228 = vst [vmem:[#allocation169_spill] sm:$0xff] %v13067_v24 }
 0xabd   : > { %5666 = vperm.xlu0 %8966, %v5153_v2   ;;  %v13049_v2 = vpop.xlane.xlu0 %4901 }
 0xabe   : > { %15221 = vst [vmem:[#allocation164_spill] sm:$0xff] %v13049_v2  ;;  %v3891_v2 = vadd.f32 %v15226_v37, %v10698_v32  ;;  %v5155_v37 = vadd.f32 %v14971_v13, %v12797_v30 }
 0xac0   : > { %10045 = vtanh.f32 %v3891_v2 }
 0xac1   : > { %6095 = vperm.xlu0 %8966, %v5296_v15   ;;  %v13054_v15 = vpop.permute.xlu0 %5975 }
 0xac2   : > { %15223 = vst [vmem:[#allocation166_spill] sm:$0xff] %v13054_v15 }
 0xac5   : > { %5675 = vperm.xlu0 %8966, %v5156_v28   ;;  %v13059_v28 = vpop.permute.xlu0 %5969 }
 0xac9   : > { %6089 = vperm.xlu0 %8966, %v5294_v5   ;;  %v13065_v47 = vpop.xlane.xlu0 %4913  ;;  %v15229_v5 = vld [vmem:[#allocation111_spill] sm:$0xff] }
 0xaca   : > { %4979 = vadd.xlane.f32.xlu1 %v4512_v22  ;;  %15227 = vst [vmem:[#allocation109_spill] sm:$0xff] %v13065_v47  ;;  %v3883_v22 = vadd.f32 %v15229_v5, %v10698_v32  ;;  %v10046_v2 = vpop.eup %10045  ;;  %v5293_v5 = vadd.f32 %v11128_v29, %v12761_v25 }
 0xacb   : > { %v4519_v49 = vmul.f32 %v10046_v2, %v10743_v11  ;;  %v15239_v2 = vld [vmem:[#allocation107_spill] sm:$0xff] }
 0xacc   : > { %10047 = vtanh.f32 %v3883_v22  ;;  %v3878_v29 = vadd.f32 %v15239_v2, %v10698_v32  ;;  %v5298_v2 = vadd.f32 %v14986_v39, %v12869_v8  ;;  %v15248_v8 = vld [vmem:[#allocation114_spill] sm:$0xff] }
 0xacd   : > { %v13071_v1 = vpop.xlane.xlu0 %4909 }
 0xace   : > { %4975 = vadd.xlane.f32.xlu1 %v4510_v54  ;;  %15230 = vst [vmem:[#allocation111_spill] sm:$0xff] %v13071_v1  ;;  %v13075_v54 = vpop.permute.xlu1 %5990  ;;  %10049 = vtanh.f32 %v3878_v29 }
 0xacf   : > { %15231 = vst [vmem:[#allocation170_spill] sm:$0xff] %v13075_v54 }
 0xad1   : > { %v13077_v23 = vpop.permute.xlu0 %5987 }
 0xad2   : > { %15232 = vst [vmem:[#allocation171_spill] sm:$0xff] %v13077_v23  ;;  %v13081_v47 = vpop.xlane.xlu1 %4923 }
 0xad3   : > { %15233 = vst [vmem:[#allocation172_spill] sm:$0xff] %v13081_v47 }
 0xad5   : > { %v13085_v1 = vpop.permute.xlu0 %5981 }
 0xad6   : > { %15234 = vst [vmem:[#allocation173_spill] sm:$0xff] %v13085_v1  ;;  %v10048_v22 = vpop.eup %10047  ;;  %v13088_v63 = vpop.xlane.xlu1 %4919 }
 0xad7   : > { %15235 = vst [vmem:[#allocation174_spill] sm:$0xff] %v13088_v63  ;;  %v4517_v30 = vmul.f32 %v10048_v22, %v10743_v11 }
 0xad8   : > { %v10050_v29 = vpop.eup %10049 }
 0xada   : > { %v13093_v47 = vpop.permute.xlu1 %6008 }
 0xade   : > { %v13099_v25 = vpop.permute.xlu1 %6002 }
 0xadf   : > { %6092 = vperm.xlu1 %8965, %v5295_v16   ;;  %v13090_v16 = vpop.xlane.xlu0 %4921 }
 0xae0   : > { %15236 = vst [vmem:[#allocation175_spill] sm:$0xff] %v13090_v16 }
 0xae3   : > { %5672 = vperm.xlu1 %8965, %v5155_v37   ;;  %v13095_v37 = vpop.xlane.xlu0 %4917 }
 0xae4   : > { %15237 = vst [vmem:[#allocation176_spill] sm:$0xff] %v13095_v37  ;;  %v5300_v37 = vadd.f32 %v14980_v20, %v12863_v59 }
 0xae7   : > { %6086 = vperm.xlu1 %8965, %v5293_v5   ;;  %v13097_v35 = vpop.permute.xlu0 %5999  ;;  %v13103_v5 = vpop.xlane.xlu1 %4931 }
 0xae8   : > { %4993 = vadd.xlane.f32.xlu0 %v4519_v49  ;;  %15238 = vst [vmem:[#allocation177_spill] sm:$0xff] %v13097_v35  ;;  %15240 = vst [vmem:[#allocation107_spill] sm:$0xff] %v13103_v5  ;;  %v15242_v49 = vld [vmem:[#allocation108_spill] sm:$0xff] }
 0xae9   : > { %v3870_v22 = vadd.f32 %v15242_v49, %v10698_v32  ;;  %v4516_v49 = vmul.f32 %v10050_v29, %v10743_v11  ;;  %v15251_v29 = vld [vmem:[#allocation115_spill] sm:$0xff] }
 0xaeb   : > { %v13105_v63 = vpop.permute.xlu0 %5993  ;;  %v13111_v16 = vpop.xlane.xlu1 %4927  ;;  %10051 = vtanh.f32 %v3870_v22 }
 0xaec   : > { %4989 = vadd.xlane.f32.xlu0 %v4517_v30  ;;  %15241 = vst [vmem:[#allocation178_spill] sm:$0xff] %v13105_v63  ;;  %15244 = vst [vmem:[#allocation179_spill] sm:$0xff] %v13111_v16  ;;  %v3899_v63 = vadd.f32 %v15251_v29, %v10698_v32 }
 0xaef   : > { %v13109_v30 = vpop.xlane.xlu0 %4929  ;;  %v13119_v5 = vpop.permute.xlu1 %6020 }
 0xaf0   : > { %15243 = vst [vmem:[#allocation108_spill] sm:$0xff] %v13109_v30  ;;  %15246 = vst [vmem:[#allocation181_spill] sm:$0xff] %v13119_v5 }
 0xaf3   : > { %v13117_v35 = vpop.xlane.xlu0 %4925  ;;  %v13124_v16 = vpop.permute.xlu1 %6014 }
 0xaf4   : > { %15245 = vst [vmem:[#allocation180_spill] sm:$0xff] %v13117_v35  ;;  %v3907_v35 = vadd.f32 %v15248_v8, %v10698_v32 }
 0xaf5   : > { %v10052_v30 = vpop.eup %10051 }
 0xaf6   : > { %v4514_v59 = vmul.f32 %v10052_v30, %v10743_v11  ;;  %10053 = vtanh.f32 %v3907_v35  ;;  %v5299_v35 = vadd.f32 %v14971_v13, %v12807_v61 }
 0xaf7   : > { %v13121_v24 = vpop.permute.xlu0 %6011  ;;  %v13129_v22 = vpop.xlane.xlu1 %4939  ;;  %10055 = vtanh.f32 %v3899_v63 }
 0xaf8   : > { %15247 = vst [vmem:[#allocation182_spill] sm:$0xff] %v13129_v22 }
 0xb00   : > { %v10054_v22 = vpop.eup %10053 }
 0xb01   : > { %v4523_v29 = vmul.f32 %v10054_v22, %v10743_v11 }
 0xb02   : > { %6107 = vperm.xlu0 %8966, %v5300_v37   ;;  %v13127_v37 = vpop.permute.xlu0 %6005 }
 0xb06   : > { %6101 = vperm.xlu0 %8966, %v5298_v2   ;;  %v13133_v20 = vpop.xlane.xlu0 %4937  ;;  %v13135_v2 = vpop.xlane.xlu1 %4935 }
 0xb07   : > { %15249 = vst [vmem:[#allocation114_spill] sm:$0xff] %v13133_v20  ;;  %15250 = vst [vmem:[#allocation183_spill] sm:$0xff] %v13135_v2  ;;  %v5297_v2 = vadd.f32 %v14974_v45, %v12815_v36  ;;  %v15264_v36 = vld [vmem:[#allocation112_spill] sm:$0xff] }
 0xb0a   : > { %v13139_v23 = vpop.xlane.xlu0 %4933  ;;  %v13141_v30 = vpop.permute.xlu1 %6032 }
 0xb0b   : > { %4987 = vadd.xlane.f32.xlu1 %v4516_v49  ;;  %15252 = vst [vmem:[#allocation115_spill] sm:$0xff] %v13139_v23  ;;  %15253 = vst [vmem:[#allocation184_spill] sm:$0xff] %v13141_v30  ;;  %v10056_v23 = vpop.eup %10055 }
 0xb0e   : > { %v13143_v49 = vpop.permute.xlu0 %6023  ;;  %v13147_v8 = vpop.permute.xlu1 %6026 }
 0xb0f   : > { %4983 = vadd.xlane.f32.xlu1 %v4514_v59  ;;  %15254 = vst [vmem:[#allocation185_spill] sm:$0xff] %v13143_v49  ;;  %v5154_v59 = vadd.f32 %v14986_v39, %v12799_v58  ;;  %15255 = vst [vmem:[#allocation186_spill] sm:$0xff] %v13147_v8  ;;  %v4521_v39 = vmul.f32 %v10056_v23, %v10743_v11 }
 0xb12   : > { %v13151_v20 = vpop.permute.xlu0 %6017  ;;  %v13154_v63 = vpop.xlane.xlu1 %4947 }
 0xb13   : > { %15256 = vst [vmem:[#allocation187_spill] sm:$0xff] %v13154_v63 }
 0xb16   : > { %v13158_v58 = vpop.xlane.xlu0 %4945 }
 0xb17   : > { %15257 = vst [vmem:[#allocation188_spill] sm:$0xff] %v13158_v58 }
 0xb1a   : > { %v13163_v61 = vpop.xlane.xlu0 %4941 }
 0xb1b   : > { %15259 = vst [vmem:[#allocation190_spill] sm:$0xff] %v13163_v61  ;;  %v5304_v61 = vadd.f32 %v11099_v56, %v12899_v40 }
 0xb1e   : > { %v13165_v13 = vpop.permute.xlu0 %6035 }
 0xb1f   : > { %15260 = vst [vmem:[#allocation191_spill] sm:$0xff] %v13165_v13  ;;  %v15289_v13 = vld [vmem:[#allocation66_spill] sm:$0xff] }
 0xb20   : > { %5669 = vperm.xlu1 %8965, %v5154_v59   ;;  %v13161_v59 = vpop.xlane.xlu1 %4943 }
 0xb21   : > { %15258 = vst [vmem:[#allocation189_spill] sm:$0xff] %v13161_v59 }
 0xb22   : > { %v13169_v63 = vpop.permute.xlu0 %6029 }
 0xb23   : > { %15262 = vst [vmem:[#allocation193_spill] sm:$0xff] %v13169_v63 }
 0xb24   : > { %6104 = vperm.xlu1 %8965, %v5299_v35   ;;  %v13167_v22 = vpop.permute.xlu1 %6044 }
 0xb25   : > { %5001 = vadd.xlane.f32.xlu0 %v4523_v29  ;;  %15261 = vst [vmem:[#allocation192_spill] sm:$0xff] %v13167_v22  ;;  %v3894_v29 = vadd.f32 %v15264_v36, %v10698_v32  ;;  %v5302_v36 = vadd.f32 %v11073_v0, %v12905_v42  ;;  %v15275_v42 = vld [vmem:[#allocation118_spill] sm:$0xff] }
 0xb26   : > { %v13175_v58 = vpop.xlane.xlu0 %4953 }
 0xb27   : > { %15265 = vst [vmem:[#allocation112_spill] sm:$0xff] %v13175_v58  ;;  %10057 = vtanh.f32 %v3894_v29 }
 0xb28   : > { %6098 = vperm.xlu1 %8965, %v5297_v2   ;;  %v13171_v35 = vpop.permute.xlu1 %6038 }
 0xb29   : > { %4997 = vadd.xlane.f32.xlu0 %v4521_v39  ;;  %15263 = vst [vmem:[#allocation194_spill] sm:$0xff] %v13171_v35  ;;  %v15267_v39 = vld [vmem:[#allocation113_spill] sm:$0xff]  ;;  %v15292_v35 = vld [vmem:[#allocation43_spill] sm:$0xff] }
 0xb2a   : > { %v3886_v2 = vadd.f32 %v15267_v39, %v10698_v32  ;;  %v13183_v59 = vpop.xlane.xlu0 %4949 }
 0xb2b   : > { %15268 = vst [vmem:[#allocation113_spill] sm:$0xff] %v13183_v59 }
 0xb2c   : > { %v13177_v23 = vpop.xlane.xlu1 %4955  ;;  %10059 = vtanh.f32 %v3886_v2 }
 0xb2d   : > { %15266 = vst [vmem:[#allocation195_spill] sm:$0xff] %v13177_v23 }
 0xb2e   : > { %v13189_v58 = vpop.permute.xlu0 %6047 }
 0xb2f   : > { %15270 = vst [vmem:[#allocation197_spill] sm:$0xff] %v13189_v58 }
 0xb30   : > { %v13185_v45 = vpop.xlane.xlu1 %4951 }
 0xb31   : > { %15269 = vst [vmem:[#allocation196_spill] sm:$0xff] %v13185_v45  ;;  %v10058_v29 = vpop.eup %10057 }
 0xb32   : > { %v13193_v22 = vpop.permute.xlu0 %6041  ;;  %v4520_v39 = vmul.f32 %v10058_v29, %v10743_v11 }
 0xb33   : > { %15272 = vst [vmem:[#allocation199_spill] sm:$0xff] %v13193_v22 }
 0xb34   : > { %v13191_v23 = vpop.permute.xlu1 %6056 }
 0xb35   : > { %15271 = vst [vmem:[#allocation198_spill] sm:$0xff] %v13191_v23  ;;  %v15277_v23 = vld [vmem:[#allocation120_spill] sm:$0xff] }
 0xb36   : > { %v10060_v40 = vpop.eup %10059  ;;  %v13198_v59 = vpop.xlane.xlu0 %4961  ;;  %v3915_v0 = vadd.f32 %v15277_v23, %v10698_v32 }
 0xb37   : > { %15274 = vst [vmem:[#allocation201_spill] sm:$0xff] %v13198_v59  ;;  %v4518_v2 = vmul.f32 %v10060_v40, %v10743_v11 }
 0xb3a   : > { %v13207_v56 = vpop.xlane.xlu0 %4957 }
 0xb3b   : > { %15278 = vst [vmem:[#allocation120_spill] sm:$0xff] %v13207_v56  ;;  %v15284_v56 = vld [vmem:[#allocation5_spill] sm:$0xff] }
 0xb3f   : > { %6119 = vperm.xlu0 %8966, %v5304_v61   ;;  %v13196_v61 = vpop.permute.xlu1 %6050 }
 0xb40   : > { %15273 = vst [vmem:[#allocation200_spill] sm:$0xff] %v13196_v61  ;;  %v15281_v61 = vlaneseq }
 0xb42   : > { %v6434_v59 = vand.u32 127, %v15281_v61 }
 0xb43   : > { %6113 = vperm.xlu0 %8966, %v5302_v36   ;;  %v3923_v36 = vadd.f32 %v15275_v42, %v10698_v32  ;;  %v13203_v45 = vpop.xlane.xlu1 %4963 }
 0xb44   : > { %15276 = vst [vmem:[#allocation118_spill] sm:$0xff] %v13203_v45  ;;  %v6439_v42 = vadd.s32 4294967288, %v6434_v59  ;;  %v6495_v30 = vadd.s32 4294967224, %v6434_v59  ;;  %v6530_v63 = vadd.s32 4294967184, %v6434_v59  ;;  %v6516_v52 = vadd.s32 4294967200, %v6434_v59 }
 0xb45   : > { %10061 = vtanh.f32 %v3923_v36 }
 0xb46   : > { %10063 = vtanh.f32 %v3915_v0  ;;  %v13222_v45 = vsub.s32 %v6439_v42, %v15284_v56  ;;  %v6446_v0 = vadd.s32 4294967280, %v6434_v59  ;;  %v15287_v42 = vld [vmem:[#allocation68_spill] sm:$0xff] }
 0xb47   : > { %v13209_v29 = vpop.xlane.xlu1 %4959 }
 0xb48   : > { %15279 = vst [vmem:[#allocation202_spill] sm:$0xff] %v13209_v29  ;;  %v6453_v29 = vadd.s32 4294967272, %v6434_v59 }
 0xb4b   : > { %v13214_v40 = vpop.permute.xlu1 %6068 }
 0xb4c   : > { %4995 = vadd.xlane.f32.xlu1 %v4520_v39  ;;  %v13211_v39 = vpop.permute.xlu0 %6059  ;;  %15282 = vst [vmem:[#allocation204_spill] sm:$0xff] %v13214_v40  ;;  %v13229_v40 = vsub.s32 %v6434_v59, %v15284_v56 }
 0xb4d   : > { %15280 = vst [vmem:[#allocation203_spill] sm:$0xff] %v13211_v39 }
 0xb4f   : > { %v10062_v58 = vpop.eup %10061  ;;  %v13226_v61 = vpop.permute.xlu1 %6062 }
 0xb50   : > { %4991 = vadd.xlane.f32.xlu1 %v4518_v2  ;;  %v13216_v22 = vpop.permute.xlu0 %6053  ;;  %v5303_v2 = vadd.f32 %v11055_v7, %v12843_v12  ;;  %v4527_v23 = vmul.f32 %v10062_v58, %v10743_v11  ;;  %v10064_v36 = vpop.eup %10063  ;;  %15286 = vst [vmem:[#allocation206_spill] sm:$0xff] %v13226_v61  ;;  %v6474_v58 = vadd.s32 4294967248, %v6434_v59  ;;  %v6551_v7 = vrot.slane %v15287_v42, %v13222_v45 }
 0xb51   : > { %15283 = vst [vmem:[#allocation205_spill] sm:$0xff] %v13216_v22  ;;  %v5301_v22 = vadd.f32 %v11035_v53, %v12851_v6  ;;  %v4525_v12 = vmul.f32 %v10064_v36, %v10743_v11  ;;  %v6467_v61 = vadd.s32 4294967256, %v6434_v59  ;;  %v6547_v6 = vrot.slane %v15289_v13, %v13229_v40 }
 0xb52   : > { %v13246_v36 = vsub.s32 %v6474_v58, %v15284_v56  ;;  %v13249_v42 = vsub.s32 %v6453_v29, %v15284_v56  ;;  %v6509_v58 = vadd.s32 4294967208, %v6434_v59 }
 0xb53   : > { %v13258_v13 = vsub.s32 %v6467_v61, %v15284_v56  ;;  %v15297_v61 = vld [vmem:[#allocation101_spill] sm:$0xff] }
 0xb54   : > { %v13224_v39 = vpop.xlane.xlu0 %4969  ;;  %v13284_v27 = vsub.s32 %v6509_v58, %v15284_v56 }
 0xb55   : > { %15285 = vst [vmem:[#allocation5_spill] sm:$0xff] %v13224_v39  ;;  %v13237_v39 = vsub.s32 %v6446_v0, %v15284_v56  ;;  %v6571_v8 = vrot.slane %v15297_v61, %v13258_v13 }
 0xb57   : > { %v6556_v54 = vrot.slane %v15292_v35, %v13237_v39  ;;  %v15296_v35 = vld [vmem:[#allocation49_spill] sm:$0xff] }
 0xb58   : > { %v13243_v53 = vpop.xlane.xlu0 %4965  ;;  %v6561_v49 = vrot.slane %v15296_v35, %v13249_v42  ;;  %v6630_v35 = vrot.slane %v12455_v18, %v13222_v45  ;;  %v6626_v18 = vrot.slane %v12474_v55, %v13229_v40 }
 0xb59   : > { %15290 = vst [vmem:[#allocation66_spill] sm:$0xff] %v13243_v53  ;;  %v6488_v53 = vadd.s32 4294967232, %v6434_v59 }
 0xb61   : > { %6116 = vperm.xlu1 %8965, %v5303_v2   ;;  %v6460_v2 = vadd.s32 4294967264, %v6434_v59 }
 0xb62   : > { %5009 = vadd.xlane.f32.xlu0 %v4527_v23  ;;  %v13239_v23 = vpop.xlane.xlu1 %4971 }
 0xb63   : > { %15288 = vst [vmem:[#allocation68_spill] sm:$0xff] %v13239_v23  ;;  %v13253_v0 = vsub.s32 %v6460_v2, %v15284_v56  ;;  %v6481_v23 = vadd.s32 4294967240, %v6434_v59  ;;  %v13263_v2 = vpop.permute.xlu0 %6071 }
 0xb64   : > { %15294 = vst [vmem:[#allocation43_spill] sm:$0xff] %v13263_v2  ;;  %v6523_v2 = vadd.s32 4294967192, %v6434_v59 }
 0xb65   : > { %6110 = vperm.xlu1 %8965, %v5301_v22   ;;  %v6552_v22 = vsel %vm6444_vm1, %v6551_v7, %v6547_v6  ;;  %15291 = vst [vmem:[#allocation207_spill] sm:$0xff] %v13253_v0  ;;  %v15293_v7 = vld [vmem:[#allocation119_spill] sm:$0xff]  ;;  %v13272_v15 = vsub.s32 %v6481_v23, %v15284_v56  ;;  %v13287_v23 = vsub.s32 %v6495_v30, %v15284_v56  ;;  %v15299_v30 = vld [vmem:[#allocation18_spill] sm:$0xff] }
 0xb66   : > { %5005 = vadd.xlane.f32.xlu0 %v4525_v12  ;;  %v6502_v12 = vadd.s32 4294967216, %v6434_v59  ;;  %v6557_v29 = vsel %vm6451_vm2, %v6556_v54, %v6552_v22  ;;  %v6566_v6 = vrot.slane %v15293_v7, %v13253_v0  ;;  %v13265_v1 = vpop.xlane.xlu1 %4967  ;;  %v6537_v22 = vadd.s32 4294967176, %v6434_v59 }
 0xb67   : > { %15295 = vst [vmem:[#allocation119_spill] sm:$0xff] %v13265_v1  ;;  %v13278_v7 = vsub.s32 %v6488_v53, %v15284_v56  ;;  %v6562_v1 = vsel %vm6458_vm3, %v6561_v49, %v6557_v29  ;;  %v13294_v53 = vsub.s32 %v6516_v52, %v15284_v56  ;;  %v13308_v52 = vpop.permute.xlu0 %6065  ;;  %v13317_v58 = vsub.s32 %v6523_v2, %v15284_v56 }
 0xb68   : > { %v13275_v54 = vsub.s32 %v6502_v12, %v15284_v56  ;;  %v13290_v12 = vsub.s32 %v6530_v63, %v15284_v56  ;;  %v6567_v61 = vsel %vm6465_vm4, %v6566_v6, %v6562_v1  ;;  %v13304_v63 = vsub.s32 %v6537_v22, %v15284_v56  ;;  %v15300_v1 = vld [vmem:[#allocation110_spill] sm:$0xff]  ;;  %15301 = vst [vmem:[#allocation49_spill] sm:$0xff] %v13308_v52 }
 0xb69   : > { %v6572_v49 = vsel %vm6472_vm5, %v6571_v8, %v6567_v61  ;;  %v6576_v6 = vrot.slane %v15300_v1, %v13246_v36  ;;  %v6631_v29 = vsel %vm6444_vm1, %v6630_v35, %v6626_v18  ;;  %v6586_v1 = vrot.slane %v12402_v57, %v13278_v7  ;;  %v15306_v8 = vld [vmem:[#allocation96_spill] sm:$0xff] }
 0xb6a   : > { %v13310_v51 = vpop.permute.xlu1 %6080  ;;  %v6581_v5 = vrot.slane %v15306_v8, %v13272_v15  ;;  %v6591_v56 = vrot.slane %v12348_v21, %v13287_v23  ;;  %v6709_v35 = vrot.slane %v12599_v46, %v13222_v45  ;;  %v15307_v57 = vld [vmem:[#allocation116_spill] sm:$0xff]  ;;  %v6640_v61 = vrot.slane %v12447_v38, %v13249_v42  ;;  %v15310_v21 = vld [vmem:[#allocation33_spill] sm:$0xff] }
 0xb6b   : > { %15302 = vst [vmem:[#allocation101_spill] sm:$0xff] %v13310_v51  ;;  %v6577_v22 = vsel %vm6479_vm6, %v6576_v6, %v6572_v49  ;;  %v6635_v51 = vrot.slane %v12467_v33, %v13237_v39  ;;  %v3910_v49 = vadd.f32 %v15307_v57, %v10698_v32  ;;  %v13336_v33 = vpop.xlane.xlu0 %4977  ;;  %v6645_v52 = vrot.slane %v15310_v21, %v13253_v0  ;;  %v15312_v57 = vld [vmem:[#allocation148_spill] sm:$0xff] }
 0xb6c   : > { %15308 = vst [vmem:[#allocation18_spill] sm:$0xff] %v13336_v33  ;;  %v6582_v8 = vsel %vm6486_vm7, %v6581_v5, %v6577_v22  ;;  %v6650_v59 = vrot.slane %v15312_v57, %v13258_v13  ;;  %v15313_v33 = vld [vmem:[#allocation41_spill] sm:$0xff]  ;;  %v15315_v5 = vld [vmem:[#allocation6_spill] sm:$0xff]  ;;  %v5308_v57 = vadd.f32 %v11140_v31, %v12931_v9 }
 0xb6d   : > { %v6636_v2 = vsel %vm6451_vm2, %v6635_v51, %v6631_v29  ;;  %v6587_v46 = vsel %vm6493_vm8, %v6586_v1, %v6582_v8  ;;  %v6705_v55 = vrot.slane %v15313_v33, %v13229_v40  ;;  %v6596_v22 = vrot.slane %v15315_v5, %v13275_v54  ;;  %v15316_v1 = vld [vmem:[#allocation117_spill] sm:$0xff]  ;;  %v15318_v51 = vld [vmem:[#allocation40_spill] sm:$0xff]  ;;  %v15321_v9 = vld [vmem:[#allocation146_spill] sm:$0xff] }
 0xb6e   : > { %v13352_v6 = vpop.permute.xlu1 %6074  ;;  %v6592_v38 = vsel %vm6500_vm9, %v6591_v56, %v6587_v46  ;;  %v6641_v21 = vsel %vm6458_vm3, %v6640_v61, %v6636_v2  ;;  %10065 = vtanh.f32 %v3910_v49  ;;  %v3902_v8 = vadd.f32 %v15316_v1, %v10698_v32  ;;  %v15322_v46 = vld [vmem:[#allocation149_spill] sm:$0xff] }
 0xb6f   : > { %15314 = vst [vmem:[#allocation110_spill] sm:$0xff] %v13352_v6  ;;  %v6710_v29 = vsel %vm6444_vm1, %v6709_v35, %v6705_v55  ;;  %v6646_v5 = vsel %vm6465_vm4, %v6645_v52, %v6641_v21  ;;  %v6714_v56 = vrot.slane %v15318_v51, %v13237_v39  ;;  %v6597_v61 = vsel %vm14650_vm10, %v6596_v22, %v6592_v38  ;;  %v13370_v2 = vpop.xlane.xlu0 %4973  ;;  %v15323_v51 = vld [vmem:[#allocation45_spill] sm:$0xff]  ;;  %v15324_v38 = vld [vmem:[#allocation34_spill] sm:$0xff] }
 0xb70   : > { %v6651_v55 = vsel %vm6472_vm5, %v6650_v59, %v6646_v5  ;;  %15319 = vst [vmem:[#allocation96_spill] sm:$0xff] %v13370_v2  ;;  %v6606_v49 = vrot.slane %v15321_v9, %v13294_v53  ;;  %v6655_v52 = vrot.slane %v15322_v46, %v13246_v36  ;;  %v6724_v22 = vrot.slane %v15323_v51, %v13253_v0  ;;  %v15325_v59 = vld [vmem:[#allocation38_spill] sm:$0xff]  ;;  %v15326_v9 = vld [vmem:[#allocation123_spill] sm:$0xff] }
 0xb71   : > { %v6715_v21 = vsel %vm6451_vm2, %v6714_v56, %v6710_v29  ;;  %v6719_v1 = vrot.slane %v15324_v38, %v13249_v42  ;;  %v6729_v5 = vrot.slane %v15325_v59, %v13258_v13  ;;  %10067 = vtanh.f32 %v3902_v8  ;;  %v15327_v46 = vld [vmem:[#allocation147_spill] sm:$0xff]  ;;  %v15328_v56 = vld [vmem:[#allocation30_spill] sm:$0xff] }
 0xb72   : > { %v13372_v35 = vpop.xlane.xlu1 %4979  ;;  %v6601_v6 = vrot.slane %v15326_v9, %v13284_v27  ;;  %v6611_v2 = vrot.slane %v15327_v46, %v13317_v58  ;;  %v6656_v29 = vsel %vm6479_vm6, %v6655_v52, %v6651_v55  ;;  %v6665_v51 = vrot.slane %v15328_v56, %v13278_v7  ;;  %v15329_v38 = vld [vmem:[#allocation15_spill] sm:$0xff]  ;;  %v15330_v59 = vld [vmem:[#allocation26_spill] sm:$0xff] }
 0xb73   : > { %15320 = vst [vmem:[#allocation116_spill] sm:$0xff] %v13372_v35  ;;  %v6660_v35 = vrot.slane %v15329_v38, %v13272_v15  ;;  %v6670_v8 = vrot.slane %v15330_v59, %v13287_v23  ;;  %v6720_v31 = vsel %vm6458_vm3, %v6719_v1, %v6715_v21  ;;  %v13401_v9 = vpop.permute.xlu0 %6083 }
 0xb74   : > { %15332 = vst [vmem:[#allocation33_spill] sm:$0xff] %v13401_v9  ;;  %v6602_v33 = vsel %vm14649_vm11, %v6601_v6, %v6597_v61  ;;  %v6725_v38 = vsel %vm6465_vm4, %v6724_v22, %v6720_v31  ;;  %v15337_v6 = vld [vmem:[#allocation39_spill] sm:$0xff] }
 0xb75   : > { %v6607_v59 = vsel %vm14648_vm12, %v6606_v49, %v6602_v33  ;;  %v6661_v21 = vsel %vm6486_vm7, %v6660_v35, %v6656_v29  ;;  %v6730_v1 = vsel %vm6472_vm5, %v6729_v5, %v6725_v38  ;;  %v6734_v61 = vrot.slane %v15337_v6, %v13246_v36  ;;  %v15338_v33 = vld [vmem:[#allocation14_spill] sm:$0xff]  ;;  %v15339_v5 = vld [vmem:[#allocation28_spill] sm:$0xff] }
 0xb76   : > { %v6612_v55 = vsel %vm14651_vm13, %v6611_v2, %v6607_v59  ;;  %v6666_v56 = vsel %vm6493_vm8, %v6665_v51, %v6661_v21  ;;  %v6616_v49 = vrot.slane %v15338_v33, %v13290_v12  ;;  %v6675_v29 = vrot.slane %v15339_v5, %v13275_v54  ;;  %v15340_v2 = vld [vmem:[#allocation50_spill] sm:$0xff]  ;;  %v15341_v59 = vld [vmem:[#allocation53_spill] sm:$0xff] }
 0xb77   : > { %v6671_v35 = vsel %vm6500_vm9, %v6670_v8, %v6666_v56  ;;  %v6735_v38 = vsel %vm6479_vm6, %v6734_v61, %v6730_v1  ;;  %v6744_v51 = vrot.slane %v15340_v2, %v13278_v7  ;;  %v6793_v21 = vrot.slane %v15341_v59, %v13237_v39  ;;  %v15343_v8 = vld [vmem:[#allocation80_spill] sm:$0xff]  ;;  %v13438_v5 = vpop.permute.xlu0 %6077  ;;  %v15346_v2 = vld [vmem:[#allocation67_spill] sm:$0xff] }
 0xb78   : > { %v10066_v31 = vpop.eup %10065  ;;  %v6617_v33 = vsel %vm6535_vm14, %v6616_v49, %v6612_v55  ;;  %v6739_v56 = vrot.slane %v15343_v8, %v13272_v15  ;;  %15345 = vst [vmem:[#allocation41_spill] sm:$0xff] %v13438_v5  ;;  %v6676_v1 = vsel %vm14650_vm10, %v6675_v29, %v6671_v35  ;;  %v6803_v59 = vrot.slane %v15346_v2, %v13253_v0  ;;  %v15347_v55 = vld [vmem:[#allocation24_spill] sm:$0xff]  ;;  %v15349_v5 = vld [vmem:[#allocation55_spill] sm:$0xff] }
 0xb79   : > { %v6680_v49 = vrot.slane %v15347_v55, %v13284_v27  ;;  %v15348_v8 = vld [vmem:[#allocation32_spill] sm:$0xff]  ;;  %v6798_v52 = vrot.slane %v15349_v5, %v13249_v42 }
 0xb7a   : > { %v6685_v46 = vrot.slane %v15348_v8, %v13294_v53  ;;  %v15353_v8 = vld [vmem:[#allocation35_spill] sm:$0xff]  ;;  %v15355_v29 = vld [vmem:[#allocation44_spill] sm:$0xff] }
 0xb7b   : > { %v13467_v18 = vpop.xlane.xlu0 %4985 }
 0xb7c   : > { %6131 = vperm.xlu0 %8966, %v5308_v57   ;;  %v5306_v57 = vadd.f32 %v11126_v10, %v12933_v60  ;;  %v15331_v60 = vld [vmem:[#allocation52_spill] sm:$0xff]  ;;  %15354 = vst [vmem:[#allocation117_spill] sm:$0xff] %v13467_v18 }
 0xb7d   : > { %v6788_v10 = vrot.slane %v15331_v60, %v13222_v45  ;;  %v15335_v60 = vld [vmem:[#allocation60_spill] sm:$0xff] }
 0xb7e   : > { %v6784_v9 = vrot.slane %v15335_v60, %v13229_v40  ;;  %v15342_v60 = vld [vmem:[#allocation144_spill] sm:$0xff] }
 0xb7f   : > { %v6621_v6 = vrot.slane %v15342_v60, %v13304_v63  ;;  %v10068_v60 = vpop.eup %10067 }
 0xb80   : > { %6125 = vperm.xlu0 %8966, %v5306_v57   ;;  %v13414_v57 = vpop.xlane.xlu1 %4975  ;;  %v6789_v22 = vsel %vm6444_vm1, %v6788_v10, %v6784_v9  ;;  %v15344_v10 = vld [vmem:[#allocation42_spill] sm:$0xff] }
 0xb81   : > { %15336 = vst [vmem:[#allocation148_spill] sm:$0xff] %v13414_v57  ;;  %v6749_v9 = vrot.slane %v15344_v10, %v13287_v23  ;;  %v6794_v61 = vsel %vm6451_vm2, %v6793_v21, %v6789_v22  ;;  %v4524_v57 = vmul.f32 %v10066_v31, %v10743_v11  ;;  %v6740_v10 = vsel %vm6486_vm7, %v6739_v56, %v6735_v38  ;;  %v15351_v22 = vld [vmem:[#allocation27_spill] sm:$0xff] }
 0xb82   : > { %v15352_v21 = vld [vmem:[#allocation31_spill] sm:$0xff]  ;;  %v13459_v2 = vsel %vm6542_vm15, %v6621_v6, %v6617_v33  ;;  %v6745_v55 = vsel %vm6493_vm8, %v6744_v51, %v6740_v10  ;;  %v6695_v38 = vrot.slane %v15353_v8, %v13290_v12  ;;  %v6681_v56 = vsel %vm14649_vm11, %v6680_v49, %v6676_v1  ;;  %v15356_v33 = vld [vmem:[#allocation124_spill] sm:$0xff] }
 0xb83   : > { %v6750_v5 = vsel %vm6500_vm9, %v6749_v9, %v6745_v55  ;;  %v6754_v31 = vrot.slane %v15355_v29, %v13275_v54  ;;  %v3939_v51 = vadd.f32 %v15356_v33, %v10698_v32  ;;  %v6686_v10 = vsel %vm14648_vm12, %v6685_v46, %v6681_v56  ;;  %v15357_v1 = vld [vmem:[#allocation36_spill] sm:$0xff]  ;;  %v15360_v29 = vld [vmem:[#allocation37_spill] sm:$0xff] }
 0xb84   : > { %v13452_v35 = vpop.permute.xlu1 %6092  ;;  %v6690_v49 = vrot.slane %v15357_v1, %v13317_v58  ;;  %v15358_v9 = vld [vmem:[#allocation56_spill] sm:$0xff]  ;;  %v6700_v8 = vrot.slane %v15360_v29, %v13304_v63  ;;  %v6863_v46 = vrot.slane %v12925_v34, %v13229_v40  ;;  %v15363_v1 = vld [vmem:[#allocation47_spill] sm:$0xff]  ;;  %v6942_v29 = vrot.slane %v12999_v17, %v13229_v40 }
 0xb85   : > { %15350 = vst [vmem:[#allocation6_spill] sm:$0xff] %v13452_v35  ;;  %v6799_v35 = vsel %vm6458_vm3, %v6798_v52, %v6794_v61  ;;  %v6808_v52 = vrot.slane %v15358_v9, %v13258_v13  ;;  %v15359_v61 = vld [vmem:[#allocation125_spill] sm:$0xff]  ;;  %v6755_v33 = vsel %vm14650_vm10, %v6754_v31, %v6750_v5  ;;  %v6769_v9 = vrot.slane %v15363_v1, %v13317_v58 }
 0xb86   : > { %v6804_v6 = vsel %vm6465_vm4, %v6803_v59, %v6799_v35  ;;  %v3931_v55 = vadd.f32 %v15359_v61, %v10698_v32  ;;  %v15361_v59 = vld [vmem:[#allocation46_spill] sm:$0xff]  ;;  %10069 = vtanh.f32 %v3939_v51  ;;  %v6867_v34 = vrot.slane %v12908_v3, %v13222_v45  ;;  %v15366_v51 = vld [vmem:[#allocation75_spill] sm:$0xff] }
 0xb87   : > { %v6759_v35 = vrot.slane %v15361_v59, %v13284_v27  ;;  %v6809_v61 = vsel %vm6472_vm5, %v6808_v52, %v6804_v6  ;;  %v15364_v59 = vld [vmem:[#allocation57_spill] sm:$0xff]  ;;  %v7021_v5 = vrot.slane %v13099_v25, %v13229_v40  ;;  %v6946_v17 = vrot.slane %v13037_v43, %v13222_v45  ;;  %v13508_v6 = vpop.xlane.xlu0 %4981 }
 0xb88   : > { %v13496_v18 = vpop.permute.xlu1 %5672  ;;  %v6813_v31 = vrot.slane %v15364_v59, %v13246_v36  ;;  %10071 = vtanh.f32 %v3931_v55  ;;  %15365 = vst [vmem:[#allocation40_spill] sm:$0xff] %v13508_v6  ;;  %v6823_v1 = vrot.slane %v15366_v51, %v13278_v7  ;;  %v6868_v3 = vsel %vm6444_vm1, %v6867_v34, %v6863_v46  ;;  %v15371_v51 = vld [vmem:[#allocation63_spill] sm:$0xff] }
 0xb89   : > { %5003 = vadd.xlane.f32.xlu1 %v4524_v57  ;;  %v4522_v57 = vmul.f32 %v10068_v60, %v10743_v11  ;;  %v15362_v60 = vld [vmem:[#allocation54_spill] sm:$0xff]  ;;  %v7025_v25 = vrot.slane %v13127_v37, %v13222_v45  ;;  %v6872_v43 = vrot.slane %v12913_v62, %v13237_v39  ;;  %v6951_v46 = vrot.slane %v12995_v19, %v13237_v39 }
 0xb8a   : > { %v6764_v56 = vrot.slane %v15362_v60, %v13294_v53  ;;  %v6760_v60 = vsel %vm14649_vm11, %v6759_v35, %v6755_v33  ;;  %v6814_v52 = vsel %vm6479_vm6, %v6813_v31, %v6809_v61  ;;  %v6947_v35 = vsel %vm6444_vm1, %v6946_v17, %v6942_v29  ;;  %v15368_v33 = vld [vmem:[#allocation48_spill] sm:$0xff]  ;;  %v15370_v19 = vld [vmem:[#allocation78_spill] sm:$0xff] }
 0xb8b   : > { %v6774_v61 = vrot.slane %v15368_v33, %v13290_v12  ;;  %v7026_v37 = vsel %vm6444_vm1, %v7025_v25, %v7021_v5  ;;  %v6873_v31 = vsel %vm6451_vm2, %v6872_v43, %v6868_v3  ;;  %v6882_v34 = vrot.slane %v12943_v48, %v13253_v0  ;;  %v13534_v29 = vpop.permute.xlu0 %5666 }
 0xb8c   : > { %v7030_v62 = vrot.slane %v13093_v47, %v13237_v39  ;;  %v6877_v17 = vrot.slane %v15370_v19, %v13249_v42  ;;  %v6952_v5 = vsel %vm6451_vm2, %v6951_v46, %v6947_v35  ;;  %v6828_v48 = vrot.slane %v15371_v51, %v13287_v23 }
 0xb8d   : > { %4999 = vadd.xlane.f32.xlu1 %v4522_v57  ;;  %v6691_v57 = vsel %vm14651_vm13, %v6690_v49, %v6686_v10  ;;  %v6765_v10 = vsel %vm14648_vm12, %v6764_v56, %v6760_v60  ;;  %v15367_v49 = vld [vmem:[#allocation61_spill] sm:$0xff]  ;;  %v13536_v60 = vpop.permute.xlu1 %6086  ;;  %v6956_v47 = vrot.slane %v13029_v50, %v13249_v42  ;;  %v7040_v25 = vrot.slane %v13124_v16, %v13253_v0 }
 0xb8e   : > { %v6818_v55 = vrot.slane %v15367_v49, %v13272_v15  ;;  %v6770_v59 = vsel %vm14651_vm13, %v6769_v9, %v6765_v10  ;;  %15369 = vst [vmem:[#allocation146_spill] sm:$0xff] %v13536_v60  ;;  %v7031_v3 = vsel %vm6451_vm2, %v7030_v62, %v7026_v37  ;;  %v6878_v49 = vsel %vm6458_vm3, %v6877_v17, %v6873_v31 }
 0xb8f   : > { %v6775_v10 = vsel %vm6535_vm14, %v6774_v61, %v6770_v59  ;;  %v6883_v50 = vsel %vm6465_vm4, %v6882_v34, %v6878_v49  ;;  %v6957_v33 = vsel %vm6458_vm3, %v6956_v47, %v6952_v5  ;;  %v6887_v61 = vrot.slane %v12952_v44, %v13258_v13  ;;  %v15375_v44 = vld [vmem:[#allocation121_spill] sm:$0xff] }
 0xb90   : > { %v6819_v56 = vsel %vm6486_vm7, %v6818_v55, %v6814_v52  ;;  %v6961_v52 = vrot.slane %v13021_v14, %v13253_v0  ;;  %v7035_v14 = vrot.slane %v13121_v24, %v13249_v42  ;;  %v15372_v55 = vld [vmem:[#allocation51_spill] sm:$0xff]  ;;  %v10070_v16 = vpop.eup %10069  ;;  %v6966_v34 = vrot.slane %v13059_v28, %v13258_v13  ;;  %v15378_v47 = vld [vmem:[#allocation85_spill] sm:$0xff] }
 0xb91   : > { %v6824_v9 = vsel %vm6493_vm8, %v6823_v1, %v6819_v56  ;;  %v6696_v1 = vsel %vm6535_vm14, %v6695_v38, %v6691_v57  ;;  %v6779_v43 = vrot.slane %v15372_v55, %v13304_v63  ;;  %v15373_v38 = vld [vmem:[#allocation62_spill] sm:$0xff]  ;;  %v13582_v19 = vadd.f32 %v15375_v44, %v10698_v32 }
 0xb92   : > { %v6829_v35 = vsel %vm6500_vm9, %v6828_v48, %v6824_v9  ;;  %v6833_v57 = vrot.slane %v15373_v38, %v13275_v54  ;;  %v6962_v24 = vsel %vm6465_vm4, %v6961_v52, %v6957_v33  ;;  %v7036_v59 = vsel %vm6458_vm3, %v7035_v14, %v7031_v3  ;;  %v10072_v37 = vpop.eup %10071  ;;  %v13578_v9 = vpop.permute.xlu0 %6095  ;;  %v15376_v52 = vld [vmem:[#allocation69_spill] sm:$0xff]  ;;  %v15380_v38 = vld [vmem:[#allocation79_spill] sm:$0xff] }
 0xb93   : > { %v13570_v56 = vsel %vm6542_vm15, %v6700_v8, %v6696_v1  ;;  %v13573_v31 = vsel %vm6542_vm15, %v6779_v43, %v6775_v10  ;;  %v7041_v62 = vsel %vm6465_vm4, %v7040_v25, %v7036_v59  ;;  %15374 = vst [vmem:[#allocation149_spill] sm:$0xff] %v13578_v9  ;;  %v6888_v5 = vsel %vm6472_vm5, %v6887_v61, %v6883_v50  ;;  %v15377_v48 = vld [vmem:[#allocation81_spill] sm:$0xff] }
 0xb94   : > { %v6834_v17 = vsel %vm14650_vm10, %v6833_v57, %v6829_v35  ;;  %v7045_v8 = vrot.slane %v13151_v20, %v13258_v13  ;;  %v6838_v51 = vrot.slane %v15376_v52, %v13284_v27  ;;  %v5307_v28 = vadd.f32 %v11103_v4, %v15377_v48  ;;  %v15379_v50 = vld [vmem:[#allocation181_spill] sm:$0xff]  ;;  %v15381_v57 = vld [vmem:[#allocation84_spill] sm:$0xff] }
 0xb95   : > { %v6892_v3 = vrot.slane %v15378_v47, %v13246_v36  ;;  %v6967_v25 = vsel %vm6472_vm5, %v6966_v34, %v6962_v24  ;;  %v6971_v10 = vrot.slane %v13017_v26, %v13246_v36  ;;  %v4531_v20 = vmul.f32 %v10070_v16, %v10743_v11  ;;  %v15382_v24 = vld [vmem:[#allocation165_spill] sm:$0xff] }
 0xb96   : > { %v7046_v49 = vsel %vm6472_vm5, %v7045_v8, %v7041_v62  ;;  %v4529_v14 = vmul.f32 %v10072_v37, %v10743_v11  ;;  %v6839_v55 = vsel %vm14649_vm11, %v6838_v51, %v6834_v17  ;;  %v6902_v35 = vrot.slane %v12961_v41, %v13278_v7  ;;  %v15383_v37 = vld [vmem:[#allocation83_spill] sm:$0xff]  ;;  %v15384_v34 = vld [vmem:[#allocation77_spill] sm:$0xff]  ;;  %v15385_v41 = vld [vmem:[#allocation166_spill] sm:$0xff]  ;;  %v5676_v52 = vpop.permute.xlu0 %5675 }
 0xb97   : > { %v6893_v43 = vsel %vm6479_vm6, %v6892_v3, %v6888_v5  ;;  %v7050_v33 = vrot.slane %v15379_v50, %v13246_v36  ;;  %v6843_v26 = vrot.slane %v15380_v38, %v13294_v53  ;;  %v6897_v61 = vrot.slane %v15381_v57, %v13272_v15  ;;  %v15386_v5 = vld [vmem:[#allocation186_spill] sm:$0xff] }
 0xb98   : > { %v13561_v46 = vpop.xlane.xlu1 %4987  ;;  %v6972_v16 = vsel %vm6479_vm6, %v6971_v10, %v6967_v25  ;;  %v6981_v59 = vrot.slane %v15382_v24, %v13278_v7  ;;  %v5305_v62 = vadd.f32 %v15384_v34, %v15383_v37  ;;  %v6976_v44 = vrot.slane %v15385_v41, %v13272_v15  ;;  %v15388_v10 = vld [vmem:[#allocation105_spill] sm:$0xff] }
 0xb99   : > { %v7051_v17 = vsel %vm6479_vm6, %v7050_v33, %v7046_v49  ;;  %v7060_v8 = vrot.slane %v15386_v5, %v13278_v7  ;;  %v6898_v48 = vsel %vm6486_vm7, %v6897_v61, %v6893_v43  ;;  %v6438_v3 = vrot.slane %v13534_v29, %v13229_v40  ;;  %v15389_v24 = vld [vmem:[#allocation173_spill] sm:$0xff] }
 0xb9a   : > { %v6903_v49 = vsel %vm6493_vm8, %v6902_v35, %v6898_v48  ;;  %v6977_v50 = vsel %vm6486_vm7, %v6976_v44, %v6972_v16  ;;  %v6450_v33 = vrot.slane %v13496_v18, %v13237_v39  ;;  %v6457_v57 = vrot.slane %v5676_v52, %v13249_v42  ;;  %v15390_v18 = vld [vmem:[#allocation72_spill] sm:$0xff]  ;;  %v15391_v41 = vld [vmem:[#allocation193_spill] sm:$0xff] }
 0xb9b   : > { %v6982_v43 = vsel %vm6493_vm8, %v6981_v59, %v6977_v50  ;;  %v6844_v61 = vsel %vm14648_vm12, %v6843_v26, %v6839_v55  ;;  %v6986_v35 = vrot.slane %v15389_v24, %v13287_v23  ;;  %v7065_v44 = vrot.slane %v15391_v41, %v13287_v23  ;;  %v15393_v26 = vld [vmem:[#allocation92_spill] sm:$0xff]  ;;  %v15406_v41 = vld [vmem:[#allocation171_spill] sm:$0xff] }
 0xb9c   : > { %v13595_v1 = vpop.xlane.xlu1 %4983  ;;  %v6912_v5 = vrot.slane %v15393_v26, %v13275_v54  ;;  %v15394_v52 = vrot.slane %v15299_v30, %v13253_v0  ;;  %v15398_v50 = vld [vmem:[#allocation152_spill] sm:$0xff]  ;;  %10073 = vtanh.f32 %v13582_v19 }
 0xb9d   : > { %v15399_v30 = vld [vmem:[#allocation184_spill] sm:$0xff] }
 0xb9e   : > { %6128 = vperm.xlu1 %8965, %v5307_v28   ;;  %v15387_v28 = vld [vmem:[#allocation185_spill] sm:$0xff] }
 0xb9f   : > { %5017 = vadd.xlane.f32.xlu0 %v4531_v20  ;;  %v7055_v47 = vrot.slane %v15387_v28, %v13272_v15  ;;  %v6907_v20 = vrot.slane %v15388_v10, %v13287_v23  ;;  %v15395_v28 = vld [vmem:[#allocation163_spill] sm:$0xff] }
 0xba0   : > { %v5670_v51 = vpop.permute.xlu1 %5669 }
 0xba1   : > { %v6443_v25 = vrot.slane %v5670_v51, %v13222_v45  ;;  %v7056_v38 = vsel %vm6486_vm7, %v7055_v47, %v7051_v17  ;;  %v6908_v59 = vsel %vm6500_vm9, %v6907_v20, %v6903_v49  ;;  %v6991_v47 = vrot.slane %v15395_v28, %v13275_v54 }
 0xba2   : > { %6122 = vperm.xlu1 %8965, %v5305_v62   ;;  %v7061_v16 = vsel %vm6493_vm8, %v7060_v8, %v7056_v38  ;;  %v6848_v62 = vrot.slane %v15390_v18, %v13317_v58  ;;  %v6987_v8 = vsel %vm6500_vm9, %v6986_v35, %v6982_v43  ;;  %v6913_v49 = vsel %vm14650_vm10, %v6912_v5, %v6908_v59  ;;  %v15400_v38 = vld [vmem:[#allocation17_spill] sm:$0xff]  ;;  %v15404_v18 = vld [vmem:[#allocation16_spill] sm:$0xff]  ;;  %v15408_v5 = vld [vmem:[#allocation22_spill] sm:$0xff] }
 0xba3   : > { %v6445_v29 = vsel %vm6444_vm1, %v6443_v25, %v6438_v3  ;;  %5013 = vadd.xlane.f32.xlu0 %v4529_v14  ;;  %v15392_v14 = vld [vmem:[#allocation73_spill] sm:$0xff]  ;;  %v7066_v3 = vsel %vm6500_vm9, %v7065_v44, %v7061_v16  ;;  %v15396_v25 = vld [vmem:[#allocation19_spill] sm:$0xff]  ;;  %v7070_v43 = vrot.slane %v15399_v30, %v13275_v54  ;;  %v6992_v35 = vsel %vm14650_vm10, %v6991_v47, %v6987_v8  ;;  %v15403_v16 = vld [vmem:[#allocation170_spill] sm:$0xff] }
 0xba4   : > { %v6452_v37 = vsel %vm6451_vm2, %v6450_v33, %v6445_v29  ;;  %v6853_v55 = vrot.slane %v15392_v14, %v13290_v12  ;;  %v6849_v48 = vsel %vm14651_vm13, %v6848_v62, %v6844_v61  ;;  %v15397_v10 = vrot.slane %v15396_v25, %v13258_v13  ;;  %v15402_v61 = vld [vmem:[#allocation151_spill] sm:$0xff]  ;;  %v15407_v14 = vld [vmem:[#allocation194_spill] sm:$0xff] }
 0xba5   : > { %v6459_v17 = vsel %vm6458_vm3, %v6457_v57, %v6452_v37  ;;  %v6922_v33 = vrot.slane %v15398_v50, %v13294_v53  ;;  %v15401_v57 = vrot.slane %v15400_v38, %v13246_v36  ;;  %v6917_v24 = vrot.slane %v15402_v61, %v13284_v27  ;;  %v15410_v47 = vld [vmem:[#allocation191_spill] sm:$0xff]  ;;  %v15413_v50 = vld [vmem:[#allocation74_spill] sm:$0xff] }
 0xba6   : > { %v6466_v51 = vsel %vm6465_vm4, %v15394_v52, %v6459_v17  ;;  %v7001_v37 = vrot.slane %v15403_v16, %v13294_v53  ;;  %v15405_v62 = vrot.slane %v15404_v18, %v13272_v15  ;;  %v6996_v44 = vrot.slane %v15406_v41, %v13284_v27  ;;  %v15417_v16 = vld [vmem:[#allocation20_spill] sm:$0xff]  ;;  %v10074_v19 = vpop.eup %10073 }
 0xba7   : > { %v6473_v20 = vsel %vm6472_vm5, %v15397_v10, %v6466_v51  ;;  %v7071_v17 = vsel %vm14650_vm10, %v7070_v43, %v7066_v3  ;;  %v7080_v26 = vrot.slane %v15407_v14, %v13294_v53  ;;  %v15409_v52 = vrot.slane %v15408_v5, %v13278_v7  ;;  %v15411_v10 = vld [vmem:[#allocation23_spill] sm:$0xff] }
 0xba8   : > { %v6480_v29 = vsel %vm6479_vm6, %v15401_v57, %v6473_v20  ;;  %v6854_v51 = vsel %vm6535_vm14, %v6853_v55, %v6849_v48  ;;  %v6918_v28 = vsel %vm14649_vm11, %v6917_v24, %v6913_v49  ;;  %v7075_v25 = vrot.slane %v15410_v47, %v13284_v27  ;;  %v15414_v57 = vld [vmem:[#allocation21_spill] sm:$0xff]  ;;  %v15416_v49 = vld [vmem:[#allocation159_spill] sm:$0xff] }
 0xba9   : > { %v6487_v59 = vsel %vm6486_vm7, %v15405_v62, %v6480_v29  ;;  %v15412_v20 = vrot.slane %v15411_v10, %v13287_v23  ;;  %v6858_v30 = vrot.slane %v15413_v50, %v13304_v63  ;;  %v6923_v43 = vsel %vm14648_vm12, %v6922_v33, %v6918_v28  ;;  %v15419_v62 = vld [vmem:[#allocation178_spill] sm:$0xff] }
 0xbaa   : > { %v6494_v8 = vsel %vm6493_vm8, %v15409_v52, %v6487_v59  ;;  %v6997_v38 = vsel %vm14649_vm11, %v6996_v44, %v6992_v35  ;;  %v15415_v55 = vrot.slane %v15414_v57, %v13275_v54  ;;  %v6927_v29 = vrot.slane %v15416_v49, %v13317_v58  ;;  %v15420_v44 = vld [vmem:[#allocation29_spill] sm:$0xff]  ;;  %v15424_v28 = vld [vmem:[#allocation150_spill] sm:$0xff]  ;;  %v15429_v57 = vld [vmem:[#allocation192_spill] sm:$0xff] }
 0xbab   : > { %v6501_v3 = vsel %vm6500_vm9, %v15412_v20, %v6494_v8  ;;  %v7002_v61 = vsel %vm14648_vm12, %v7001_v37, %v6997_v38  ;;  %v7076_v24 = vsel %vm14649_vm11, %v7075_v25, %v7071_v17  ;;  %v15418_v18 = vrot.slane %v15417_v16, %v13284_v27  ;;  %v15422_v17 = vld [vmem:[#allocation199_spill] sm:$0xff]  ;;  %v15425_v25 = vld [vmem:[#allocation25_spill] sm:$0xff] }
 0xbac   : > { %v6508_v48 = vsel %vm14650_vm10, %v15415_v55, %v6501_v3  ;;  %v6859_v35 = vsel %vm6542_vm15, %v6858_v30, %v6854_v51  ;;  %v7006_v59 = vrot.slane %v15419_v62, %v13317_v58  ;;  %v7081_v41 = vsel %vm14648_vm12, %v7080_v26, %v7076_v24  ;;  %v15427_v3 = vld [vmem:[#allocation169_spill] sm:$0xff] }
 0xbad   : > { %v6515_v33 = vsel %vm14649_vm11, %v15418_v18, %v6508_v48  ;;  %v15421_v14 = vrot.slane %v15420_v44, %v13294_v53  ;;  %v6928_v37 = vsel %vm14651_vm13, %v6927_v29, %v6923_v43  ;;  %v7085_v52 = vrot.slane %v15422_v17, %v13317_v58  ;;  %v15430_v49 = vld [vmem:[#allocation157_spill] sm:$0xff] }
 0xbae   : > { %v15423_v8 = vrot.slane %v15352_v21, %v13317_v58  ;;  %v6932_v47 = vrot.slane %v15424_v28, %v13290_v12  ;;  %v7007_v26 = vsel %vm14651_vm13, %v7006_v59, %v7002_v61  ;;  %v15426_v10 = vrot.slane %v15425_v25, %v13290_v12  ;;  %v15431_v24 = vld [vmem:[#allocation177_spill] sm:$0xff]  ;;  %v15437_v28 = vld [vmem:[#allocation95_spill] sm:$0xff] }
 0xbaf   : > { %v6522_v5 = vsel %vm14648_vm12, %v15421_v14, %v6515_v33  ;;  %vm14653_vm12 = vcmask 1042434   ;;  %v7011_v50 = vrot.slane %v15427_v3, %v13290_v12  ;;  %v7086_v21 = vsel %vm14651_vm13, %v7085_v52, %v7081_v41  ;;  %v15432_v62 = vld [vmem:[#allocation197_spill] sm:$0xff] }
 0xbb0   : > { %v6529_v51 = vsel %vm14651_vm13, %v15423_v8, %v6522_v5  ;;  %v15428_v30 = vrot.slane %v15351_v22, %v13304_v63  ;;  %vm7733_vm11 = vcmask 1043459   ;;  %v6933_v38 = vsel %vm6535_vm14, %v6932_v47, %v6928_v37  ;;  %v15434_v37 = vld [vmem:[#allocation94_spill] sm:$0xff] }
 0xbb1   : > { %v6536_v20 = vsel %vm6535_vm14, %v15426_v10, %v6529_v51  ;;  %v7090_v55 = vrot.slane %v15429_v57, %v13290_v12  ;;  %vm14661_vm10 = vcmask 1044484   ;;  %v6937_v29 = vrot.slane %v15430_v49, %v13304_v63  ;;  %v15442_v49 = vld [vmem:[#allocation89_spill] sm:$0xff] }
 0xbb2   : > { %v6543_v43 = vsel %vm6542_vm15, %v15428_v30, %v6536_v20  ;;  %v7012_v61 = vsel %vm6535_vm14, %v7011_v50, %v7007_v26  ;;  %vm14660_vm13 = vcmask 1045509   ;;  %v7016_v16 = vrot.slane %v15431_v24, %v13304_v63  ;;  %v15438_v20 = vld [vmem:[#allocation128_spill] sm:$0xff]  ;;  %v15439_v50 = vld [vmem:[#allocation129_spill] sm:$0xff]  ;;  %v15444_v24 = vld [vmem:[#allocation126_spill] sm:$0xff] }
 0xbb3   : > { %v7730_v48 = vsel %vm14652_vm0, %v13459_v2, %v6543_v43  ;;  %v7091_v18 = vsel %vm6535_vm14, %v7090_v55, %v7086_v21  ;;  %vm14659_vm0 = vcmask 1046534   ;;  %v6938_v33 = vsel %vm6542_vm15, %v6937_v29, %v6933_v38  ;;  %v15440_v43 = vld [vmem:[#allocation86_spill] sm:$0xff]  ;;  %v15441_v38 = vld [vmem:[#allocation93_spill] sm:$0xff]  ;;  %v15443_v29 = vld [vmem:[#allocation88_spill] sm:$0xff] }
 0xbb4   : > { %v7732_v22 = vsel %vm14653_vm12, %v13570_v56, %v7730_v48  ;;  %v7095_v59 = vrot.slane %v15432_v62, %v13304_v63  ;;  %vm14658_vm12 = vcmask 1047559   ;;  %v15433_v56 = vld [vmem:[#allocation122_spill] sm:$0xff]  ;;  %v7017_v14 = vsel %vm6542_vm15, %v7016_v16, %v7012_v61 }
 0xbb5   : > { %v7734_v2 = vsel %vm7733_vm11, %v13573_v31, %v7732_v22  ;;  %v3918_v44 = vadd.f32 %v15433_v56, %v10698_v32  ;;  %v15435_v31 = vld [vmem:[#allocation99_spill] sm:$0xff]  ;;  %v4528_v26 = vmul.f32 %v10074_v19, %v10743_v11  ;;  %v3955_v3 = vadd.f32 %v15438_v20, %v10698_v32  ;;  %v15447_v62 = vld [vmem:[#allocation70_spill] sm:$0xff] }
 0xbb6   : > { %v7736_v41 = vsel %vm14661_vm10, %v6859_v35, %v7734_v2  ;;  %v5312_v17 = vadd.f32 %v15435_v31, %v15434_v37  ;;  %v7096_v52 = vsel %vm6542_vm15, %v7095_v59, %v7091_v18  ;;  %v15436_v35 = vld [vmem:[#allocation97_spill] sm:$0xff]  ;;  %v3947_v21 = vadd.f32 %v15439_v50, %v10698_v32  ;;  %v15445_v18 = vld [vmem:[#allocation127_spill] sm:$0xff]  ;;  %v15449_v56 = vld [vmem:[#allocation58_spill] sm:$0xff] }
 0xbb7   : > { %v7738_v5 = vsel %vm14660_vm13, %v6938_v33, %v7736_v41  ;;  %10075 = vtanh.f32 %v3918_v44  ;;  %v5310_v47 = vadd.f32 %v15437_v28, %v15436_v35  ;;  %v5311_v57 = vadd.f32 %v15441_v38, %v15440_v43  ;;  %v15446_v33 = vld [vmem:[#allocation102_spill] sm:$0xff]  ;;  %v15455_v50 = vld [vmem:[#allocation59_spill] sm:$0xff] }
 0xbb8   : > { %v7740_v8 = vsel %vm14659_vm0, %v7017_v14, %v7738_v5  ;;  %10077 = vtanh.f32 %v3955_v3  ;;  %v5309_v61 = vadd.f32 %v15443_v29, %v15442_v49  ;;  %v3942_v16 = vadd.f32 %v15444_v24, %v10698_v32  ;;  %v15448_v41 = vld [vmem:[#allocation98_spill] sm:$0xff]  ;;  %v15454_v3 = vld [vmem:[#allocation100_spill] sm:$0xff]  ;;  %v15456_v43 = vld [vmem:[#allocation131_spill] sm:$0xff] }
 0xbb9   : > { %v7742_v51 = vsel %vm14658_vm12, %v7096_v52, %v7740_v8  ;;  %6143 = vperm.xlu0 %8966, %v5312_v17   ;;  %10079 = vtanh.f32 %v3947_v21  ;;  %v3934_v2 = vadd.f32 %v15445_v18, %v10698_v32  ;;  %v5316_v59 = vadd.f32 %v15447_v62, %v15446_v33  ;;  %v15450_v52 = vld [vmem:[#allocation132_spill] sm:$0xff]  ;;  %v15452_v19 = vld [vmem:[#allocation90_spill] sm:$0xff]  ;;  %v15458_v49 = vld [vmem:[#allocation153_spill] sm:$0xff] }
 0xbba   : > { %7752 = vst [vmem:[%s13778_s14] sm:$0xff] %v7742_v51  ;;  %10081 = vtanh.f32 %v3942_v16  ;;  %v5314_v44 = vadd.f32 %v15449_v56, %v15448_v41  ;;  %v3971_v8 = vadd.f32 %v15450_v52, %v10698_v32  ;;  %v15451_v51 = vld [vmem:[#allocation133_spill] sm:$0xff]  ;;  %v5313_v21 = vadd.f32 %v15455_v50, %v15454_v3  ;;  %v15460_v24 = vld [vmem:[#allocation106_spill] sm:$0xff]  ;;  %v15461_v16 = vld [vmem:[#allocation76_spill] sm:$0xff] }
 0xbbb   : > { %10083 = vtanh.f32 %v3934_v2  ;;  %v3963_v35 = vadd.f32 %v15451_v51, %v10698_v32  ;;  %v5318_v18 = vadd.f32 %v15461_v16, %v15460_v24  ;;  %v15464_v52 = vld [vmem:[#allocation154_spill] sm:$0xff]  ;;  %v15468_v3 = vld [vmem:[#allocation135_spill] sm:$0xff]  ;;  %vm15544_vm12 = vcmask 720512  }
 0xbbc   : > { %10085 = vtanh.f32 %v3971_v8  ;;  %v15465_v8 = vld [vmem:[#allocation71_spill] sm:$0xff]  ;;  %vm15546_vm0 = vcmask 786112   ;;  %vm15547_vm13 = vcmask 851712  }
 0xbbd   : > { %6137 = vperm.xlu0 %8966, %v5310_v47   ;;  %10087 = vtanh.f32 %v3963_v35  ;;  %v5319_v51 = vadd.f32 %v15465_v8, %v15464_v52 }
 0xbc1   : > { %v10076_v25 = vpop.eup %10075 }
 0xbc2   : > { %v4526_v10 = vmul.f32 %v10076_v25, %v10743_v11  ;;  %v10078_v30 = vpop.eup %10077 }
 0xbc3   : > { %v4535_v55 = vmul.f32 %v10078_v30, %v10743_v11  ;;  %v10080_v48 = vpop.eup %10079 }
 0xbc4   : > { %v4533_v22 = vmul.f32 %v10080_v48, %v10743_v11  ;;  %v10082_v14 = vpop.eup %10081 }
 0xbc5   : > { %v4532_v5 = vmul.f32 %v10082_v14, %v10743_v11  ;;  %v10084_v37 = vpop.eup %10083 }
 0xbc6   : > { %5011 = vadd.xlane.f32.xlu1 %v4528_v26  ;;  %v4530_v17 = vmul.f32 %v10084_v37, %v10743_v11  ;;  %v10086_v47 = vpop.eup %10085  ;;  %v15453_v26 = vld [vmem:[#allocation64_spill] sm:$0xff] }
 0xbc7   : > { %v5315_v25 = vadd.f32 %v15453_v26, %v15452_v19  ;;  %v10088_v20 = vpop.eup %10087  ;;  %v15466_v19 = vld [vmem:[#allocation155_spill] sm:$0xff] }
 0xbc8   : > { %v4537_v30 = vmul.f32 %v10088_v20, %v10743_v11 }
 0xbca   : > { %5007 = vadd.xlane.f32.xlu1 %v4526_v10  ;;  %v4539_v10 = vmul.f32 %v10086_v47, %v10743_v11 }
 0xbdb   : > { %6140 = vperm.xlu1 %8965, %v5311_v57   ;;  %v3958_v57 = vadd.f32 %v15456_v43, %v10698_v32 }
 0xbdc   : > { %5025 = vadd.xlane.f32.xlu0 %v4535_v55  ;;  %v15457_v55 = vld [vmem:[#allocation130_spill] sm:$0xff] }
 0xbdd   : > { %10089 = vtanh.f32 %v3958_v57  ;;  %v3950_v48 = vadd.f32 %v15457_v55, %v10698_v32  ;;  %v15470_v57 = vld [vmem:[#allocation156_spill] sm:$0xff]  ;;  %v15471_v55 = vld [vmem:[#allocation91_spill] sm:$0xff] }
 0xbdf   : > { %6134 = vperm.xlu1 %8965, %v5309_v61   ;;  %v15459_v61 = vld [vmem:[#allocation82_spill] sm:$0xff]  ;;  %10091 = vtanh.f32 %v3950_v48  ;;  %v5324_v48 = vadd.f32 %v15471_v55, %v15470_v57 }
 0xbe0   : > { %5021 = vadd.xlane.f32.xlu0 %v4533_v22  ;;  %v5320_v22 = vadd.f32 %v15459_v61, %v15458_v49  ;;  %v15472_v49 = vld [vmem:[#allocation158_spill] sm:$0xff] }
 0xbe7   : > { %v10090_v2 = vpop.eup %10089 }
 0xbe8   : > { %v4536_v33 = vmul.f32 %v10090_v2, %v10743_v11 }
 0xbf6   : > { %6155 = vperm.xlu0 %8966, %v5316_v59   ;;  %v10092_v59 = vpop.eup %10091 }
 0xbf7   : > { %v4534_v41 = vmul.f32 %v10092_v59, %v10743_v11 }
 0xbfa   : > { %6149 = vperm.xlu0 %8966, %v5314_v44   ;;  %v15462_v44 = vld [vmem:[#allocation136_spill] sm:$0xff] }
 0xbfb   : > { %v3987_v14 = vadd.f32 %v15462_v44, %v10698_v32 }
 0xbfd   : > { %10093 = vtanh.f32 %v3987_v14  ;;  %v15475_v14 = vld [vmem:[#allocation141_spill] sm:$0xff] }
 0xc03   : > { %5019 = vadd.xlane.f32.xlu1 %v4532_v5  ;;  %v15463_v5 = vld [vmem:[#allocation137_spill] sm:$0xff] }
 0xc04   : > { %v3979_v37 = vadd.f32 %v15463_v5, %v10698_v32  ;;  %v3995_v5 = vadd.f32 %v15475_v14, %v10698_v32 }
 0xc06   : > { %10095 = vtanh.f32 %v3979_v37 }
 0xc07   : > { %5015 = vadd.xlane.f32.xlu1 %v4530_v17  ;;  %v10094_v17 = vpop.eup %10093 }
 0xc08   : > { %v4543_v35 = vmul.f32 %v10094_v17, %v10743_v11  ;;  %v15476_v17 = vld [vmem:[#allocation160_spill] sm:$0xff] }
 0xc09   : > { %v5323_v52 = vadd.f32 %v11103_v4, %v15476_v17 }
 0xc10   : > { %v10096_v47 = vpop.eup %10095 }
 0xc11   : > { %v4541_v20 = vmul.f32 %v10096_v47, %v10743_v11  ;;  %v15477_v47 = vld [vmem:[#allocation161_spill] sm:$0xff] }
 0xc18   : > { %6152 = vperm.xlu1 %8965, %v5315_v25   ;;  %v15467_v25 = vld [vmem:[#allocation65_spill] sm:$0xff] }
 0xc19   : > { %5033 = vadd.xlane.f32.xlu0 %v4539_v10  ;;  %v5317_v10 = vadd.f32 %v15467_v25, %v15466_v19  ;;  %v5321_v19 = vadd.f32 %v15384_v34, %v15477_v47 }
 0xc1c   : > { %6146 = vperm.xlu1 %8965, %v5313_v21   ;;  %v3974_v21 = vadd.f32 %v15468_v3, %v10698_v32 }
 0xc1d   : > { %5029 = vadd.xlane.f32.xlu0 %v4537_v30  ;;  %v15469_v30 = vld [vmem:[#allocation134_spill] sm:$0xff] }
 0xc1e   : > { %10097 = vtanh.f32 %v3974_v21  ;;  %v3966_v43 = vadd.f32 %v15469_v30, %v10698_v32  ;;  %v15479_v21 = vld [vmem:[#allocation138_spill] sm:$0xff] }
 0xc1f   : > { %v3982_v30 = vadd.f32 %v15479_v21, %v10698_v32  ;;  %v15492_v21 = vld [vmem:[#allocation104_spill] sm:$0xff] }
 0xc20   : > { %10099 = vtanh.f32 %v3966_v43  ;;  %v15480_v43 = vld [vmem:[#allocation162_spill] sm:$0xff] }
 0xc21   : > { %v5328_v57 = vadd.f32 %v15435_v31, %v15480_v43 }
 0xc33   : > { %6167 = vperm.xlu0 %8966, %v5320_v22   ;;  %v15473_v22 = vld [vmem:[#allocation87_spill] sm:$0xff] }
 0xc34   : > { %v5322_v24 = vadd.f32 %v15473_v22, %v15472_v49 }
 0xc37   : > { %6161 = vperm.xlu0 %8966, %v5318_v18   ;;  %v10098_v18 = vpop.eup %10097 }
 0xc38   : > { %v4540_v2 = vmul.f32 %v10098_v18, %v10743_v11 }
 0xc40   : > { %5027 = vadd.xlane.f32.xlu1 %v4536_v33  ;;  %v10100_v33 = vpop.eup %10099 }
 0xc41   : > { %v4538_v59 = vmul.f32 %v10100_v33, %v10743_v11 }
 0xc44   : > { %5023 = vadd.xlane.f32.xlu1 %v4534_v41  ;;  %v15474_v41 = vld [vmem:[#allocation140_spill] sm:$0xff] }
 0xc45   : > { %v4003_v44 = vadd.f32 %v15474_v41, %v10698_v32  ;;  %v13868_v41 = vpop.permute.xlu1 %6104 }
 0xc46   : > { %15484 = vst [vmem:[#allocation38_spill] sm:$0xff] %v13868_v41 }
 0xc47   : > { %10101 = vtanh.f32 %v4003_v44 }
 0xc48   : > { %10103 = vtanh.f32 %v3995_v5  ;;  %v15486_v5 = vld [vmem:[#allocation9_spill] sm:$0xff] }
 0xc49   : > { %v13875_v17 = vpop.permute.xlu1 %6098 }
 0xc4a   : > { %15487 = vst [vmem:[#allocation147_spill] sm:$0xff] %v13875_v17 }
 0xc4d   : > { %v13881_v47 = vpop.xlane.xlu1 %4995 }
 0xc51   : > { %v10102_v37 = vpop.eup %10101 }
 0xc55   : > { %6164 = vperm.xlu1 %8965, %v5319_v51   ;;  %v4547_v51 = vmul.f32 %v10102_v37, %v10743_v11  ;;  %v4019_v37 = vadd.f32 %v15486_v5, %v10698_v32 }
 0xc56   : > { %5041 = vadd.xlane.f32.xlu0 %v4543_v35  ;;  %v10104_v35 = vpop.eup %10103 }
 0xc59   : > { %6158 = vperm.xlu1 %8965, %v5317_v10   ;;  %v4545_v10 = vmul.f32 %v10104_v35, %v10743_v11 }
 0xc5a   : > { %5037 = vadd.xlane.f32.xlu0 %v4541_v20  ;;  %v15478_v20 = vld [vmem:[#allocation139_spill] sm:$0xff] }
 0xc5b   : > { %v3990_v3 = vadd.f32 %v15478_v20, %v10698_v32 }
 0xc5d   : > { %10105 = vtanh.f32 %v3990_v3 }
 0xc5e   : > { %10107 = vtanh.f32 %v3982_v30  ;;  %v5327_v30 = vadd.f32 %v15441_v38, %v15492_v21  ;;  %v15500_v21 = vld [vmem:[#allocation143_spill] sm:$0xff] }
 0xc5f   : > { %10109 = vtanh.f32 %v4019_v37 }
 0xc67   : > { %v10106_v18 = vpop.eup %10105 }
 0xc68   : > { %v4544_v33 = vmul.f32 %v10106_v18, %v10743_v11  ;;  %v15495_v18 = vld [vmem:[#allocation164_spill] sm:$0xff] }
 0xc70   : > { %6179 = vperm.xlu0 %8966, %v5324_v48   ;;  %v15481_v48 = vld [vmem:[#allocation103_spill] sm:$0xff] }
 0xc71   : > { %v5326_v49 = vadd.f32 %v15437_v28, %v15481_v48 }
 0xc74   : > { %6173 = vperm.xlu0 %8966, %v5322_v24   ;;  %v13863_v24 = vpop.permute.xlu0 %6089 }
 0xc75   : > { %15482 = vst [vmem:[#allocation45_spill] sm:$0xff] %v13863_v24 }
 0xc7d   : > { %5035 = vadd.xlane.f32.xlu1 %v4540_v2  ;;  %v13865_v2 = vpop.xlane.xlu0 %4993 }
 0xc7e   : > { %15483 = vst [vmem:[#allocation34_spill] sm:$0xff] %v13865_v2 }
 0xc81   : > { %5031 = vadd.xlane.f32.xlu1 %v4538_v59  ;;  %v10108_v59 = vpop.eup %10107  ;;  %v13870_v44 = vpop.xlane.xlu0 %4989 }
 0xc82   : > { %15485 = vst [vmem:[#allocation123_spill] sm:$0xff] %v13870_v44  ;;  %v4542_v14 = vmul.f32 %v10108_v59, %v10743_v11  ;;  %v10110_v3 = vpop.eup %10109 }
 0xc83   : > { %v4551_v43 = vmul.f32 %v10110_v3, %v10743_v11 }
 0xc92   : > { %6176 = vperm.xlu1 %8965, %v5323_v52   ;;  %v13877_v52 = vpop.permute.xlu0 %6107 }
 0xc93   : > { %5049 = vadd.xlane.f32.xlu0 %v4547_v51  ;;  %15488 = vst [vmem:[#allocation30_spill] sm:$0xff] %v13877_v52  ;;  %v15489_v51 = vld [vmem:[#allocation7_spill] sm:$0xff]  ;;  %v15514_v52 = vld [vmem:[#allocation145_spill] sm:$0xff] }
 0xc94   : > { %v4011_v35 = vadd.f32 %v15489_v51, %v10698_v32 }
 0xc96   : > { %6170 = vperm.xlu1 %8965, %v5321_v19   ;;  %10111 = vtanh.f32 %v4011_v35  ;;  %v13883_v19 = vpop.permute.xlu0 %6101 }
 0xc97   : > { %5045 = vadd.xlane.f32.xlu0 %v4545_v10  ;;  %15490 = vst [vmem:[#allocation15_spill] sm:$0xff] %v13883_v19  ;;  %v13885_v10 = vpop.xlane.xlu1 %4991 }
 0xc9a   : > { %v13887_v20 = vpop.xlane.xlu0 %5001 }
 0xc9b   : > { %15491 = vst [vmem:[#allocation26_spill] sm:$0xff] %v13887_v20  ;;  %v13892_v48 = vpop.permute.xlu1 %6116  ;;  %v15527_v20 = vld [vmem:[#allocation174_spill] sm:$0xff] }
 0xc9c   : > { %15493 = vst [vmem:[#allocation52_spill] sm:$0xff] %v13892_v48  ;;  %v5334_v44 = vadd.f32 %v15461_v16, %v15527_v20 }
 0xc9f   : > { %v13901_v5 = vpop.permute.xlu1 %6110 }
 0xca0   : > { %15497 = vst [vmem:[#allocation14_spill] sm:$0xff] %v13901_v5  ;;  %v4027_v5 = vadd.f32 %v15514_v52, %v10698_v32  ;;  %v15520_v52 = vld [vmem:[#allocation111_spill] sm:$0xff] }
 0xca3   : > { %v13903_v37 = vpop.xlane.xlu1 %5003 }
 0xca7   : > { %v13909_v3 = vpop.xlane.xlu1 %4999 }
 0xcad   : > { %6191 = vperm.xlu0 %8966, %v5328_v57   ;;  %v10112_v57 = vpop.eup %10111 }
 0xcae   : > { %v4549_v59 = vmul.f32 %v10112_v57, %v10743_v11  ;;  %v13915_v57 = vpop.permute.xlu1 %6128 }
 0xcaf   : > { %15502 = vst [vmem:[#allocation144_spill] sm:$0xff] %v13915_v57 }
 0xcb1   : > { %6185 = vperm.xlu0 %8966, %v5326_v49   ;;  %v13894_v49 = vpop.xlane.xlu0 %4997 }
 0xcb2   : > { %15494 = vst [vmem:[#allocation60_spill] sm:$0xff] %v13894_v49  ;;  %v13923_v60 = vpop.permute.xlu1 %6122 }
 0xcb3   : > { %15506 = vst [vmem:[#allocation42_spill] sm:$0xff] %v13923_v60 }
 0xcb6   : > { %v13929_v57 = vpop.xlane.xlu1 %5011 }
 0xcba   : > { %5043 = vadd.xlane.f32.xlu1 %v4544_v33  ;;  %v5325_v33 = vadd.f32 %v15443_v29, %v15495_v18  ;;  %v15503_v18 = vld [vmem:[#allocation142_spill] sm:$0xff] }
 0xcbe   : > { %5039 = vadd.xlane.f32.xlu1 %v4542_v14  ;;  %v13899_v14 = vpop.permute.xlu0 %6119 }
 0xcbf   : > { %15496 = vst [vmem:[#allocation39_spill] sm:$0xff] %v13899_v14  ;;  %v15507_v14 = vld [vmem:[#allocation168_spill] sm:$0xff] }
 0xcc2   : > { %v13905_v51 = vpop.permute.xlu0 %6113 }
 0xcc3   : > { %15498 = vst [vmem:[#allocation28_spill] sm:$0xff] %v13905_v51 }
 0xcc6   : > { %v13907_v35 = vpop.xlane.xlu0 %5009 }
 0xcc7   : > { %15499 = vst [vmem:[#allocation50_spill] sm:$0xff] %v13907_v35 }
 0xccf   : > { %6188 = vperm.xlu1 %8965, %v5327_v30   ;;  %v4006_v30 = vadd.f32 %v15500_v21, %v10698_v32  ;;  %v5330_v21 = vadd.f32 %v15449_v56, %v15507_v14  ;;  %v15511_v14 = vld [vmem:[#allocation13_spill] sm:$0xff] }
 0xcd0   : > { %5057 = vadd.xlane.f32.xlu0 %v4551_v43  ;;  %v13913_v43 = vpop.xlane.xlu0 %5005  ;;  %v4035_v60 = vadd.f32 %v15511_v14, %v10698_v32  ;;  %v15518_v14 = vld [vmem:[#allocation109_spill] sm:$0xff] }
 0xcd1   : > { %15501 = vst [vmem:[#allocation53_spill] sm:$0xff] %v13913_v43  ;;  %10113 = vtanh.f32 %v4006_v30 }
 0xcd3   : > { %6182 = vperm.xlu1 %8965, %v5325_v33   ;;  %v3998_v33 = vadd.f32 %v15503_v18, %v10698_v32  ;;  %v13933_v18 = vpop.xlane.xlu1 %5007 }
 0xcd4   : > { %5053 = vadd.xlane.f32.xlu0 %v4549_v59  ;;  %v15504_v59 = vld [vmem:[#allocation167_spill] sm:$0xff]  ;;  %v13921_v24 = vpop.permute.xlu0 %6131 }
 0xcd5   : > { %v5332_v9 = vadd.f32 %v15447_v62, %v15504_v59  ;;  %15505 = vst [vmem:[#allocation80_spill] sm:$0xff] %v13921_v24  ;;  %10115 = vtanh.f32 %v3998_v33 }
 0xcd6   : > { %10117 = vtanh.f32 %v4035_v60 }
 0xcd7   : > { %10119 = vtanh.f32 %v4027_v5  ;;  %v5329_v5 = vadd.f32 %v15455_v50, %v15520_v52 }
 0xcd8   : > { %v13927_v48 = vpop.permute.xlu0 %6125 }
 0xcd9   : > { %15508 = vst [vmem:[#allocation67_spill] sm:$0xff] %v13927_v48  ;;  %v13941_v48 = vpop.permute.xlu1 %6140 }
 0xcda   : > { %15512 = vst [vmem:[#allocation55_spill] sm:$0xff] %v13941_v48  ;;  %v5331_v48 = vadd.f32 %v15453_v26, %v15518_v14 }
 0xcdb   : > { %v10114_v30 = vpop.eup %10113 }
 0xcdc   : > { %v13931_v51 = vpop.xlane.xlu0 %5017  ;;  %v4548_v59 = vmul.f32 %v10114_v30, %v10743_v11 }
 0xcdd   : > { %15509 = vst [vmem:[#allocation24_spill] sm:$0xff] %v13931_v51  ;;  %v13947_v41 = vpop.permute.xlu1 %6134 }
 0xcde   : > { %15515 = vst [vmem:[#allocation31_spill] sm:$0xff] %v13947_v41 }
 0xcdf   : > { %v10116_v24 = vpop.eup %10115 }
 0xce0   : > { %v4546_v33 = vmul.f32 %v10116_v24, %v10743_v11  ;;  %v10118_v19 = vpop.eup %10117 }
 0xce1   : > { %v4555_v60 = vmul.f32 %v10118_v19, %v10743_v11 }
 0xcea   : > { %6203 = vperm.xlu0 %8966, %v5332_v9   ;;  %v13936_v9 = vpop.xlane.xlu0 %5013 }
 0xceb   : > { %15510 = vst [vmem:[#allocation32_spill] sm:$0xff] %v13936_v9 }
 0xcee   : > { %6197 = vperm.xlu0 %8966, %v5330_v21   ;;  %v13943_v21 = vpop.permute.xlu0 %6143 }
 0xcef   : > { %15513 = vst [vmem:[#allocation27_spill] sm:$0xff] %v13943_v21  ;;  %v10120_v21 = vpop.eup %10119 }
 0xcf2   : > { %v13949_v30 = vpop.permute.xlu0 %6137 }
 0xcf3   : > { %15516 = vst [vmem:[#allocation35_spill] sm:$0xff] %v13949_v30  ;;  %v4553_v30 = vmul.f32 %v10120_v21, %v10743_v11  ;;  %v15525_v21 = vld [vmem:[#allocation8_spill] sm:$0xff] }
 0xcf6   : > { %v13953_v24 = vpop.xlane.xlu0 %5025 }
 0xcf7   : > { %5051 = vadd.xlane.f32.xlu1 %v4548_v59  ;;  %v13951_v59 = vpop.xlane.xlu1 %5019  ;;  %15517 = vst [vmem:[#allocation44_spill] sm:$0xff] %v13953_v24 }
 0xcfa   : > { %v13960_v17 = vpop.xlane.xlu0 %5021 }
 0xcfb   : > { %5047 = vadd.xlane.f32.xlu1 %v4546_v33  ;;  %v13957_v33 = vpop.xlane.xlu1 %5015  ;;  %15519 = vst [vmem:[#allocation124_spill] sm:$0xff] %v13960_v17 }
 0xcfe   : > { %v6156_v41 = vpop.permute.xlu0 %6155 }
 0xcff   : > { %v6153_v24 = vpop.permute.xlu1 %6152 }
 0xd02   : > { %v6150_v9 = vpop.permute.xlu0 %6149 }
 0xd03   : > { %v6147_v14 = vpop.permute.xlu1 %6146 }
 0xd06   : > { %v13965_v51 = vpop.xlane.xlu0 %5033 }
 0xd07   : > { %15521 = vst [vmem:[#allocation36_spill] sm:$0xff] %v13965_v51  ;;  %v13967_v43 = vpop.xlane.xlu1 %5027 }
 0xd0a   : > { %v13969_v19 = vpop.xlane.xlu0 %5029 }
 0xd0b   : > { %15522 = vst [vmem:[#allocation56_spill] sm:$0xff] %v13969_v19  ;;  %v13973_v17 = vpop.xlane.xlu1 %5023 }
 0xd0c   : > { %6200 = vperm.xlu1 %8965, %v5331_v48   ;;  %v15523_v48 = vld [vmem:[#allocation10_spill] sm:$0xff]  ;;  %15524 = vst [vmem:[#allocation125_spill] sm:$0xff] %v13973_v17 }
 0xd0d   : > { %5065 = vadd.xlane.f32.xlu0 %v4555_v60  ;;  %v4022_v60 = vadd.f32 %v15523_v48, %v10698_v32  ;;  %v15528_v48 = vld [vmem:[#allocation107_spill] sm:$0xff] }
 0xd0e   : > { %v13975_v52 = vpop.permute.xlu0 %6167  ;;  %v5340_v6 = vadd.f32 %v15471_v55, %v15528_v48 }
 0xd0f   : > { %10121 = vtanh.f32 %v4022_v60  ;;  %v6165_v49 = vpop.permute.xlu1 %6164 }
 0xd10   : > { %6194 = vperm.xlu1 %8965, %v5329_v5   ;;  %v4014_v5 = vadd.f32 %v15525_v21, %v10698_v32  ;;  %v15530_v21 = vld [vmem:[#allocation179_spill] sm:$0xff] }
 0xd11   : > { %5061 = vadd.xlane.f32.xlu0 %v4553_v30  ;;  %v15526_v30 = vld [vmem:[#allocation172_spill] sm:$0xff]  ;;  %v5338_v51 = vadd.f32 %v15473_v22, %v15530_v21 }
 0xd12   : > { %v5336_v35 = vadd.f32 %v15459_v61, %v15526_v30  ;;  %10123 = vtanh.f32 %v4014_v5  ;;  %v6162_v2 = vpop.permute.xlu0 %6161 }
 0xd13   : > { %v6159_v19 = vpop.permute.xlu1 %6158 }
 0xd16   : > { %v13985_v50 = vpop.xlane.xlu0 %5041 }
 0xd17   : > { %15529 = vst [vmem:[#allocation37_spill] sm:$0xff] %v13985_v50  ;;  %v13989_v30 = vpop.xlane.xlu1 %5035  ;;  %v7258_v50 = vrot.slane %v6147_v14, %v13229_v40 }
 0xd18   : > { %15531 = vst [vmem:[#allocation46_spill] sm:$0xff] %v13989_v30  ;;  %v15535_v30 = vld [vmem:[#allocation183_spill] sm:$0xff] }
 0xd19   : > { %v10122_v60 = vpop.eup %10121 }
 0xd1a   : > { %v13992_v20 = vpop.xlane.xlu0 %5037 }
 0xd1b   : > { %15532 = vst [vmem:[#allocation54_spill] sm:$0xff] %v13992_v20 }
 0xd1c   : > { %v10124_v5 = vpop.eup %10123 }
 0xd1d   : > { %v4550_v26 = vmul.f32 %v10124_v5, %v10743_v11 }
 0xd1e   : > { %v6180_v21 = vpop.permute.xlu0 %6179 }
 0xd27   : > { %6215 = vperm.xlu0 %8966, %v5336_v35   ;;  %v4552_v35 = vmul.f32 %v10122_v60, %v10743_v11  ;;  %v5342_v60 = vadd.f32 %v15437_v28, %v15535_v30  ;;  %v15537_v30 = vld [vmem:[#allocation189_spill] sm:$0xff] }
 0xd2b   : > { %6209 = vperm.xlu0 %8966, %v5334_v44   ;;  %v15533_v44 = vld [vmem:[#allocation182_spill] sm:$0xff] }
 0xd2c   : > { %v5344_v48 = vadd.f32 %v15435_v31, %v15533_v44  ;;  %v15536_v44 = vld [vmem:[#allocation187_spill] sm:$0xff] }
 0xd2d   : > { %v5348_v5 = vadd.f32 %v15447_v62, %v15536_v44 }
 0xd2f   : > { %6227 = vperm.xlu0 %8966, %v5340_v6   ;;  %v13998_v6 = vpop.xlane.xlu1 %5031 }
 0xd30   : > { %15534 = vst [vmem:[#allocation47_spill] sm:$0xff] %v13998_v6  ;;  %v6174_v6 = vpop.permute.xlu0 %6173 }
 0xd33   : > { %6221 = vperm.xlu0 %8966, %v5338_v51   ;;  %v7262_v51 = vrot.slane %v6150_v9, %v13222_v45  ;;  %v6177_v17 = vpop.permute.xlu1 %6176  ;;  %v5346_v9 = vadd.f32 %v15449_v56, %v15537_v30 }
 0xd34   : > { %5059 = vadd.xlane.f32.xlu1 %v4552_v35  ;;  %v7267_v35 = vrot.slane %v6153_v24, %v13237_v39  ;;  %v14014_v24 = vpop.xlane.xlu0 %5049 }
 0xd35   : > { %v7263_v20 = vsel %vm6444_vm1, %v7262_v51, %v7258_v50  ;;  %v7282_v51 = vrot.slane %v6162_v2, %v13258_v13 }
 0xd36   : > { %v7268_v14 = vsel %vm6451_vm2, %v7267_v35, %v7263_v20  ;;  %v15538_v20 = vld [vmem:[#allocation195_spill] sm:$0xff] }
 0xd37   : > { %6239 = vperm.xlu0 %8966, %v5344_v48   ;;  %v7277_v48 = vrot.slane %v6159_v19, %v13253_v0  ;;  %v6171_v44 = vpop.permute.xlu1 %6170  ;;  %v5352_v19 = vadd.f32 %v15459_v61, %v15538_v20 }
 0xd38   : > { %5055 = vadd.xlane.f32.xlu1 %v4550_v26  ;;  %v7272_v26 = vrot.slane %v6156_v41, %v13249_v42  ;;  %v7287_v41 = vrot.slane %v6165_v49, %v13246_v36  ;;  %v14027_v2 = vpop.xlane.xlu0 %5045  ;;  %v15541_v49 = vld [vmem:[#allocation176_spill] sm:$0xff] }
 0xd3a   : > { %v7273_v50 = vsel %vm6458_vm3, %v7272_v26, %v7268_v14  ;;  %v15540_v26 = vld [vmem:[#allocation196_spill] sm:$0xff] }
 0xd3b   : > { %6233 = vperm.xlu0 %8966, %v5342_v60   ;;  %v7278_v60 = vsel %vm6465_vm4, %v7277_v48, %v7273_v50  ;;  %v7297_v48 = vrot.slane %v6171_v44, %v13278_v7  ;;  %v7292_v50 = vrot.slane %v13975_v52, %v13272_v15 }
 0xd3c   : > { %v7283_v35 = vsel %vm6472_vm5, %v7282_v51, %v7278_v60  ;;  %v5333_v60 = vadd.f32 %v15467_v25, %v15541_v49  ;;  %v6192_v44 = vpop.permute.xlu0 %6191  ;;  %v15543_v49 = vld [vmem:[#allocation202_spill] sm:$0xff] }
 0xd3d   : > { %v7288_v14 = vsel %vm6479_vm6, %v7287_v41, %v7283_v35  ;;  %v15542_v35 = vld [vmem:[#allocation118_spill] sm:$0xff] }
 0xd3e   : > { %v7293_v51 = vsel %vm6486_vm7, %v7292_v50, %v7288_v14  ;;  %v5356_v41 = vadd.f32 %v15471_v55, %v15542_v35  ;;  %v5354_v14 = vadd.f32 %v15473_v22, %v15543_v49  ;;  %v7332_v49 = vrot.slane %v6192_v44, %v13304_v63  ;;  %v15552_v44 = vld [vmem:[#allocation148_spill] sm:$0xff] }
 0xd3f   : > { %6251 = vperm.xlu0 %8966, %v5348_v5   ;;  %v15539_v5 = vld [vmem:[#allocation175_spill] sm:$0xff] }
 0xd40   : > { %v5335_v30 = vadd.f32 %v15465_v8, %v15539_v5  ;;  %v7302_v5 = vrot.slane %v6174_v6, %v13287_v23  ;;  %v6186_v50 = vpop.permute.xlu0 %6185  ;;  %v15545_v6 = vld [vmem:[#allocation68_spill] sm:$0xff] }
 0xd43   : > { %6245 = vperm.xlu0 %8966, %v5346_v9   ;;  %v5350_v9 = vadd.f32 %v15461_v16, %v15540_v26  ;;  %v7307_v26 = vrot.slane %v6177_v17, %v13275_v54 }
 0xd47   : > { %v14023_v0 = vpop.xlane.xlu1 %5043  ;;  %6263 = vperm.xlu0 %8966, %v5352_v19   ;;  %v7298_v19 = vsel %vm6493_vm8, %v7297_v48, %v7293_v51  ;;  %v7312_v48 = vrot.slane %v6180_v21, %v13284_v27 }
 0xd48   : > { %v7303_v52 = vsel %vm6500_vm9, %v7302_v5, %v7298_v19  ;;  %v7322_v19 = vrot.slane %v6186_v50, %v13317_v58  ;;  %v15550_v50 = vld [vmem:[#allocation116_spill] sm:$0xff] }
 0xd49   : > { %6212 = vperm.xlu1 %8965, %v5335_v30  }
 0xd4b   : > { %v14036_v20 = vpop.xlane.xlu1 %5039  ;;  %6257 = vperm.xlu0 %8966, %v5350_v9   ;;  %v7308_v9 = vsel %vm15544_vm12, %v7307_v26, %v7303_v52  ;;  %vm15548_vm12 = vcmask 917312   ;;  %v15549_v26 = vld [vmem:[#allocation119_spill] sm:$0xff] }
 0xd4d   : > { %6206 = vperm.xlu1 %8965, %v5333_v60   ;;  %v5360_v60 = vadd.f32 %v15435_v31, %v15545_v6  ;;  %v15553_v6 = vld [vmem:[#allocation12_spill] sm:$0xff] }
 0xd4f   : > { %v6189_v30 = vpop.permute.xlu1 %6188  ;;  %6275 = vperm.xlu0 %8966, %v5356_v41   ;;  %v7313_v41 = vsel %vm15546_vm0, %v7312_v48, %v7308_v9  ;;  %v5364_v9 = vadd.f32 %v15447_v62, %v15550_v50 }
 0xd50   : > { %v7327_v17 = vrot.slane %v6189_v30, %v13290_v12  ;;  %v15551_v30 = vld [vmem:[#allocation11_spill] sm:$0xff] }
 0xd51   : > { %v4038_v48 = vadd.f32 %v15551_v30, %v10698_v32 }
 0xd53   : > { %v6183_v51 = vpop.permute.xlu1 %6182  ;;  %6269 = vperm.xlu0 %8966, %v5354_v14   ;;  %v5358_v14 = vadd.f32 %v15437_v28, %v15549_v26  ;;  %10125 = vtanh.f32 %v4038_v48 }
 0xd54   : > { %v7317_v35 = vrot.slane %v6183_v51, %v13294_v53 }
 0xd56   : > { %v7318_v5 = vsel %vm15547_vm13, %v7317_v35, %v7313_v41  ;;  %v5362_v35 = vadd.f32 %v15449_v56, %v15552_v44  ;;  %v5366_v41 = vadd.f32 %v15461_v16, %v13595_v1  ;;  %v5374_v1 = vadd.f32 %v15437_v28, %v13909_v3  ;;  %v15556_v44 = vld [vmem:[#allocation114_spill] sm:$0xff] }
 0xd57   : > { %v7323_v52 = vsel %vm15548_vm12, %v7322_v19, %v7318_v5  ;;  %6287 = vperm.xlu0 %8966, %v5360_v60   ;;  %v4030_v60 = vadd.f32 %v15553_v6, %v10698_v32  ;;  %v5368_v19 = vadd.f32 %v15459_v61, %v13561_v46  ;;  %v5372_v5 = vadd.f32 %v15471_v55, %v13881_v47 }
 0xd58   : > { %v7328_v21 = vsel %vm6535_vm14, %v7327_v17, %v7323_v52  ;;  %v5370_v32 = vadd.f32 %v15473_v22, %v13885_v10  ;;  %v5380_v47 = vadd.f32 %v15447_v62, %v13929_v57  ;;  %v5378_v10 = vadd.f32 %v15449_v56, %v13933_v18 }
 0xd59   : > { %v14061_v51 = vsel %vm6542_vm15, %v7332_v49, %v7328_v21  ;;  %10127 = vtanh.f32 %v4030_v60  ;;  %v5376_v21 = vadd.f32 %v15435_v31, %v13903_v37  ;;  %v5384_v3 = vadd.f32 %v15459_v61, %v13951_v59 }
 0xd5a   : > { %v5382_v18 = vadd.f32 %v15461_v16, %v13957_v33  ;;  %v5388_v59 = vadd.f32 %v15471_v55, %v13967_v43  ;;  %vm15612_vm13 = vcmask 720512   ;;  %vm15618_vm12 = vcmask 786112  }
 0xd5b   : > { %6281 = vperm.xlu0 %8966, %v5358_v14   ;;  %vm15615_vm0 = vmmov %vm15612_vm13 }
 0xd5c   : > { %vm15620_vm10 = vmmov %vm15618_vm12 }
 0xd5d   : > { %v10126_v17 = vpop.eup %10125  ;;  %v14087_v26 = vpop.xlane.xlu0 %5057 }
 0xd5e   : > { %v4556_v49 = vmul.f32 %v10126_v17, %v10743_v11 }
 0xd5f   : > { %6299 = vperm.xlu0 %8966, %v5364_v9   ;;  %v15555_v9 = vld [vmem:[#allocation180_spill] sm:$0xff] }
 0xd60   : > { %v5337_v57 = vadd.f32 %v15384_v34, %v15555_v9  ;;  %v15562_v9 = vld [vmem:[#allocation190_spill] sm:$0xff] }
 0xd61   : > { %v5054_v37 = vpop.xlane.xlu0 %5053 }
 0xd63   : > { %6293 = vperm.xlu0 %8966, %v5362_v35   ;;  %v10128_v52 = vpop.eup %10127  ;;  %v5343_v35 = vadd.f32 %v15441_v38, %v15556_v44 }
 0xd64   : > { %v4554_v46 = vmul.f32 %v10128_v52, %v10743_v11  ;;  %v15554_v11 = vld [vmem:[#allocation108_spill] sm:$0xff] }
 0xd65   : > { %v5339_v14 = vadd.f32 %v11103_v4, %v15554_v11  ;;  %v15561_v11 = vld [vmem:[#allocation36_spill] sm:$0xff] }
 0xd67   : > { %6311 = vperm.xlu0 %8966, %v5368_v19   ;;  %v15557_v19 = vld [vmem:[#allocation115_spill] sm:$0xff] }
 0xd69   : > { %v6204_v30 = vpop.permute.xlu0 %6203 }
 0xd6b   : > { %6305 = vperm.xlu0 %8966, %v5366_v41   ;;  %v5341_v41 = vadd.f32 %v15443_v29, %v15557_v19  ;;  %v15567_v19 = vld [vmem:[#allocation113_spill] sm:$0xff] }
 0xd6d   : > { %v6198_v60 = vpop.permute.xlu0 %6197 }
 0xd6e   : > { %v7341_v33 = vrot.slane %v6198_v60, %v13222_v45 }
 0xd6f   : > { %6323 = vperm.xlu0 %8966, %v5372_v5   ;;  %v15558_v5 = vld [vmem:[#allocation125_spill] sm:$0xff] }
 0xd71   : > { %5067 = vadd.xlane.f32.xlu1 %v4556_v49  ;;  %v5386_v49 = vadd.f32 %v15473_v22, %v15558_v5 }
 0xd73   : > { %6317 = vperm.xlu0 %8966, %v5370_v32  }
 0xd75   : > { %5063 = vadd.xlane.f32.xlu1 %v4554_v46  ;;  %v7351_v46 = vrot.slane %v6204_v30, %v13249_v42  ;;  %v15564_v30 = vld [vmem:[#allocation56_spill] sm:$0xff] }
 0xd76   : > { %v5389_v44 = vadd.f32 %v15443_v29, %v15564_v30  ;;  %v15573_v30 = vld [vmem:[#allocation66_spill] sm:$0xff] }
 0xd77   : > { %6335 = vperm.xlu0 %8966, %v5376_v21   ;;  %v15559_v21 = vld [vmem:[#allocation188_spill] sm:$0xff] }
 0xd7b   : > { %6329 = vperm.xlu0 %8966, %v5374_v1   ;;  %v15560_v1 = vld [vmem:[#allocation64_spill] sm:$0xff] }
 0xd7f   : > { %6347 = vperm.xlu0 %8966, %v5380_v47   ;;  %v5347_v47 = vadd.f32 %v15560_v1, %v15559_v21 }
 0xd83   : > { %6341 = vperm.xlu0 %8966, %v5378_v10  }
 0xd84   : > { %v14093_v50 = vpop.xlane.xlu1 %5051 }
 0xd86   : > { %6224 = vperm.xlu1 %8965, %v5339_v14   ;;  %v5391_v14 = vadd.f32 %v15441_v38, %v15561_v11  ;;  %v15572_v11 = vld [vmem:[#allocation5_spill] sm:$0xff] }
 0xd87   : > { %6359 = vperm.xlu0 %8966, %v5384_v3  }
 0xd88   : > { %v14099_v48 = vpop.xlane.xlu1 %5047 }
 0xd8a   : > { %6218 = vperm.xlu1 %8965, %v5337_v57   ;;  %v15563_v57 = vld [vmem:[#allocation59_spill] sm:$0xff] }
 0xd8b   : > { %6353 = vperm.xlu0 %8966, %v5382_v18   ;;  %v5345_v18 = vadd.f32 %v15563_v57, %v15562_v9  ;;  %v5397_v9 = vadd.f32 %v15467_v25, %v14027_v2  ;;  %v15576_v2 = vld [vmem:[#allocation96_spill] sm:$0xff] }
 0xd8c   : > { %v6201_v6 = vpop.permute.xlu1 %6200 }
 0xd8d   : > { %v7346_v32 = vrot.slane %v6201_v6, %v13237_v39 }
 0xd8e   : > { %6236 = vperm.xlu1 %8965, %v5343_v35   ;;  %v15565_v35 = vld [vmem:[#allocation112_spill] sm:$0xff] }
 0xd8f   : > { %6371 = vperm.xlu0 %8966, %v5388_v59   ;;  %v5351_v6 = vadd.f32 %v15465_v8, %v15565_v35  ;;  %v15566_v59 = vld [vmem:[#allocation47_spill] sm:$0xff]  ;;  %v5401_v35 = vadd.f32 %v15384_v34, %v5054_v37 }
 0xd90   : > { %v6195_v17 = vpop.permute.xlu1 %6194  ;;  %v5390_v60 = vadd.f32 %v15437_v28, %v15566_v59 }
 0xd91   : > { %v7337_v52 = vrot.slane %v6195_v17, %v13229_v40  ;;  %v15568_v17 = vld [vmem:[#allocation37_spill] sm:$0xff] }
 0xd92   : > { %6230 = vperm.xlu1 %8965, %v5341_v41   ;;  %v5349_v41 = vadd.f32 %v15467_v25, %v15567_v19  ;;  %v5395_v5 = vadd.f32 %v15560_v1, %v15568_v17 }
 0xd93   : > { %v7342_v43 = vsel %vm6444_vm1, %v7341_v33, %v7337_v52  ;;  %6365 = vperm.xlu0 %8966, %v5386_v49   ;;  %v15569_v49 = vld [vmem:[#allocation201_spill] sm:$0xff] }
 0xd94   : > { %v7347_v10 = vsel %vm6451_vm2, %v7346_v32, %v7342_v43  ;;  %v5355_v33 = vadd.f32 %v11103_v4, %v15569_v49  ;;  %v15570_v32 = vld [vmem:[#allocation54_spill] sm:$0xff]  ;;  %v15571_v43 = vld [vmem:[#allocation120_spill] sm:$0xff] }
 0xd95   : > { %v14122_v3 = vsel %vm6458_vm3, %v7351_v46, %v7347_v10  ;;  %v5393_v46 = vadd.f32 %v15563_v57, %v15570_v32  ;;  %v5353_v21 = vadd.f32 %v15384_v34, %v15571_v43  ;;  %v15578_v49 = vld [vmem:[#allocation40_spill] sm:$0xff]  ;;  %v15579_v43 = vld [vmem:[#allocation34_spill] sm:$0xff] }
 0xd96   : > { %6248 = vperm.xlu1 %8965, %v5347_v47   ;;  %v5399_v47 = vadd.f32 %v15465_v8, %v14014_v24  ;;  %v15574_v24 = vld [vmem:[#allocation18_spill] sm:$0xff] }
 0xd97   : > { %6380 = vperm.xlu0 %8966, %v5391_v14   ;;  %v5359_v14 = vadd.f32 %v15441_v38, %v15572_v11 }
 0xd9a   : > { %6242 = vperm.xlu1 %8965, %v5345_v18   ;;  %v14138_v52 = vpop.xlane.xlu0 %5065 }
 0xd9b   : > { %6374 = vperm.xlu0 %8966, %v5389_v44   ;;  %v5357_v44 = vadd.f32 %v15443_v29, %v15573_v30 }
 0xd9e   : > { %6260 = vperm.xlu1 %8965, %v5351_v6   ;;  %v14146_v10 = vpop.xlane.xlu0 %5061  ;;  %v5363_v6 = vadd.f32 %v15560_v1, %v15574_v24 }
 0xd9f   : > { %6377 = vperm.xlu0 %8966, %v5390_v60   ;;  %v15575_v60 = vld [vmem:[#allocation46_spill] sm:$0xff] }
 0xda0   : > { %v5392_v19 = vadd.f32 %v15435_v31, %v15575_v60  ;;  %v15582_v60 = vld [vmem:[#allocation207_spill] sm:$0xff] }
 0xda2   : > { %6254 = vperm.xlu1 %8965, %v5349_v41   ;;  %v5361_v41 = vadd.f32 %v15563_v57, %v15576_v2 }
 0xda3   : > { %6392 = vperm.xlu0 %8966, %v5395_v5   ;;  %v15577_v5 = vld [vmem:[#allocation117_spill] sm:$0xff] }
 0xda4   : > { %v5367_v37 = vadd.f32 %v15465_v8, %v15577_v5 }
 0xda6   : > { %6272 = vperm.xlu1 %8965, %v5355_v33   ;;  %v6216_v18 = vpop.permute.xlu0 %6215  ;;  %v5365_v33 = vadd.f32 %v15467_v25, %v15578_v49 }
 0xda7   : > { %6386 = vperm.xlu0 %8966, %v5393_v46  }
 0xdaa   : > { %6266 = vperm.xlu1 %8965, %v5353_v21   ;;  %v6210_v59 = vpop.permute.xlu0 %6209  ;;  %v5371_v21 = vadd.f32 %v11103_v4, %v15579_v43 }
 0xdab   : > { %6404 = vperm.xlu0 %8966, %v5399_v47   ;;  %v7361_v2 = vrot.slane %v6210_v59, %v13258_v13  ;;  %v15584_v59 = vld [vmem:[#allocation50_spill] sm:$0xff] }
 0xdae   : > { %6284 = vperm.xlu1 %8965, %v5359_v14   ;;  %v14161_v17 = vpop.permute.xlu0 %6227  ;;  %v15580_v14 = vld [vmem:[#allocation123_spill] sm:$0xff] }
 0xdaf   : > { %6398 = vperm.xlu0 %8966, %v5397_v9   ;;  %v5369_v9 = vadd.f32 %v15384_v34, %v15580_v14 }
 0xdb2   : > { %6278 = vperm.xlu1 %8965, %v5357_v44   ;;  %v14167_v32 = vpop.permute.xlu0 %6221  ;;  %v15581_v44 = vld [vmem:[#allocation26_spill] sm:$0xff] }
 0xdb3   : > { %6410 = vperm.xlu0 %8966, %v5401_v35   ;;  %v5375_v35 = vadd.f32 %v15441_v38, %v15581_v44  ;;  %v5379_v44 = vadd.f32 %v15560_v1, %v15584_v59 }
 0xdb6   : > { %6296 = vperm.xlu1 %8965, %v5363_v6   ;;  %v14175_v11 = vpop.permute.xlu0 %6239 }
 0xdb7   : > { %6383 = vperm.xlu0 %8966, %v5392_v19  }
 0xdba   : > { %6290 = vperm.xlu1 %8965, %v5361_v41   ;;  %v14181_v24 = vpop.permute.xlu0 %6233  ;;  %v15583_v41 = vld [vmem:[#allocation60_spill] sm:$0xff] }
 0xdbb   : > { %v5373_v5 = vadd.f32 %v15443_v29, %v15583_v41 }
 0xdbe   : > { %6308 = vperm.xlu1 %8965, %v5367_v37  }
 0xdc1   : > { %v14169_v46 = vpop.xlane.xlu1 %5059 }
 0xdc2   : > { %6302 = vperm.xlu1 %8965, %v5365_v33   ;;  %v7371_v33 = vrot.slane %v6216_v18, %v13272_v15  ;;  %v15586_v18 = vld [vmem:[#allocation24_spill] sm:$0xff] }
 0xdc5   : > { %v14173_v47 = vpop.xlane.xlu1 %5055 }
 0xdc6   : > { %6320 = vperm.xlu1 %8965, %v5371_v21   ;;  %v14192_v21 = vpop.permute.xlu0 %6251 }
 0xdc9   : > { %v6213_v30 = vpop.permute.xlu1 %6212 }
 0xdca   : > { %6314 = vperm.xlu1 %8965, %v5369_v9   ;;  %v7366_v37 = vrot.slane %v6213_v30, %v13246_v36  ;;  %v15585_v30 = vld [vmem:[#allocation53_spill] sm:$0xff] }
 0xdcd   : > { %v6207_v6 = vpop.permute.xlu1 %6206 }
 0xdce   : > { %v7356_v19 = vrot.slane %v6207_v6, %v15582_v60  ;;  %6332 = vperm.xlu1 %8965, %v5375_v35   ;;  %v5377_v35 = vadd.f32 %v15563_v57, %v15585_v30  ;;  %v5383_v6 = vadd.f32 %v15465_v8, %v15586_v18  ;;  %v15589_v57 = vld [vmem:[#allocation124_spill] sm:$0xff]  ;;  %v15590_v8 = vld [vmem:[#allocation147_spill] sm:$0xff] }
 0xdd0   : > { %v7357_v49 = vsel %vm6465_vm4, %v7356_v19, %v14122_v3  ;;  %v14202_v3 = vpop.permute.xlu0 %6245 }
 0xdd1   : > { %v7362_v43 = vsel %vm6472_vm5, %v7361_v2, %v7357_v49  ;;  %v15587_v2 = vld [vmem:[#allocation32_spill] sm:$0xff]  ;;  %v5385_v49 = vadd.f32 %v15384_v34, %v15589_v57 }
 0xdd2   : > { %6326 = vperm.xlu1 %8965, %v5373_v5   ;;  %v7367_v14 = vsel %vm6479_vm6, %v7366_v37, %v7362_v43  ;;  %v5381_v41 = vadd.f32 %v15467_v25, %v15587_v2  ;;  %v15588_v5 = vld [vmem:[#allocation44_spill] sm:$0xff]  ;;  %v7179_v43 = vrot.slane %v15590_v8, %v13229_v40 }
 0xdd3   : > { %v14196_v9 = vsel %vm6486_vm7, %v7371_v33, %v7367_v14  ;;  %v5387_v1 = vadd.f32 %v11103_v4, %v15588_v5  ;;  %v5396_v14 = vadd.f32 %v15447_v62, %v14023_v0  ;;  %v15591_v25 = vld [vmem:[#allocation200_spill] sm:$0xff]  ;;  %v15595_v5 = vld [vmem:[#allocation198_spill] sm:$0xff] }
 0xdd4   : > { %v14206_v19 = vpop.permute.xlu0 %6263  ;;  %v7100_v59 = vrot.slane %v15591_v25, %v13229_v40  ;;  %v15598_v25 = vld [vmem:[#allocation206_spill] sm:$0xff] }
 0xdd6   : > { %6344 = vperm.xlu1 %8965, %v5379_v44   ;;  %v15592_v44 = vld [vmem:[#allocation15_spill] sm:$0xff] }
 0xdd7   : > { %v7183_v30 = vrot.slane %v15592_v44, %v13222_v45  ;;  %v15599_v44 = vld [vmem:[#allocation203_spill] sm:$0xff] }
 0xdd8   : > { %v14212_v37 = vpop.permute.xlu0 %6257 }
 0xdd9   : > { %v7184_v34 = vsel %vm6444_vm1, %v7183_v30, %v7179_v43  ;;  %v15597_v43 = vld [vmem:[#allocation30_spill] sm:$0xff]  ;;  %v7114_v30 = vrot.slane %v15599_v44, %v13249_v42 }
 0xdda   : > { %6338 = vperm.xlu1 %8965, %v5377_v35   ;;  %v15593_v35 = vld [vmem:[#allocation205_spill] sm:$0xff] }
 0xddb   : > { %v7104_v18 = vrot.slane %v15593_v35, %v13222_v45 }
 0xddc   : > { %v14216_v33 = vpop.permute.xlu0 %6275 }
 0xddd   : > { %v7105_v62 = vsel %vm6444_vm1, %v7104_v18, %v7100_v59  ;;  %v7119_v59 = vrot.slane %v15598_v25, %v15582_v60 }
 0xdde   : > { %6356 = vperm.xlu1 %8965, %v5383_v6   ;;  %v5394_v6 = vadd.f32 %v15449_v56, %v14036_v20  ;;  %v5400_v56 = vadd.f32 %v15459_v61, %v14093_v50  ;;  %v5398_v50 = vadd.f32 %v15461_v16, %v14099_v48  ;;  %v15603_v16 = vld [vmem:[#allocation204_spill] sm:$0xff] }
 0xddf   : > { %v7129_v48 = vrot.slane %v15603_v16, %v13246_v36 }
 0xde0   : > { %v14231_v2 = vpop.permute.xlu0 %6269 }
 0xde2   : > { %6350 = vperm.xlu1 %8965, %v5381_v41   ;;  %v15594_v41 = vld [vmem:[#allocation38_spill] sm:$0xff] }
 0xde3   : > { %v7188_v0 = vrot.slane %v15594_v41, %v13237_v39  ;;  %v15600_v41 = vld [vmem:[#allocation28_spill] sm:$0xff] }
 0xde4   : > { %v14251_v18 = vpop.permute.xlu0 %6287  ;;  %v7203_v61 = vrot.slane %v15600_v41, %v13258_v13 }
 0xde5   : > { %v7189_v57 = vsel %vm6451_vm2, %v7188_v0, %v7184_v34 }
 0xde6   : > { %6368 = vperm.xlu1 %8965, %v5387_v1   ;;  %v7109_v1 = vrot.slane %v15595_v5, %v13237_v39 }
 0xde8   : > { %v7110_v20 = vsel %vm6451_vm2, %v7109_v1, %v7105_v62  ;;  %v15601_v62 = vld [vmem:[#allocation49_spill] sm:$0xff] }
 0xde9   : > { %v7124_v5 = vrot.slane %v15601_v62, %v13258_v13 }
 0xdea   : > { %6362 = vperm.xlu1 %8965, %v5385_v49   ;;  %v15596_v49 = vld [vmem:[#allocation14_spill] sm:$0xff] }
 0xdeb   : > { %v7198_v8 = vrot.slane %v15596_v49, %v15582_v60 }
 0xdee   : > { %6395 = vperm.xlu1 %8965, %v5396_v14   ;;  %v7193_v14 = vrot.slane %v15597_v43, %v13249_v42  ;;  %v5403_v43 = vadd.f32 %v11103_v4, %v14087_v26 }
 0xdf0   : > { %v7194_v35 = vsel %vm6458_vm3, %v7193_v14, %v7189_v57  ;;  %v15602_v57 = vld [vmem:[#allocation52_spill] sm:$0xff]  ;;  %v14268_v14 = vpop.permute.xlu0 %6281 }
 0xdf1   : > { %v7199_v34 = vsel %vm6465_vm4, %v7198_v8, %v7194_v35  ;;  %v7208_v49 = vrot.slane %v15602_v57, %v13246_v36 }
 0xdf2   : > { %6389 = vperm.xlu1 %8965, %v5394_v6   ;;  %v7115_v6 = vsel %vm6458_vm3, %v7114_v30, %v7110_v20  ;;  %v7204_v1 = vsel %vm6472_vm5, %v7203_v61, %v7199_v34  ;;  %v15604_v20 = vld [vmem:[#allocation42_spill] sm:$0xff] }
 0xdf3   : > { %v7120_v0 = vsel %vm6465_vm4, %v7119_v59, %v7115_v6  ;;  %v7218_v25 = vrot.slane %v15604_v20, %v13278_v7  ;;  %v15605_v59 = vld [vmem:[#allocation39_spill] sm:$0xff]  ;;  %v15606_v34 = vld [vmem:[#allocation110_spill] sm:$0xff] }
 0xdf4   : > { %v7125_v8 = vsel %vm6472_vm5, %v7124_v5, %v7120_v0  ;;  %v7213_v44 = vrot.slane %v15605_v59, %v13272_v15  ;;  %v7139_v4 = vrot.slane %v15606_v34, %v13278_v7  ;;  %v15607_v6 = vld [vmem:[#allocation43_spill] sm:$0xff]  ;;  %v14290_v57 = vpop.permute.xlu0 %6299  ;;  %v15614_v34 = vld [vmem:[#allocation80_spill] sm:$0xff] }
 0xdf5   : > { %v7130_v35 = vsel %vm6479_vm6, %v7129_v48, %v7125_v8  ;;  %v7134_v41 = vrot.slane %v15607_v6, %v13272_v15  ;;  %v15608_v5 = vld [vmem:[#allocation67_spill] sm:$0xff]  ;;  %v15609_v8 = vld [vmem:[#allocation41_spill] sm:$0xff]  ;;  %v15616_v6 = vld [vmem:[#allocation146_spill] sm:$0xff] }
 0xdf6   : > { %6407 = vperm.xlu1 %8965, %v5400_v56   ;;  %v7209_v56 = vsel %vm6479_vm6, %v7208_v49, %v7204_v1  ;;  %v7223_v1 = vrot.slane %v15608_v5, %v13287_v23 }
 0xdf7   : > { %v7214_v61 = vsel %vm6486_vm7, %v7213_v44, %v7209_v56  ;;  %v7135_v62 = vsel %vm6486_vm7, %v7134_v41, %v7130_v35  ;;  %v7159_v41 = vrot.slane %v15616_v6, %v13294_v53 }
 0xdf8   : > { %v7219_v0 = vsel %vm6493_vm8, %v7218_v25, %v7214_v61  ;;  %v15611_v25 = vld [vmem:[#allocation101_spill] sm:$0xff] }
 0xdf9   : > { %v7224_v16 = vsel %vm6500_vm9, %v7223_v1, %v7219_v0  ;;  %v7149_v59 = vrot.slane %v15611_v25, %v13275_v54  ;;  %v15617_v61 = vld [vmem:[#allocation33_spill] sm:$0xff] }
 0xdfa   : > { %6401 = vperm.xlu1 %8965, %v5398_v50   ;;  %v5404_v50 = vadd.f32 %v15471_v55, %v14169_v46  ;;  %v5402_v55 = vadd.f32 %v15473_v22, %v14173_v47  ;;  %v15610_v46 = vld [vmem:[#allocation144_spill] sm:$0xff]  ;;  %v5405_v22 = vadd.f32 %v15443_v29, %v14146_v10  ;;  %v14310_v47 = vpop.permute.xlu0 %6293  ;;  %v15621_v10 = vld [vmem:[#allocation35_spill] sm:$0xff] }
 0xdfb   : > { %v7228_v48 = vrot.slane %v15610_v46, %v13275_v54 }
 0xdfd   : > { %v7229_v44 = vsel %vm15612_vm13, %v7228_v48, %v7224_v16  ;;  %vm15619_vm13 = vcmask 851712   ;;  %v15623_v48 = vld [vmem:[#allocation45_spill] sm:$0xff] }
 0xdfe   : > { %v5068_v30 = vpop.xlane.xlu1 %5067  ;;  %6416 = vperm.xlu1 %8965, %v5403_v43   ;;  %v7144_v43 = vrot.slane %v15609_v8, %v13287_v23  ;;  %v7381_v8 = vrot.slane %v14167_v32, %v13287_v23 }
 0xdff   : > { %v5408_v26 = vadd.f32 %v15435_v31, %v5068_v30  ;;  %v7140_v31 = vsel %vm6493_vm8, %v7139_v4, %v7135_v62  ;;  %v15613_v30 = vld [vmem:[#allocation31_spill] sm:$0xff]  ;;  %v7233_v4 = vrot.slane %v15614_v34, %v13284_v27 }
 0xe00   : > { %v7145_v56 = vsel %vm6500_vm9, %v7144_v43, %v7140_v31  ;;  %v7238_v35 = vrot.slane %v15613_v30, %v13294_v53  ;;  %v7243_v31 = vrot.slane %v15621_v10, %v13317_v58 }
 0xe01   : > { %6431 = vperm.xlu0 %8966, %v5408_v26   ;;  %v7150_v26 = vsel %vm15615_vm0, %v7149_v59, %v7145_v56  ;;  %v7234_v0 = vsel %vm15618_vm12, %v7233_v4, %v7229_v44  ;;  %vm15622_vm0 = vmmov %vm15619_vm13  ;;  %v7164_v56 = vrot.slane %v15623_v48, %v13317_v58  ;;  %vm15624_vm12 = vcmask 917312   ;;  %v14335_v44 = vpop.permute.xlu0 %6311 }
 0xe02   : > { %v5064_v49 = vpop.xlane.xlu1 %5063  ;;  %6419 = vperm.xlu1 %8965, %v5404_v50   ;;  %v7154_v50 = vrot.slane %v15617_v61, %v13284_v27  ;;  %v7239_v5 = vsel %vm15619_vm13, %v7238_v35, %v7234_v0  ;;  %v7391_v59 = vrot.slane %v14161_v17, %v13284_v27  ;;  %vm15627_vm13 = vmmov %vm15624_vm12  ;;  %v5407_v35 = vadd.f32 %v15441_v38, %v14138_v52  ;;  %v15629_v17 = vld [vmem:[#allocation6_spill] sm:$0xff]  ;;  %v15631_v0 = vld [vmem:[#allocation149_spill] sm:$0xff] }
 0xe03   : > { %v5406_v43 = vadd.f32 %v15437_v28, %v5064_v49  ;;  %v7244_v25 = vsel %vm15624_vm12, %v7243_v31, %v7239_v5  ;;  %v15625_v49 = vld [vmem:[#allocation55_spill] sm:$0xff]  ;;  %v7169_v4 = vrot.slane %v15629_v17, %v13290_v12  ;;  %v7401_v52 = vrot.slane %v14181_v24, %v13317_v58 }
 0xe04   : > { %v7155_v29 = vsel %vm15620_vm10, %v7154_v50, %v7150_v26  ;;  %vm15626_vm10 = vcmask 720512   ;;  %v15630_v26 = vld [vmem:[#allocation27_spill] sm:$0xff]  ;;  %vm15632_vm12 = vcmask 851712   ;;  %v7411_v31 = vrot.slane %v14175_v11, %v13304_v63 }
 0xe05   : > { %v7160_v16 = vsel %vm15622_vm0, %v7159_v41, %v7155_v29  ;;  %vm15628_vm0 = vcmask 786112   ;;  %v7253_v6 = vrot.slane %v15630_v26, %v13304_v63  ;;  %v14357_v5 = vpop.permute.xlu0 %6305  ;;  %v7420_v11 = vrot.slane %v14202_v3, %v13222_v45 }
 0xe06   : > { %v6225_v20 = vpop.permute.xlu1 %6224  ;;  %6413 = vperm.xlu1 %8965, %v5402_v55   ;;  %v7440_v3 = vrot.slane %v14212_v37, %v13258_v13  ;;  %v7460_v37 = vrot.slane %v14231_v2, %v13287_v23 }
 0xe07   : > { %v7386_v55 = vrot.slane %v6225_v20, %v13275_v54  ;;  %v7248_v20 = vrot.slane %v15625_v49, %v13290_v12 }
 0xe0a   : > { %v6219_v62 = vpop.permute.xlu1 %6218  ;;  %6422 = vperm.xlu1 %8965, %v5405_v22   ;;  %v7249_v22 = vsel %vm6535_vm14, %v7248_v20, %v7244_v25 }
 0xe0b   : > { %v7376_v1 = vrot.slane %v6219_v62, %v13278_v7  ;;  %v7174_v62 = vrot.slane %v15631_v0, %v13304_v63  ;;  %v7254_v38 = vsel %vm6542_vm15, %v7253_v6, %v7249_v22 }
 0xe0d   : > { %v7377_v46 = vsel %vm6493_vm8, %v7376_v1, %v14196_v9  ;;  %v7165_v9 = vsel %vm15627_vm13, %v7164_v56, %v7160_v16  ;;  %v14371_v56 = vpop.permute.xlu0 %6323 }
 0xe0e   : > { %v7382_v32 = vsel %vm6500_vm9, %v7381_v8, %v7377_v46  ;;  %v6237_v28 = vpop.permute.xlu1 %6236  ;;  %6425 = vperm.xlu1 %8965, %v5406_v43   ;;  %v7170_v61 = vsel %vm6535_vm14, %v7169_v4, %v7165_v9 }
 0xe0f   : > { %v7387_v30 = vsel %vm15626_vm10, %v7386_v55, %v7382_v32  ;;  %v7406_v1 = vrot.slane %v6237_v28, %v13290_v12  ;;  %v7175_v10 = vsel %vm6542_vm15, %v7174_v62, %v7170_v61  ;;  %vm15633_vm10 = vmmov %vm15627_vm13  ;;  %vm15634_vm13 = vcmask 1041409  }
 0xe10   : > { %v7392_v34 = vsel %vm15628_vm0, %v7391_v59, %v7387_v30  ;;  %v7743_v16 = vsel %vm15634_vm13, %v7254_v38, %v7175_v10  ;;  %vm15635_vm0 = vcmask 1042434   ;;  %v7430_v28 = vrot.slane %v14192_v21, %v13249_v42 }
 0xe11   : > { %v7744_v24 = vsel %vm15635_vm0, %v14061_v51, %v7743_v16  ;;  %v14382_v9 = vpop.permute.xlu0 %6317  ;;  %v7450_v21 = vrot.slane %v14206_v19, %v13272_v15  ;;  %v7480_v16 = vrot.slane %v14268_v14, %v13317_v58  ;;  %vm15639_vm13 = vcmask 917312  }
 0xe12   : > { %v6231_v41 = vpop.permute.xlu1 %6230  ;;  %6428 = vperm.xlu1 %8965, %v5407_v35   ;;  %vm15640_vm0 = vcmask 1044484   ;;  %v7499_v14 = vrot.slane %v14310_v47, %v13222_v45  ;;  %v7519_v47 = vrot.slane %v14357_v5, %v13258_v13 }
 0xe13   : > { %v7396_v50 = vrot.slane %v6231_v41, %v13294_v53 }
 0xe15   : > { %v7397_v29 = vsel %vm15632_vm12, %v7396_v50, %v7392_v34  ;;  %v14391_v22 = vpop.permute.xlu0 %6335  ;;  %vm15637_vm12 = vcmask 786112  }
 0xe16   : > { %v7402_v8 = vsel %vm15633_vm10, %v7401_v52, %v7397_v29  ;;  %v6249_v43 = vpop.permute.xlu1 %6248  ;;  %v7470_v52 = vrot.slane %v14216_v33, %v13284_v27  ;;  %vm15638_vm10 = vcmask 851712   ;;  %v7490_v33 = vrot.slane %v14251_v18, %v13304_v63 }
 0xe17   : > { %v7407_v55 = vsel %vm6535_vm14, %v7406_v1, %v7402_v8  ;;  %v7425_v32 = vrot.slane %v6249_v43, %v13237_v39  ;;  %v7509_v18 = vrot.slane %v14290_v57, %v13249_v42 }
 0xe18   : > { %v7412_v46 = vsel %vm6542_vm15, %v7411_v31, %v7407_v55 }
 0xe19   : > { %v7745_v48 = vsel %vm7733_vm11, %v7412_v46, %v7744_v24  ;;  %v14399_v62 = vpop.permute.xlu0 %6329  ;;  %vm15636_vm11 = vcmask 720512  }
 0xe1a   : > { %v6243_v25 = vpop.permute.xlu1 %6242 }
 0xe1b   : > { %v7416_v59 = vrot.slane %v6243_v25, %v13229_v40 }
 0xe1d   : > { %v7421_v49 = vsel %vm6444_vm1, %v7420_v11, %v7416_v59  ;;  %v14408_v8 = vpop.permute.xlu0 %6347 }
 0xe1e   : > { %v7426_v51 = vsel %vm6451_vm2, %v7425_v32, %v7421_v49  ;;  %v6261_v20 = vpop.permute.xlu1 %6260 }
 0xe1f   : > { %v7431_v30 = vsel %vm6458_vm3, %v7430_v28, %v7426_v51  ;;  %v7445_v17 = vrot.slane %v6261_v20, %v13246_v36 }
 0xe21   : > { %v6342_v59 = vpop.permute.xlu0 %6341 }
 0xe22   : > { %v6255_v35 = vpop.permute.xlu1 %6254 }
 0xe23   : > { %v7435_v34 = vrot.slane %v6255_v35, %v15582_v60 }
 0xe25   : > { %v7436_v4 = vsel %vm6465_vm4, %v7435_v34, %v7431_v30  ;;  %v14428_v35 = vpop.permute.xlu0 %6359 }
 0xe26   : > { %v7441_v26 = vsel %vm6472_vm5, %v7440_v3, %v7436_v4  ;;  %v6273_v6 = vpop.permute.xlu1 %6272 }
 0xe27   : > { %v7446_v41 = vsel %vm6479_vm6, %v7445_v17, %v7441_v26  ;;  %v7465_v38 = vrot.slane %v6273_v6, %v13275_v54  ;;  %v7529_v6 = vrot.slane %v14335_v44, %v13272_v15  ;;  %v7549_v44 = vrot.slane %v14371_v56, %v13284_v27 }
 0xe28   : > { %v7451_v61 = vsel %vm6486_vm7, %v7450_v21, %v7446_v41  ;;  %v7569_v56 = vrot.slane %v14391_v22, %v13304_v63 }
 0xe29   : > { %v6354_v21 = vpop.permute.xlu0 %6353 }
 0xe2a   : > { %v6267_v50 = vpop.permute.xlu1 %6266 }
 0xe2b   : > { %v7455_v0 = vrot.slane %v6267_v50, %v13278_v7 }
 0xe2d   : > { %v7456_v19 = vsel %vm6493_vm8, %v7455_v0, %v7451_v61 }
 0xe2e   : > { %v7461_v1 = vsel %vm6500_vm9, %v7460_v37, %v7456_v19  ;;  %v6285_v29 = vpop.permute.xlu1 %6284  ;;  %v14442_v37 = vpop.permute.xlu0 %6371  ;;  %v7539_v19 = vrot.slane %v14382_v9, %v13287_v23  ;;  %v7559_v9 = vrot.slane %v14399_v62, %v13317_v58 }
 0xe2f   : > { %v7466_v10 = vsel %vm15636_vm11, %v7465_v38, %v7461_v1  ;;  %v7485_v55 = vrot.slane %v6285_v29, %v13290_v12 }
 0xe30   : > { %v7471_v31 = vsel %vm15637_vm12, %v7470_v52, %v7466_v10 }
 0xe32   : > { %v6279_v43 = vpop.permute.xlu1 %6278 }
 0xe33   : > { %v7475_v2 = vrot.slane %v6279_v43, %v13294_v53  ;;  %v6366_v43 = vpop.permute.xlu0 %6365 }
 0xe35   : > { %v7476_v24 = vsel %vm15638_vm10, %v7475_v2, %v7471_v31 }
 0xe36   : > { %v7481_v46 = vsel %vm15639_vm13, %v7480_v16, %v7476_v24  ;;  %v6297_v25 = vpop.permute.xlu1 %6296 }
 0xe37   : > { %v7486_v11 = vsel %vm6535_vm14, %v7485_v55, %v7481_v46  ;;  %v7504_v20 = vrot.slane %v6297_v25, %v13237_v39  ;;  %v14461_v46 = vpop.permute.xlu0 %6380 }
 0xe38   : > { %v7491_v32 = vsel %vm6542_vm15, %v7490_v33, %v7486_v11 }
 0xe39   : > { %v7746_v28 = vsel %vm15640_vm0, %v7491_v32, %v7745_v48  ;;  %vm15641_vm0 = vcmask 1045509  }
 0xe3a   : > { %v6291_v49 = vpop.permute.xlu1 %6290 }
 0xe3b   : > { %v7495_v51 = vrot.slane %v6291_v49, %v13229_v40 }
 0xe3d   : > { %v7500_v30 = vsel %vm6444_vm1, %v7499_v14, %v7495_v51  ;;  %v6375_v51 = vpop.permute.xlu0 %6374 }
 0xe3e   : > { %v7505_v34 = vsel %vm6451_vm2, %v7504_v20, %v7500_v30  ;;  %v6309_v3 = vpop.permute.xlu1 %6308 }
 0xe3f   : > { %v7510_v48 = vsel %vm6458_vm3, %v7509_v18, %v7505_v34  ;;  %v7524_v26 = vrot.slane %v6309_v3, %v13246_v36 }
 0xe41   : > { %v14469_v18 = vpop.permute.xlu0 %6377 }
 0xe42   : > { %v6303_v17 = vpop.permute.xlu1 %6302 }
 0xe43   : > { %v7514_v4 = vrot.slane %v6303_v17, %v15582_v60  ;;  %v7578_v17 = vrot.slane %v6342_v59, %v13222_v45 }
 0xe45   : > { %v7515_v57 = vsel %vm6465_vm4, %v7514_v4, %v7510_v48  ;;  %v6393_v22 = vpop.permute.xlu0 %6392 }
 0xe46   : > { %v7520_v41 = vsel %vm6472_vm5, %v7519_v47, %v7515_v57  ;;  %v6321_v61 = vpop.permute.xlu1 %6320 }
 0xe47   : > { %v7525_v50 = vsel %vm6479_vm6, %v7524_v26, %v7520_v41  ;;  %v7544_v52 = vrot.slane %v6321_v61, %v13275_v54  ;;  %v7588_v41 = vrot.slane %v14408_v8, %v13249_v42 }
 0xe48   : > { %v7530_v0 = vsel %vm6486_vm7, %v7529_v6, %v7525_v50 }
 0xe49   : > { %v6387_v47 = vpop.permute.xlu0 %6386 }
 0xe4a   : > { %v6315_v38 = vpop.permute.xlu1 %6314  ;;  %v7653_v59 = vrot.slane %v6387_v47, %v13229_v40 }
 0xe4b   : > { %v7534_v5 = vrot.slane %v6315_v38, %v13278_v7 }
 0xe4d   : > { %v7535_v1 = vsel %vm6493_vm8, %v7534_v5, %v7530_v0  ;;  %v6405_v38 = vpop.permute.xlu0 %6404 }
 0xe4e   : > { %v7540_v29 = vsel %vm6500_vm9, %v7539_v19, %v7535_v1  ;;  %v6333_v10 = vpop.permute.xlu1 %6332  ;;  %v7598_v19 = vrot.slane %v6354_v21, %v13258_v13  ;;  %v7608_v21 = vrot.slane %v14428_v35, %v13272_v15 }
 0xe4f   : > { %v7545_v31 = vsel %vm15636_vm11, %v7544_v52, %v7540_v29  ;;  %v7564_v24 = vrot.slane %v6333_v10, %v13290_v12 }
 0xe50   : > { %v7550_v2 = vsel %vm15637_vm12, %v7549_v44, %v7545_v31  ;;  %v7662_v44 = vrot.slane %v6393_v22, %v13237_v39 }
 0xe51   : > { %v6399_v31 = vpop.permute.xlu0 %6398 }
 0xe52   : > { %v6327_v16 = vpop.permute.xlu1 %6326 }
 0xe53   : > { %v7554_v55 = vrot.slane %v6327_v16, %v13294_v53 }
 0xe55   : > { %v7555_v33 = vsel %vm15638_vm10, %v7554_v55, %v7550_v2 }
 0xe56   : > { %v7560_v25 = vsel %vm15639_vm13, %v7559_v9, %v7555_v33  ;;  %v6345_v11 = vpop.permute.xlu1 %6344  ;;  %v7672_v9 = vrot.slane %v6399_v31, %v15582_v60 }
 0xe57   : > { %v7565_v32 = vsel %vm6535_vm14, %v7564_v24, %v7560_v25  ;;  %v7583_v26 = vrot.slane %v6345_v11, %v13237_v39  ;;  %v7618_v25 = vrot.slane %v6366_v43, %v13287_v23  ;;  %v7628_v43 = vrot.slane %v14442_v37, %v13284_v27 }
 0xe58   : > { %v7570_v49 = vsel %vm6542_vm15, %v7569_v56, %v7565_v32  ;;  %v7682_v32 = vrot.slane %v6405_v38, %v13246_v36  ;;  %v7638_v37 = vrot.slane %v14469_v18, %v13317_v58 }
 0xe59   : > { %v14467_v14 = vsel %vm15641_vm0, %v7570_v49, %v7746_v28 }
 0xe5a   : > { %v6339_v62 = vpop.permute.xlu1 %6338 }
 0xe5b   : > { %v7574_v3 = vrot.slane %v6339_v62, %v13229_v40  ;;  %v6411_v62 = vpop.permute.xlu0 %6410 }
 0xe5d   : > { %v7579_v4 = vsel %vm6444_vm1, %v7578_v17, %v7574_v3  ;;  %v7633_v17 = vrot.slane %v6375_v51, %v13294_v53  ;;  %v7643_v51 = vrot.slane %v14461_v46, %v13290_v12 }
 0xe5e   : > { %v6357_v20 = vpop.permute.xlu1 %6356  ;;  %v7584_v57 = vsel %vm6451_vm2, %v7583_v26, %v7579_v4 }
 0xe5f   : > { %v7589_v50 = vsel %vm6458_vm3, %v7588_v41, %v7584_v57  ;;  %v7603_v8 = vrot.slane %v6357_v20, %v13246_v36  ;;  %v7692_v36 = vrot.slane %v6411_v62, %v13278_v7 }
 0xe62   : > { %v6351_v30 = vpop.permute.xlu1 %6350 }
 0xe63   : > { %v7593_v6 = vrot.slane %v6351_v30, %v15582_v60 }
 0xe65   : > { %v7594_v5 = vsel %vm6465_vm4, %v7593_v6, %v7589_v50 }
 0xe66   : > { %v6369_v34 = vpop.permute.xlu1 %6368  ;;  %v7599_v29 = vsel %vm6472_vm5, %v7598_v19, %v7594_v5 }
 0xe67   : > { %v7623_v49 = vrot.slane %v6369_v34, %v13275_v54 }
 0xe6a   : > { %v6363_v48 = vpop.permute.xlu1 %6362 }
 0xe6b   : > { %v7613_v40 = vrot.slane %v6363_v48, %v13278_v7  ;;  %v6384_v7 = vpop.permute.xlu0 %6383 }
 0xe6e   : > { %v6396_v28 = vpop.permute.xlu1 %6395 }
 0xe6f   : > { %v7667_v2 = vrot.slane %v6396_v28, %v13249_v42 }
 0xe72   : > { %v6390_v61 = vpop.permute.xlu1 %6389 }
 0xe73   : > { %v7657_v0 = vrot.slane %v6390_v61, %v13222_v45  ;;  %v7604_v45 = vsel %vm6479_vm6, %v7603_v8, %v7599_v29 }
 0xe74   : > { %v7609_v24 = vsel %vm6486_vm7, %v7608_v21, %v7604_v45 }
 0xe75   : > { %v7658_v52 = vsel %vm6444_vm1, %v7657_v0, %v7653_v59  ;;  %v7614_v33 = vsel %vm6493_vm8, %v7613_v40, %v7609_v24  ;;  %vm15642_vm1 = vmmov %vm15636_vm11  ;;  %v7648_v0 = vrot.slane %v6384_v7, %v13304_v63  ;;  %vm15651_vm11 = vcmask 1047559  }
 0xe76   : > { %v6408_v1 = vpop.permute.xlu1 %6407  ;;  %v7663_v10 = vsel %vm6451_vm2, %v7662_v44, %v7658_v52  ;;  %v7619_v35 = vsel %vm6500_vm9, %v7618_v25, %v7614_v33  ;;  %vm15643_vm2 = vmmov %vm15637_vm12 }
 0xe77   : > { %v7668_v55 = vsel %vm6458_vm3, %v7667_v2, %v7663_v10  ;;  %v7624_v20 = vsel %vm15642_vm1, %v7623_v49, %v7619_v35  ;;  %v7687_v30 = vrot.slane %v6408_v1, %v13272_v15  ;;  %vm15644_vm3 = vmmov %vm15638_vm10 }
 0xe78   : > { %v7673_v11 = vsel %vm6465_vm4, %v7672_v9, %v7668_v55  ;;  %v7629_v48 = vsel %vm15643_vm2, %v7628_v43, %v7624_v20  ;;  %vm15645_vm4 = vmmov %vm15639_vm13 }
 0xe79   : > { %v7634_v47 = vsel %vm15644_vm3, %v7633_v17, %v7629_v48 }
 0xe7a   : > { %v6402_v16 = vpop.permute.xlu1 %6401  ;;  %v7639_v57 = vsel %vm15645_vm4, %v7638_v37, %v7634_v47 }
 0xe7b   : > { %v7677_v39 = vrot.slane %v6402_v16, %v13258_v13 }
 0xe7d   : > { %v7678_v42 = vsel %vm6472_vm5, %v7677_v39, %v7673_v11  ;;  %vm15646_vm5 = vmmov %vm15642_vm1 }
 0xe7e   : > { %v6417_v56 = vpop.permute.xlu1 %6416  ;;  %v7683_v60 = vsel %vm6479_vm6, %v7682_v32, %v7678_v42  ;;  %vm15647_vm6 = vmmov %vm15643_vm2 }
 0xe7f   : > { %v7688_v3 = vsel %vm6486_vm7, %v7687_v30, %v7683_v60  ;;  %v7702_v28 = vrot.slane %v6417_v56, %v13275_v54  ;;  %v7644_v54 = vsel %vm6535_vm14, %v7643_v51, %v7639_v57  ;;  %vm15648_vm7 = vmmov %vm15644_vm3 }
 0xe80   : > { %v7693_v4 = vsel %vm6493_vm8, %v7692_v36, %v7688_v3  ;;  %v6432_v59 = vpop.permute.xlu0 %6431  ;;  %v7649_v46 = vsel %vm6542_vm15, %v7648_v0, %v7644_v54  ;;  %vm15649_vm8 = vmmov %vm15645_vm4 }
 0xe81   : > { %v7727_v5 = vrot.slane %v6432_v59, %v13304_v63 }
 0xe82   : > { %v6420_v13 = vpop.permute.xlu1 %6419 }
 0xe83   : > { %v7707_v6 = vrot.slane %v6420_v13, %v13284_v27 }
 0xe86   : > { %v6414_v22 = vpop.permute.xlu1 %6413 }
 0xe87   : > { %v7697_v34 = vrot.slane %v6414_v22, %v13287_v23 }
 0xe89   : > { %v7698_v15 = vsel %vm6500_vm9, %v7697_v34, %v7693_v4  ;;  %vm15650_vm9 = vcmask 1046534  }
 0xe8a   : > { %v6423_v26 = vpop.permute.xlu1 %6422  ;;  %v7703_v23 = vsel %vm15646_vm5, %v7702_v28, %v7698_v15 }
 0xe8b   : > { %v7712_v61 = vrot.slane %v6423_v26, %v13294_v53  ;;  %v7708_v50 = vsel %vm15647_vm6, %v7707_v6, %v7703_v23 }
 0xe8d   : > { %v7713_v27 = vsel %vm15648_vm7, %v7712_v61, %v7708_v50 }
 0xe8e   : > { %v6426_v41 = vpop.permute.xlu1 %6425 }
 0xe8f   : > { %v7717_v18 = vrot.slane %v6426_v41, %v13317_v58 }
 0xe91   : > { %v7718_v58 = vsel %vm15649_vm8, %v7717_v18, %v7713_v27 }
 0xe92   : > { %v6429_v38 = vpop.permute.xlu1 %6428 }
 0xe93   : > { %v7722_v53 = vrot.slane %v6429_v38, %v13290_v12  ;;  %v7748_v12 = vsel %vm15650_vm9, %v7649_v46, %v14467_v14 }
 0xe95   : > { %v7723_v19 = vsel %vm6535_vm14, %v7722_v53, %v7718_v58 }
 0xe96   : > { %v7728_v52 = vsel %vm6542_vm15, %v7727_v5, %v7723_v19 }
 0xe97   : > { %v7749_v63 = vsel %vm15651_vm11, %v7728_v52, %v7748_v12 }
 0xe98   : > { %7753 = vst [vmem:[%s13778_s14 + $0x8] sm:$0xff] %v7749_v63 }
 0xe99   : > { %10142 = shalt.err (!%p10139_p3)
}
 0xe9a   : > { %s10143_s28 = scalar_lea.hbm %s14542_s22, 256  ;;  %s10147_s4 = scalar_lea.hbm %s14596_s2, 512 }
 0xe9b   : > { %p10144_p4 = scmp.ne.s32.totalorder %s14542_s22, %s10143_s28  ;;  %p10148_p9 = scmp.lt.u32.totalorder %s14542_s22, %s14596_s2 }
 0xe9c   : > { %p10149_p10 = scmp.lt.u32.totalorder %s10147_s4, %s10143_s28  ;;  %p10151_p12 = scmp.lt.u32.totalorder %s10143_s28, %s14542_s22 }
 0xe9d   : > { %p10145_p7 = pnand %p10144_p4, %p10247_p5 }
 0xe9e   : > { %p10150_p11 = por %p10149_p10, %p10148_p9 }
 0xe9f   : > { %p10146_p8 = pneg %p10145_p7 }
 0xea0   : > { %p10152_p13 = por %p10151_p12, %p10150_p11 }
 0xea2   : > { %p10153_p0 = pnand %p10152_p13, %p10146_p8 }
 0xea4   : > { %10156 = shalt.err (!%p10153_p0)
}
 0xea5   : > { %s10195_s7 = smov 128   ;;  %s10196_s8 = smov 8  }
 0xea6   : > { %8923 = dma.vmem_to_hbm [thread:$0]  (%p10247_p5), %s14544_s16, 256, %s14542_s22, %s14553_s24, %s10195_s7, %s10195_s7, %s10196_s8  }
 0xea7 PF: > { %p8929_p1 = scmp.ge.s32.totalorder %s10191_s12, 2  ;;  %s7783_s30 = sand.u32 1, %s10179_s9  }
 0xea8   : > { %s7784_s13 = scalar_lea.sflag [#allocation3], %s7783_s30 }
 0xea9   : > { %p8926_p2 = pnand %p8929_p1, %p10251_p6 }
 0xeab   : > { %10174 = dma.done.wait (!%p8926_p2), %s7784_s13, 256  }
 0xeac   : > { %10176 = vsyncadd (!%p8926_p2), %s7784_s13, 4294967040  ;;  %p12_p3 = scmp.ge.s32.totalorder %s10235_s15, 4   ;;  %s15652_s9 = smov %s10183_s10 }
 0xead   : > { %s15653_s10 = smov %s10187_s11  ;;  %s15654_s11 = smov %s10245_s18 }
 0xeae   : > { %s15655_s12 = smov %s10235_s15  ;;  %14 = sbr.rel (!%p12_p3) target bundleno = 3 (0x3), region = 63 }
 0xeb5   :  { %7789 = vsyncpa [#allocation3], 1 }
 0xeb6   :  { %7791 = vsyncpa [#allocation3 + $0x1], 1 }

</bundles_post_ra>
